<compile_context>
chip_gen: v5e
topology: v5e:2x2
jax: 0.10.0
libtpu: 0.0.40
codegen_flags: <defaults>
</compile_context>

<pallas_src>
import functools
import math

import numpy as np

import jax
import jax.numpy as jnp
from jax.experimental import pallas as pl
from jax.experimental.pallas import tpu as pltpu


# ------------------------------- helpers ------------------------------------


def _layer_norm(x, gamma, beta, eps=1e-5):
    mean = jnp.mean(x, axis=-1, keepdims=True)
    var = jnp.mean(jnp.square(x - mean), axis=-1, keepdims=True)
    return (x - mean) * jax.lax.rsqrt(var + eps) * gamma + beta


def _gelu(x, approx):
    if approx:
        # tanh approximation -> EUP slot (otherwise idle during FF matmuls).
        return jax.nn.gelu(x, approximate=True)
    # nn.GELU() default (approximate='none'): 0.5 * x * (1 + erf(x / sqrt(2)))
    return 0.5 * x * (1.0 + jax.lax.erf(x * (1.0 / math.sqrt(2.0))))


# ------------------------------- kernel ------------------------------------


def transformer_block_kernel(
    xq_ref,                                    # (1, tq, D) f32  (query tile)
    xf_ref,                                    # (1, S, D)  cdt  (full sequence)
    wq_ref, wk_ref, wv_ref,                    # (D, D)     cdt
    bq_ref, bk_ref, bv_ref,                    # (1, D)     f32
    wo_ref, bo_ref,                            # (D, D) cdt, (1, D) f32
    w1_ref, b1_ref,                            # (D, H) cdt, (1, H) f32
    w2_ref, b2_ref,                            # (H, D) cdt, (1, D) f32
    g1_ref, be1_ref, g2_ref, be2_ref,          # (1, D)     f32
    o_ref,                                     # (1, tq, D) f32
    k_cache, v_cache,                          # (S, D)     cdt scratch
    ctx_scr,                                   # (tq, D)    cdt scratch
    *, heads, ff_chunks, approx_recip, approx_gelu,
):
    qi = pl.program_id(1)
    D = xq_ref.shape[2]
    hd = D // heads
    scale = 1.0 / math.sqrt(hd)
    cdt = k_cache.dtype

    # ---- K / V projections: once per batch element, cached across q tiles --
    # CORRECTNESS: this cache is only valid because the q-tile axis is the
    # innermost grid axis, is marked "arbitrary", and qi==0 runs first for
    # every batch element on each core. Do not reorder the grid or mark the
    # q axis "parallel" without removing this cross-qi dependence.
    @pl.when(qi == 0)
    def _():
        xs = xf_ref[0]                                                 # (S, D) cdt
        k_cache[...] = (jnp.dot(xs, wk_ref[...],
                                preferred_element_type=jnp.float32)
                        + bk_ref[...]).astype(cdt)
        v_cache[...] = (jnp.dot(xs, wv_ref[...],
                                preferred_element_type=jnp.float32)
                        + bv_ref[...]).astype(cdt)

    x_q = xq_ref[0]                                                    # (tq, D) f32

    # ---- Q projection; 1/sqrt(hd) folded into q; cast to cdt exactly once --
    q = ((jnp.dot(x_q.astype(cdt), wq_ref[...],
                  preferred_element_type=jnp.float32)
          + bq_ref[...]) * scale).astype(cdt)                          # (tq, D) cdt

    # ---- attention heads ----------------------------------------------------
    # Per-head (tq, S) scores live only inside each iteration; contexts are
    # stored into ctx_scr (no carried f32 accumulator), then one full-depth
    # (tq, D) @ (D, D) output projection.
    for h in range(heads):
        sl = slice(h * hd, (h + 1) * hd)
        s = jax.lax.dot_general(                                       # (tq, S) f32
            q[:, sl], k_cache[:, sl], (((1,), (1,)), ((), ())),
            preferred_element_type=jnp.float32)
        s = s - jnp.max(s, axis=-1, keepdims=True)
        p = jnp.exp(s)
        p = p * pl.reciprocal(jnp.sum(p, axis=-1, keepdims=True),
                              approx=approx_recip)
        ctx = jnp.dot(p.astype(cdt), v_cache[:, sl],
                      preferred_element_type=jnp.float32)              # (tq, hd) f32
        ctx_scr[:, sl] = ctx.astype(cdt)

    attn_out = jnp.dot(ctx_scr[...], wo_ref[...],
                       preferred_element_type=jnp.float32) + bo_ref[...]

    # ---- residual + LayerNorm 1 ---------------------------------------------
    h1 = _layer_norm(x_q + attn_out, g1_ref[...], be1_ref[...])
    h1_c = h1.astype(cdt)                       # cast once, reused per FF chunk

    # ---- feed-forward, hidden dim processed in chunks -----------------------
    H = w1_ref.shape[1]
    th = H // ff_chunks
    ff = None
    for c in range(ff_chunks):
        cs = slice(c * th, (c + 1) * th)
        f1 = jnp.dot(h1_c, w1_ref[:, cs],
                     preferred_element_type=jnp.float32) + b1_ref[:, cs]
        f1 = _gelu(f1, approx_gelu)
        part = jnp.dot(f1.astype(cdt), w2_ref[cs, :],
                       preferred_element_type=jnp.float32)
        ff = part if ff is None else ff + part
    ff = ff + b2_ref[...]

    # ---- residual + LayerNorm 2 ---------------------------------------------
    o_ref[0] = _layer_norm(h1 + ff, g2_ref[...], be2_ref[...]).astype(o_ref.dtype)


# ------------------------------- wrapper ------------------------------------


def transformer_block(x, params, heads, *, q_tile=None, ff_chunks=None,
                      compute_dtype=None):
    B, S, D = x.shape
    H = 4 * D
    assert D % heads == 0

    if q_tile is None:
        # default 256 when S allows (v6e tile sweeps favor >=256-row tiles).
        q_tile = next((c for c in (256, 128, 64, 32, 16, 8) if S % c == 0), S)
    assert S % q_tile == 0 and q_tile % 8 == 0
    nq = S // q_tile

    if ff_chunks is None:
        ff_chunks = 1
        while H // ff_chunks > 2048:          # cap (tq, th) f32 intermediate
            ff_chunks *= 2
    assert H % ff_chunks == 0 and (H // ff_chunks) % 128 == 0

    cdt = compute_dtype if compute_dtype is not None else x.dtype
    cdt_np = np.dtype(cdt)
    # approx reciprocal / tanh-GELU (EUP) on the low-precision production path;
    # exact erf / exact reciprocal on the strict f32 verification path.
    use_approx = cdt_np != np.dtype(jnp.float32)

    def w(name):            # matmul weights in compute dtype (bf16 in prod)
        return params[name].astype(cdt)

    # Full-sequence operand, pre-cast in the wrapper, used only at qi==0.
    x_full = x.astype(cdt)

    kernel = functools.partial(
        transformer_block_kernel, heads=heads, ff_chunks=ff_chunks,
        approx_recip=use_approx, approx_gelu=use_approx)

    def const_spec(shape):  # constant index map across the grid -> 1 buffer
        return pl.BlockSpec(shape, lambda *_: (0,) * len(shape),
                            pipeline_mode=pl.Buffered(1))

    in_specs = [
        pl.BlockSpec((1, q_tile, D), lambda b, qi: (b, qi, 0)),        # x q-tile (f32)
        pl.BlockSpec((1, S, D), lambda b, qi: (b, 0, 0)),              # x full seq (cdt)
        const_spec((D, D)), const_spec((D, D)), const_spec((D, D)),    # wq wk wv
        const_spec((1, D)), const_spec((1, D)), const_spec((1, D)),    # bq bk bv
        const_spec((D, D)), const_spec((1, D)),                        # wo bo
        const_spec((D, H)), const_spec((1, H)),                        # w1 b1
        const_spec((H, D)), const_spec((1, D)),                        # w2 b2
        const_spec((1, D)), const_spec((1, D)),                        # g1 be1
        const_spec((1, D)), const_spec((1, D)),                        # g2 be2
    ]

    # VMEM budget derived from the device: ~100 MiB on v5e/v6e, ~51 MiB on v7x.
    try:
        vmem_cap = int(pltpu.get_tpu_info().vmem_capacity_bytes)
    except Exception:
        vmem_cap = 64 * 1024 * 1024
    vmem_limit = min(int(vmem_cap * 0.8), 100 * 1024 * 1024)

    # advisory cost estimate for XLA's scheduler
    flops = 2 * B * S * D * (12 * D + 2 * S)
    transcendentals = B * S * (heads * S + 4 * D + heads + 2)
    weight_bytes = (4 * D * D + 2 * D * H) * cdt_np.itemsize
    bytes_accessed = (B * S * D * (8 + cdt_np.itemsize)      # x f32 + x cdt + out
                      + weight_bytes + (10 * D + H) * 4)

    return pl.pallas_call(
        kernel,
        out_shape=jax.ShapeDtypeStruct((B, S, D), x.dtype),
        grid_spec=pltpu.PrefetchScalarGridSpec(
            num_scalar_prefetch=0,
            grid=(B, nq),
            in_specs=in_specs,
            out_specs=pl.BlockSpec((1, q_tile, D), lambda b, qi: (b, qi, 0)),
            scratch_shapes=[pltpu.VMEM((S, D), cdt),        # K cache (per batch elem)
                            pltpu.VMEM((S, D), cdt),        # V cache
                            pltpu.VMEM((q_tile, D), cdt)],  # per-head ctx concat
        ),
        compiler_params=pltpu.CompilerParams(
            # batch axis -> megacore; q-tile axis carries the K/V cache state
            # and MUST stay innermost + "arbitrary".
            dimension_semantics=("parallel", "arbitrary"),
            vmem_limit_bytes=vmem_limit,
        ),
        cost_estimate=pl.CostEstimate(
            flops=int(flops),
            transcendentals=int(transcendentals),
            bytes_accessed=int(bytes_accessed)),
    )(
        x, x_full,
        w("wq"), w("wk"), w("wv"),
        params["bq"], params["bk"], params["bv"],
        w("wo"), params["bo"],
        w("w1"), params["b1"], w("w2"), params["b2"],
        params["g1"], params["be1"], params["g2"], params["be2"],
    )


# ------------------------------ reference -----------------------------------


def reference_block(x, p, heads):
    B, S, D = x.shape
    hd = D // heads

    def ln(y, g, b):
        m = y.mean(-1, keepdims=True)
        v = jnp.square(y - m).mean(-1, keepdims=True)
        return (y - m) / jnp.sqrt(v + 1e-5) * g + b

    q = x @ p["wq"] + p["bq"][0]
    k = x @ p["wk"] + p["bk"][0]
    v = x @ p["wv"] + p["bv"][0]
    q = q.reshape(B, S, heads, hd).transpose(0, 2, 1, 3)
    k = k.reshape(B, S, heads, hd).transpose(0, 2, 1, 3)
    v = v.reshape(B, S, heads, hd).transpose(0, 2, 1, 3)
    s = jnp.einsum("bhqd,bhkd->bhqk", q, k) / math.sqrt(hd)
    a = jax.nn.softmax(s, axis=-1)
    o = jnp.einsum("bhqk,bhkd->bhqd", a, v).transpose(0, 2, 1, 3).reshape(B, S, D)
    attn_out = o @ p["wo"] + p["bo"][0]
    h1 = ln(x + attn_out, p["g1"][0], p["be1"][0])
    ff = h1 @ p["w1"] + p["b1"][0]
    ff = 0.5 * ff * (1.0 + jax.lax.erf(ff / math.sqrt(2.0)))
    ff = ff @ p["w2"] + p["b2"][0]
    return ln(h1 + ff, p["g2"][0], p["be2"][0])


# --------------------------------- main -------------------------------------


def init_params(key, dim):
    H = 4 * dim
    ks = jax.random.split(key, 12)
    n = lambda k, shape, s: (s * jax.random.normal(k, shape)).astype(jnp.float32)

    # PyTorch nn.MultiheadAttention: in_proj_weight (3D, D), out_proj (D, D);
    # Linear computes x @ W^T, so we store pre-transposed weights (in, out).
    in_proj_w = n(ks[0], (3 * dim, dim), 0.1)
    in_proj_b = n(ks[1], (3 * dim,), 0.01)
    params = {
        "wq": in_proj_w[:dim].T,
        "wk": in_proj_w[dim:2 * dim].T,
        "wv": in_proj_w[2 * dim:].T,
        "bq": in_proj_b[:dim].reshape(1, dim),
        "bk": in_proj_b[dim:2 * dim].reshape(1, dim),
        "bv": in_proj_b[2 * dim:].reshape(1, dim),
        "wo": n(ks[2], (dim, dim), 0.1).T,
        "bo": n(ks[3], (1, dim), 0.01),
        "w1": n(ks[4], (H, dim), 0.1).T,
        "b1": n(ks[5], (1, H), 0.01),
        "w2": n(ks[6], (dim, H), 0.1).T,
        "b2": n(ks[7], (1, dim), 0.01),
        "g1": 1.0 + n(ks[8], (1, dim), 0.1),
        "be1": n(ks[9], (1, dim), 0.01),
        "g2": 1.0 + n(ks[10], (1, dim), 0.1),
        "be2": n(ks[11], (1, dim), 0.01),
    }
    return {k_: jnp.asarray(v_, jnp.float32) for k_, v_ in params.items()}


if __name__ == "__main__":
    # Lane/sublane-aligned small config: D, 4D multiples of 128; head_dim = 128.
    # q_tile=64 < S so the cached-KV path (qi > 0) is exercised.
    B, S, D, HEADS, TQ = 2, 128, 256, 2, 64

    key = jax.random.PRNGKey(0)
    kx, kp = jax.random.split(key)
    x = jax.random.normal(kx, (B, S, D), dtype=jnp.float32)
    params = init_params(kp, D)

    ref = jax.block_until_ready(reference_block(x, params, HEADS))

    # Strict check: f32 matmuls, exact erf GELU, exact softmax reciprocal.
    out_f32 = jax.block_until_ready(
        transformer_block(x, params, HEADS, q_tile=TQ,
                          compute_dtype=jnp.float32))
    assert out_f32.shape == (B, S, D)
    err32 = float(jnp.max(jnp.abs(out_f32 - ref)))
    assert err32 < 2e-3, f"f32 path max abs err {err32}"

    # Production path: bf16 MXU inputs + f32 accumulation, approx reciprocal,
    # tanh GELU. Tolerance sized for bf16 operand rounding (output is
    # LayerNorm'd, so absolute error is the right metric).
    out_bf16 = jax.block_until_ready(
        transformer_block(x, params, HEADS, q_tile=TQ,
                          compute_dtype=jnp.bfloat16))
    assert out_bf16.shape == (B, S, D)
    errbf = float(jnp.max(jnp.abs(out_bf16 - ref)))
    assert errbf < 0.3, f"bf16 path max abs err {errbf}"

    print("KERNEL_OK")
</pallas_src>

<mosaic_0001>
module attributes {stable_mosaic.version = 11 : i64} {
  func.func @transformer_block_kernel(%arg0: i32, %arg1: i32, %arg2: memref<1x64x256xf32, #tpu.memory_space<vmem>>, %arg3: memref<1x128x256xf32, #tpu.memory_space<vmem>>, %arg4: memref<256x256xf32, #tpu.memory_space<vmem>>, %arg5: memref<256x256xf32, #tpu.memory_space<vmem>>, %arg6: memref<256x256xf32, #tpu.memory_space<vmem>>, %arg7: memref<1x256xf32, #tpu.memory_space<vmem>>, %arg8: memref<1x256xf32, #tpu.memory_space<vmem>>, %arg9: memref<1x256xf32, #tpu.memory_space<vmem>>, %arg10: memref<256x256xf32, #tpu.memory_space<vmem>>, %arg11: memref<1x256xf32, #tpu.memory_space<vmem>>, %arg12: memref<256x1024xf32, #tpu.memory_space<vmem>>, %arg13: memref<1x1024xf32, #tpu.memory_space<vmem>>, %arg14: memref<1024x256xf32, #tpu.memory_space<vmem>>, %arg15: memref<1x256xf32, #tpu.memory_space<vmem>>, %arg16: memref<1x256xf32, #tpu.memory_space<vmem>>, %arg17: memref<1x256xf32, #tpu.memory_space<vmem>>, %arg18: memref<1x256xf32, #tpu.memory_space<vmem>>, %arg19: memref<1x256xf32, #tpu.memory_space<vmem>>, %arg20: memref<1x64x256xf32, #tpu.memory_space<vmem>>, %arg21: memref<128x256xf32, #tpu.memory_space<vmem>>, %arg22: memref<128x256xf32, #tpu.memory_space<vmem>>, %arg23: memref<64x256xf32, #tpu.memory_space<vmem>>) attributes {dimension_semantics = [#tpu.dimension_semantics<parallel>, #tpu.dimension_semantics<arbitrary>], iteration_bounds = array<i64: 2, 2>, scalar_prefetch = 0 : i64, scratch_operands = 3 : i64, tpu.core_type = #tpu.core_type<tc>, window_params = [{transform_indices = @transform_0, window_bounds = array<i64: 1, 64, 256>}, {transform_indices = @transform_1, window_bounds = array<i64: 1, 128, 256>}, {pipeline_mode = #tpu.pipeline_mode<synchronous>, transform_indices = @transform_2, window_bounds = array<i64: 256, 256>}, {pipeline_mode = #tpu.pipeline_mode<synchronous>, transform_indices = @transform_3, window_bounds = array<i64: 256, 256>}, {pipeline_mode = #tpu.pipeline_mode<synchronous>, transform_indices = @transform_4, window_bounds = array<i64: 256, 256>}, {pipeline_mode = #tpu.pipeline_mode<synchronous>, transform_indices = @transform_5, window_bounds = array<i64: 1, 256>}, {pipeline_mode = #tpu.pipeline_mode<synchronous>, transform_indices = @transform_6, window_bounds = array<i64: 1, 256>}, {pipeline_mode = #tpu.pipeline_mode<synchronous>, transform_indices = @transform_7, window_bounds = array<i64: 1, 256>}, {pipeline_mode = #tpu.pipeline_mode<synchronous>, transform_indices = @transform_8, window_bounds = array<i64: 256, 256>}, {pipeline_mode = #tpu.pipeline_mode<synchronous>, transform_indices = @transform_9, window_bounds = array<i64: 1, 256>}, {pipeline_mode = #tpu.pipeline_mode<synchronous>, transform_indices = @transform_10, window_bounds = array<i64: 256, 1024>}, {pipeline_mode = #tpu.pipeline_mode<synchronous>, transform_indices = @transform_11, window_bounds = array<i64: 1, 1024>}, {pipeline_mode = #tpu.pipeline_mode<synchronous>, transform_indices = @transform_12, window_bounds = array<i64: 1024, 256>}, {pipeline_mode = #tpu.pipeline_mode<synchronous>, transform_indices = @transform_13, window_bounds = array<i64: 1, 256>}, {pipeline_mode = #tpu.pipeline_mode<synchronous>, transform_indices = @transform_14, window_bounds = array<i64: 1, 256>}, {pipeline_mode = #tpu.pipeline_mode<synchronous>, transform_indices = @transform_15, window_bounds = array<i64: 1, 256>}, {pipeline_mode = #tpu.pipeline_mode<synchronous>, transform_indices = @transform_16, window_bounds = array<i64: 1, 256>}, {pipeline_mode = #tpu.pipeline_mode<synchronous>, transform_indices = @transform_17, window_bounds = array<i64: 1, 256>}, {transform_indices = @transform_18, window_bounds = array<i64: 1, 64, 256>}]} {
    %c0_i32 = arith.constant 0 : i32
    %0 = arith.cmpi eq, %arg1, %c0_i32 : i32
    %1 = arith.extui %0 : i1 to i32
    %c0_i32_0 = arith.constant 0 : i32
    %2 = arith.cmpi ne, %1, %c0_i32_0 : i32
    scf.if %2 {
      %c0_68 = arith.constant 0 : index
      %c0_69 = arith.constant 0 : index
      %c0_70 = arith.constant 0 : index
      %121 = vector.load %arg3[%c0_68, %c0_69, %c0_70] : memref<1x128x256xf32, #tpu.memory_space<vmem>>, vector<1x128x256xf32>
      %122 = vector.shape_cast %121 : vector<1x128x256xf32> to vector<128x256xf32>
      %c0_71 = arith.constant 0 : index
      %c0_72 = arith.constant 0 : index
      %123 = vector.load %arg5[%c0_71, %c0_72] : memref<256x256xf32, #tpu.memory_space<vmem>>, vector<256x256xf32>
      %cst_73 = arith.constant dense<0.000000e+00> : vector<128x256xf32>
      %124 = tpu.matmul %122, %123, %cst_73 {dimension_numbers = #tpu.dot_dimension_numbers<[1], [0], [0], [1], [0, 0, 1, 1], [], []>} : vector<128x256xf32>, vector<256x256xf32>, vector<128x256xf32> -> vector<128x256xf32>
      %c0_74 = arith.constant 0 : index
      %c0_75 = arith.constant 0 : index
      %125 = vector.load %arg8[%c0_74, %c0_75] : memref<1x256xf32, #tpu.memory_space<vmem>>, vector<1x256xf32>
      %126 = vector.broadcast %125 : vector<1x256xf32> to vector<128x256xf32>
      %127 = arith.addf %124, %126 : vector<128x256xf32>
      %c0_76 = arith.constant 0 : index
      %c0_77 = arith.constant 0 : index
      %128 = vector.load %arg21[%c0_76, %c0_77] : memref<128x256xf32, #tpu.memory_space<vmem>>, vector<128x256xf32>
      tpu.vector_store %arg21[%c0_76, %c0_77], %127 {strides = array<i32>} : memref<128x256xf32, #tpu.memory_space<vmem>>, vector<128x256xf32>,
      %c0_78 = arith.constant 0 : index
      %c0_79 = arith.constant 0 : index
      %129 = vector.load %arg6[%c0_78, %c0_79] : memref<256x256xf32, #tpu.memory_space<vmem>>, vector<256x256xf32>
      %cst_80 = arith.constant dense<0.000000e+00> : vector<128x256xf32>
      %130 = tpu.matmul %122, %129, %cst_80 {dimension_numbers = #tpu.dot_dimension_numbers<[1], [0], [0], [1], [0, 0, 1, 1], [], []>} : vector<128x256xf32>, vector<256x256xf32>, vector<128x256xf32> -> vector<128x256xf32>
      %c0_81 = arith.constant 0 : index
      %c0_82 = arith.constant 0 : index
      %131 = vector.load %arg9[%c0_81, %c0_82] : memref<1x256xf32, #tpu.memory_space<vmem>>, vector<1x256xf32>
      %132 = vector.broadcast %131 : vector<1x256xf32> to vector<128x256xf32>
      %133 = arith.addf %130, %132 : vector<128x256xf32>
      %c0_83 = arith.constant 0 : index
      %c0_84 = arith.constant 0 : index
      %134 = vector.load %arg22[%c0_83, %c0_84] : memref<128x256xf32, #tpu.memory_space<vmem>>, vector<128x256xf32>
      tpu.vector_store %arg22[%c0_83, %c0_84], %133 {strides = array<i32>} : memref<128x256xf32, #tpu.memory_space<vmem>>, vector<128x256xf32>,
    } else {
    }
    %c0 = arith.constant 0 : index
    %c0_1 = arith.constant 0 : index
    %c0_2 = arith.constant 0 : index
    %3 = vector.load %arg2[%c0, %c0_1, %c0_2] : memref<1x64x256xf32, #tpu.memory_space<vmem>>, vector<1x64x256xf32>
    %4 = vector.shape_cast %3 : vector<1x64x256xf32> to vector<64x256xf32>
    %c0_3 = arith.constant 0 : index
    %c0_4 = arith.constant 0 : index
    %5 = vector.load %arg4[%c0_3, %c0_4] : memref<256x256xf32, #tpu.memory_space<vmem>>, vector<256x256xf32>
    %cst = arith.constant dense<0.000000e+00> : vector<64x256xf32>
    %6 = tpu.matmul %4, %5, %cst {dimension_numbers = #tpu.dot_dimension_numbers<[1], [0], [0], [1], [0, 0, 1, 1], [], []>} : vector<64x256xf32>, vector<256x256xf32>, vector<64x256xf32> -> vector<64x256xf32>
    %c0_5 = arith.constant 0 : index
    %c0_6 = arith.constant 0 : index
    %7 = vector.load %arg7[%c0_5, %c0_6] : memref<1x256xf32, #tpu.memory_space<vmem>>, vector<1x256xf32>
    %8 = vector.broadcast %7 : vector<1x256xf32> to vector<64x256xf32>
    %9 = arith.addf %6, %8 : vector<64x256xf32>
    %cst_7 = arith.constant 0.0883883461 : f32
    %10 = vector.broadcast %cst_7 : f32 to vector<64x256xf32>
    %11 = arith.mulf %9, %10 : vector<64x256xf32>
    %12 = vector.extract_strided_slice %11 {offsets = [0, 0], sizes = [64, 128], strides = [1, 1]} : vector<64x256xf32> to vector<64x128xf32>
    %c0_8 = arith.constant 0 : index
    %c0_9 = arith.constant 0 : index
    %13 = vector.load %arg21[%c0_8, %c0_9] : memref<128x256xf32, #tpu.memory_space<vmem>>, vector<128x128xf32>
    %cst_10 = arith.constant dense<0.000000e+00> : vector<64x128xf32>
    %14 = tpu.matmul %12, %13, %cst_10 {dimension_numbers = #tpu.dot_dimension_numbers<[1], [1], [0], [0], [0, 0, 1, 0], [], []>} : vector<64x128xf32>, vector<128x128xf32>, vector<64x128xf32> -> vector<64x128xf32>
    %cst_11 = arith.constant dense<0xFF800000> : vector<64xf32>
    %15 = vector.multi_reduction <maximumf>, %14, %cst_11 [1] : vector<64x128xf32> to vector<64xf32>
    %16 = vector.shape_cast %15 : vector<64xf32> to vector<64x1xf32>
    %17 = vector.broadcast %16 : vector<64x1xf32> to vector<64x128xf32>
    %18 = arith.subf %14, %17 : vector<64x128xf32>
    %19 = math.exp %18 : vector<64x128xf32>
    %cst_12 = arith.constant dense<0.000000e+00> : vector<64xf32>
    %20 = vector.multi_reduction <add>, %19, %cst_12 [1] : vector<64x128xf32> to vector<64xf32>
    %21 = vector.shape_cast %20 : vector<64xf32> to vector<64x1xf32>
    %22 = tpu.reciprocal %21 : vector<64x1xf32> -> vector<64x1xf32>
    %23 = vector.broadcast %22 : vector<64x1xf32> to vector<64x128xf32>
    %24 = arith.mulf %19, %23 : vector<64x128xf32>
    %c0_13 = arith.constant 0 : index
    %c0_14 = arith.constant 0 : index
    %25 = vector.load %arg22[%c0_13, %c0_14] : memref<128x256xf32, #tpu.memory_space<vmem>>, vector<128x128xf32>
    %cst_15 = arith.constant dense<0.000000e+00> : vector<64x128xf32>
    %26 = tpu.matmul %24, %25, %cst_15 {dimension_numbers = #tpu.dot_dimension_numbers<[1], [0], [0], [1], [0, 0, 1, 1], [], []>} : vector<64x128xf32>, vector<128x128xf32>, vector<64x128xf32> -> vector<64x128xf32>
    %c0_16 = arith.constant 0 : index
    %c0_17 = arith.constant 0 : index
    %27 = vector.load %arg23[%c0_16, %c0_17] : memref<64x256xf32, #tpu.memory_space<vmem>>, vector<64x128xf32>
    tpu.vector_store %arg23[%c0_16, %c0_17], %26 {strides = array<i32>} : memref<64x256xf32, #tpu.memory_space<vmem>>, vector<64x128xf32>,
    %28 = vector.extract_strided_slice %11 {offsets = [0, 128], sizes = [64, 128], strides = [1, 1]} : vector<64x256xf32> to vector<64x128xf32>
    %c0_18 = arith.constant 0 : index
    %c128 = arith.constant 128 : index
    %29 = vector.load %arg21[%c0_18, %c128] : memref<128x256xf32, #tpu.memory_space<vmem>>, vector<128x128xf32>
    %cst_19 = arith.constant dense<0.000000e+00> : vector<64x128xf32>
    %30 = tpu.matmul %28, %29, %cst_19 {dimension_numbers = #tpu.dot_dimension_numbers<[1], [1], [0], [0], [0, 0, 1, 0], [], []>} : vector<64x128xf32>, vector<128x128xf32>, vector<64x128xf32> -> vector<64x128xf32>
    %cst_20 = arith.constant dense<0xFF800000> : vector<64xf32>
    %31 = vector.multi_reduction <maximumf>, %30, %cst_20 [1] : vector<64x128xf32> to vector<64xf32>
    %32 = vector.shape_cast %31 : vector<64xf32> to vector<64x1xf32>
    %33 = vector.broadcast %32 : vector<64x1xf32> to vector<64x128xf32>
    %34 = arith.subf %30, %33 : vector<64x128xf32>
    %35 = math.exp %34 : vector<64x128xf32>
    %cst_21 = arith.constant dense<0.000000e+00> : vector<64xf32>
    %36 = vector.multi_reduction <add>, %35, %cst_21 [1] : vector<64x128xf32> to vector<64xf32>
    %37 = vector.shape_cast %36 : vector<64xf32> to vector<64x1xf32>
    %38 = tpu.reciprocal %37 : vector<64x1xf32> -> vector<64x1xf32>
    %39 = vector.broadcast %38 : vector<64x1xf32> to vector<64x128xf32>
    %40 = arith.mulf %35, %39 : vector<64x128xf32>
    %c0_22 = arith.constant 0 : index
    %c128_23 = arith.constant 128 : index
    %41 = vector.load %arg22[%c0_22, %c128_23] : memref<128x256xf32, #tpu.memory_space<vmem>>, vector<128x128xf32>
    %cst_24 = arith.constant dense<0.000000e+00> : vector<64x128xf32>
    %42 = tpu.matmul %40, %41, %cst_24 {dimension_numbers = #tpu.dot_dimension_numbers<[1], [0], [0], [1], [0, 0, 1, 1], [], []>} : vector<64x128xf32>, vector<128x128xf32>, vector<64x128xf32> -> vector<64x128xf32>
    %c0_25 = arith.constant 0 : index
    %c128_26 = arith.constant 128 : index
    %43 = vector.load %arg23[%c0_25, %c128_26] : memref<64x256xf32, #tpu.memory_space<vmem>>, vector<64x128xf32>
    tpu.vector_store %arg23[%c0_25, %c128_26], %42 {strides = array<i32>} : memref<64x256xf32, #tpu.memory_space<vmem>>, vector<64x128xf32>,
    %c0_27 = arith.constant 0 : index
    %c0_28 = arith.constant 0 : index
    %44 = vector.load %arg23[%c0_27, %c0_28] : memref<64x256xf32, #tpu.memory_space<vmem>>, vector<64x256xf32>
    %c0_29 = arith.constant 0 : index
    %c0_30 = arith.constant 0 : index
    %45 = vector.load %arg10[%c0_29, %c0_30] : memref<256x256xf32, #tpu.memory_space<vmem>>, vector<256x256xf32>
    %cst_31 = arith.constant dense<0.000000e+00> : vector<64x256xf32>
    %46 = tpu.matmul %44, %45, %cst_31 {dimension_numbers = #tpu.dot_dimension_numbers<[1], [0], [0], [1], [0, 0, 1, 1], [], []>} : vector<64x256xf32>, vector<256x256xf32>, vector<64x256xf32> -> vector<64x256xf32>
    %c0_32 = arith.constant 0 : index
    %c0_33 = arith.constant 0 : index
    %47 = vector.load %arg11[%c0_32, %c0_33] : memref<1x256xf32, #tpu.memory_space<vmem>>, vector<1x256xf32>
    %48 = vector.broadcast %47 : vector<1x256xf32> to vector<64x256xf32>
    %49 = arith.addf %46, %48 : vector<64x256xf32>
    %50 = arith.addf %4, %49 : vector<64x256xf32>
    %c0_34 = arith.constant 0 : index
    %c0_35 = arith.constant 0 : index
    %51 = vector.load %arg16[%c0_34, %c0_35] : memref<1x256xf32, #tpu.memory_space<vmem>>, vector<1x256xf32>
    %c0_36 = arith.constant 0 : index
    %c0_37 = arith.constant 0 : index
    %52 = vector.load %arg17[%c0_36, %c0_37] : memref<1x256xf32, #tpu.memory_space<vmem>>, vector<1x256xf32>
    %cst_38 = arith.constant dense<0.000000e+00> : vector<64xf32>
    %53 = vector.multi_reduction <add>, %50, %cst_38 [1] : vector<64x256xf32> to vector<64xf32>
    %54 = vector.shape_cast %53 : vector<64xf32> to vector<64x1xf32>
    %cst_39 = arith.constant 2.560000e+02 : f32
    %55 = vector.broadcast %cst_39 : f32 to vector<64x1xf32>
    %56 = arith.divf %54, %55 : vector<64x1xf32>
    %57 = vector.broadcast %56 : vector<64x1xf32> to vector<64x256xf32>
    %58 = arith.subf %50, %57 : vector<64x256xf32>
    %59 = arith.mulf %58, %58 : vector<64x256xf32>
    %cst_40 = arith.constant dense<0.000000e+00> : vector<64xf32>
    %60 = vector.multi_reduction <add>, %59, %cst_40 [1] : vector<64x256xf32> to vector<64xf32>
    %61 = vector.shape_cast %60 : vector<64xf32> to vector<64x1xf32>
    %cst_41 = arith.constant 2.560000e+02 : f32
    %62 = vector.broadcast %cst_41 : f32 to vector<64x1xf32>
    %63 = arith.divf %61, %62 : vector<64x1xf32>
    %64 = vector.broadcast %56 : vector<64x1xf32> to vector<64x256xf32>
    %65 = arith.subf %50, %64 : vector<64x256xf32>
    %cst_42 = arith.constant 9.99999974E-6 : f32
    %66 = vector.broadcast %cst_42 : f32 to vector<64x1xf32>
    %67 = arith.addf %63, %66 : vector<64x1xf32>
    %68 = math.rsqrt %67 : vector<64x1xf32>
    %69 = vector.broadcast %68 : vector<64x1xf32> to vector<64x256xf32>
    %70 = arith.mulf %65, %69 : vector<64x256xf32>
    %71 = vector.broadcast %51 : vector<1x256xf32> to vector<64x256xf32>
    %72 = arith.mulf %70, %71 : vector<64x256xf32>
    %73 = vector.broadcast %52 : vector<1x256xf32> to vector<64x256xf32>
    %74 = arith.addf %72, %73 : vector<64x256xf32>
    %c0_43 = arith.constant 0 : index
    %c0_44 = arith.constant 0 : index
    %75 = vector.load %arg12[%c0_43, %c0_44] : memref<256x1024xf32, #tpu.memory_space<vmem>>, vector<256x1024xf32>
    %cst_45 = arith.constant dense<0.000000e+00> : vector<64x1024xf32>
    %76 = tpu.matmul %74, %75, %cst_45 {dimension_numbers = #tpu.dot_dimension_numbers<[1], [0], [0], [1], [0, 0, 1, 1], [], []>} : vector<64x256xf32>, vector<256x1024xf32>, vector<64x1024xf32> -> vector<64x1024xf32>
    %c0_46 = arith.constant 0 : index
    %c0_47 = arith.constant 0 : index
    %77 = vector.load %arg13[%c0_46, %c0_47] : memref<1x1024xf32, #tpu.memory_space<vmem>>, vector<1x1024xf32>
    %78 = vector.broadcast %77 : vector<1x1024xf32> to vector<64x1024xf32>
    %79 = arith.addf %76, %78 : vector<64x1024xf32>
    %cst_48 = arith.constant 5.000000e-01 : f32
    %80 = vector.broadcast %cst_48 : f32 to vector<64x1024xf32>
    %81 = arith.mulf %80, %79 : vector<64x1024xf32>
    %cst_49 = arith.constant 0.707106769 : f32
    %82 = vector.broadcast %cst_49 : f32 to vector<64x1024xf32>
    %83 = arith.mulf %79, %82 : vector<64x1024xf32>
    %84 = math.erf %83 : vector<64x1024xf32>
    %cst_50 = arith.constant 1.000000e+00 : f32
    %85 = vector.broadcast %cst_50 : f32 to vector<64x1024xf32>
    %86 = arith.addf %85, %84 : vector<64x1024xf32>
    %87 = arith.mulf %81, %86 : vector<64x1024xf32>
    %c0_51 = arith.constant 0 : index
    %c0_52 = arith.constant 0 : index
    %88 = vector.load %arg14[%c0_51, %c0_52] : memref<1024x256xf32, #tpu.memory_space<vmem>>, vector<1024x256xf32>
    %cst_53 = arith.constant dense<0.000000e+00> : vector<64x256xf32>
    %89 = tpu.matmul %87, %88, %cst_53 {dimension_numbers = #tpu.dot_dimension_numbers<[1], [0], [0], [1], [0, 0, 1, 1], [], []>} : vector<64x1024xf32>, vector<1024x256xf32>, vector<64x256xf32> -> vector<64x256xf32>
    %c0_54 = arith.constant 0 : index
    %c0_55 = arith.constant 0 : index
    %90 = vector.load %arg15[%c0_54, %c0_55] : memref<1x256xf32, #tpu.memory_space<vmem>>, vector<1x256xf32>
    %91 = vector.broadcast %90 : vector<1x256xf32> to vector<64x256xf32>
    %92 = arith.addf %89, %91 : vector<64x256xf32>
    %93 = arith.addf %74, %92 : vector<64x256xf32>
    %c0_56 = arith.constant 0 : index
    %c0_57 = arith.constant 0 : index
    %94 = vector.load %arg18[%c0_56, %c0_57] : memref<1x256xf32, #tpu.memory_space<vmem>>, vector<1x256xf32>
    %c0_58 = arith.constant 0 : index
    %c0_59 = arith.constant 0 : index
    %95 = vector.load %arg19[%c0_58, %c0_59] : memref<1x256xf32, #tpu.memory_space<vmem>>, vector<1x256xf32>
    %cst_60 = arith.constant dense<0.000000e+00> : vector<64xf32>
    %96 = vector.multi_reduction <add>, %93, %cst_60 [1] : vector<64x256xf32> to vector<64xf32>
    %97 = vector.shape_cast %96 : vector<64xf32> to vector<64x1xf32>
    %cst_61 = arith.constant 2.560000e+02 : f32
    %98 = vector.broadcast %cst_61 : f32 to vector<64x1xf32>
    %99 = arith.divf %97, %98 : vector<64x1xf32>
    %100 = vector.broadcast %99 : vector<64x1xf32> to vector<64x256xf32>
    %101 = arith.subf %93, %100 : vector<64x256xf32>
    %102 = arith.mulf %101, %101 : vector<64x256xf32>
    %cst_62 = arith.constant dense<0.000000e+00> : vector<64xf32>
    %103 = vector.multi_reduction <add>, %102, %cst_62 [1] : vector<64x256xf32> to vector<64xf32>
    %104 = vector.shape_cast %103 : vector<64xf32> to vector<64x1xf32>
    %cst_63 = arith.constant 2.560000e+02 : f32
    %105 = vector.broadcast %cst_63 : f32 to vector<64x1xf32>
    %106 = arith.divf %104, %105 : vector<64x1xf32>
    %107 = vector.broadcast %99 : vector<64x1xf32> to vector<64x256xf32>
    %108 = arith.subf %93, %107 : vector<64x256xf32>
    %cst_64 = arith.constant 9.99999974E-6 : f32
    %109 = vector.broadcast %cst_64 : f32 to vector<64x1xf32>
    %110 = arith.addf %106, %109 : vector<64x1xf32>
    %111 = math.rsqrt %110 : vector<64x1xf32>
    %112 = vector.broadcast %111 : vector<64x1xf32> to vector<64x256xf32>
    %113 = arith.mulf %108, %112 : vector<64x256xf32>
    %114 = vector.broadcast %94 : vector<1x256xf32> to vector<64x256xf32>
    %115 = arith.mulf %113, %114 : vector<64x256xf32>
    %116 = vector.broadcast %95 : vector<1x256xf32> to vector<64x256xf32>
    %117 = arith.addf %115, %116 : vector<64x256xf32>
    %c0_65 = arith.constant 0 : index
    %c0_66 = arith.constant 0 : index
    %c0_67 = arith.constant 0 : index
    %118 = vector.load %arg20[%c0_65, %c0_66, %c0_67] : memref<1x64x256xf32, #tpu.memory_space<vmem>>, vector<1x64x256xf32>
    %119 = vector.shape_cast %118 : vector<1x64x256xf32> to vector<64x256xf32>
    %120 = vector.shape_cast %117 : vector<64x256xf32> to vector<1x64x256xf32>
    tpu.vector_store %arg20[%c0_65, %c0_66, %c0_67], %120 {strides = array<i32>} : memref<1x64x256xf32, #tpu.memory_space<vmem>>, vector<1x64x256xf32>,
    return
  }
  func.func @transform_0(%arg0: i32, %arg1: i32) -> (i32, i32, i32) {
    %c0_i32 = arith.constant 0 : i32
    %c0_i32_0 = arith.constant 0 : i32
    return %arg0, %arg1, %c0_i32 : i32, i32, i32
  }
  func.func @transform_1(%arg0: i32, %arg1: i32) -> (i32, i32, i32) {
    %c0_i32 = arith.constant 0 : i32
    %c0_i32_0 = arith.constant 0 : i32
    %c0_i32_1 = arith.constant 0 : i32
    return %arg0, %c0_i32, %c0_i32_0 : i32, i32, i32
  }
  func.func @transform_2(%arg0: i32, %arg1: i32) -> (i32, i32) {
    %c0_i32 = arith.constant 0 : i32
    %c0_i32_0 = arith.constant 0 : i32
    %c0_i32_1 = arith.constant 0 : i32
    return %c0_i32, %c0_i32_0 : i32, i32
  }
  func.func @transform_3(%arg0: i32, %arg1: i32) -> (i32, i32) {
    %c0_i32 = arith.constant 0 : i32
    %c0_i32_0 = arith.constant 0 : i32
    %c0_i32_1 = arith.constant 0 : i32
    return %c0_i32, %c0_i32_0 : i32, i32
  }
  func.func @transform_4(%arg0: i32, %arg1: i32) -> (i32, i32) {
    %c0_i32 = arith.constant 0 : i32
    %c0_i32_0 = arith.constant 0 : i32
    %c0_i32_1 = arith.constant 0 : i32
    return %c0_i32, %c0_i32_0 : i32, i32
  }
  func.func @transform_5(%arg0: i32, %arg1: i32) -> (i32, i32) {
    %c0_i32 = arith.constant 0 : i32
    %c0_i32_0 = arith.constant 0 : i32
    %c0_i32_1 = arith.constant 0 : i32
    return %c0_i32, %c0_i32_0 : i32, i32
  }
  func.func @transform_6(%arg0: i32, %arg1: i32) -> (i32, i32) {
    %c0_i32 = arith.constant 0 : i32
    %c0_i32_0 = arith.constant 0 : i32
    %c0_i32_1 = arith.constant 0 : i32
    return %c0_i32, %c0_i32_0 : i32, i32
  }
  func.func @transform_7(%arg0: i32, %arg1: i32) -> (i32, i32) {
    %c0_i32 = arith.constant 0 : i32
    %c0_i32_0 = arith.constant 0 : i32
    %c0_i32_1 = arith.constant 0 : i32
    return %c0_i32, %c0_i32_0 : i32, i32
  }
  func.func @transform_8(%arg0: i32, %arg1: i32) -> (i32, i32) {
    %c0_i32 = arith.constant 0 : i32
    %c0_i32_0 = arith.constant 0 : i32
    %c0_i32_1 = arith.constant 0 : i32
    return %c0_i32, %c0_i32_0 : i32, i32
  }
  func.func @transform_9(%arg0: i32, %arg1: i32) -> (i32, i32) {
    %c0_i32 = arith.constant 0 : i32
    %c0_i32_0 = arith.constant 0 : i32
    %c0_i32_1 = arith.constant 0 : i32
    return %c0_i32, %c0_i32_0 : i32, i32
  }
  func.func @transform_10(%arg0: i32, %arg1: i32) -> (i32, i32) {
    %c0_i32 = arith.constant 0 : i32
    %c0_i32_0 = arith.constant 0 : i32
    %c0_i32_1 = arith.constant 0 : i32
    return %c0_i32, %c0_i32_0 : i32, i32
  }
  func.func @transform_11(%arg0: i32, %arg1: i32) -> (i32, i32) {
    %c0_i32 = arith.constant 0 : i32
    %c0_i32_0 = arith.constant 0 : i32
    %c0_i32_1 = arith.constant 0 : i32
    return %c0_i32, %c0_i32_0 : i32, i32
  }
  func.func @transform_12(%arg0: i32, %arg1: i32) -> (i32, i32) {
    %c0_i32 = arith.constant 0 : i32
    %c0_i32_0 = arith.constant 0 : i32
    %c0_i32_1 = arith.constant 0 : i32
    return %c0_i32, %c0_i32_0 : i32, i32
  }
  func.func @transform_13(%arg0: i32, %arg1: i32) -> (i32, i32) {
    %c0_i32 = arith.constant 0 : i32
    %c0_i32_0 = arith.constant 0 : i32
    %c0_i32_1 = arith.constant 0 : i32
    return %c0_i32, %c0_i32_0 : i32, i32
  }
  func.func @transform_14(%arg0: i32, %arg1: i32) -> (i32, i32) {
    %c0_i32 = arith.constant 0 : i32
    %c0_i32_0 = arith.constant 0 : i32
    %c0_i32_1 = arith.constant 0 : i32
    return %c0_i32, %c0_i32_0 : i32, i32
  }
  func.func @transform_15(%arg0: i32, %arg1: i32) -> (i32, i32) {
    %c0_i32 = arith.constant 0 : i32
    %c0_i32_0 = arith.constant 0 : i32
    %c0_i32_1 = arith.constant 0 : i32
    return %c0_i32, %c0_i32_0 : i32, i32
  }
  func.func @transform_16(%arg0: i32, %arg1: i32) -> (i32, i32) {
    %c0_i32 = arith.constant 0 : i32
    %c0_i32_0 = arith.constant 0 : i32
    %c0_i32_1 = arith.constant 0 : i32
    return %c0_i32, %c0_i32_0 : i32, i32
  }
  func.func @transform_17(%arg0: i32, %arg1: i32) -> (i32, i32) {
    %c0_i32 = arith.constant 0 : i32
    %c0_i32_0 = arith.constant 0 : i32
    %c0_i32_1 = arith.constant 0 : i32
    return %c0_i32, %c0_i32_0 : i32, i32
  }
  func.func @transform_18(%arg0: i32, %arg1: i32) -> (i32, i32, i32) {
    %c0_i32 = arith.constant 0 : i32
    %c0_i32_0 = arith.constant 0 : i32
    return %arg0, %arg1, %c0_i32 : i32, i32, i32
  }
}

</mosaic_0001>

<bundles_post_ra>
// kernel: tpu_custom_call.1
= control target key start
LH: loop header
LB: loop body
LE: loop exit
PB: predicated region body
PF: predicated region fallthrough
CT: control target
= control target key end

     0   :  { %s14436_s0 = inlined_call_operand.hbm [shape: f32[2,128,256], index: 0, kind: input, shape index: {}]   ;;  %s14437_s1 = inlined_call_operand.hbm [shape: f32[2,128,256], index: 1, kind: input, shape index: {}]   ;;  %s14438_s2 = inlined_call_operand.hbm [shape: f32[256,256], index: 2, kind: input, shape index: {}]   ;;  %s14439_s3 = inlined_call_operand.hbm [shape: f32[256,256], index: 3, kind: input, shape index: {}]   ;;  %s14440_s4 = inlined_call_operand.hbm [shape: f32[256,256], index: 4, kind: input, shape index: {}]   ;;  %s14441_s5 = inlined_call_operand.vmem [shape: f32[1,256], index: 5, kind: input, shape index: {}]   ;;  %s14442_s6 = inlined_call_operand.hbm [shape: f32[1,256], index: 6, kind: input, shape index: {}]   ;;  %s14443_s7 = inlined_call_operand.hbm [shape: f32[1,256], index: 7, kind: input, shape index: {}]   ;;  %s14444_s8 = inlined_call_operand.hbm [shape: f32[256,256], index: 8, kind: input, shape index: {}]   ;;  %s14445_s9 = inlined_call_operand.hbm [shape: f32[1,256], index: 9, kind: input, shape index: {}]   ;;  %s14446_s10 = inlined_call_operand.hbm [shape: f32[256,1024], index: 10, kind: input, shape index: {}]   ;;  %s14447_s11 = inlined_call_operand.vmem [shape: f32[1,1024], index: 11, kind: input, shape index: {}]   ;;  %s14448_s12 = inlined_call_operand.hbm [shape: f32[1024,256], index: 12, kind: input, shape index: {}]   ;;  %s14449_s13 = inlined_call_operand.vmem [shape: f32[1,256], index: 13, kind: input, shape index: {}]   ;;  %s14450_s14 = inlined_call_operand.hbm [shape: f32[1,256], index: 14, kind: input, shape index: {}]   ;;  %s14451_s15 = inlined_call_operand.vmem [shape: f32[1,256], index: 15, kind: input, shape index: {}]   ;;  %s14452_s16 = inlined_call_operand.hbm [shape: f32[1,256], index: 16, kind: input, shape index: {}]   ;;  %s14453_s17 = inlined_call_operand.vmem [shape: f32[1,256], index: 17, kind: input, shape index: {}]   ;;  %s14454_s18 = inlined_call_operand.hbm [shape: f32[2,128,256], index: 18, kind: output, shape index: {}]  }
   0x1   :  { %14594 = sst [smem:[#allocation118_spill]] %s14436_s0 }
   0x2   :  { %14595 = sst [smem:[#allocation119_spill]] %s14437_s1 }
   0x3   :  { %14596 = sst [smem:[#allocation120_spill]] %s14438_s2 }
   0x4   :  { %14597 = sst [smem:[#allocation121_spill]] %s14439_s3 }
   0x5   :  { %14598 = sst [smem:[#allocation122_spill]] %s14440_s4 }
   0x6   :  { %14599 = sst [smem:[#allocation123_spill]] %s14441_s5 }
   0x7   :  { %14600 = sst [smem:[#allocation124_spill]] %s14442_s6 }
   0x8   :  { %14601 = sst [smem:[#allocation125_spill]] %s14443_s7 }
   0x9   :  { %14602 = sst [smem:[#allocation126_spill]] %s14444_s8 }
   0xa   :  { %14603 = sst [smem:[#allocation127_spill]] %s14445_s9 }
   0xb   :  { %14604 = sst [smem:[#allocation128_spill]] %s14446_s10 }
   0xc   :  { %14605 = sst [smem:[#allocation129_spill]] %s14447_s11 }
   0xd   :  { %14606 = sst [smem:[#allocation130_spill]] %s14448_s12 }
   0xe   :  { %14607 = sst [smem:[#allocation131_spill]] %s14449_s13 }
   0xf   :  { %14608 = sst [smem:[#allocation132_spill]] %s14450_s14 }
  0x10   :  { %14609 = sst [smem:[#allocation133_spill]] %s14451_s15 }
  0x11   :  { %14610 = sst [smem:[#allocation134_spill]] %s14452_s16 }
  0x12   :  { %14611 = sst [smem:[#allocation135_spill]] %s14453_s17 }
  0x13   :  { %14612 = sst [smem:[#allocation136_spill]] %s14454_s18 }
  0x14   :  { %23 = vsyncpa [#allocation6], 0 }
  0x15   :  { %25 = vsyncpa [#allocation6 + $0x1], 0 }
  0x16   :  { %26 = vsyncpa [#allocation9], 0 }
  0x17   :  { %28 = vsyncpa [#allocation9 + $0x1], 0 }
  0x18   :  { %29 = vsyncpa [#allocation12], 0 }
  0x19   :  { %30 = vsyncpa [#allocation15], 0 }
  0x1a   :  { %31 = vsyncpa [#allocation18], 0 }
  0x1b   :  { %32 = vsyncpa [#allocation21], 0 }
  0x1c   :  { %33 = vsyncpa [#allocation24], 0 }
  0x1d   :  { %34 = vsyncpa [#allocation7], 0 }
  0x1e   :  { %36 = vsyncpa [#allocation7 + $0x1], 0  ;;  %s9384_s27 = smov 0   ;;  %s9386_s28 = smov 0  }
  0x1f   :  { %s9388_s29 = smov 0   ;;  %s9390_s30 = smov 0  }
  0x20   :  { %s9392_s0 = smov 0   ;;  %s9394_s19 = smov 0  }
  0x21   :  { %s9396_s1 = smov 0   ;;  %s9398_s20 = smov 0  }
  0x22   :  { %s9400_s21 = smov 0   ;;  %s9402_s22 = smov 0  }
  0x23   :  { %s9404_s2 = smov 0  }
  0x24 LB: > { %14613 = sst [smem:[#allocation36_spill]] %s9229_s27  ;;  %s9440_s23 = sadd.s32 4294967295, %s9269_s2   ;;  %s9269_s2 = sphi %s9404_s2, %s42_s2   ;;  %s9265_s22 = sphi %s9402_s22, %s15059_s22   ;;  %s9261_s21 = sphi %s9400_s21, %s15052_s21   ;;  %s9257_s20 = sphi %s9398_s20, %s15058_s20   ;;  %s9253_s1 = sphi %s9396_s1, %s15051_s1   ;;  %s9249_s19 = sphi %s9394_s19, %s15057_s19   ;;  %s9245_s0 = sphi %s9392_s0, %s15056_s0   ;;  %s9241_s30 = sphi %s9390_s30, %s15055_s30   ;;  %s9237_s29 = sphi %s9388_s29, %s15054_s29   ;;  %s9233_s28 = sphi %s9386_s28, %s15050_s28   ;;  %s9229_s27 = sphi %s9384_s27, %s15049_s27  }
  0x25   : > { %14614 = sst [smem:[#allocation37_spill]] %s9233_s28  ;;  %p8147_p0 = scmp.ge.s32.totalorder %s9269_s2, 1 }
  0x26   : > { %14615 = sst [smem:[#allocation38_spill]] %s9237_s29  ;;  %p77_p1 = scmp.eq.s32.totalorder %s9440_s23, 0 }
  0x27   : > { %14616 = sst [smem:[#allocation39_spill]] %s9253_s1  ;;  %p477_p2 = scmp.lt.s32.totalorder %s9269_s2, 5 }
  0x28   : > { %14617 = sst [smem:[#allocation40_spill]] %s9257_s20  ;;  %s9271_s17 = smov [#allocation10]  }
  0x29   : > { %14618 = sst [smem:[#allocation41_spill]] %s9261_s21  ;;  %p9448_p3 = pnand %p8147_p0, %p477_p2 }
  0x2a   : > { %s14619_s26 = sld [smem:[#allocation120_spill]]  ;;  %s490_s13 = sshll.u32 %s9271_s17, 4  ;;  %s491_s13 = int_to_ptr.vmem [resolvable:$true] %s490_s13 }
  0x2b   : > { %s14620_s20 = scalar_select %p9448_p3, 1, 0 }
  0x2c   : > { %p8308_p4 = pneg %p9448_p3  ;;  %s14623_s3 = sld [smem:[#allocation121_spill]] }
  0x2d   : > { %14621 = sst [smem:[#allocation42_spill]] %s14620_s20  ;;  %s14461_s25 = smov 256  }
  0x2e   : > { %p9456_p5 = pnand %p8308_p4, %p77_p1  ;;  %s9274_s17 = smov [#allocation11]  }
  0x2f   : > { %s504_s1 = sshll.u32 %s9274_s17, 4  ;;  %s14624_s6 = sld [smem:[#allocation124_spill]]  ;;  %s505_s1 = int_to_ptr.vmem [resolvable:$true] %s504_s1 }
  0x30   : > { %s488_s18 = sshll.u32 %s14619_s26, 4  ;;  %s14463_s26 = smov 16   ;;  %s489_s18 = int_to_ptr.hbm [resolvable:$true] %s488_s18 }
  0x31   : > { %8311 = dma.hbm_to_vmem [thread:$0]  (!%p9456_p5), %s489_s18, 8192, %s491_s13, [#allocation9], %s14461_s25, %s14461_s25, %s14463_s26  }
  0x32   : > { %s502_s24 = sshll.u32 %s14623_s3, 4  ;;  %s14625_s8 = sld [smem:[#allocation126_spill]]  ;;  %s503_s24 = int_to_ptr.hbm [resolvable:$true] %s502_s24 }
  0x33   : > { %8314 = dma.hbm_to_vmem [thread:$0]  (!%p9456_p5), %s503_s24, 8192, %s505_s1, [#allocation12], %s14461_s25, %s14461_s25, %s14463_s26  }
  0x34   : > { %s9275_s29 = smov [#allocation14]   ;;  %s9276_s18 = smov [#allocation17]  }
  0x35   : > { %s534_s28 = sshll.u32 %s14624_s6, 4  ;;  %s536_s13 = sshll.u32 %s9275_s29, 4  ;;  %s535_s28 = int_to_ptr.hbm [resolvable:$true] %s534_s28  ;;  %s537_s13 = int_to_ptr.vmem [resolvable:$true] %s536_s13 }
  0x36   : > { %8320 = dma.hbm_to_vmem [thread:$0]  (!%p9456_p5), %s535_s28, 32, %s537_s13, [#allocation15]  }
  0x37   : > { %s559_s27 = sshll.u32 %s9276_s18, 4  ;;  %s14626_s10 = sld [smem:[#allocation128_spill]]  ;;  %s560_s27 = int_to_ptr.vmem [resolvable:$true] %s559_s27 }
  0x38   : > { %s557_s3 = sshll.u32 %s14625_s8, 4  ;;  %s9277_s29 = smov [#allocation20]   ;;  %s558_s3 = int_to_ptr.hbm [resolvable:$true] %s557_s3 }
  0x39   : > { %8326 = dma.hbm_to_vmem [thread:$0]  (!%p9456_p5), %s558_s3, 8192, %s560_s27, [#allocation18], %s14461_s25, %s14461_s25, %s14463_s26  }
  0x3a   : > { %s585_s1 = sshll.u32 %s9277_s29, 4  ;;  %s14627_s14 = sld [smem:[#allocation132_spill]]  ;;  %s586_s1 = int_to_ptr.vmem [resolvable:$true] %s585_s1 }
  0x3b   : > { %s9278_s15 = smov 1024   ;;  %s9279_s13 = smov 64  }
  0x3c   : > { %s9280_s18 = smov [#allocation23]   ;;  %s14628_s4 = sld [smem:[#allocation122_spill]] }
  0x3d   : > { %s583_s6 = sshll.u32 %s14626_s10, 4  ;;  %s620_s20 = sshll.u32 %s9280_s18, 4  ;;  %s584_s6 = int_to_ptr.hbm [resolvable:$true] %s583_s6  ;;  %s621_s20 = int_to_ptr.vmem [resolvable:$true] %s620_s20 }
  0x3e   : > { %8332 = dma.hbm_to_vmem [thread:$0]  (!%p9456_p5), %s584_s6, 32768, %s586_s1, [#allocation21], %s9278_s15, %s9278_s15, %s9279_s13  }
  0x3f   : > { %s14629_s7 = sld [smem:[#allocation125_spill]]  ;;  %s9281_s5 = smov [#allocation13]  }
  0x40   : > { %s618_s28 = sshll.u32 %s14627_s14, 4  ;;  %s518_s25 = sshll.u32 %s9281_s5, 4  ;;  %s619_s28 = int_to_ptr.hbm [resolvable:$true] %s618_s28  ;;  %s519_s25 = int_to_ptr.vmem [resolvable:$true] %s518_s25 }
  0x41   : > { %8338 = dma.hbm_to_vmem [thread:$0]  (!%p9456_p5), %s619_s28, 32, %s621_s20, [#allocation24]  }
  0x42   : > { %s516_s3 = sshll.u32 %s14628_s4, 4  ;;  %s14630_s6 = smov 256   ;;  %s517_s3 = int_to_ptr.hbm [resolvable:$true] %s516_s3 }
  0x43   : > { %8317 = dma.hbm_to_vmem [thread:$0]  (!%p9456_p5), %s517_s3, 8192, %s519_s25, [#allocation12], %s14630_s6, %s14630_s6, %s14463_s26  }
  0x44   : > { %s9282_s8 = smov [#allocation16]   ;;  %s14631_s9 = sld [smem:[#allocation127_spill]] }
  0x45   : > { %s546_s24 = sshll.u32 %s14629_s7, 4  ;;  %s548_s1 = sshll.u32 %s9282_s8, 4  ;;  %s547_s24 = int_to_ptr.hbm [resolvable:$true] %s546_s24  ;;  %s549_s1 = int_to_ptr.vmem [resolvable:$true] %s548_s1 }
  0x46   : > { %8323 = dma.hbm_to_vmem [thread:$0]  (!%p9456_p5), %s547_s24, 32, %s549_s1, [#allocation15]  }
  0x47   : > { %s14632_s12 = sld [smem:[#allocation130_spill]]  ;;  %s9283_s27 = smov [#allocation19]  }
  0x48   : > { %s574_s25 = sshll.u32 %s9283_s27, 4  ;;  %s9284_s3 = smov [#allocation22]   ;;  %s575_s25 = int_to_ptr.vmem [resolvable:$true] %s574_s25 }
  0x49   : > { %s602_s29 = sshll.u32 %s9284_s3, 4  ;;  %s14633_s16 = sld [smem:[#allocation134_spill]]  ;;  %s603_s29 = int_to_ptr.vmem [resolvable:$true] %s602_s29 }
  0x4a   : > { %s572_s28 = sshll.u32 %s14631_s9, 4  ;;  %s9285_s1 = smov [#allocation25]   ;;  %s573_s28 = int_to_ptr.hbm [resolvable:$true] %s572_s28 }
  0x4b   : > { %8329 = dma.hbm_to_vmem [thread:$0]  (!%p9456_p5), %s573_s28, 32, %s575_s25, [#allocation18]  }
  0x4c   : > { %s635_s15 = sshll.u32 %s9285_s1, 4  ;;  %s8146_s13 = sadd.s32 4294967294, %s9269_s2   ;;  %s636_s15 = int_to_ptr.vmem [resolvable:$true] %s635_s15 }
  0x4d   : > { %s600_s17 = sshll.u32 %s14632_s12, 4  ;;  %s51_s28 = sadd.s32 1, %s9261_s21  ;;  %s601_s17 = int_to_ptr.hbm [resolvable:$true] %s600_s17 }
  0x4e   : > { %8335 = dma.hbm_to_vmem [thread:$0]  (!%p9456_p5), %s601_s17, 32768, %s603_s29, [#allocation21], %s14630_s6, %s14630_s6, %s14463_s26  }
  0x4f   : > { %s633_s8 = sshll.u32 %s14633_s16, 4  ;;  %s54_s18 = sadd.s32 1, %s9265_s22  ;;  %s634_s8 = int_to_ptr.hbm [resolvable:$true] %s633_s8 }
  0x50   : > { %8341 = dma.hbm_to_vmem [thread:$0]  (!%p9456_p5), %s634_s8, 32, %s636_s15, [#allocation24]  }
  0x51   : > { %p52_p6 = scmp.ge.s32.totalorder %s51_s28, 2  ;;  %s63_s20 = sadd.s32 1, %s9249_s19 }
  0x52   : > { %p70_p7 = scmp.ne.s32.totalorder %s9249_s19, %s9245_s0  ;;  %p71_p8 = scmp.eq.s32.totalorder %s9269_s2, 0 }
  0x53   : > { %s15061_s28 = smov (%p52_p6, %s51_s28), 0  ;;  %s15063_s18 = smov (!%p52_p6, %s54_s18), %s9265_s22 }
  0x54   : > { %14634 = sst [smem:[#allocation43_spill]] %s15061_s28  ;;  %s59_s17 = ssub.s32 %s9261_s21, %s15061_s28 }
  0x55   : > { %p9541_p9 = por %p71_p8, %p70_p7  ;;  %p56_p10 = scmp.ge.s32.totalorder %s15063_s18, 2 }
  0x56   : > { %p76_p11 = scmp.ne.s32.totalorder %s9245_s0, %s9241_s30  ;;  %p464_p12 = scmp.eq.s32.totalorder %s9440_s23, 3 }
  0x57   : > { %p470_p13 = scmp.eq.s32.totalorder %s8146_s13, 3  ;;  %s15065_s18 = smov (%p56_p10, %s15063_s18), 0 }
  0x58   : > { %14636 = sst [smem:[#allocation44_spill]] %s15065_s18  ;;  %p9552_p0 = por %p77_p1, %p76_p11 }
  0x59   : > { %p9556_p2 = por %p464_p12, %p70_p7  ;;  %s58_s3 = ssub.s32 %s9265_s22, %s15065_s18 }
  0x5a   : > { %p9562_p4 = por %p470_p13, %p76_p11  ;;  %s60_s24 = sor.u32 %s59_s17, %s58_s3 }
  0x5b   : > { %p87_p5 = scmp.eq.s32.totalorder %s58_s3, 0  ;;  %p61_p6 = scmp.eq.s32.totalorder %s60_s24, 0 }
  0x5c   : > { %p8364_p10 = scmp.lt.s32.totalorder %s9269_s2, 4  ;;  %s649_s5 = sand.u32 1, %s9249_s19  }
  0x5d   : > { %s14640_s8 = sld [smem:[#allocation38_spill]]  ;;  %s8255_s1 = sshll.u32 %s9261_s21, 4 }
  0x5e   : > { %s9570_s15 = scalar_select %p61_p6, %s9249_s19, %s63_s20  }
  0x5f   : > { %s14641_s13 = sld [smem:[#allocation37_spill]]  ;;  %s8160_s26 = sshll.u32 %s649_s5, 7 }
  0x60   : > { %s14642_s4 = sld [smem:[#allocation36_spill]]  ;;  %s8163_s7 = sshll.u32 %s9265_s22, 5 }
  0x61   : > { %s659_s9 = sadd.s32 %s8255_s1, %s8163_s7  ;;  %s653_s10 = scalar_lea.vmem [#allocation5], %s8160_s26 }
  0x62   : > { %s664_s17 = sshll.u32 %s653_s10, 4  ;;  %s8164_s24 = sshll.u32 %s659_s9, 3  ;;  %s665_s17 = int_to_ptr.vmem [resolvable:$true] %s664_s17 }
  0x63   : > { %s14643_s16 = sld [smem:[#allocation118_spill]]  ;;  %p8343_p7 = pnand %p8364_p10, %p9541_p9 }
  0x64   : > { %s650_s28 = scalar_lea.sflag [#allocation6], %s649_s5  ;;  %s14644_s21 = smov 16  }
  0x65   : > { %s89_s7 = sadd.s32 1, %s14640_s8  ;;  %p96_p11 = scmp.ne.s32.totalorder %s14640_s8, %s14641_s13 }
  0x66   : > { %s9586_s9 = scalar_select %p87_p5, %s14640_s8, %s89_s7  }
  0x67   : > { %p102_p12 = scmp.ne.s32.totalorder %s14641_s13, %s14642_s4  ;;  %s674_s10 = sand.u32 1, %s9269_s2  }
  0x68   : > { %s676_s12 = sand.u32 1, %s14640_s8   ;;  %p98_p13 = por %p96_p11, %p71_p8 }
  0x69   : > { %s661_s20 = scalar_lea.hbm %s14643_s16, %s8164_s24  ;;  %p9598_p9 = por %p102_p12, %p77_p1 }
  0x6a   : > { %s662_s18 = sshll.u32 %s661_s20, 4  ;;  %s8165_s16 = sshll.u32 %s676_s12, 8  ;;  %s663_s18 = int_to_ptr.hbm [resolvable:$true] %s662_s18 }
  0x6b   : > { %8345 = dma.hbm_to_vmem [thread:$0]  (!%p8343_p7), %s663_s18, 2048, %s665_s17, %s650_s28, %s14630_s6, %s14630_s6, %s14644_s21  }
  0x6c   : > { %s8256_s26 = sshll.u32 %s9265_s22, 8  ;;  %s14646_s18 = sld [smem:[#allocation119_spill]] }
  0x6d   : > { %s678_s5 = scalar_lea.vmem [#allocation8], %s8165_s16  ;;  %p8346_p5 = pnand %p8364_p10, %p98_p13 }
  0x6e   : > { %s686_s1 = sshll.u32 %s678_s5, 4  ;;  %s675_s4 = scalar_lea.sflag [#allocation9], %s674_s10  ;;  %s687_s1 = int_to_ptr.vmem [resolvable:$true] %s686_s1 }
  0x70   : > { %698 = sbr.rel (%p9448_p3) target bundleno = 3162 (0xc5a), region = 92 }
  0x72   : > { %s683_s3 = scalar_lea.hbm %s14646_s18, %s8256_s26 }
  0x73   : > { %s684_s17 = sshll.u32 %s683_s3, 4  ;;  %s685_s17 = int_to_ptr.hbm [resolvable:$true] %s684_s17 }
  0x74   : > { %8348 = dma.hbm_to_vmem [thread:$0]  (!%p8346_p5), %s685_s17, 4096, %s687_s1, %s675_s4, %s14630_s6, %s14630_s6, %s14644_s21  }
  0x75   : > { %s9614_s13 = sand.u32 1, %s9245_s0  }
  0x76   : > { %s8169_s24 = sshll.u32 %s9614_s13, 7  ;;  %s701_s20 = scalar_lea.sflag [#allocation6], %s9614_s13 }
  0x77   : > { %s9618_s7 = scalar_lea.vmem [#allocation5], %s8169_s24 }
  0x78   : > { %9192 = dma.done.wait (%p9552_p0), %s701_s20, 2048  }
  0x79   : > { %9194 = vsyncadd (%p9552_p0), %s701_s20, 4294965248  ;;  %s14648_s21 = sld [smem:[#allocation37_spill]]  ;;  %s710_s6 = sand.u32 1, %s9440_s23  }
  0x7a   : > { %s711_s16 = scalar_lea.sflag [#allocation9], %s710_s6 }
  0x7f   : > { %s712_s10 = sand.u32 1, %s14648_s21  }
  0x80   : > { %s8170_s12 = sshll.u32 %s712_s10, 8 }
  0x81   : > { %s9626_s26 = scalar_lea.vmem [#allocation8], %s8170_s12 }
  0x82   : > { %9196 = dma.done.wait (%p9598_p9), %s711_s16, 4096  }
  0x83   : > { %9198 = vsyncadd (%p9598_p9), %s711_s16, 4294963200 }
  0x84   : > { %9200 = dma.done.wait (%p77_p1), [#allocation9], 8192  }
  0x85   : > { %9202 = vsyncadd (%p77_p1), [#allocation9], 4294959104 }
  0x86   : > { %9204 = dma.done.wait (%p77_p1), [#allocation12], 16384  }
  0x87   : > { %9206 = vsyncadd (%p77_p1), [#allocation12], 4294950912 }
  0x88   : > { %9208 = dma.done.wait (%p77_p1), [#allocation15], 64  }
  0x89   : > { %9210 = vsyncadd (%p77_p1), [#allocation15], 4294967232 }
  0x8a   : > { %9212 = dma.done.wait (%p77_p1), [#allocation18], 8224  }
  0x8b   : > { %9214 = vsyncadd (%p77_p1), [#allocation18], 4294959072 }
  0x8c   : > { %9216 = dma.done.wait (%p77_p1), [#allocation21], 65536  }
  0x8d   : > { %9218 = vsyncadd (%p77_p1), [#allocation21], 4294901760 }
  0x8e   : > { %9220 = dma.done.wait (%p77_p1), [#allocation24], 64  }
  0x8f   : > { %9222 = vsyncadd (%p77_p1), [#allocation24], 4294967232  ;;  %s9656_s27 = scalar_lea.vmem [#allocation26], %s8169_s24  ;;  %s14649_s14 = sld [smem:[#allocation39_spill]] }
  0x95   : > { %p8183_p3 = scmp.ne.s32.totalorder %s14649_s14, 0 }
  0x97   : > { %833 = sbr.rel (%p8183_p3) target bundleno = 573 (0x23d), region = 148 }
  0x9c   : > { %v897_v0 = vld [vmem:[#allocation11 + $0xf8] sm:$0xff]  ;;  %v895_v1 = vld [vmem:[#allocation11 + $0xe8] sm:$0xff]  ;;  %v896_v4 = vld [vmem:[#allocation11 + $0xf0] sm:$0xff] }
  0x9d   : > { %v929_v2 = vld [vmem:[#allocation11 + $0x1f8] sm:$0xff]  ;;  %1066 = vmatpush.msra.mxu2 %v897_v0  ;;  %v927_v3 = vld [vmem:[#allocation11 + $0x1e8] sm:$0xff]  ;;  %936 = vmatpush.msra.mxu0 %v896_v4  ;;  %v894_v7 = vld [vmem:[#allocation11 + $0xe0] sm:$0xff] }
  0x9e   : > { %1131 = vmatpush.msra.mxu3 %v929_v2  ;;  %v893_v5 = vld [vmem:[#allocation11 + $0xd8] sm:$0xff]  ;;  %v891_v8 = vld [vmem:[#allocation11 + $0xc8] sm:$0xff]  ;;  %v928_v9 = vld [vmem:[#allocation11 + $0x1f0] sm:$0xff] }
  0x9f   : > { %v925_v6 = vld [vmem:[#allocation11 + $0x1d8] sm:$0xff]  ;;  %1067 = vmatpush.msra.mxu2 %v895_v1  ;;  %937 = vmatpush.msra.mxu0 %v894_v7  ;;  %v923_v10 = vld [vmem:[#allocation11 + $0x1c8] sm:$0xff]  ;;  %v892_v11 = vld [vmem:[#allocation11 + $0xd0] sm:$0xff] }
  0xa0   : > { %1132 = vmatpush.msra.mxu3 %v927_v3  ;;  %1001 = vmatpush.msra.mxu1 %v928_v9  ;;  %v926_v12 = vld [vmem:[#allocation11 + $0x1e0] sm:$0xff]  ;;  %v924_v14 = vld [vmem:[#allocation11 + $0x1d0] sm:$0xff]  ;;  %v889_v15 = vld [vmem:[#allocation11 + $0xb8] sm:$0xff] }
  0xa1   : > { %1068 = vmatpush.msra.mxu2 %v893_v5  ;;  %v890_v13 = vld [vmem:[#allocation11 + $0xc0] sm:$0xff]  ;;  %938 = vmatpush.msra.mxu0 %v892_v11  ;;  %v921_v16 = vld [vmem:[#allocation11 + $0x1b8] sm:$0xff]  ;;  %v888_v17 = vld [vmem:[#allocation11 + $0xb0] sm:$0xff] }
  0xa2   : > { %1133 = vmatpush.msra.mxu3 %v925_v6  ;;  %1002 = vmatpush.msra.mxu1 %v926_v12  ;;  %v922_v18 = vld [vmem:[#allocation11 + $0x1c0] sm:$0xff]  ;;  %v887_v19 = vld [vmem:[#allocation11 + $0xa8] sm:$0xff]  ;;  %v920_v22 = vld [vmem:[#allocation11 + $0x1b0] sm:$0xff] }
  0xa3   : > { %1069 = vmatpush.msra.mxu2 %v891_v8  ;;  %939 = vmatpush.msra.mxu0 %v890_v13  ;;  %v919_v20 = vld [vmem:[#allocation11 + $0x1a8] sm:$0xff]  ;;  %v886_v21 = vld [vmem:[#allocation11 + $0xa0] sm:$0xff]  ;;  %v885_v23 = vld [vmem:[#allocation11 + $0x98] sm:$0xff] }
  0xa4   : > { %1134 = vmatpush.msra.mxu3 %v923_v10  ;;  %1003 = vmatpush.msra.mxu1 %v924_v14  ;;  %v917_v24 = vld [vmem:[#allocation11 + $0x198] sm:$0xff]  ;;  %v884_v25 = vld [vmem:[#allocation11 + $0x90] sm:$0xff]  ;;  %v918_v26 = vld [vmem:[#allocation11 + $0x1a0] sm:$0xff] }
  0xa5   : > { %1070 = vmatpush.msra.mxu2 %v889_v15  ;;  %940 = vmatpush.msra.mxu0 %v888_v17  ;;  %v883_v27 = vld [vmem:[#allocation11 + $0x88] sm:$0xff]  ;;  %v882_v29 = vld [vmem:[#allocation11 + $0x80] sm:$0xff]  ;;  %v916_v30 = vld [vmem:[#allocation11 + $0x190] sm:$0xff] }
  0xa6   : > { %1135 = vmatpush.msra.mxu3 %v921_v16  ;;  %1004 = vmatpush.msra.mxu1 %v922_v18  ;;  %v915_v28 = vld [vmem:[#allocation11 + $0x188] sm:$0xff]  ;;  %v881_v31 = vld [vmem:[#allocation11 + $0x78] sm:$0xff]  ;;  %v880_v33 = vld [vmem:[#allocation11 + $0x70] sm:$0xff] }
  0xa7   : > { %1071 = vmatpush.msra.mxu2 %v887_v19  ;;  %941 = vmatpush.msra.mxu0 %v886_v21  ;;  %v913_v32 = vld [vmem:[#allocation11 + $0x178] sm:$0xff]  ;;  %v914_v34 = vld [vmem:[#allocation11 + $0x180] sm:$0xff]  ;;  %v879_v35 = vld [vmem:[#allocation11 + $0x68] sm:$0xff] }
  0xa8   : > { %1136 = vmatpush.msra.mxu3 %v919_v20  ;;  %1005 = vmatpush.msra.mxu1 %v920_v22  ;;  %v911_v36 = vld [vmem:[#allocation11 + $0x168] sm:$0xff]  ;;  %v878_v37 = vld [vmem:[#allocation11 + $0x60] sm:$0xff]  ;;  %v912_v38 = vld [vmem:[#allocation11 + $0x170] sm:$0xff] }
  0xa9   : > { %1072 = vmatpush.msra.mxu2 %v885_v23  ;;  %942 = vmatpush.msra.mxu0 %v884_v25  ;;  %v877_v39 = vld [vmem:[#allocation11 + $0x58] sm:$0xff]  ;;  %v876_v41 = vld [vmem:[#allocation11 + $0x50] sm:$0xff]  ;;  %v910_v42 = vld [vmem:[#allocation11 + $0x160] sm:$0xff] }
  0xaa   : > { %1137 = vmatpush.msra.mxu3 %v917_v24  ;;  %1006 = vmatpush.msra.mxu1 %v918_v26  ;;  %v909_v40 = vld [vmem:[#allocation11 + $0x158] sm:$0xff]  ;;  %v875_v43 = vld [vmem:[#allocation11 + $0x48] sm:$0xff]  ;;  %v874_v45 = vld [vmem:[#allocation11 + $0x40] sm:$0xff] }
  0xab   : > { %1073 = vmatpush.msra.mxu2 %v883_v27  ;;  %943 = vmatpush.msra.mxu0 %v882_v29  ;;  %v907_v44 = vld [vmem:[#allocation11 + $0x148] sm:$0xff]  ;;  %v908_v46 = vld [vmem:[#allocation11 + $0x150] sm:$0xff]  ;;  %v873_v47 = vld [vmem:[#allocation11 + $0x38] sm:$0xff] }
  0xac   : > { %1138 = vmatpush.msra.mxu3 %v915_v28  ;;  %1007 = vmatpush.msra.mxu1 %v916_v30  ;;  %v905_v48 = vld [vmem:[#allocation11 + $0x138] sm:$0xff]  ;;  %v872_v49 = vld [vmem:[#allocation11 + $0x30] sm:$0xff]  ;;  %v906_v50 = vld [vmem:[#allocation11 + $0x140] sm:$0xff] }
  0xad   : > { %1074 = vmatpush.msra.mxu2 %v881_v31  ;;  %944 = vmatpush.msra.mxu0 %v880_v33  ;;  %v871_v51 = vld [vmem:[#allocation11 + $0x28] sm:$0xff]  ;;  %v870_v53 = vld [vmem:[#allocation11 + $0x20] sm:$0xff]  ;;  %v904_v54 = vld [vmem:[#allocation11 + $0x130] sm:$0xff] }
  0xae   : > { %1139 = vmatpush.msra.mxu3 %v913_v32  ;;  %1008 = vmatpush.msra.mxu1 %v914_v34  ;;  %v903_v52 = vld [vmem:[#allocation11 + $0x128] sm:$0xff]  ;;  %v869_v55 = vld [vmem:[#allocation11 + $0x18] sm:$0xff]  ;;  %v868_v57 = vld [vmem:[#allocation11 + $0x10] sm:$0xff] }
  0xaf   : > { %1075 = vmatpush.msra.mxu2 %v879_v35  ;;  %945 = vmatpush.msra.mxu0 %v878_v37  ;;  %v901_v56 = vld [vmem:[#allocation11 + $0x118] sm:$0xff]  ;;  %v902_v58 = vld [vmem:[#allocation11 + $0x120] sm:$0xff]  ;;  %v867_v59 = vld [vmem:[#allocation11 + $0x8] sm:$0xff] }
  0xb0   : > { %1140 = vmatpush.msra.mxu3 %v911_v36  ;;  %1009 = vmatpush.msra.mxu1 %v912_v38  ;;  %v899_v60 = vld [vmem:[#allocation11 + $0x108] sm:$0xff]  ;;  %v9660_v61 = vld [vmem:[%s9626_s26] sm:$0xff]  ;;  %v1259_v63 = vld [vmem:[#allocation13 + $0xf8] sm:$0xff] }
  0xb1   : > { %1076 = vmatpush.msra.mxu2 %v877_v39  ;;  %946 = vmatpush.msra.mxu0 %v876_v41  ;;  %v9663_v62 = vld [vmem:[%s9626_s26 + $0x8] sm:$0xff]  ;;  %v1291_v0 = vld [vmem:[#allocation13 + $0x1f8] sm:$0xff]  ;;  %v866_v1 = vld [vmem:[#allocation11] sm:$0xff] }
  0xb2   : > { %1141 = vmatpush.msra.mxu3 %v909_v40  ;;  %1010 = vmatpush.msra.mxu1 %v910_v42  ;;  %v900_v2 = vld [vmem:[#allocation11 + $0x110] sm:$0xff]  ;;  %v1257_v3 = vld [vmem:[#allocation13 + $0xe8] sm:$0xff]  ;;  %v898_v5 = vld [vmem:[#allocation11 + $0x100] sm:$0xff] }
  0xb3   : > { %1077 = vmatpush.msra.mxu2 %v875_v43  ;;  %947 = vmatpush.msra.mxu0 %v874_v45  ;;  %v1258_v4 = vld [vmem:[#allocation13 + $0xf0] sm:$0xff]  ;;  %v1289_v6 = vld [vmem:[#allocation13 + $0x1e8] sm:$0xff]  ;;  %v1256_v8 = vld [vmem:[#allocation13 + $0xe0] sm:$0xff] }
  0xb4   : > { %1142 = vmatpush.msra.mxu3 %v907_v44  ;;  %1011 = vmatpush.msra.mxu1 %v908_v46  ;;  %v1290_v7 = vld [vmem:[#allocation13 + $0x1f0] sm:$0xff]  ;;  %v1255_v9 = vld [vmem:[#allocation13 + $0xd8] sm:$0xff]  ;;  %v1288_v13 = vld [vmem:[#allocation13 + $0x1e0] sm:$0xff] }
  0xb5   : > { %1078 = vmatpush.msra.mxu2 %v873_v47  ;;  %948 = vmatpush.msra.mxu0 %v872_v49  ;;  %v1287_v10 = vld [vmem:[#allocation13 + $0x1d8] sm:$0xff]  ;;  %v9670_v11 = vld [vmem:[%s9626_s26 + $0x10] sm:$0xff]  ;;  %v1253_v15 = vld [vmem:[#allocation13 + $0xc8] sm:$0xff] }
  0xb6   : > { %1143 = vmatpush.msra.mxu3 %v905_v48  ;;  %1012 = vmatpush.msra.mxu1 %v906_v50  ;;  %v9673_v12 = vld [vmem:[%s9626_s26 + $0x18] sm:$0xff]  ;;  %v1254_v14 = vld [vmem:[#allocation13 + $0xd0] sm:$0xff]  ;;  %v1285_v16 = vld [vmem:[#allocation13 + $0x1c8] sm:$0xff] }
  0xb7   : > { %1079 = vmatpush.msra.mxu2 %v871_v51  ;;  %949 = vmatpush.msra.mxu0 %v870_v53  ;;  %v1286_v17 = vld [vmem:[#allocation13 + $0x1d0] sm:$0xff]  ;;  %v1252_v18 = vld [vmem:[#allocation13 + $0xc0] sm:$0xff]  ;;  %v1251_v19 = vld [vmem:[#allocation13 + $0xb8] sm:$0xff] }
  0xb8   : > { %1144 = vmatpush.msra.mxu3 %v903_v52  ;;  %1013 = vmatpush.msra.mxu1 %v904_v54  ;;  %v1283_v20 = vld [vmem:[#allocation13 + $0x1b8] sm:$0xff]  ;;  %v1284_v21 = vld [vmem:[#allocation13 + $0x1c0] sm:$0xff]  ;;  %v1250_v22 = vld [vmem:[#allocation13 + $0xb0] sm:$0xff] }
  0xb9   : > { %1080 = vmatpush.msra.mxu2 %v869_v55  ;;  %950 = vmatpush.msra.mxu0 %v868_v57  ;;  %v1249_v23 = vld [vmem:[#allocation13 + $0xa8] sm:$0xff]  ;;  %v9680_v25 = vld [vmem:[%s9626_s26 + $0x20] sm:$0xff]  ;;  %v1282_v27 = vld [vmem:[#allocation13 + $0x1b0] sm:$0xff] }
  0xba   : > { %1145 = vmatpush.msra.mxu3 %v901_v56  ;;  %1014 = vmatpush.msra.mxu1 %v902_v58  ;;  %v1281_v24 = vld [vmem:[#allocation13 + $0x1a8] sm:$0xff]  ;;  %v1248_v28 = vld [vmem:[#allocation13 + $0xa0] sm:$0xff]  ;;  %v1247_v30 = vld [vmem:[#allocation13 + $0x98] sm:$0xff] }
  0xbb   : > { %1081 = vmatpush.msra.mxu2 %v867_v59  ;;  %951 = vmatpush.msra.mxu0 %v866_v1  ;;  %v9683_v26 = vld [vmem:[%s9626_s26 + $0x28] sm:$0xff]  ;;  %v1280_v29 = vld [vmem:[#allocation13 + $0x1a0] sm:$0xff]  ;;  %v1279_v31 = vld [vmem:[#allocation13 + $0x198] sm:$0xff] }
  0xbc   : > { %1146 = vmatpush.msra.mxu3 %v899_v60  ;;  %1082 = vmatmul.f32.vlgmr.msra.gmra.mxu2 %v9660_v61  ;;  %v1246_v32 = vld [vmem:[#allocation13 + $0x90] sm:$0xff]  ;;  %v9693_v34 = vld [vmem:[%s9626_s26 + $0x38] sm:$0xff]  ;;  %v1245_v36 = vld [vmem:[#allocation13 + $0x88] sm:$0xff] }
  0xbd   : > { %1147 = vmatmul.f32.vlgmr.msra.gmra.mxu3 %v9663_v62  ;;  %1428 = vmatpush.msrb.mxu2 %v1259_v63  ;;  %v9690_v33 = vld [vmem:[%s9626_s26 + $0x30] sm:$0xff]  ;;  %v1277_v37 = vld [vmem:[#allocation13 + $0x188] sm:$0xff]  ;;  %v1244_v38 = vld [vmem:[#allocation13 + $0x80] sm:$0xff] }
  0xbe   : > { %1493 = vmatpush.msrb.mxu3 %v1291_v0  ;;  %1015 = vmatpush.msra.mxu1 %v900_v2  ;;  %v1278_v35 = vld [vmem:[#allocation13 + $0x190] sm:$0xff]  ;;  %v9700_v39 = vld [vmem:[%s9626_s26 + $0x40] sm:$0xff]  ;;  %v9703_v40 = vld [vmem:[%s9626_s26 + $0x48] sm:$0xff] }
  0xbf   : > { %952 = vmatmul.f32.vlgmr.msra.gmra.mxu0 %v9660_v61  ;;  %1429 = vmatpush.msrb.mxu2 %v1257_v3  ;;  %v1276_v41 = vld [vmem:[#allocation13 + $0x180] sm:$0xff]  ;;  %v1243_v42 = vld [vmem:[#allocation13 + $0x78] sm:$0xff]  ;;  %v1242_v44 = vld [vmem:[#allocation13 + $0x70] sm:$0xff] }
  0xc0   : > { %1298 = vmatpush.msrb.mxu0 %v1258_v4  ;;  %1016 = vmatpush.msra.mxu1 %v898_v5  ;;  %v1275_v43 = vld [vmem:[#allocation13 + $0x178] sm:$0xff]  ;;  %v9710_v45 = vld [vmem:[%s9626_s26 + $0x50] sm:$0xff]  ;;  %v1241_v48 = vld [vmem:[#allocation13 + $0x68] sm:$0xff] }
  0xc1   : > { %1017 = vmatmul.f32.vlgmr.msra.gmra.mxu1 %v9663_v62  ;;  %1494 = vmatpush.msrb.mxu3 %v1289_v6  ;;  %v9713_v46 = vld [vmem:[%s9626_s26 + $0x58] sm:$0xff]  ;;  %v1274_v47 = vld [vmem:[#allocation13 + $0x170] sm:$0xff]  ;;  %v1273_v49 = vld [vmem:[#allocation13 + $0x168] sm:$0xff] }
  0xc2   : > { %1363 = vmatpush.msrb.mxu1 %v1290_v7  ;;  %1299 = vmatpush.msrb.mxu0 %v1256_v8  ;;  %v1240_v50 = vld [vmem:[#allocation13 + $0x60] sm:$0xff]  ;;  %v9723_v52 = vld [vmem:[%s9626_s26 + $0x68] sm:$0xff]  ;;  %v1239_v54 = vld [vmem:[#allocation13 + $0x58] sm:$0xff] }
  0xc3   : > { %1430 = vmatpush.msrb.mxu2 %v1255_v9  ;;  %1495 = vmatpush.msrb.mxu3 %v1287_v10  ;;  %v9720_v51 = vld [vmem:[%s9626_s26 + $0x60] sm:$0xff]  ;;  %v1271_v55 = vld [vmem:[#allocation13 + $0x158] sm:$0xff]  ;;  %v1238_v56 = vld [vmem:[#allocation13 + $0x50] sm:$0xff] }
  0xc4   : > { %1085 = vmatmul.f32.gmra.mxu2 %v9670_v11  ;;  %1364 = vmatpush.msrb.mxu1 %v1288_v13  ;;  %v1272_v53 = vld [vmem:[#allocation13 + $0x160] sm:$0xff]  ;;  %v9730_v57 = vld [vmem:[%s9626_s26 + $0x70] sm:$0xff]  ;;  %v9733_v58 = vld [vmem:[%s9626_s26 + $0x78] sm:$0xff] }
  0xc5   : > { %1150 = vmatmul.f32.gmra.mxu3 %v9673_v12  ;;  %1300 = vmatpush.msrb.mxu0 %v1254_v14  ;;  %v1270_v59 = vld [vmem:[#allocation13 + $0x150] sm:$0xff]  ;;  %v1237_v60 = vld [vmem:[#allocation13 + $0x48] sm:$0xff]  ;;  %v1236_v0 = vld [vmem:[#allocation13 + $0x40] sm:$0xff] }
  0xc6   : > { %1431 = vmatpush.msrb.mxu2 %v1253_v15  ;;  %1496 = vmatpush.msrb.mxu3 %v1285_v16  ;;  %v1269_v63 = vld [vmem:[#allocation13 + $0x148] sm:$0xff]  ;;  %v9740_v1 = vld [vmem:[%s9626_s26 + $0x80] sm:$0xff]  ;;  %v1235_v4 = vld [vmem:[#allocation13 + $0x38] sm:$0xff] }
  0xc7   : > { %955 = vmatmul.f32.gmra.mxu0 %v9670_v11  ;;  %1365 = vmatpush.msrb.mxu1 %v1286_v17  ;;  %v9743_v2 = vld [vmem:[%s9626_s26 + $0x88] sm:$0xff]  ;;  %v1268_v3 = vld [vmem:[#allocation13 + $0x140] sm:$0xff]  ;;  %v1267_v5 = vld [vmem:[#allocation13 + $0x138] sm:$0xff] }
  0xc8   : > { %1301 = vmatpush.msrb.mxu0 %v1252_v18  ;;  %1432 = vmatpush.msrb.mxu2 %v1251_v19  ;;  %v1234_v6 = vld [vmem:[#allocation13 + $0x30] sm:$0xff]  ;;  %v9753_v8 = vld [vmem:[%s9626_s26 + $0x98] sm:$0xff]  ;;  %v1233_v10 = vld [vmem:[#allocation13 + $0x28] sm:$0xff] }
  0xc9   : > { %1020 = vmatmul.f32.gmra.mxu1 %v9673_v12  ;;  %1497 = vmatpush.msrb.mxu3 %v1283_v20  ;;  %v9750_v7 = vld [vmem:[%s9626_s26 + $0x90] sm:$0xff]  ;;  %v1265_v13 = vld [vmem:[#allocation13 + $0x128] sm:$0xff]  ;;  %v1232_v14 = vld [vmem:[#allocation13 + $0x20] sm:$0xff] }
  0xca   : > { %1366 = vmatpush.msrb.mxu1 %v1284_v21  ;;  %1302 = vmatpush.msrb.mxu0 %v1250_v22  ;;  %v1266_v9 = vld [vmem:[#allocation13 + $0x130] sm:$0xff]  ;;  %v9760_v15 = vld [vmem:[%s9626_s26 + $0xa0] sm:$0xff]  ;;  %v9763_v16 = vld [vmem:[%s9626_s26 + $0xa8] sm:$0xff] }
  0xcb   : > { %1433 = vmatpush.msrb.mxu2 %v1249_v23  ;;  %1498 = vmatpush.msrb.mxu3 %v1281_v24  ;;  %v1264_v17 = vld [vmem:[#allocation13 + $0x120] sm:$0xff]  ;;  %v1231_v18 = vld [vmem:[#allocation13 + $0x18] sm:$0xff]  ;;  %v1230_v20 = vld [vmem:[#allocation13 + $0x10] sm:$0xff] }
  0xcc   : > { %1088 = vmatmul.f32.gmra.mxu2 %v9680_v25  ;;  %1367 = vmatpush.msrb.mxu1 %v1282_v27  ;;  %v1263_v19 = vld [vmem:[#allocation13 + $0x118] sm:$0xff]  ;;  %v9770_v21 = vld [vmem:[%s9626_s26 + $0xb0] sm:$0xff]  ;;  %v1229_v24 = vld [vmem:[#allocation13 + $0x8] sm:$0xff] }
  0xcd   : > { %1153 = vmatmul.f32.gmra.mxu3 %v9683_v26  ;;  %1303 = vmatpush.msrb.mxu0 %v1248_v28  ;;  %v9773_v22 = vld [vmem:[%s9626_s26 + $0xb8] sm:$0xff]  ;;  %v1262_v23 = vld [vmem:[#allocation13 + $0x110] sm:$0xff]  ;;  %v1261_v27 = vld [vmem:[#allocation13 + $0x108] sm:$0xff] }
  0xce   : > { %1434 = vmatpush.msrb.mxu2 %v1247_v30  ;;  %1499 = vmatpush.msrb.mxu3 %v1279_v31  ;;  %v1228_v28 = vld [vmem:[#allocation13] sm:$0xff]  ;;  %v9783_v30 = vld [vmem:[%s9626_s26 + $0xc8] sm:$0xff] }
  0xcf   : > { %958 = vmatmul.f32.gmra.mxu0 %v9680_v25  ;;  %1368 = vmatpush.msrb.mxu1 %v1280_v29  ;;  %v9780_v29 = vld [vmem:[%s9626_s26 + $0xc0] sm:$0xff] }
  0xd0   : > { %1304 = vmatpush.msrb.mxu0 %v1246_v32  ;;  %1435 = vmatpush.msrb.mxu2 %v1245_v36  ;;  %v1260_v31 = vld [vmem:[#allocation13 + $0x100] sm:$0xff]  ;;  %v9790_v32 = vld [vmem:[%s9626_s26 + $0xd0] sm:$0xff] }
  0xd1   : > { %1023 = vmatmul.f32.gmra.mxu1 %v9683_v26  ;;  %1500 = vmatpush.msrb.mxu3 %v1277_v37  ;;  %v9800_v36 = vld [vmem:[%s9626_s26 + $0xe0] sm:$0xff]  ;;  %v9803_v37 = vld [vmem:[%s9626_s26 + $0xe8] sm:$0xff] }
  0xd2   : > { %1369 = vmatpush.msrb.mxu1 %v1278_v35  ;;  %1305 = vmatpush.msrb.mxu0 %v1244_v38  ;;  %v9793_v35 = vld [vmem:[%s9626_s26 + $0xd8] sm:$0xff]  ;;  %v9810_v38 = vld [vmem:[%s9626_s26 + $0xf0] sm:$0xff] }
  0xd3   : > { %1436 = vmatpush.msrb.mxu2 %v1243_v42  ;;  %1501 = vmatpush.msrb.mxu3 %v1275_v43  ;;  %v930_v42 = vld [vmem:[#allocation14] sm:$0x3] }
  0xd4   : > { %1091 = vmatmul.f32.gmra.mxu2 %v9690_v33  ;;  %1370 = vmatpush.msrb.mxu1 %v1276_v41  ;;  %v9813_v41 = vld [vmem:[%s9626_s26 + $0xf8] sm:$0xff]  ;;  %v9819_v43 = vperm.slane %v930_v42, 0 }
  0xd5   : > { %1156 = vmatmul.f32.gmra.mxu3 %v9693_v34  ;;  %1306 = vmatpush.msrb.mxu0 %v1242_v44 }
  0xd6   : > { %1371 = vmatpush.msrb.mxu1 %v1274_v47  ;;  %1437 = vmatpush.msrb.mxu2 %v1241_v48  ;;  %v9823_v47 = vperm.slane %v930_v42, 1 }
  0xd7   : > { %961 = vmatmul.f32.gmra.mxu0 %v9690_v33  ;;  %1502 = vmatpush.msrb.mxu3 %v1273_v49 }
  0xd8   : > { %1307 = vmatpush.msrb.mxu0 %v1240_v50  ;;  %1372 = vmatpush.msrb.mxu1 %v1272_v53 }
  0xd9   : > { %1026 = vmatmul.f32.gmra.mxu1 %v9693_v34  ;;  %1438 = vmatpush.msrb.mxu2 %v1239_v54 }
  0xda   : > { %1503 = vmatpush.msrb.mxu3 %v1271_v55  ;;  %1308 = vmatpush.msrb.mxu0 %v1238_v56 }
  0xdb   : > { %1373 = vmatpush.msrb.mxu1 %v1270_v59  ;;  %1439 = vmatpush.msrb.mxu2 %v1237_v60 }
  0xdc   : > { %1094 = vmatmul.f32.gmra.mxu2 %v9700_v39  ;;  %1504 = vmatpush.msrb.mxu3 %v1269_v63 }
  0xdd   : > { %1159 = vmatmul.f32.gmra.mxu3 %v9703_v40  ;;  %1309 = vmatpush.msrb.mxu0 %v1236_v0 }
  0xde   : > { %1374 = vmatpush.msrb.mxu1 %v1268_v3  ;;  %1440 = vmatpush.msrb.mxu2 %v1235_v4 }
  0xdf   : > { %964 = vmatmul.f32.gmra.mxu0 %v9700_v39  ;;  %1505 = vmatpush.msrb.mxu3 %v1267_v5 }
  0xe0   : > { %1310 = vmatpush.msrb.mxu0 %v1234_v6  ;;  %1375 = vmatpush.msrb.mxu1 %v1266_v9 }
  0xe1   : > { %1029 = vmatmul.f32.gmra.mxu1 %v9703_v40  ;;  %1441 = vmatpush.msrb.mxu2 %v1233_v10 }
  0xe2   : > { %1506 = vmatpush.msrb.mxu3 %v1265_v13  ;;  %1311 = vmatpush.msrb.mxu0 %v1232_v14 }
  0xe3   : > { %1376 = vmatpush.msrb.mxu1 %v1264_v17  ;;  %1442 = vmatpush.msrb.mxu2 %v1231_v18 }
  0xe4   : > { %1097 = vmatmul.f32.gmra.mxu2 %v9710_v45  ;;  %1507 = vmatpush.msrb.mxu3 %v1263_v19 }
  0xe5   : > { %1162 = vmatmul.f32.gmra.mxu3 %v9713_v46  ;;  %1312 = vmatpush.msrb.mxu0 %v1230_v20 }
  0xe6   : > { %1377 = vmatpush.msrb.mxu1 %v1262_v23  ;;  %1443 = vmatpush.msrb.mxu2 %v1229_v24 }
  0xe7   : > { %967 = vmatmul.f32.gmra.mxu0 %v9710_v45  ;;  %1508 = vmatpush.msrb.mxu3 %v1261_v27 }
  0xe8   : > { %1313 = vmatpush.msrb.mxu0 %v1228_v28  ;;  %1378 = vmatpush.msrb.mxu1 %v1260_v31 }
  0xe9   : > { %1032 = vmatmul.f32.gmra.mxu1 %v9713_v46 }
  0xec   : > { %1100 = vmatmul.f32.gmra.mxu2 %v9720_v51 }
  0xed   : > { %1165 = vmatmul.f32.gmra.mxu3 %v9723_v52 }
  0xef   : > { %970 = vmatmul.f32.gmra.mxu0 %v9720_v51 }
  0xf1   : > { %1035 = vmatmul.f32.gmra.mxu1 %v9723_v52 }
  0xf4   : > { %1103 = vmatmul.f32.gmra.mxu2 %v9730_v57 }
  0xf5   : > { %1168 = vmatmul.f32.gmra.mxu3 %v9733_v58 }
  0xf7   : > { %973 = vmatmul.f32.gmra.mxu0 %v9730_v57 }
  0xf9   : > { %1038 = vmatmul.f32.gmra.mxu1 %v9733_v58 }
  0xfc   : > { %1106 = vmatmul.f32.gmra.mxu2 %v9740_v1 }
  0xfd   : > { %1171 = vmatmul.f32.gmra.mxu3 %v9743_v2 }
  0xff   : > { %976 = vmatmul.f32.gmra.mxu0 %v9740_v1 }
 0x101   : > { %1041 = vmatmul.f32.gmra.mxu1 %v9743_v2 }
 0x104   : > { %1109 = vmatmul.f32.gmra.mxu2 %v9750_v7 }
 0x105   : > { %1174 = vmatmul.f32.gmra.mxu3 %v9753_v8 }
 0x107   : > { %979 = vmatmul.f32.gmra.mxu0 %v9750_v7 }
 0x109   : > { %1044 = vmatmul.f32.gmra.mxu1 %v9753_v8 }
 0x10c   : > { %1112 = vmatmul.f32.gmra.mxu2 %v9760_v15 }
 0x10d   : > { %1177 = vmatmul.f32.gmra.mxu3 %v9763_v16 }
 0x10f   : > { %982 = vmatmul.f32.gmra.mxu0 %v9760_v15 }
 0x111   : > { %1047 = vmatmul.f32.gmra.mxu1 %v9763_v16 }
 0x114   : > { %1115 = vmatmul.f32.gmra.mxu2 %v9770_v21 }
 0x115   : > { %1180 = vmatmul.f32.gmra.mxu3 %v9773_v22 }
 0x117   : > { %985 = vmatmul.f32.gmra.mxu0 %v9770_v21 }
 0x119   : > { %1050 = vmatmul.f32.gmra.mxu1 %v9773_v22 }
 0x11c   : > { %1118 = vmatmul.f32.gmra.mxu2 %v9780_v29 }
 0x11d   : > { %1183 = vmatmul.f32.gmra.mxu3 %v9783_v30 }
 0x11f   : > { %988 = vmatmul.f32.gmra.mxu0 %v9780_v29 }
 0x121   : > { %1053 = vmatmul.f32.gmra.mxu1 %v9783_v30 }
 0x124   : > { %1121 = vmatmul.f32.gmra.mxu2 %v9790_v32 }
 0x125   : > { %1186 = vmatmul.f32.gmra.mxu3 %v9793_v35 }
 0x127   : > { %991 = vmatmul.f32.gmra.mxu0 %v9790_v32 }
 0x129   : > { %1056 = vmatmul.f32.gmra.mxu1 %v9793_v35 }
 0x12c   : > { %1124 = vmatmul.f32.gmra.mxu2 %v9800_v36 }
 0x12d   : > { %1189 = vmatmul.f32.gmra.mxu3 %v9803_v37 }
 0x12f   : > { %994 = vmatmul.f32.gmra.mxu0 %v9800_v36 }
 0x131   : > { %1059 = vmatmul.f32.gmra.mxu1 %v9803_v37 }
 0x134   : > { %1127 = vmatmul.f32.gmra.mxu2 %v9810_v38 }
 0x135   : > { %1192 = vmatmul.f32.gmra.mxu3 %v9813_v41 }
 0x137   : > { %997 = vmatmul.f32.gmra.mxu0 %v9810_v38 }
 0x139   : > { %1062 = vmatmul.f32.gmra.mxu1 %v9813_v41 }
 0x13c   : > { %1444 = vmatmul.f32.vlgmr.msrb.gmra.mxu2 %v9660_v61  ;;  %v953_v44 = vpop.f32.mrf.mxu0 }
 0x13d   : > { %1509 = vmatmul.f32.vlgmr.msrb.gmra.mxu3 %v9663_v62  ;;  %v954_v48 = vadd.f32 %v953_v44, %v9819_v43 }
 0x13e   : > { %v1018_v49 = vpop.f32.mrf.mxu1 }
 0x13f   : > { %v1083_v50 = vpop.f32.mrf.mxu2  ;;  %v1019_v53 = vadd.f32 %v1018_v49, %v954_v48  ;;  %1314 = vmatmul.f32.vlgmr.msrb.gmra.mxu0 %v9660_v61 }
 0x140   : > { %v1148_v54 = vpop.f32.mrf.mxu3  ;;  %v1084_v55 = vadd.f32 %v1083_v50, %v9823_v47 }
 0x141   : > { %1196 = vst [vmem:[#allocation2 + $0xb0] sm:$0xff] %v1019_v53  ;;  %1379 = vmatmul.f32.vlgmr.msrb.gmra.mxu1 %v9663_v62 }
 0x142   : > { %v1149_v56 = vadd.f32 %v1148_v54, %v1084_v55 }
 0x144   : > { %1197 = vst [vmem:[#allocation2] sm:$0xff] %v1149_v56  ;;  %1447 = vmatmul.f32.gmra.mxu2 %v9670_v11  ;;  %v956_v59 = vpop.f32.mrf.mxu0 }
 0x145   : > { %1512 = vmatmul.f32.gmra.mxu3 %v9673_v12  ;;  %v957_v60 = vadd.f32 %v956_v59, %v9819_v43 }
 0x146   : > { %v1021_v63 = vpop.f32.mrf.mxu1 }
 0x147   : > { %v1086_v0 = vpop.f32.mrf.mxu2  ;;  %v1022_v3 = vadd.f32 %v1021_v63, %v957_v60  ;;  %1317 = vmatmul.f32.gmra.mxu0 %v9670_v11 }
 0x148   : > { %v1151_v4 = vpop.f32.mrf.mxu3  ;;  %v1087_v61 = vadd.f32 %v1086_v0, %v9823_v47 }
 0x149   : > { %1198 = vst [vmem:[#allocation2 + $0xd8] sm:$0xff] %v1022_v3  ;;  %1382 = vmatmul.f32.gmra.mxu1 %v9673_v12 }
 0x14a   : > { %v1152_v62 = vadd.f32 %v1151_v4, %v1087_v61 }
 0x14c   : > { %1199 = vst [vmem:[#allocation2 + $0x18] sm:$0xff] %v1152_v62  ;;  %1450 = vmatmul.f32.gmra.mxu2 %v9680_v25  ;;  %v959_v5 = vpop.f32.mrf.mxu0 }
 0x14d   : > { %1515 = vmatmul.f32.gmra.mxu3 %v9683_v26  ;;  %v960_v6 = vadd.f32 %v959_v5, %v9819_v43 }
 0x14e   : > { %v1024_v9 = vpop.f32.mrf.mxu1 }
 0x14f   : > { %v1089_v10 = vpop.f32.mrf.mxu2  ;;  %v1025_v13 = vadd.f32 %v1024_v9, %v960_v6  ;;  %1320 = vmatmul.f32.gmra.mxu0 %v9680_v25 }
 0x150   : > { %v1154_v14 = vpop.f32.mrf.mxu3  ;;  %v1090_v11 = vadd.f32 %v1089_v10, %v9823_v47 }
 0x151   : > { %1200 = vst [vmem:[#allocation2 + $0x50] sm:$0xff] %v1025_v13  ;;  %1385 = vmatmul.f32.gmra.mxu1 %v9683_v26 }
 0x152   : > { %v1155_v12 = vadd.f32 %v1154_v14, %v1090_v11 }
 0x154   : > { %1201 = vst [vmem:[#allocation2 + $0x68] sm:$0xff] %v1155_v12  ;;  %1453 = vmatmul.f32.gmra.mxu2 %v9690_v33  ;;  %v962_v17 = vpop.f32.mrf.mxu0 }
 0x155   : > { %1518 = vmatmul.f32.gmra.mxu3 %v9693_v34  ;;  %v963_v18 = vadd.f32 %v962_v17, %v9819_v43 }
 0x156   : > { %v1027_v19 = vpop.f32.mrf.mxu1 }
 0x157   : > { %v1092_v20 = vpop.f32.mrf.mxu2  ;;  %v1028_v23 = vadd.f32 %v1027_v19, %v963_v18  ;;  %1323 = vmatmul.f32.gmra.mxu0 %v9690_v33 }
 0x158   : > { %v1157_v24 = vpop.f32.mrf.mxu3  ;;  %v1093_v25 = vadd.f32 %v1092_v20, %v9823_v47 }
 0x159   : > { %1202 = vst [vmem:[#allocation2 + $0x30] sm:$0xff] %v1028_v23  ;;  %1388 = vmatmul.f32.gmra.mxu1 %v9693_v34 }
 0x15a   : > { %v1158_v26 = vadd.f32 %v1157_v24, %v1093_v25 }
 0x15c   : > { %1203 = vst [vmem:[#allocation2 + $0x48] sm:$0xff] %v1158_v26  ;;  %1456 = vmatmul.f32.gmra.mxu2 %v9700_v39  ;;  %v965_v27 = vpop.f32.mrf.mxu0 }
 0x15d   : > { %1521 = vmatmul.f32.gmra.mxu3 %v9703_v40  ;;  %v966_v28 = vadd.f32 %v965_v27, %v9819_v43 }
 0x15e   : > { %v1030_v31 = vpop.f32.mrf.mxu1 }
 0x15f   : > { %v1095_v42 = vpop.f32.mrf.mxu2  ;;  %v1031_v44 = vadd.f32 %v1030_v31, %v966_v28  ;;  %1326 = vmatmul.f32.gmra.mxu0 %v9700_v39 }
 0x160   : > { %v1160_v48 = vpop.f32.mrf.mxu3  ;;  %v1096_v33 = vadd.f32 %v1095_v42, %v9823_v47 }
 0x161   : > { %1204 = vst [vmem:[#allocation2 + $0x80] sm:$0xff] %v1031_v44  ;;  %1391 = vmatmul.f32.gmra.mxu1 %v9703_v40 }
 0x162   : > { %v1161_v34 = vadd.f32 %v1160_v48, %v1096_v33 }
 0x164   : > { %1205 = vst [vmem:[#allocation2 + $0x88] sm:$0xff] %v1161_v34  ;;  %1459 = vmatmul.f32.gmra.mxu2 %v9710_v45  ;;  %v968_v49 = vpop.f32.mrf.mxu0 }
 0x165   : > { %1524 = vmatmul.f32.gmra.mxu3 %v9713_v46  ;;  %v969_v50 = vadd.f32 %v968_v49, %v9819_v43 }
 0x166   : > { %v1033_v53 = vpop.f32.mrf.mxu1 }
 0x167   : > { %v1098_v54 = vpop.f32.mrf.mxu2  ;;  %v1034_v55 = vadd.f32 %v1033_v53, %v969_v50  ;;  %1329 = vmatmul.f32.gmra.mxu0 %v9710_v45 }
 0x168   : > { %v1163_v56 = vpop.f32.mrf.mxu3  ;;  %v1099_v39 = vadd.f32 %v1098_v54, %v9823_v47 }
 0x169   : > { %1206 = vst [vmem:[#allocation2 + $0xe8] sm:$0xff] %v1034_v55  ;;  %1394 = vmatmul.f32.gmra.mxu1 %v9713_v46 }
 0x16a   : > { %v1164_v40 = vadd.f32 %v1163_v56, %v1099_v39 }
 0x16c   : > { %1207 = vst [vmem:[#allocation2 + $0xb8] sm:$0xff] %v1164_v40  ;;  %1462 = vmatmul.f32.gmra.mxu2 %v9720_v51  ;;  %v971_v59 = vpop.f32.mrf.mxu0 }
 0x16d   : > { %1527 = vmatmul.f32.gmra.mxu3 %v9723_v52  ;;  %v972_v60 = vadd.f32 %v971_v59, %v9819_v43 }
 0x16e   : > { %v1036_v63 = vpop.f32.mrf.mxu1 }
 0x16f   : > { %v1101_v0 = vpop.f32.mrf.mxu2  ;;  %v1037_v3 = vadd.f32 %v1036_v63, %v972_v60  ;;  %1332 = vmatmul.f32.gmra.mxu0 %v9720_v51 }
 0x170   : > { %v1166_v4 = vpop.f32.mrf.mxu3  ;;  %v1102_v45 = vadd.f32 %v1101_v0, %v9823_v47 }
 0x171   : > { %1208 = vst [vmem:[#allocation2 + $0x60] sm:$0xff] %v1037_v3  ;;  %1397 = vmatmul.f32.gmra.mxu1 %v9723_v52 }
 0x172   : > { %v1167_v46 = vadd.f32 %v1166_v4, %v1102_v45 }
 0x174   : > { %1209 = vst [vmem:[#allocation2 + $0xf0] sm:$0xff] %v1167_v46  ;;  %1465 = vmatmul.f32.gmra.mxu2 %v9730_v57  ;;  %v974_v61 = vpop.f32.mrf.mxu0 }
 0x175   : > { %1530 = vmatmul.f32.gmra.mxu3 %v9733_v58  ;;  %v975_v62 = vadd.f32 %v974_v61, %v9819_v43 }
 0x176   : > { %v1039_v5 = vpop.f32.mrf.mxu1 }
 0x177   : > { %v1104_v6 = vpop.f32.mrf.mxu2  ;;  %v1040_v9 = vadd.f32 %v1039_v5, %v975_v62  ;;  %1335 = vmatmul.f32.gmra.mxu0 %v9730_v57 }
 0x178   : > { %v1169_v10 = vpop.f32.mrf.mxu3  ;;  %v1105_v51 = vadd.f32 %v1104_v6, %v9823_v47 }
 0x179   : > { %1210 = vst [vmem:[#allocation2 + $0x8] sm:$0xff] %v1040_v9  ;;  %1400 = vmatmul.f32.gmra.mxu1 %v9733_v58 }
 0x17a   : > { %v1170_v52 = vadd.f32 %v1169_v10, %v1105_v51 }
 0x17c   : > { %1211 = vst [vmem:[#allocation2 + $0x78] sm:$0xff] %v1170_v52  ;;  %1468 = vmatmul.f32.gmra.mxu2 %v9740_v1  ;;  %v977_v13 = vpop.f32.mrf.mxu0 }
 0x17d   : > { %1533 = vmatmul.f32.gmra.mxu3 %v9743_v2  ;;  %v978_v14 = vadd.f32 %v977_v13, %v9819_v43 }
 0x17e   : > { %v1042_v11 = vpop.f32.mrf.mxu1 }
 0x17f   : > { %v1107_v12 = vpop.f32.mrf.mxu2  ;;  %v1043_v17 = vadd.f32 %v1042_v11, %v978_v14  ;;  %1338 = vmatmul.f32.gmra.mxu0 %v9740_v1  ;;  %v1292_v14 = vld [vmem:[#allocation16] sm:$0x3] }
 0x180   : > { %v1172_v18 = vpop.f32.mrf.mxu3  ;;  %v1108_v57 = vadd.f32 %v1107_v12, %v9823_v47 }
 0x181   : > { %1212 = vst [vmem:[#allocation2 + $0x38] sm:$0xff] %v1043_v17  ;;  %1403 = vmatmul.f32.gmra.mxu1 %v9743_v2 }
 0x182   : > { %v1173_v58 = vadd.f32 %v1172_v18, %v1108_v57 }
 0x184   : > { %1213 = vst [vmem:[#allocation2 + $0x58] sm:$0xff] %v1173_v58  ;;  %1471 = vmatmul.f32.gmra.mxu2 %v9750_v7  ;;  %v980_v19 = vpop.f32.mrf.mxu0  ;;  %v9921_v58 = vperm.slane %v1292_v14, 1 }
 0x185   : > { %1536 = vmatmul.f32.gmra.mxu3 %v9753_v8  ;;  %v981_v20 = vadd.f32 %v980_v19, %v9819_v43 }
 0x186   : > { %v1045_v23 = vpop.f32.mrf.mxu1 }
 0x187   : > { %v1110_v24 = vpop.f32.mrf.mxu2  ;;  %v1046_v25 = vadd.f32 %v1045_v23, %v981_v20  ;;  %1341 = vmatmul.f32.gmra.mxu0 %v9750_v7 }
 0x188   : > { %v1175_v26 = vpop.f32.mrf.mxu3  ;;  %v1111_v1 = vadd.f32 %v1110_v24, %v9823_v47 }
 0x189   : > { %1214 = vst [vmem:[#allocation2 + $0x40] sm:$0xff] %v1046_v25  ;;  %1406 = vmatmul.f32.gmra.mxu1 %v9753_v8 }
 0x18a   : > { %v1176_v2 = vadd.f32 %v1175_v26, %v1111_v1 }
 0x18c   : > { %1215 = vst [vmem:[#allocation2 + $0xc8] sm:$0xff] %v1176_v2  ;;  %1474 = vmatmul.f32.gmra.mxu2 %v9760_v15  ;;  %v983_v27 = vpop.f32.mrf.mxu0 }
 0x18d   : > { %1539 = vmatmul.f32.gmra.mxu3 %v9763_v16  ;;  %v984_v28 = vadd.f32 %v983_v27, %v9819_v43 }
 0x18e   : > { %v1048_v31 = vpop.f32.mrf.mxu1 }
 0x18f   : > { %v1113_v42 = vpop.f32.mrf.mxu2  ;;  %v1049_v44 = vadd.f32 %v1048_v31, %v984_v28  ;;  %1344 = vmatmul.f32.gmra.mxu0 %v9760_v15 }
 0x190   : > { %v1178_v48 = vpop.f32.mrf.mxu3  ;;  %v1114_v7 = vadd.f32 %v1113_v42, %v9823_v47 }
 0x191   : > { %1216 = vst [vmem:[#allocation2 + $0xe0] sm:$0xff] %v1049_v44  ;;  %1409 = vmatmul.f32.gmra.mxu1 %v9763_v16 }
 0x192   : > { %v1179_v8 = vadd.f32 %v1178_v48, %v1114_v7 }
 0x194   : > { %1217 = vst [vmem:[#allocation2 + $0x90] sm:$0xff] %v1179_v8  ;;  %1477 = vmatmul.f32.gmra.mxu2 %v9770_v21  ;;  %v986_v33 = vpop.f32.mrf.mxu0 }
 0x195   : > { %1542 = vmatmul.f32.gmra.mxu3 %v9773_v22  ;;  %v987_v34 = vadd.f32 %v986_v33, %v9819_v43 }
 0x196   : > { %v1051_v49 = vpop.f32.mrf.mxu1 }
 0x197   : > { %v1116_v50 = vpop.f32.mrf.mxu2  ;;  %v1052_v53 = vadd.f32 %v1051_v49, %v987_v34  ;;  %1347 = vmatmul.f32.gmra.mxu0 %v9770_v21 }
 0x198   : > { %v1181_v54 = vpop.f32.mrf.mxu3  ;;  %v1117_v15 = vadd.f32 %v1116_v50, %v9823_v47 }
 0x199   : > { %1218 = vst [vmem:[#allocation2 + $0x70] sm:$0xff] %v1052_v53  ;;  %1412 = vmatmul.f32.gmra.mxu1 %v9773_v22 }
 0x19a   : > { %v1182_v16 = vadd.f32 %v1181_v54, %v1117_v15 }
 0x19c   : > { %1219 = vst [vmem:[#allocation2 + $0xc0] sm:$0xff] %v1182_v16  ;;  %1480 = vmatmul.f32.gmra.mxu2 %v9780_v29  ;;  %v989_v55 = vpop.f32.mrf.mxu0 }
 0x19d   : > { %1545 = vmatmul.f32.gmra.mxu3 %v9783_v30  ;;  %v990_v56 = vadd.f32 %v989_v55, %v9819_v43 }
 0x19e   : > { %v1054_v39 = vpop.f32.mrf.mxu1 }
 0x19f   : > { %v1119_v40 = vpop.f32.mrf.mxu2  ;;  %v1055_v59 = vadd.f32 %v1054_v39, %v990_v56  ;;  %1350 = vmatmul.f32.gmra.mxu0 %v9780_v29 }
 0x1a0   : > { %v1184_v60 = vpop.f32.mrf.mxu3  ;;  %v1120_v21 = vadd.f32 %v1119_v40, %v9823_v47 }
 0x1a1   : > { %1220 = vst [vmem:[#allocation2 + $0xa8] sm:$0xff] %v1055_v59  ;;  %1415 = vmatmul.f32.gmra.mxu1 %v9783_v30 }
 0x1a2   : > { %v1185_v22 = vadd.f32 %v1184_v60, %v1120_v21 }
 0x1a4   : > { %1221 = vst [vmem:[#allocation2 + $0xd0] sm:$0xff] %v1185_v22  ;;  %1483 = vmatmul.f32.gmra.mxu2 %v9790_v32  ;;  %v992_v63 = vpop.f32.mrf.mxu0 }
 0x1a5   : > { %1548 = vmatmul.f32.gmra.mxu3 %v9793_v35  ;;  %v993_v0 = vadd.f32 %v992_v63, %v9819_v43 }
 0x1a6   : > { %v1057_v3 = vpop.f32.mrf.mxu1 }
 0x1a7   : > { %v1122_v4 = vpop.f32.mrf.mxu2  ;;  %v1058_v45 = vadd.f32 %v1057_v3, %v993_v0  ;;  %1353 = vmatmul.f32.gmra.mxu0 %v9790_v32 }
 0x1a8   : > { %v1187_v46 = vpop.f32.mrf.mxu3  ;;  %v1123_v29 = vadd.f32 %v1122_v4, %v9823_v47 }
 0x1a9   : > { %1222 = vst [vmem:[#allocation2 + $0x10] sm:$0xff] %v1058_v45  ;;  %1418 = vmatmul.f32.gmra.mxu1 %v9793_v35 }
 0x1aa   : > { %v1188_v30 = vadd.f32 %v1187_v46, %v1123_v29 }
 0x1ac   : > { %1223 = vst [vmem:[#allocation2 + $0x28] sm:$0xff] %v1188_v30  ;;  %1486 = vmatmul.f32.gmra.mxu2 %v9800_v36  ;;  %v995_v61 = vpop.f32.mrf.mxu0 }
 0x1ad   : > { %1551 = vmatmul.f32.gmra.mxu3 %v9803_v37  ;;  %v996_v62 = vadd.f32 %v995_v61, %v9819_v43 }
 0x1ae   : > { %v1060_v5 = vpop.f32.mrf.mxu1 }
 0x1af   : > { %v1125_v6 = vpop.f32.mrf.mxu2  ;;  %v1061_v9 = vadd.f32 %v1060_v5, %v996_v62  ;;  %1356 = vmatmul.f32.gmra.mxu0 %v9800_v36 }
 0x1b0   : > { %v1190_v10 = vpop.f32.mrf.mxu3  ;;  %v1126_v32 = vadd.f32 %v1125_v6, %v9823_v47 }
 0x1b1   : > { %1224 = vst [vmem:[#allocation2 + $0xa0] sm:$0xff] %v1061_v9  ;;  %1421 = vmatmul.f32.gmra.mxu1 %v9803_v37  ;;  %v9919_v37 = vperm.slane %v1292_v14, 0 }
 0x1b2   : > { %v1191_v35 = vadd.f32 %v1190_v10, %v1126_v32 }
 0x1b4   : > { %1225 = vst [vmem:[#allocation2 + $0xf8] sm:$0xff] %v1191_v35  ;;  %1489 = vmatmul.f32.gmra.mxu2 %v9810_v38  ;;  %v998_v51 = vpop.f32.mrf.mxu0 }
 0x1b5   : > { %1554 = vmatmul.f32.gmra.mxu3 %v9813_v41  ;;  %v999_v52 = vadd.f32 %v998_v51, %v9819_v43 }
 0x1b6   : > { %v1063_v13 = vpop.f32.mrf.mxu1 }
 0x1b7   : > { %v1128_v11 = vpop.f32.mrf.mxu2  ;;  %v1064_v12 = vadd.f32 %v1063_v13, %v999_v52  ;;  %1359 = vmatmul.f32.gmra.mxu0 %v9810_v38 }
 0x1b8   : > { %v1193_v17 = vpop.f32.mrf.mxu3  ;;  %v1129_v36 = vadd.f32 %v1128_v11, %v9823_v47 }
 0x1b9   : > { %1226 = vst [vmem:[#allocation2 + $0x20] sm:$0xff] %v1064_v12  ;;  %1424 = vmatmul.f32.gmra.mxu1 %v9813_v41 }
 0x1ba   : > { %v1194_v18 = vadd.f32 %v1193_v17, %v1129_v36 }
 0x1bc   : > { %1227 = vst [vmem:[#allocation2 + $0x98] sm:$0xff] %v1194_v18  ;;  %v1315_v57 = vpop.f32.mrf.mxu0 }
 0x1bd   : > { %v1316_v43 = vadd.f32 %v1315_v57, %v9919_v37 }
 0x1be   : > { %v1380_v19 = vpop.f32.mrf.mxu1 }
 0x1bf   : > { %v1445_v20 = vpop.f32.mrf.mxu2  ;;  %v1381_v23 = vadd.f32 %v1380_v19, %v1316_v43 }
 0x1c0   : > { %v1510_v24 = vpop.f32.mrf.mxu3  ;;  %v1446_v38 = vadd.f32 %v1445_v20, %v9921_v58 }
 0x1c1   : > { %1558 = vst [vmem:[#allocation3 + $0x80] sm:$0xff] %v1381_v23 }
 0x1c2   : > { %v1511_v47 = vadd.f32 %v1510_v24, %v1446_v38 }
 0x1c4   : > { %1559 = vst [vmem:[#allocation3 + $0xc8] sm:$0xff] %v1511_v47  ;;  %v1318_v25 = vpop.f32.mrf.mxu0 }
 0x1c5   : > { %v1319_v41 = vadd.f32 %v1318_v25, %v9919_v37 }
 0x1c6   : > { %v1383_v26 = vpop.f32.mrf.mxu1 }
 0x1c7   : > { %v1448_v1 = vpop.f32.mrf.mxu2  ;;  %v1384_v2 = vadd.f32 %v1383_v26, %v1319_v41 }
 0x1c8   : > { %v1513_v27 = vpop.f32.mrf.mxu3  ;;  %v1449_v28 = vadd.f32 %v1448_v1, %v9921_v58 }
 0x1c9   : > { %1560 = vst [vmem:[#allocation3 + $0xe8] sm:$0xff] %v1384_v2 }
 0x1ca   : > { %v1514_v31 = vadd.f32 %v1513_v27, %v1449_v28 }
 0x1cc   : > { %1561 = vst [vmem:[#allocation3 + $0x78] sm:$0xff] %v1514_v31  ;;  %v1321_v42 = vpop.f32.mrf.mxu0 }
 0x1cd   : > { %v1322_v44 = vadd.f32 %v1321_v42, %v9919_v37 }
 0x1ce   : > { %v1386_v48 = vpop.f32.mrf.mxu1 }
 0x1cf   : > { %v1451_v7 = vpop.f32.mrf.mxu2  ;;  %v1387_v8 = vadd.f32 %v1386_v48, %v1322_v44 }
 0x1d0   : > { %v1516_v33 = vpop.f32.mrf.mxu3  ;;  %v1452_v34 = vadd.f32 %v1451_v7, %v9921_v58 }
 0x1d1   : > { %1562 = vst [vmem:[#allocation3 + $0x8] sm:$0xff] %v1387_v8 }
 0x1d2   : > { %v1517_v49 = vadd.f32 %v1516_v33, %v1452_v34 }
 0x1d4   : > { %1563 = vst [vmem:[#allocation3 + $0x90] sm:$0xff] %v1517_v49  ;;  %v1324_v50 = vpop.f32.mrf.mxu0 }
 0x1d5   : > { %v1325_v53 = vadd.f32 %v1324_v50, %v9919_v37 }
 0x1d6   : > { %v1389_v54 = vpop.f32.mrf.mxu1 }
 0x1d7   : > { %v1454_v15 = vpop.f32.mrf.mxu2  ;;  %v1390_v16 = vadd.f32 %v1389_v54, %v1325_v53 }
 0x1d8   : > { %v1519_v55 = vpop.f32.mrf.mxu3  ;;  %v1455_v56 = vadd.f32 %v1454_v15, %v9921_v58 }
 0x1d9   : > { %1564 = vst [vmem:[#allocation3 + $0x58] sm:$0xff] %v1390_v16 }
 0x1da   : > { %v1520_v39 = vadd.f32 %v1519_v55, %v1455_v56 }
 0x1dc   : > { %1565 = vst [vmem:[#allocation3 + $0xa8] sm:$0xff] %v1520_v39  ;;  %v1327_v40 = vpop.f32.mrf.mxu0 }
 0x1dd   : > { %v1328_v59 = vadd.f32 %v1327_v40, %v9919_v37 }
 0x1de   : > { %v1392_v60 = vpop.f32.mrf.mxu1 }
 0x1df   : > { %v1457_v21 = vpop.f32.mrf.mxu2  ;;  %v1393_v22 = vadd.f32 %v1392_v60, %v1328_v59 }
 0x1e0   : > { %v1522_v63 = vpop.f32.mrf.mxu3  ;;  %v1458_v0 = vadd.f32 %v1457_v21, %v9921_v58 }
 0x1e1   : > { %1566 = vst [vmem:[#allocation3 + $0xd0] sm:$0xff] %v1393_v22 }
 0x1e2   : > { %v1523_v3 = vadd.f32 %v1522_v63, %v1458_v0 }
 0x1e4   : > { %1567 = vst [vmem:[#allocation3 + $0xb0] sm:$0xff] %v1523_v3  ;;  %v1330_v4 = vpop.f32.mrf.mxu0 }
 0x1e5   : > { %v1331_v45 = vadd.f32 %v1330_v4, %v9919_v37 }
 0x1e6   : > { %v1395_v46 = vpop.f32.mrf.mxu1 }
 0x1e7   : > { %v1460_v29 = vpop.f32.mrf.mxu2  ;;  %v1396_v30 = vadd.f32 %v1395_v46, %v1331_v45 }
 0x1e8   : > { %v1525_v61 = vpop.f32.mrf.mxu3  ;;  %v1461_v62 = vadd.f32 %v1460_v29, %v9921_v58 }
 0x1e9   : > { %1568 = vst [vmem:[#allocation3 + $0x38] sm:$0xff] %v1396_v30 }
 0x1ea   : > { %v1526_v5 = vadd.f32 %v1525_v61, %v1461_v62 }
 0x1ec   : > { %1569 = vst [vmem:[#allocation3 + $0x40] sm:$0xff] %v1526_v5  ;;  %v1333_v6 = vpop.f32.mrf.mxu0 }
 0x1ed   : > { %v1334_v9 = vadd.f32 %v1333_v6, %v9919_v37 }
 0x1ee   : > { %v1398_v10 = vpop.f32.mrf.mxu1 }
 0x1ef   : > { %v1463_v32 = vpop.f32.mrf.mxu2  ;;  %v1399_v35 = vadd.f32 %v1398_v10, %v1334_v9 }
 0x1f0   : > { %v1528_v51 = vpop.f32.mrf.mxu3  ;;  %v1464_v52 = vadd.f32 %v1463_v32, %v9921_v58 }
 0x1f1   : > { %1570 = vst [vmem:[#allocation3 + $0xe0] sm:$0xff] %v1399_v35 }
 0x1f2   : > { %v1529_v13 = vadd.f32 %v1528_v51, %v1464_v52 }
 0x1f4   : > { %1571 = vst [vmem:[#allocation3 + $0x60] sm:$0xff] %v1529_v13  ;;  %v1336_v14 = vpop.f32.mrf.mxu0 }
 0x1f5   : > { %v1337_v11 = vadd.f32 %v1336_v14, %v9919_v37 }
 0x1f6   : > { %v1401_v12 = vpop.f32.mrf.mxu1 }
 0x1f7   : > { %v1466_v17 = vpop.f32.mrf.mxu2  ;;  %v1402_v36 = vadd.f32 %v1401_v12, %v1337_v11 }
 0x1f8   : > { %v1531_v18 = vpop.f32.mrf.mxu3  ;;  %v1467_v57 = vadd.f32 %v1466_v17, %v9921_v58 }
 0x1f9   : > { %1572 = vst [vmem:[#allocation3 + $0x18] sm:$0xff] %v1402_v36 }
 0x1fa   : > { %v1532_v43 = vadd.f32 %v1531_v18, %v1467_v57 }
 0x1fc   : > { %1573 = vst [vmem:[#allocation3 + $0x68] sm:$0xff] %v1532_v43  ;;  %v1339_v19 = vpop.f32.mrf.mxu0 }
 0x1fd   : > { %v1340_v20 = vadd.f32 %v1339_v19, %v9919_v37 }
 0x1fe   : > { %v1404_v23 = vpop.f32.mrf.mxu1 }
 0x1ff   : > { %v1469_v24 = vpop.f32.mrf.mxu2  ;;  %v1405_v38 = vadd.f32 %v1404_v23, %v1340_v20 }
 0x200   : > { %v1534_v47 = vpop.f32.mrf.mxu3  ;;  %v1470_v25 = vadd.f32 %v1469_v24, %v9921_v58 }
 0x201   : > { %1574 = vst [vmem:[#allocation3 + $0x10] sm:$0xff] %v1405_v38 }
 0x202   : > { %v1535_v41 = vadd.f32 %v1534_v47, %v1470_v25 }
 0x204   : > { %1575 = vst [vmem:[#allocation3 + $0x70] sm:$0xff] %v1535_v41  ;;  %v1342_v26 = vpop.f32.mrf.mxu0 }
 0x205   : > { %v1343_v1 = vadd.f32 %v1342_v26, %v9919_v37 }
 0x206   : > { %v1407_v2 = vpop.f32.mrf.mxu1 }
 0x207   : > { %v1472_v27 = vpop.f32.mrf.mxu2  ;;  %v1408_v28 = vadd.f32 %v1407_v2, %v1343_v1 }
 0x208   : > { %v1537_v31 = vpop.f32.mrf.mxu3  ;;  %v1473_v42 = vadd.f32 %v1472_v27, %v9921_v58 }
 0x209   : > { %1576 = vst [vmem:[#allocation3 + $0x50] sm:$0xff] %v1408_v28 }
 0x20a   : > { %v1538_v44 = vadd.f32 %v1537_v31, %v1473_v42 }
 0x20c   : > { %1577 = vst [vmem:[#allocation3 + $0xa0] sm:$0xff] %v1538_v44  ;;  %v1345_v48 = vpop.f32.mrf.mxu0 }
 0x20d   : > { %v1346_v7 = vadd.f32 %v1345_v48, %v9919_v37 }
 0x20e   : > { %v1410_v8 = vpop.f32.mrf.mxu1 }
 0x20f   : > { %v1475_v33 = vpop.f32.mrf.mxu2  ;;  %v1411_v34 = vadd.f32 %v1410_v8, %v1346_v7 }
 0x210   : > { %v1540_v49 = vpop.f32.mrf.mxu3  ;;  %v1476_v50 = vadd.f32 %v1475_v33, %v9921_v58 }
 0x211   : > { %1578 = vst [vmem:[#allocation3 + $0xd8] sm:$0xff] %v1411_v34 }
 0x212   : > { %v1541_v53 = vadd.f32 %v1540_v49, %v1476_v50 }
 0x214   : > { %1579 = vst [vmem:[#allocation3 + $0x30] sm:$0xff] %v1541_v53  ;;  %v1348_v54 = vpop.f32.mrf.mxu0 }
 0x215   : > { %v1349_v15 = vadd.f32 %v1348_v54, %v9919_v37 }
 0x216   : > { %v1413_v16 = vpop.f32.mrf.mxu1 }
 0x217   : > { %v1478_v55 = vpop.f32.mrf.mxu2  ;;  %v1414_v56 = vadd.f32 %v1413_v16, %v1349_v15 }
 0x218   : > { %v1543_v39 = vpop.f32.mrf.mxu3  ;;  %v1479_v40 = vadd.f32 %v1478_v55, %v9921_v58 }
 0x219   : > { %1580 = vst [vmem:[#allocation3 + $0x20] sm:$0xff] %v1414_v56 }
 0x21a   : > { %v1544_v59 = vadd.f32 %v1543_v39, %v1479_v40 }
 0x21c   : > { %1581 = vst [vmem:[#allocation3 + $0xf0] sm:$0xff] %v1544_v59  ;;  %v1351_v60 = vpop.f32.mrf.mxu0 }
 0x21d   : > { %v1352_v21 = vadd.f32 %v1351_v60, %v9919_v37 }
 0x21e   : > { %v1416_v22 = vpop.f32.mrf.mxu1 }
 0x21f   : > { %v1481_v63 = vpop.f32.mrf.mxu2  ;;  %v1417_v0 = vadd.f32 %v1416_v22, %v1352_v21 }
 0x220   : > { %v1546_v3 = vpop.f32.mrf.mxu3  ;;  %v1482_v4 = vadd.f32 %v1481_v63, %v9921_v58 }
 0x221   : > { %1582 = vst [vmem:[#allocation3 + $0x88] sm:$0xff] %v1417_v0 }
 0x222   : > { %v1547_v45 = vadd.f32 %v1546_v3, %v1482_v4 }
 0x224   : > { %1583 = vst [vmem:[#allocation3 + $0x48] sm:$0xff] %v1547_v45  ;;  %v1354_v46 = vpop.f32.mrf.mxu0 }
 0x225   : > { %v1355_v29 = vadd.f32 %v1354_v46, %v9919_v37 }
 0x226   : > { %v1419_v30 = vpop.f32.mrf.mxu1 }
 0x227   : > { %v1484_v61 = vpop.f32.mrf.mxu2  ;;  %v1420_v62 = vadd.f32 %v1419_v30, %v1355_v29 }
 0x228   : > { %v1549_v5 = vpop.f32.mrf.mxu3  ;;  %v1485_v6 = vadd.f32 %v1484_v61, %v9921_v58 }
 0x229   : > { %1584 = vst [vmem:[#allocation3 + $0xf8] sm:$0xff] %v1420_v62 }
 0x22a   : > { %v1550_v9 = vadd.f32 %v1549_v5, %v1485_v6 }
 0x22c   : > { %1585 = vst [vmem:[#allocation3 + $0xc0] sm:$0xff] %v1550_v9  ;;  %v1357_v10 = vpop.f32.mrf.mxu0 }
 0x22d   : > { %v1358_v32 = vadd.f32 %v1357_v10, %v9919_v37 }
 0x22e   : > { %v1422_v35 = vpop.f32.mrf.mxu1 }
 0x22f   : > { %v1487_v51 = vpop.f32.mrf.mxu2  ;;  %v1423_v52 = vadd.f32 %v1422_v35, %v1358_v32 }
 0x230   : > { %v1552_v13 = vpop.f32.mrf.mxu3  ;;  %v1488_v14 = vadd.f32 %v1487_v51, %v9921_v58 }
 0x231   : > { %1586 = vst [vmem:[#allocation3 + $0xb8] sm:$0xff] %v1423_v52 }
 0x232   : > { %v1553_v11 = vadd.f32 %v1552_v13, %v1488_v14 }
 0x234   : > { %1587 = vst [vmem:[#allocation3] sm:$0xff] %v1553_v11  ;;  %v1360_v12 = vpop.f32.mrf.mxu0 }
 0x235   : > { %v1361_v17 = vadd.f32 %v1360_v12, %v9919_v37 }
 0x236   : > { %v1425_v36 = vpop.f32.mrf.mxu1 }
 0x237   : > { %v1490_v18 = vpop.f32.mrf.mxu2  ;;  %v1426_v57 = vadd.f32 %v1425_v36, %v1361_v17 }
 0x238   : > { %v1555_v43 = vpop.f32.mrf.mxu3  ;;  %v1491_v19 = vadd.f32 %v1490_v18, %v9921_v58 }
 0x239   : > { %1588 = vst [vmem:[#allocation3 + $0x28] sm:$0xff] %v1426_v57 }
 0x23a   : > { %v1556_v20 = vadd.f32 %v1555_v43, %v1491_v19 }
 0x23c   : > { %1589 = vst [vmem:[#allocation3 + $0x98] sm:$0xff] %v1556_v20 }
 0x23d PF: > { %v1637_v23 = vld [vmem:[#allocation10 + $0xf8] sm:$0xff]  ;;  %v1635_v24 = vld [vmem:[#allocation10 + $0xe8] sm:$0xff]  ;;  %v1636_v37 = vld [vmem:[#allocation10 + $0xf0] sm:$0xff]  ;;  %s14650_s28 = sld [smem:[#allocation123_spill]]  ;;  %s7925_s6 = sshll.u32 %s9656_s27, 4  ;;  %s7926_s6 = int_to_ptr.vmem [resolvable:$true] %s7925_s6 }
 0x23e   : > { %v1669_v38 = vld [vmem:[#allocation10 + $0x1f8] sm:$0xff]  ;;  %1758 = vmatpush.msra.mxu2 %v1637_v23  ;;  %v1667_v47 = vld [vmem:[#allocation10 + $0x1e8] sm:$0xff]  ;;  %1676 = vmatpush.msra.mxu0 %v1636_v37  ;;  %v1634_v2 = vld [vmem:[#allocation10 + $0xe0] sm:$0xff]  ;;  %s14666_s5 = sld [smem:[#allocation133_spill]]  ;;  %s7910_s12 = scalar_lea.sflag [#allocation7], %s9614_s13 }
 0x23f   : > { %1799 = vmatpush.msra.mxu3 %v1669_v38  ;;  %v1633_v25 = vld [vmem:[#allocation10 + $0xd8] sm:$0xff]  ;;  %v1631_v26 = vld [vmem:[#allocation10 + $0xc8] sm:$0xff]  ;;  %v1668_v27 = vld [vmem:[#allocation10 + $0x1f0] sm:$0xff]  ;;  %s14683_s4 = sld [smem:[#allocation129_spill]] }
 0x240   : > { %v1665_v41 = vld [vmem:[#allocation10 + $0x1d8] sm:$0xff]  ;;  %1759 = vmatpush.msra.mxu2 %v1635_v24  ;;  %v1663_v1 = vld [vmem:[#allocation10 + $0x1c8] sm:$0xff]  ;;  %1677 = vmatpush.msra.mxu0 %v1634_v2  ;;  %v1632_v31 = vld [vmem:[#allocation10 + $0xd0] sm:$0xff]  ;;  %s14975_s16 = sld [smem:[#allocation131_spill]] }
 0x241   : > { %1800 = vmatpush.msra.mxu3 %v1667_v47  ;;  %v1629_v58 = vld [vmem:[#allocation10 + $0xb8] sm:$0xff]  ;;  %1717 = vmatpush.msra.mxu1 %v1668_v27  ;;  %v1666_v42 = vld [vmem:[#allocation10 + $0x1e0] sm:$0xff]  ;;  %v1664_v48 = vld [vmem:[#allocation10 + $0x1d0] sm:$0xff]  ;;  %s15046_s18 = sld [smem:[#allocation39_spill]] }
 0x242   : > { %1760 = vmatpush.msra.mxu2 %v1633_v25  ;;  %v1661_v28 = vld [vmem:[#allocation10 + $0x1b8] sm:$0xff]  ;;  %v1630_v44 = vld [vmem:[#allocation10 + $0xc0] sm:$0xff]  ;;  %v1627_v7 = vld [vmem:[#allocation10 + $0xa8] sm:$0xff]  ;;  %1678 = vmatpush.msra.mxu0 %v1632_v31  ;;  %s15047_s3 = sld [smem:[#allocation40_spill]] }
 0x243   : > { %1801 = vmatpush.msra.mxu3 %v1665_v41  ;;  %v1659_v8 = vld [vmem:[#allocation10 + $0x1a8] sm:$0xff]  ;;  %1718 = vmatpush.msra.mxu1 %v1666_v42  ;;  %v1628_v33 = vld [vmem:[#allocation10 + $0xb0] sm:$0xff]  ;;  %v1662_v34 = vld [vmem:[#allocation10 + $0x1c0] sm:$0xff] }
 0x244   : > { %1761 = vmatpush.msra.mxu2 %v1631_v26  ;;  %v1625_v49 = vld [vmem:[#allocation10 + $0x98] sm:$0xff]  ;;  %1679 = vmatpush.msra.mxu0 %v1630_v44  ;;  %v1626_v53 = vld [vmem:[#allocation10 + $0xa0] sm:$0xff]  ;;  %v1660_v54 = vld [vmem:[#allocation10 + $0x1b0] sm:$0xff] }
 0x245   : > { %1802 = vmatpush.msra.mxu3 %v1663_v1  ;;  %v1657_v50 = vld [vmem:[#allocation10 + $0x198] sm:$0xff]  ;;  %1719 = vmatpush.msra.mxu1 %v1664_v48  ;;  %v1623_v15 = vld [vmem:[#allocation10 + $0x88] sm:$0xff]  ;;  %v1624_v55 = vld [vmem:[#allocation10 + $0x90] sm:$0xff] }
 0x246   : > { %1762 = vmatpush.msra.mxu2 %v1629_v58  ;;  %v1655_v16 = vld [vmem:[#allocation10 + $0x188] sm:$0xff]  ;;  %1680 = vmatpush.msra.mxu0 %v1628_v33  ;;  %v1658_v56 = vld [vmem:[#allocation10 + $0x1a0] sm:$0xff]  ;;  %v1621_v39 = vld [vmem:[#allocation10 + $0x78] sm:$0xff] }
 0x247   : > { %1803 = vmatpush.msra.mxu3 %v1661_v28  ;;  %1720 = vmatpush.msra.mxu1 %v1662_v34  ;;  %v1653_v40 = vld [vmem:[#allocation10 + $0x178] sm:$0xff]  ;;  %v1622_v59 = vld [vmem:[#allocation10 + $0x80] sm:$0xff]  ;;  %v1656_v60 = vld [vmem:[#allocation10 + $0x190] sm:$0xff] }
 0x248   : > { %1763 = vmatpush.msra.mxu2 %v1627_v7  ;;  %1681 = vmatpush.msra.mxu0 %v1626_v53  ;;  %v1619_v21 = vld [vmem:[#allocation10 + $0x68] sm:$0xff]  ;;  %v1620_v63 = vld [vmem:[#allocation10 + $0x70] sm:$0xff]  ;;  %v1654_v0 = vld [vmem:[#allocation10 + $0x180] sm:$0xff]  ;;  %s8251_s1 = sshll.u32 %s15047_s3, 5 }
 0x249   : > { %1804 = vmatpush.msra.mxu3 %v1659_v8  ;;  %1721 = vmatpush.msra.mxu1 %v1660_v54  ;;  %v1651_v22 = vld [vmem:[#allocation10 + $0x168] sm:$0xff]  ;;  %v1617_v3 = vld [vmem:[#allocation10 + $0x58] sm:$0xff]  ;;  %v1618_v45 = vld [vmem:[#allocation10 + $0x60] sm:$0xff] }
 0x24a   : > { %1764 = vmatpush.msra.mxu2 %v1625_v49  ;;  %1682 = vmatpush.msra.mxu0 %v1624_v55  ;;  %v1649_v4 = vld [vmem:[#allocation10 + $0x158] sm:$0xff]  ;;  %v1652_v46 = vld [vmem:[#allocation10 + $0x170] sm:$0xff]  ;;  %v1615_v29 = vld [vmem:[#allocation10 + $0x48] sm:$0xff] }
 0x24b   : > { %1805 = vmatpush.msra.mxu3 %v1657_v50  ;;  %1722 = vmatpush.msra.mxu1 %v1658_v56  ;;  %v1647_v30 = vld [vmem:[#allocation10 + $0x148] sm:$0xff]  ;;  %v1616_v61 = vld [vmem:[#allocation10 + $0x50] sm:$0xff]  ;;  %v1650_v62 = vld [vmem:[#allocation10 + $0x160] sm:$0xff] }
 0x24c   : > { %1765 = vmatpush.msra.mxu2 %v1623_v15  ;;  %1683 = vmatpush.msra.mxu0 %v1622_v59  ;;  %v1613_v5 = vld [vmem:[#allocation10 + $0x38] sm:$0xff]  ;;  %v1614_v9 = vld [vmem:[#allocation10 + $0x40] sm:$0xff]  ;;  %v1648_v10 = vld [vmem:[#allocation10 + $0x150] sm:$0xff] }
 0x24d   : > { %1806 = vmatpush.msra.mxu3 %v1655_v16  ;;  %1723 = vmatpush.msra.mxu1 %v1656_v60  ;;  %v1645_v6 = vld [vmem:[#allocation10 + $0x138] sm:$0xff]  ;;  %v1611_v32 = vld [vmem:[#allocation10 + $0x28] sm:$0xff]  ;;  %v1612_v51 = vld [vmem:[#allocation10 + $0x30] sm:$0xff] }
 0x24e   : > { %1766 = vmatpush.msra.mxu2 %v1621_v39  ;;  %1684 = vmatpush.msra.mxu0 %v1620_v63  ;;  %v1643_v35 = vld [vmem:[#allocation10 + $0x128] sm:$0xff]  ;;  %v1646_v52 = vld [vmem:[#allocation10 + $0x140] sm:$0xff]  ;;  %v1609_v13 = vld [vmem:[#allocation10 + $0x18] sm:$0xff] }
 0x24f   : > { %1807 = vmatpush.msra.mxu3 %v1653_v40  ;;  %1724 = vmatpush.msra.mxu1 %v1654_v0  ;;  %v1641_v14 = vld [vmem:[#allocation10 + $0x118] sm:$0xff]  ;;  %v1610_v11 = vld [vmem:[#allocation10 + $0x20] sm:$0xff]  ;;  %v1644_v12 = vld [vmem:[#allocation10 + $0x130] sm:$0xff] }
 0x250   : > { %1767 = vmatpush.msra.mxu2 %v1619_v21  ;;  %1685 = vmatpush.msra.mxu0 %v1618_v45  ;;  %v1607_v17 = vld [vmem:[#allocation10 + $0x8] sm:$0xff]  ;;  %v1590_v18 = vld [vmem:[%s9618_s7] sm:$0xff]  ;;  %v1608_v43 = vld [vmem:[#allocation10 + $0x10] sm:$0xff] }
 0x251   : > { %1808 = vmatpush.msra.mxu3 %v1651_v22  ;;  %1725 = vmatpush.msra.mxu1 %v1652_v46  ;;  %v1639_v36 = vld [vmem:[#allocation10 + $0x108] sm:$0xff]  ;;  %v1642_v19 = vld [vmem:[#allocation10 + $0x120] sm:$0xff]  ;;  %v1640_v23 = vld [vmem:[#allocation10 + $0x110] sm:$0xff] }
 0x252   : > { %1768 = vmatpush.msra.mxu2 %v1617_v3  ;;  %1686 = vmatpush.msra.mxu0 %v1616_v61  ;;  %v1591_v57 = vld [vmem:[%s9618_s7 + $0x8] sm:$0xff]  ;;  %v1606_v20 = vld [vmem:[#allocation10] sm:$0xff]  ;;  %v1592_v38 = vld [vmem:[%s9618_s7 + $0x10] sm:$0xff] }
 0x253   : > { %1809 = vmatpush.msra.mxu3 %v1649_v4  ;;  %1726 = vmatpush.msra.mxu1 %v1650_v62  ;;  %v1638_v24 = vld [vmem:[#allocation10 + $0x100] sm:$0xff]  ;;  %v1593_v47 = vld [vmem:[%s9618_s7 + $0x18] sm:$0xff]  ;;  %v1595_v41 = vld [vmem:[%s9618_s7 + $0x28] sm:$0xff] }
 0x254   : > { %1769 = vmatpush.msra.mxu2 %v1615_v29  ;;  %1687 = vmatpush.msra.mxu0 %v1614_v9  ;;  %v1594_v25 = vld [vmem:[%s9618_s7 + $0x20] sm:$0xff]  ;;  %v1596_v37 = vld [vmem:[%s9618_s7 + $0x30] sm:$0xff]  ;;  %v1597_v26 = vld [vmem:[%s9618_s7 + $0x38] sm:$0xff] }
 0x255   : > { %1810 = vmatpush.msra.mxu3 %v1647_v30  ;;  %1727 = vmatpush.msra.mxu1 %v1648_v10  ;;  %v2169_v1 = vld [vmem:[#allocation2 + $0x98] sm:$0xff]  ;;  %v1871_v2 = vld [vmem:[#allocation2 + $0x20] sm:$0xff]  ;;  %v2167_v28 = vld [vmem:[#allocation2 + $0x28] sm:$0xff] }
 0x256   : > { %1770 = vmatpush.msra.mxu2 %v1613_v5  ;;  %1688 = vmatpush.msra.mxu0 %v1612_v51  ;;  %v2168_v58 = vld [vmem:[#allocation2 + $0xf8] sm:$0xff]  ;;  %v1870_v27 = vld [vmem:[#allocation2 + $0xa0] sm:$0xff]  ;;  %v1869_v31 = vld [vmem:[#allocation2 + $0x10] sm:$0xff] }
 0x257   : > { %1811 = vmatpush.msra.mxu3 %v1645_v6  ;;  %1728 = vmatpush.msra.mxu1 %v1646_v52  ;;  %v1598_v42 = vld [vmem:[%s9618_s7 + $0x40] sm:$0xff]  ;;  %v1599_v44 = vld [vmem:[%s9618_s7 + $0x48] sm:$0xff]  ;;  %v2166_v48 = vld [vmem:[#allocation2 + $0xd0] sm:$0xff] }
 0x258   : > { %1771 = vmatpush.msra.mxu2 %v1611_v32  ;;  %1689 = vmatpush.msra.mxu0 %v1610_v11  ;;  %v1868_v7 = vld [vmem:[#allocation2 + $0xa8] sm:$0xff]  ;;  %v2165_v8 = vld [vmem:[#allocation2 + $0xc0] sm:$0xff]  ;;  %v1867_v33 = vld [vmem:[#allocation2 + $0x70] sm:$0xff] }
 0x259   : > { %1812 = vmatpush.msra.mxu3 %v1643_v35  ;;  %1729 = vmatpush.msra.mxu1 %v1644_v12  ;;  %v1600_v34 = vld [vmem:[%s9618_s7 + $0x50] sm:$0xff]  ;;  %v1601_v49 = vld [vmem:[%s9618_s7 + $0x58] sm:$0xff]  ;;  %v1866_v53 = vld [vmem:[#allocation2 + $0xe0] sm:$0xff] }
 0x25a   : > { %1772 = vmatpush.msra.mxu2 %v1609_v13  ;;  %1690 = vmatpush.msra.mxu0 %v1608_v43  ;;  %v2164_v50 = vld [vmem:[#allocation2 + $0x90] sm:$0xff]  ;;  %v2163_v54 = vld [vmem:[#allocation2 + $0xc8] sm:$0xff]  ;;  %v1865_v15 = vld [vmem:[#allocation2 + $0x40] sm:$0xff] }
 0x25b   : > { %1813 = vmatpush.msra.mxu3 %v1641_v14  ;;  %1730 = vmatpush.msra.mxu1 %v1642_v19  ;;  %v1602_v16 = vld [vmem:[%s9618_s7 + $0x60] sm:$0xff]  ;;  %v1603_v55 = vld [vmem:[%s9618_s7 + $0x68] sm:$0xff]  ;;  %v2162_v56 = vld [vmem:[#allocation2 + $0x58] sm:$0xff] }
 0x25c   : > { %1773 = vmatpush.msra.mxu2 %v1607_v17  ;;  %1691 = vmatpush.msra.mxu0 %v1606_v20  ;;  %v1864_v39 = vld [vmem:[#allocation2 + $0x38] sm:$0xff]  ;;  %v1863_v59 = vld [vmem:[#allocation2 + $0x8] sm:$0xff]  ;;  %v1604_v60 = vld [vmem:[%s9618_s7 + $0x70] sm:$0xff] }
 0x25d   : > { %1814 = vmatpush.msra.mxu3 %v1639_v36  ;;  %1774 = vmatmul.f32.vlgmr.msra.gmra.mxu2 %v1590_v18  ;;  %v2161_v40 = vld [vmem:[#allocation2 + $0x78] sm:$0xff]  ;;  %v2160_v21 = vld [vmem:[#allocation2 + $0xf0] sm:$0xff]  ;;  %v1862_v22 = vld [vmem:[#allocation2 + $0x60] sm:$0xff] }
 0x25e   : > { %1815 = vmatmul.f32.vlgmr.msra.gmra.mxu3 %v1591_v57  ;;  %1731 = vmatpush.msra.mxu1 %v1640_v23  ;;  %v2159_v63 = vld [vmem:[#allocation2 + $0xb8] sm:$0xff]  ;;  %v1861_v0 = vld [vmem:[#allocation2 + $0xe8] sm:$0xff]  ;;  %v1860_v4 = vld [vmem:[#allocation2 + $0x80] sm:$0xff] }
 0x25f   : > { %1692 = vmatmul.f32.vlgmr.msra.gmra.mxu0 %v1590_v18  ;;  %2170 = vmatpush.xpose.msrb.mxu2 %v2169_v1  ;;  %v2158_v3 = vld [vmem:[#allocation2 + $0x88] sm:$0xff]  ;;  %v1859_v46 = vld [vmem:[#allocation2 + $0x30] sm:$0xff]  ;;  %v2155_v30 = vld [vmem:[#allocation2 + $0x18] sm:$0xff] }
 0x260   : > { %1732 = vmatpush.msra.mxu1 %v1638_v24  ;;  %1872 = vmatpush.xpose.msrb.mxu0 %v1871_v2  ;;  %v2157_v45 = vld [vmem:[#allocation2 + $0x48] sm:$0xff]  ;;  %v1605_v61 = vld [vmem:[%s9618_s7 + $0x78] sm:$0xff]  ;;  %v1858_v62 = vld [vmem:[#allocation2 + $0x50] sm:$0xff] }
 0x261   : > { %1733 = vmatmul.f32.vlgmr.msra.gmra.mxu1 %v1591_v57  ;;  %v2156_v29 = vld [vmem:[#allocation2 + $0x68] sm:$0xff]  ;;  %v2154_v5 = vld [vmem:[#allocation2] sm:$0xff]  ;;  %v1857_v6 = vld [vmem:[#allocation2 + $0xd8] sm:$0xff] }
 0x262   : > { %v1856_v9 = vld [vmem:[#allocation2 + $0xb0] sm:$0xff]  ;;  %v1670_v10 = vld [vmem:[%s14650_s28] sm:$0x3]  ;;  %s15045_s28 = sld [smem:[#allocation135_spill]] }
 0x263   : > { %2171 = vmatpush.xpose.msrb.mxu2 %v2168_v58  ;;  %v9974_v32 = vperm.slane %v1670_v10, 0  ;;  %v9976_v35 = vperm.slane %v1670_v10, 1 }
 0x264   : > { %1873 = vmatpush.xpose.msrb.mxu0 %v1870_v27 }
 0x265   : > { %1777 = vmatmul.f32.gmra.mxu2 %v1592_v38 }
 0x266   : > { %1818 = vmatmul.f32.gmra.mxu3 %v1593_v47 }
 0x267   : > { %1695 = vmatmul.f32.gmra.mxu0 %v1592_v38  ;;  %2172 = vmatpush.xpose.msrb.mxu2 %v2167_v28 }
 0x268   : > { %1874 = vmatpush.xpose.msrb.mxu0 %v1869_v31 }
 0x269   : > { %1736 = vmatmul.f32.gmra.mxu1 %v1593_v47 }
 0x26b   : > { %2173 = vmatpush.xpose.msrb.mxu2 %v2166_v48 }
 0x26c   : > { %1875 = vmatpush.xpose.msrb.mxu0 %v1868_v7 }
 0x26d   : > { %1780 = vmatmul.f32.gmra.mxu2 %v1594_v25 }
 0x26e   : > { %1821 = vmatmul.f32.gmra.mxu3 %v1595_v41 }
 0x26f   : > { %1698 = vmatmul.f32.gmra.mxu0 %v1594_v25  ;;  %2174 = vmatpush.xpose.msrb.mxu2 %v2165_v8 }
 0x270   : > { %1876 = vmatpush.xpose.msrb.mxu0 %v1867_v33 }
 0x271   : > { %1739 = vmatmul.f32.gmra.mxu1 %v1595_v41 }
 0x273   : > { %2175 = vmatpush.xpose.msrb.mxu2 %v2164_v50 }
 0x274   : > { %1877 = vmatpush.xpose.msrb.mxu0 %v1866_v53 }
 0x275   : > { %1783 = vmatmul.f32.gmra.mxu2 %v1596_v37 }
 0x276   : > { %1824 = vmatmul.f32.gmra.mxu3 %v1597_v26 }
 0x277   : > { %1701 = vmatmul.f32.gmra.mxu0 %v1596_v37  ;;  %2176 = vmatpush.xpose.msrb.mxu2 %v2163_v54 }
 0x278   : > { %1878 = vmatpush.xpose.msrb.mxu0 %v1865_v15 }
 0x279   : > { %1742 = vmatmul.f32.gmra.mxu1 %v1597_v26 }
 0x27b   : > { %2177 = vmatpush.xpose.msrb.mxu2 %v2162_v56 }
 0x27c   : > { %1879 = vmatpush.xpose.msrb.mxu0 %v1864_v39 }
 0x27d   : > { %1786 = vmatmul.f32.gmra.mxu2 %v1598_v42 }
 0x27e   : > { %1827 = vmatmul.f32.gmra.mxu3 %v1599_v44 }
 0x27f   : > { %1704 = vmatmul.f32.gmra.mxu0 %v1598_v42  ;;  %2178 = vmatpush.xpose.msrb.mxu2 %v2161_v40 }
 0x280   : > { %1880 = vmatpush.xpose.msrb.mxu0 %v1863_v59 }
 0x281   : > { %1745 = vmatmul.f32.gmra.mxu1 %v1599_v44 }
 0x283   : > { %2179 = vmatpush.xpose.msrb.mxu2 %v2160_v21 }
 0x284   : > { %1881 = vmatpush.xpose.msrb.mxu0 %v1862_v22 }
 0x285   : > { %1789 = vmatmul.f32.gmra.mxu2 %v1600_v34 }
 0x286   : > { %1830 = vmatmul.f32.gmra.mxu3 %v1601_v49 }
 0x287   : > { %1707 = vmatmul.f32.gmra.mxu0 %v1600_v34  ;;  %2180 = vmatpush.xpose.msrb.mxu2 %v2159_v63 }
 0x288   : > { %1882 = vmatpush.xpose.msrb.mxu0 %v1861_v0 }
 0x289   : > { %1748 = vmatmul.f32.gmra.mxu1 %v1601_v49 }
 0x28b   : > { %2181 = vmatpush.xpose.msrb.mxu2 %v2158_v3 }
 0x28c   : > { %1883 = vmatpush.xpose.msrb.mxu0 %v1860_v4 }
 0x28d   : > { %1792 = vmatmul.f32.gmra.mxu2 %v1602_v16 }
 0x28e   : > { %1833 = vmatmul.f32.gmra.mxu3 %v1603_v55 }
 0x28f   : > { %1710 = vmatmul.f32.gmra.mxu0 %v1602_v16  ;;  %2182 = vmatpush.xpose.msrb.mxu2 %v2157_v45 }
 0x290   : > { %1884 = vmatpush.xpose.msrb.mxu0 %v1859_v46 }
 0x291   : > { %1751 = vmatmul.f32.gmra.mxu1 %v1603_v55 }
 0x293   : > { %2183 = vmatpush.xpose.msrb.mxu2 %v2156_v29 }
 0x294   : > { %1885 = vmatpush.xpose.msrb.mxu0 %v1858_v62 }
 0x295   : > { %1795 = vmatmul.f32.gmra.mxu2 %v1604_v60 }
 0x296   : > { %1836 = vmatmul.f32.gmra.mxu3 %v1605_v61 }
 0x297   : > { %1713 = vmatmul.f32.gmra.mxu0 %v1604_v60  ;;  %2184 = vmatpush.xpose.msrb.mxu2 %v2155_v30 }
 0x298   : > { %1886 = vmatpush.xpose.msrb.mxu0 %v1857_v6 }
 0x299   : > { %1754 = vmatmul.f32.gmra.mxu1 %v1605_v61 }
 0x29b   : > { %2185 = vmatpush.xpose.msrb.mxu2 %v2154_v5 }
 0x29c   : > { %1887 = vmatpush.xpose.msrb.mxu0 %v1856_v9 }
 0x2dc   : > { %v1693_v51 = vpop.f32.mrf.mxu0 }
 0x2dd   : > { %v1694_v52 = vadd.f32 %v1693_v51, %v9974_v32 }
 0x2de   : > { %v1734_v12 = vpop.f32.mrf.mxu1 }
 0x2df   : > { %v1735_v17 = vadd.f32 %v1734_v12, %v1694_v52 }
 0x2e0   : > { %v1775_v13 = vpop.f32.mrf.mxu2 }
 0x2e1   : > { %v1816_v14 = vpop.f32.mrf.mxu3  ;;  %v1776_v11 = vadd.f32 %v1775_v13, %v9976_v35  ;;  %v1840_v18 = vmul.f32 0.088388346, %v1735_v17 }
 0x2e3   : > { %v1817_v36 = vadd.f32 %v1816_v14, %v1776_v11  ;;  %1888 = vmatmul.f32.vlgmr.msrb.gmra.mxu0 %v1840_v18 }
 0x2e4   : > { %v1696_v43 = vpop.f32.mrf.mxu0 }
 0x2e5   : > { %v1841_v57 = vmul.f32 0.088388346, %v1817_v36  ;;  %v1697_v19 = vadd.f32 %v1696_v43, %v9974_v32 }
 0x2e6   : > { %v1737_v38 = vpop.f32.mrf.mxu1 }
 0x2e7   : > { %2186 = vmatmul.f32.vlgmr.msrb.gmra.mxu2 %v1841_v57  ;;  %v1738_v47 = vadd.f32 %v1737_v38, %v1697_v19 }
 0x2e8   : > { %v1778_v20 = vpop.f32.mrf.mxu2 }
 0x2e9   : > { %v1819_v23 = vpop.f32.mrf.mxu3  ;;  %v1779_v24 = vadd.f32 %v1778_v20, %v9976_v35  ;;  %v1842_v41 = vmul.f32 0.088388346, %v1738_v47 }
 0x2eb   : > { %v1820_v25 = vadd.f32 %v1819_v23, %v1779_v24  ;;  %1891 = vmatmul.f32.gmra.mxu0 %v1842_v41 }
 0x2ec   : > { %v1699_v26 = vpop.f32.mrf.mxu0 }
 0x2ed   : > { %v1843_v37 = vmul.f32 0.088388346, %v1820_v25  ;;  %v1700_v1 = vadd.f32 %v1699_v26, %v9974_v32 }
 0x2ee   : > { %v1740_v28 = vpop.f32.mrf.mxu1 }
 0x2ef   : > { %2189 = vmatmul.f32.gmra.mxu2 %v1843_v37  ;;  %v1741_v31 = vadd.f32 %v1740_v28, %v1700_v1 }
 0x2f0   : > { %v1781_v2 = vpop.f32.mrf.mxu2 }
 0x2f1   : > { %v1822_v58 = vpop.f32.mrf.mxu3  ;;  %v1782_v27 = vadd.f32 %v1781_v2, %v9976_v35  ;;  %v1844_v44 = vmul.f32 0.088388346, %v1741_v31 }
 0x2f3   : > { %v1823_v42 = vadd.f32 %v1822_v58, %v1782_v27  ;;  %1894 = vmatmul.f32.gmra.mxu0 %v1844_v44 }
 0x2f4   : > { %v1702_v7 = vpop.f32.mrf.mxu0 }
 0x2f5   : > { %v1845_v48 = vmul.f32 0.088388346, %v1823_v42  ;;  %v1703_v8 = vadd.f32 %v1702_v7, %v9974_v32 }
 0x2f6   : > { %v1743_v50 = vpop.f32.mrf.mxu1 }
 0x2f7   : > { %2192 = vmatmul.f32.gmra.mxu2 %v1845_v48  ;;  %v1744_v53 = vadd.f32 %v1743_v50, %v1703_v8 }
 0x2f8   : > { %v1784_v33 = vpop.f32.mrf.mxu2 }
 0x2f9   : > { %v1825_v34 = vpop.f32.mrf.mxu3  ;;  %v1785_v49 = vadd.f32 %v1784_v33, %v9976_v35  ;;  %v1846_v15 = vmul.f32 0.088388346, %v1744_v53 }
 0x2fb   : > { %v1826_v54 = vadd.f32 %v1825_v34, %v1785_v49  ;;  %1897 = vmatmul.f32.gmra.mxu0 %v1846_v15 }
 0x2fc   : > { %v1705_v55 = vpop.f32.mrf.mxu0 }
 0x2fd   : > { %v1847_v16 = vmul.f32 0.088388346, %v1826_v54  ;;  %v1706_v56 = vadd.f32 %v1705_v55, %v9974_v32 }
 0x2fe   : > { %v1746_v60 = vpop.f32.mrf.mxu1 }
 0x2ff   : > { %2195 = vmatmul.f32.gmra.mxu2 %v1847_v16  ;;  %v1747_v21 = vadd.f32 %v1746_v60, %v1706_v56 }
 0x300   : > { %v1787_v39 = vpop.f32.mrf.mxu2 }
 0x301   : > { %v1828_v40 = vpop.f32.mrf.mxu3  ;;  %v1788_v59 = vadd.f32 %v1787_v39, %v9976_v35  ;;  %v1848_v63 = vmul.f32 0.088388346, %v1747_v21 }
 0x303   : > { %v1829_v22 = vadd.f32 %v1828_v40, %v1788_v59  ;;  %1900 = vmatmul.f32.gmra.mxu0 %v1848_v63 }
 0x304   : > { %v1708_v3 = vpop.f32.mrf.mxu0 }
 0x305   : > { %v1849_v0 = vmul.f32 0.088388346, %v1829_v22  ;;  %v1709_v4 = vadd.f32 %v1708_v3, %v9974_v32 }
 0x306   : > { %v1749_v30 = vpop.f32.mrf.mxu1 }
 0x307   : > { %2198 = vmatmul.f32.gmra.mxu2 %v1849_v0  ;;  %v1750_v61 = vadd.f32 %v1749_v30, %v1709_v4 }
 0x308   : > { %v1790_v45 = vpop.f32.mrf.mxu2 }
 0x309   : > { %v1831_v46 = vpop.f32.mrf.mxu3  ;;  %v1791_v29 = vadd.f32 %v1790_v45, %v9976_v35  ;;  %v1850_v5 = vmul.f32 0.088388346, %v1750_v61 }
 0x30b   : > { %v1832_v62 = vadd.f32 %v1831_v46, %v1791_v29  ;;  %1903 = vmatmul.f32.gmra.mxu0 %v1850_v5 }
 0x30c   : > { %v1711_v9 = vpop.f32.mrf.mxu0 }
 0x30d   : > { %v1851_v6 = vmul.f32 0.088388346, %v1832_v62  ;;  %v1712_v10 = vadd.f32 %v1711_v9, %v9974_v32 }
 0x30e   : > { %v1752_v14 = vpop.f32.mrf.mxu1 }
 0x30f   : > { %2201 = vmatmul.f32.gmra.mxu2 %v1851_v6  ;;  %v1753_v11 = vadd.f32 %v1752_v14, %v1712_v10  ;;  %v2402_v10 = vld [vmem:[#allocation3 + $0x98] sm:$0xff] }
 0x310   : > { %v1793_v51 = vpop.f32.mrf.mxu2  ;;  %2403 = vmatpush.msrb.mxu3 %v2402_v10  ;;  %v2103_v14 = vld [vmem:[#allocation3 + $0xb8] sm:$0xff]  ;;  %v2090_v10 = vld [vmem:[#allocation3 + $0xe8] sm:$0xff] }
 0x311   : > { %v1834_v52 = vpop.f32.mrf.mxu3  ;;  %v1794_v13 = vadd.f32 %v1793_v51, %v9976_v35  ;;  %v1852_v17 = vmul.f32 0.088388346, %v1753_v11  ;;  %v2401_v51 = vld [vmem:[#allocation3] sm:$0xff] }
 0x312   : > { %2404 = vmatpush.msrb.mxu3 %v2401_v51  ;;  %v2089_v51 = vld [vmem:[#allocation3 + $0x80] sm:$0xff] }
 0x313   : > { %v1835_v12 = vadd.f32 %v1834_v52, %v1794_v13  ;;  %1906 = vmatmul.f32.gmra.mxu0 %v1852_v17  ;;  %v2104_v52 = vld [vmem:[#allocation3 + $0x28] sm:$0xff]  ;;  %v2400_v13 = vld [vmem:[#allocation3 + $0xc0] sm:$0xff] }
 0x314   : > { %v1714_v20 = vpop.f32.mrf.mxu0  ;;  %2105 = vmatpush.msrb.mxu1 %v2104_v52  ;;  %2405 = vmatpush.msrb.mxu3 %v2400_v13 }
 0x315   : > { %v1853_v36 = vmul.f32 0.088388346, %v1835_v12  ;;  %v1715_v24 = vadd.f32 %v1714_v20, %v9974_v32  ;;  %v2398_v20 = vld [vmem:[#allocation3 + $0xf0] sm:$0xff] }
 0x316   : > { %v1755_v38 = vpop.f32.mrf.mxu1  ;;  %2106 = vmatpush.msrb.mxu1 %v2103_v14 }
 0x317   : > { %2204 = vmatmul.f32.gmra.mxu2 %v1853_v36  ;;  %v1756_v47 = vadd.f32 %v1755_v38, %v1715_v24  ;;  %v2397_v38 = vld [vmem:[#allocation3 + $0x30] sm:$0xff] }
 0x318   : > { %v1796_v18 = vpop.f32.mrf.mxu2 }
 0x319   : > { %v1797_v57 = vadd.f32 %v1796_v18, %v9976_v35  ;;  %v1837_v43 = vpop.f32.mrf.mxu3  ;;  %v1854_v25 = vmul.f32 0.088388346, %v1756_v47  ;;  %v2399_v18 = vld [vmem:[#allocation3 + $0x48] sm:$0xff] }
 0x31a   : > { %2406 = vmatpush.msrb.mxu3 %v2399_v18 }
 0x31b   : > { %v1838_v19 = vadd.f32 %v1837_v43, %v1797_v57  ;;  %1909 = vmatmul.f32.gmra.mxu0 %v1854_v25 }
 0x31c   : > { %2407 = vmatpush.msrb.mxu3 %v2398_v20 }
 0x31d   : > { %v1855_v23 = vmul.f32 0.088388346, %v1838_v19 }
 0x31e   : > { %2408 = vmatpush.msrb.mxu3 %v2397_v38 }
 0x31f   : > { %2207 = vmatmul.f32.gmra.mxu2 %v1855_v23 }
 0x360   : > { %v1889_v41 = vpop.f32.mrf.mxu0 }
 0x368   : > { %v1892_v26 = vpop.f32.mrf.mxu0 }
 0x36a   : > { %v2187_v37 = vpop.f32.mrf.mxu2 }
 0x36b   : > { %2211 = vmax.xlane.f32.xlu0 %v2187_v37 }
 0x370   : > { %v1895_v2 = vpop.f32.mrf.mxu0 }
 0x372   : > { %v2190_v1 = vpop.f32.mrf.mxu2 }
 0x373   : > { %2213 = vmax.xlane.f32.xlu1 %v2190_v1  ;;  %1913 = vmax.xlane.f32.xlu0 %v1889_v41 }
 0x378   : > { %v1898_v58 = vpop.f32.mrf.mxu0 }
 0x37a   : > { %v2193_v35 = vpop.f32.mrf.mxu2 }
 0x37b   : > { %2215 = vmax.xlane.f32.xlu2 %v2193_v35  ;;  %1915 = vmax.xlane.f32.xlu1 %v1892_v26 }
 0x380   : > { %v9994_v32 = vpop.f32.mrf.mxu0 }
 0x382   : > { %v2196_v27 = vpop.f32.mrf.mxu2 }
 0x383   : > { %2217 = vmax.xlane.f32.xlu0 %v2196_v27  ;;  %1917 = vmax.xlane.f32.xlu2 %v1895_v2 }
 0x384   : > { %1919 = vmax.xlane.f32.xlu1 %v1898_v58 }
 0x388   : > { %v10000_v31 = vpop.f32.mrf.mxu0 }
 0x38a   : > { %v9996_v28 = vpop.f32.mrf.mxu2 }
 0x38b   : > { %2219 = vmax.xlane.f32.xlu2 %v9996_v28  ;;  %1921 = vmax.xlane.f32.xlu0 %v9994_v32 }
 0x390   : > { %v10006_v44 = vpop.f32.mrf.mxu0 }
 0x392   : > { %v10002_v42 = vpop.f32.mrf.mxu2 }
 0x393   : > { %2221 = vmax.xlane.f32.xlu1 %v10002_v42  ;;  %1923 = vmax.xlane.f32.xlu2 %v10000_v31 }
 0x398   : > { %v10028_v6 = vpop.f32.mrf.mxu0 }
 0x39a   : > { %v10008_v48 = vpop.f32.mrf.mxu2 }
 0x39b   : > { %2223 = vmax.xlane.f32.xlu0 %v10008_v48  ;;  %1925 = vmax.xlane.f32.xlu2 %v10006_v44 }
 0x3a2   : > { %v10017_v60 = vpop.f32.mrf.mxu2 }
 0x3de   : > { %v2212_v7 = vpop.xlane.xlu0 %2211 }
 0x3df   : > { %v2227_v8 = vsub.f32 %v2187_v37, %v2212_v7 }
 0x3e1   : > { %v2235_v33 = vmul.f32 1.442695, %v2227_v8 }
 0x3e3   : > { %8483 = vpow2.f32 %v2235_v33 }
 0x3e6   : > { %v2214_v34 = vpop.xlane.xlu1 %2213  ;;  %v1914_v49 = vpop.xlane.xlu0 %1913 }
 0x3e7   : > { %v2228_v50 = vsub.f32 %v2190_v1, %v2214_v34  ;;  %v1929_v53 = vsub.f32 %v1889_v41, %v1914_v49  ;;  %v2101_v49 = vld [vmem:[#allocation3 + $0x88] sm:$0xff] }
 0x3e9   : > { %v10012_v54 = vpop.eup %8483  ;;  %v2237_v15 = vmul.f32 1.442695, %v2228_v50  ;;  %v1937_v16 = vmul.f32 1.442695, %v1929_v53  ;;  %v2395_v50 = vld [vmem:[#allocation3 + $0x70] sm:$0xff]  ;;  %v2100_v53 = vld [vmem:[#allocation3 + $0x20] sm:$0xff] }
 0x3ea   : > { %2251 = vadd.xlane.f32.xlu1 %v10012_v54 }
 0x3eb   : > { %8485 = vpow2.f32 %v2237_v15  ;;  %v2394_v15 = vld [vmem:[#allocation3 + $0x68] sm:$0xff] }
 0x3ec   : > { %8487 = vpow2.f32 %v1937_v16  ;;  %v2099_v16 = vld [vmem:[#allocation3 + $0xd8] sm:$0xff] }
 0x3ee   : > { %v2216_v55 = vpop.xlane.xlu2 %2215  ;;  %v1916_v56 = vpop.xlane.xlu1 %1915 }
 0x3ef   : > { %v2229_v39 = vsub.f32 %v2193_v35, %v2216_v55  ;;  %v1930_v40 = vsub.f32 %v1892_v26, %v1916_v56  ;;  %v2393_v55 = vld [vmem:[#allocation3 + $0x60] sm:$0xff]  ;;  %v2098_v56 = vld [vmem:[#allocation3 + $0x50] sm:$0xff] }
 0x3f1   : > { %v10015_v59 = vpop.eup %8485  ;;  %v2239_v21 = vmul.f32 1.442695, %v2229_v39  ;;  %v1939_v22 = vmul.f32 1.442695, %v1930_v40  ;;  %v2392_v39 = vld [vmem:[#allocation3 + $0x40] sm:$0xff]  ;;  %v2097_v40 = vld [vmem:[#allocation3 + $0x10] sm:$0xff] }
 0x3f2   : > { %v10019_v63 = vpop.eup %8487  ;;  %2225 = vmax.xlane.f32.xlu1 %v10017_v60  ;;  %2253 = vadd.xlane.f32.xlu2 %v10015_v59 }
 0x3f3   : > { %8489 = vpow2.f32 %v2239_v21  ;;  %1953 = vadd.xlane.f32.xlu0 %v10019_v63  ;;  %v2391_v21 = vld [vmem:[#allocation3 + $0xb0] sm:$0xff] }
 0x3f4   : > { %8491 = vpow2.f32 %v1939_v22  ;;  %v2096_v22 = vld [vmem:[#allocation3 + $0x18] sm:$0xff] }
 0x3f6   : > { %v2218_v0 = vpop.xlane.xlu0 %2217  ;;  %v1918_v3 = vpop.xlane.xlu2 %1917 }
 0x3f7   : > { %v2230_v4 = vsub.f32 %v2196_v27, %v2218_v0  ;;  %v1931_v45 = vsub.f32 %v1895_v2, %v1918_v3  ;;  %v1920_v46 = vpop.xlane.xlu1 %1919  ;;  %v2390_v0 = vld [vmem:[#allocation3 + $0xa8] sm:$0xff]  ;;  %v2095_v3 = vld [vmem:[#allocation3 + $0xe0] sm:$0xff] }
 0x3f8   : > { %v1932_v29 = vsub.f32 %v1898_v58, %v1920_v46  ;;  %v2388_v46 = vld [vmem:[#allocation3 + $0x78] sm:$0xff] }
 0x3f9   : > { %v10024_v30 = vpop.eup %8489  ;;  %v2241_v61 = vmul.f32 1.442695, %v2230_v4  ;;  %v1941_v62 = vmul.f32 1.442695, %v1931_v45  ;;  %v2389_v4 = vld [vmem:[#allocation3 + $0x90] sm:$0xff]  ;;  %v2094_v45 = vld [vmem:[#allocation3 + $0x38] sm:$0xff] }
 0x3fa   : > { %v10026_v5 = vpop.eup %8491  ;;  %v1943_v9 = vmul.f32 1.442695, %v1932_v29  ;;  %2255 = vadd.xlane.f32.xlu2 %v10024_v30  ;;  %v2093_v29 = vld [vmem:[#allocation3 + $0xd0] sm:$0xff] }
 0x3fb   : > { %8493 = vpow2.f32 %v2241_v61  ;;  %1955 = vadd.xlane.f32.xlu1 %v10026_v5  ;;  %1927 = vmax.xlane.f32.xlu0 %v10028_v6  ;;  %v2387_v61 = vld [vmem:[#allocation3 + $0xc8] sm:$0xff] }
 0x3fc   : > { %8495 = vpow2.f32 %v1941_v62  ;;  %v2092_v62 = vld [vmem:[#allocation3 + $0x58] sm:$0xff] }
 0x3fd   : > { %8497 = vpow2.f32 %v1943_v9  ;;  %v2091_v9 = vld [vmem:[#allocation3 + $0x8] sm:$0xff] }
 0x3fe   : > { %v2220_v11 = vpop.xlane.xlu2 %2219  ;;  %v1922_v12 = vpop.xlane.xlu0 %1921 }
 0x3ff   : > { %v2231_v17 = vsub.f32 %v9996_v28, %v2220_v11  ;;  %v1933_v36 = vsub.f32 %v9994_v32, %v1922_v12 }
 0x401   : > { %v10035_v57 = vpop.eup %8493  ;;  %v2243_v43 = vmul.f32 1.442695, %v2231_v17  ;;  %v1945_v19 = vmul.f32 1.442695, %v1933_v36 }
 0x402   : > { %v10037_v23 = vpop.eup %8495 }
 0x403   : > { %v10039_v24 = vpop.eup %8497  ;;  %8499 = vpow2.f32 %v2243_v43  ;;  %2257 = vadd.xlane.f32.xlu1 %v10035_v57  ;;  %1957 = vadd.xlane.f32.xlu0 %v10037_v23 }
 0x404   : > { %8501 = vpow2.f32 %v1945_v19  ;;  %1959 = vadd.xlane.f32.xlu2 %v10039_v24 }
 0x406   : > { %v2222_v47 = vpop.xlane.xlu1 %2221  ;;  %v1924_v25 = vpop.xlane.xlu2 %1923 }
 0x407   : > { %v2232_v41 = vsub.f32 %v10002_v42, %v2222_v47  ;;  %v1934_v37 = vsub.f32 %v10000_v31, %v1924_v25 }
 0x409   : > { %v10046_v26 = vpop.eup %8499  ;;  %v2245_v1 = vmul.f32 1.442695, %v2232_v41  ;;  %v1947_v2 = vmul.f32 1.442695, %v1934_v37 }
 0x40a   : > { %v10048_v35 = vpop.eup %8501 }
 0x40b   : > { %8503 = vpow2.f32 %v2245_v1  ;;  %1961 = vadd.xlane.f32.xlu1 %v10048_v35  ;;  %2259 = vadd.xlane.f32.xlu0 %v10046_v26 }
 0x40c   : > { %8505 = vpow2.f32 %v1947_v2 }
 0x40e   : > { %v2224_v58 = vpop.xlane.xlu0 %2223  ;;  %v1926_v27 = vpop.xlane.xlu2 %1925 }
 0x40f   : > { %v2233_v32 = vsub.f32 %v10008_v48, %v2224_v58  ;;  %v1935_v28 = vsub.f32 %v10006_v44, %v1926_v27  ;;  %v2102_v44 = vld [vmem:[#allocation3 + $0xf8] sm:$0xff]  ;;  %v2396_v48 = vld [vmem:[#allocation3 + $0xa0] sm:$0xff] }
 0x410   : > { %2107 = vmatpush.msrb.mxu1 %v2102_v44  ;;  %2409 = vmatpush.msrb.mxu3 %v2396_v48 }
 0x411   : > { %v10054_v42 = vpop.eup %8503  ;;  %v2247_v31 = vmul.f32 1.442695, %v2233_v32  ;;  %v1949_v7 = vmul.f32 1.442695, %v1935_v28 }
 0x412   : > { %v10056_v8 = vpop.eup %8505  ;;  %2261 = vadd.xlane.f32.xlu2 %v10054_v42  ;;  %2108 = vmatpush.msrb.mxu1 %v2101_v49 }
 0x413   : > { %8507 = vpow2.f32 %v2247_v31  ;;  %1963 = vadd.xlane.f32.xlu0 %v10056_v8  ;;  %2410 = vmatpush.msrb.mxu3 %v2395_v50 }
 0x414   : > { %8509 = vpow2.f32 %v1949_v7  ;;  %2109 = vmatpush.msrb.mxu1 %v2100_v53 }
 0x415   : > { %2411 = vmatpush.msrb.mxu3 %v2394_v15 }
 0x416   : > { %2110 = vmatpush.msrb.mxu1 %v2099_v16 }
 0x417   : > { %2412 = vmatpush.msrb.mxu3 %v2393_v55 }
 0x418   : > { %2111 = vmatpush.msrb.mxu1 %v2098_v56 }
 0x419   : > { %v10060_v33 = vpop.eup %8507  ;;  %2413 = vmatpush.msrb.mxu3 %v2392_v39 }
 0x41a   : > { %v10062_v34 = vpop.eup %8509  ;;  %2263 = vadd.xlane.f32.xlu1 %v10060_v33  ;;  %2112 = vmatpush.msrb.mxu1 %v2097_v40 }
 0x41b   : > { %1965 = vadd.xlane.f32.xlu2 %v10062_v34  ;;  %2414 = vmatpush.msrb.mxu3 %v2391_v21 }
 0x41c   : > { %2113 = vmatpush.msrb.mxu1 %v2096_v22 }
 0x41d   : > { %2415 = vmatpush.msrb.mxu3 %v2390_v0 }
 0x41e   : > { %2114 = vmatpush.msrb.mxu1 %v2095_v3 }
 0x41f   : > { %2416 = vmatpush.msrb.mxu3 %v2389_v4 }
 0x420   : > { %2115 = vmatpush.msrb.mxu1 %v2094_v45 }
 0x421   : > { %2417 = vmatpush.msrb.mxu3 %v2388_v46 }
 0x422   : > { %2116 = vmatpush.msrb.mxu1 %v2093_v29 }
 0x423   : > { %2418 = vmatpush.msrb.mxu3 %v2387_v61 }
 0x424   : > { %2117 = vmatpush.msrb.mxu1 %v2092_v62 }
 0x426   : > { %2118 = vmatpush.msrb.mxu1 %v2091_v9 }
 0x428   : > { %2119 = vmatpush.msrb.mxu1 %v2090_v10 }
 0x42a   : > { %2120 = vmatpush.msrb.mxu1 %v2089_v51 }
 0x45d   : > { %v2252_v52 = vpop.xlane.xlu1 %2251 }
 0x45e   : > { %8511 = vrcp.f32 %v2252_v52  ;;  %v2278_v43 = vand.u32 2147483648, %v2252_v52  ;;  %v2276_v38 = vand.u32 2147483647, %v2252_v52  ;;  %vm2272_vm1 = vweird.f32 %v2252_v52 }
 0x460   : > { %v2279_v41 = vor.u32 1.1754944e-38, %v2278_v43  ;;  %vm2277_vm3 = vcmp.eq.f32.partialorder %v2276_v38, 8.507059e+37 }
 0x464   : > { %v8512_v13 = vpop.eup %8511 }
 0x465   : > { %v2268_v14 = vmul.f32 %v8512_v13, %v2252_v52  ;;  %v2226_v11 = vpop.xlane.xlu1 %2225  ;;  %v2254_v12 = vpop.xlane.xlu2 %2253  ;;  %vm2273_vm0 = vweird.f32 %v8512_v13 }
 0x466   : > { %v2234_v17 = vsub.f32 %v10017_v60, %v2226_v11  ;;  %v1954_v36 = vpop.xlane.xlu0 %1953  ;;  %8513 = vrcp.f32 %v2254_v12  ;;  %vm2274_vm2 = vmor %vm2272_vm1, %vm2273_vm0  ;;  %v2290_v53 = vand.u32 2147483647, %v2254_v12  ;;  %v2292_v15 = vand.u32 2147483648, %v2254_v12 }
 0x467   : > { %v2269_v18 = vsub.f32 1.0, %v2268_v14  ;;  %8515 = vrcp.f32 %v1954_v36  ;;  %v1980_v50 = vand.u32 2147483648, %v1954_v36  ;;  %v1978_v56 = vand.u32 2147483647, %v1954_v36 }
 0x468   : > { %v2249_v19 = vmul.f32 1.442695, %v2234_v17  ;;  %vm1974_vm6 = vweird.f32 %v1954_v36  ;;  %vm2286_vm7 = vweird.f32 %v2254_v12  ;;  %vm2291_vm9 = vcmp.eq.f32.partialorder %v2290_v53, 8.507059e+37 }
 0x469   : > { %v2270_v20 = vmul.f32 %v8512_v13, %v2269_v18  ;;  %v1981_v40 = vor.u32 1.1754944e-38, %v1980_v50  ;;  %v2293_v22 = vor.u32 1.1754944e-38, %v2292_v15  ;;  %vm1979_vm11 = vcmp.eq.f32.partialorder %v1978_v56, 8.507059e+37 }
 0x46a   : > { %8517 = vpow2.f32 %v2249_v19 }
 0x46b   : > { %v2271_v47 = vadd.f32 %v8512_v13, %v2270_v20 }
 0x46c   : > { %v8514_v25 = vpop.eup %8513 }
 0x46d   : > { %v8516_v37 = vpop.eup %8515  ;;  %v2282_v1 = vmul.f32 %v8514_v25, %v2254_v12  ;;  %v10067_v2 = vpop.xlane.xlu2 %2255  ;;  %v2275_v60 = vsel %vm2274_vm2, %v8512_v13, %v2271_v47  ;;  %vm2287_vm4 = vweird.f32 %v8514_v25 }
 0x46e   : > { %v1970_v58 = vmul.f32 %v8516_v37, %v1954_v36  ;;  %v10069_v27 = vpop.xlane.xlu1 %1955  ;;  %8519 = vrcp.f32 %v10067_v2  ;;  %v1928_v32 = vpop.xlane.xlu0 %1927  ;;  %v2280_v28 = vsel %vm2277_vm3, %v2279_v41, %v2275_v60  ;;  %vm1975_vm5 = vweird.f32 %v8516_v37  ;;  %vm2288_vm8 = vmor %vm2286_vm7, %vm2287_vm4 }
 0x46f   : > { %v2283_v31 = vsub.f32 1.0, %v2282_v1  ;;  %8521 = vrcp.f32 %v10069_v27  ;;  %v1936_v7 = vsub.f32 %v10028_v6, %v1928_v32  ;;  %v2379_v44 = vmul.f32 %v10012_v54, %v2280_v28  ;;  %vm1976_vm10 = vmor %vm1974_vm6, %vm1975_vm5 }
 0x470   : > { %v10075_v48 = vpop.eup %8517  ;;  %v1971_v49 = vsub.f32 1.0, %v1970_v58  ;;  %v1992_v45 = vand.u32 2147483647, %v10069_v27  ;;  %v1994_v10 = vand.u32 2147483648, %v10069_v27  ;;  %v2306_v17 = vand.u32 2147483648, %v10067_v2 }
 0x471   : > { %v2284_v16 = vmul.f32 %v8514_v25, %v2283_v31  ;;  %v1951_v55 = vmul.f32 1.442695, %v1936_v7  ;;  %2419 = vmatmul.f32.vlgmr.msrb.gmra.mxu3 %v2379_v44  ;;  %2265 = vadd.xlane.f32.xlu0 %v10075_v48  ;;  %v2304_v43 = vand.u32 2147483647, %v10067_v2  ;;  %vm2300_vm14 = vweird.f32 %v10067_v2 }
 0x472   : > { %v1972_v39 = vmul.f32 %v8516_v37, %v1971_v49  ;;  %vm1988_vm15 = vweird.f32 %v10069_v27  ;;  %vm10100_vm0 = vcmp.eq.f32.partialorder %v1992_v45, 8.507059e+37  ;;  %v2307_v38 = vor.u32 1.1754944e-38, %v2306_v17 }
 0x473   : > { %8523 = vpow2.f32 %v1951_v55  ;;  %v2285_v6 = vadd.f32 %v8514_v25, %v2284_v16  ;;  %v1995_v41 = vor.u32 1.1754944e-38, %v1994_v10  ;;  %vm2305_vm3 = vcmp.eq.f32.partialorder %v2304_v43, 8.507059e+37 }
 0x474   : > { %v8520_v54 = vpop.eup %8519  ;;  %v1973_v21 = vadd.f32 %v8516_v37, %v1972_v39 }
 0x475   : > { %v8522_v0 = vpop.eup %8521  ;;  %v2296_v3 = vmul.f32 %v8520_v54, %v10067_v2  ;;  %v2289_v4 = vsel %vm2288_vm8, %v8514_v25, %v2285_v6  ;;  %vm2301_vm12 = vweird.f32 %v8520_v54 }
 0x476   : > { %v1984_v46 = vmul.f32 %v8522_v0, %v10069_v27  ;;  %v10081_v29 = vpop.xlane.xlu1 %2257  ;;  %v10083_v61 = vpop.xlane.xlu0 %1957  ;;  %v1977_v62 = vsel %vm1976_vm10, %v8516_v37, %v1973_v21  ;;  %v2294_v9 = vsel %vm2291_vm9, %v2293_v22, %v2289_v4  ;;  %vm1989_vm13 = vweird.f32 %v8522_v0  ;;  %vm2302_vm1 = vmor %vm2300_vm14, %vm2301_vm12 }
 0x477   : > { %v2297_v51 = vsub.f32 1.0, %v2296_v3  ;;  %8525 = vrcp.f32 %v10081_v29  ;;  %v10087_v52 = vpop.xlane.xlu2 %1959  ;;  %v1982_v13 = vsel %vm1979_vm11, %v1981_v40, %v1977_v62  ;;  %v2380_v14 = vmul.f32 %v10015_v59, %v2294_v9  ;;  %vm10104_vm2 = vmor %vm1988_vm15, %vm1989_vm13 }
 0x478   : > { %v1985_v11 = vsub.f32 1.0, %v1984_v46  ;;  %8527 = vrcp.f32 %v10087_v52  ;;  %v2081_v12 = vmul.f32 %v10019_v63, %v1982_v13  ;;  %v2006_v1 = vand.u32 2147483647, %v10083_v61 }
 0x479   : > { %v10093_v36 = vpop.eup %8523  ;;  %v2298_v18 = vmul.f32 %v8520_v54, %v2297_v51  ;;  %8529 = vrcp.f32 %v10083_v61  ;;  %2422 = vmatmul.f32.gmra.mxu3 %v2380_v14  ;;  %v2008_v31 = vand.u32 2147483648, %v10083_v61  ;;  %v2318_v56 = vand.u32 2147483647, %v10081_v29 }
 0x47a   : > { %v1986_v19 = vmul.f32 %v8522_v0, %v1985_v11  ;;  %2121 = vmatmul.f32.vlgmr.msrb.gmra.mxu1 %v2081_v12  ;;  %1967 = vadd.xlane.f32.xlu1 %v10093_v36  ;;  %v2320_v39 = vand.u32 2147483648, %v10081_v29  ;;  %vm2002_vm5 = vweird.f32 %v10083_v61  ;;  %vm10132_vm6 = vcmp.eq.f32.partialorder %v2006_v1, 8.507059e+37  ;;  %v2496_v1 = vld [vmem:[#allocation17 + $0xe0] sm:$0xff] }
 0x47b   : > { %v2299_v59 = vadd.f32 %v8520_v54, %v2298_v18  ;;  %vm2314_vm7 = vweird.f32 %v10081_v29  ;;  %v2009_v21 = vor.u32 1.1754944e-38, %v2008_v31  ;;  %vm2319_vm10 = vcmp.eq.f32.partialorder %v2318_v56, 8.507059e+37 }
 0x47c   : > { %v1987_v63 = vadd.f32 %v8522_v0, %v1986_v19  ;;  %v2321_v4 = vor.u32 1.1754944e-38, %v2320_v39  ;;  %v2020_v45 = vand.u32 2147483647, %v10087_v52  ;;  %v2022_v18 = vand.u32 2147483648, %v10087_v52 }
 0x47d   : > { %v8526_v47 = vpop.eup %8525  ;;  %v2303_v37 = vsel %vm2302_vm1, %v8520_v54, %v2299_v59  ;;  %vm2016_vm13 = vweird.f32 %v10087_v52 }
 0x47e   : > { %v10109_v2 = vpop.eup %8527  ;;  %v2310_v60 = vmul.f32 %v8526_v47, %v10081_v29  ;;  %v10112_v58 = vpop.xlane.xlu1 %1961  ;;  %v1991_v32 = vsel %vm10104_vm2, %v8522_v0, %v1987_v63  ;;  %v2308_v28 = vsel %vm2305_vm3, %v2307_v38, %v2303_v37  ;;  %vm2315_vm4 = vweird.f32 %v8526_v47  ;;  %v2499_v37 = vld [vmem:[#allocation17 + $0xf8] sm:$0xff] }
 0x47f   : > { %v10114_v27 = vpop.xlane.xlu0 %2259  ;;  %v8530_v7 = vpop.eup %8529  ;;  %v2012_v44 = vmul.f32 %v10109_v2, %v10087_v52  ;;  %8531 = vrcp.f32 %v10112_v58  ;;  %v1996_v49 = vsel %vm10100_vm0, %v1995_v41, %v1991_v32  ;;  %v2381_v50 = vmul.f32 %v10024_v30, %v2308_v28  ;;  %vm2316_vm9 = vmor %vm2314_vm7, %vm2315_vm4  ;;  %v2498_v41 = vld [vmem:[#allocation17 + $0xf0] sm:$0xff]  ;;  %2620 = vmatpush.msra.mxu2 %v2499_v37 }
 0x480   : > { %v2311_v53 = vsub.f32 1.0, %v2310_v60  ;;  %v1998_v15 = vmul.f32 %v8530_v7, %v10083_v61  ;;  %8533 = vrcp.f32 %v10114_v27  ;;  %v2082_v16 = vmul.f32 %v10026_v5, %v1996_v49  ;;  %2538 = vmatpush.msra.mxu0 %v2498_v41 }
 0x481   : > { %v2013_v55 = vsub.f32 1.0, %v2012_v44  ;;  %2425 = vmatmul.f32.gmra.mxu3 %v2381_v50  ;;  %vm2003_vm8 = vweird.f32 %v8530_v7  ;;  %vm2017_vm11 = vweird.f32 %v10109_v2  ;;  %v2332_v59 = vand.u32 2147483647, %v10114_v27  ;;  %v2497_v44 = vld [vmem:[#allocation17 + $0xe8] sm:$0xff] }
 0x482   : > { %v2312_v6 = vmul.f32 %v8526_v47, %v2311_v53  ;;  %v1999_v54 = vsub.f32 1.0, %v1998_v15  ;;  %2124 = vmatmul.f32.gmra.mxu1 %v2082_v16  ;;  %vm2004_vm12 = vmor %vm2002_vm5, %vm2003_vm8  ;;  %vm10174_vm0 = vcmp.eq.f32.partialorder %v2020_v45, 8.507059e+37  ;;  %v2023_v25 = vor.u32 1.1754944e-38, %v2022_v18  ;;  %v2494_v16 = vld [vmem:[#allocation17 + $0xd0] sm:$0xff]  ;;  %2539 = vmatpush.msra.mxu0 %v2496_v1 }
 0x483   : > { %v2014_v40 = vmul.f32 %v10109_v2, %v2013_v55  ;;  %vm10163_vm14 = vmor %vm2016_vm13, %vm2017_vm11  ;;  %vm2328_vm1 = vweird.f32 %v10114_v27  ;;  %vm10185_vm2 = vcmp.eq.f32.partialorder %v2332_v59, 8.507059e+37  ;;  %v2495_v55 = vld [vmem:[#allocation17 + $0xd8] sm:$0xff]  ;;  %2621 = vmatpush.msra.mxu2 %v2497_v44 }
 0x484   : > { %v2000_v5 = vmul.f32 %v8530_v7, %v1999_v54  ;;  %v2313_v22 = vadd.f32 %v8526_v47, %v2312_v6  ;;  %v2531_v6 = vld [vmem:[#allocation17 + $0x1f8] sm:$0xff]  ;;  %2540 = vmatpush.msra.mxu0 %v2494_v16 }
 0x485   : > { %v10137_v0 = vpop.eup %8531  ;;  %v10139_v3 = vpop.xlane.xlu2 %2261  ;;  %v2015_v14 = vadd.f32 %v10109_v2, %v2014_v40  ;;  %2661 = vmatpush.msra.mxu3 %v2531_v6  ;;  %2622 = vmatpush.msra.mxu2 %v2495_v55 }
 0x486   : > { %v8534_v46 = vpop.eup %8533  ;;  %v2026_v62 = vmul.f32 %v10137_v0, %v10112_v58  ;;  %8535 = vrcp.f32 %v10139_v3  ;;  %v2001_v9 = vadd.f32 %v8530_v7, %v2000_v5  ;;  %v2317_v10 = vsel %vm2316_vm9, %v8526_v47, %v2313_v22  ;;  %v2492_v5 = vld [vmem:[#allocation17 + $0xc0] sm:$0xff] }
 0x487   : > { %v10146_v29 = vpop.xlane.xlu0 %1963  ;;  %v2324_v51 = vmul.f32 %v8534_v46, %v10114_v27  ;;  %v2322_v13 = vsel %vm2319_vm10, %v2321_v4, %v2317_v10  ;;  %v2019_v38 = vsel %vm10163_vm14, %v10109_v2, %v2015_v14  ;;  %vm2329_vm15 = vweird.f32 %v8534_v46  ;;  %v2490_v10 = vld [vmem:[#allocation17 + $0xb0] sm:$0xff]  ;;  %2541 = vmatpush.msra.mxu0 %v2492_v5  ;;  %v2523_v5 = vld [vmem:[#allocation17 + $0x1b8] sm:$0xff] }
 0x488   : > { %8537 = vrcp.f32 %v10146_v29  ;;  %v2027_v11 = vsub.f32 1.0, %v2026_v62  ;;  %v2005_v12 = vsel %vm2004_vm12, %v8530_v7, %v2001_v9  ;;  %v2382_v17 = vmul.f32 %v10035_v57, %v2322_v13  ;;  %vm2330_vm3 = vmor %vm2328_vm1, %vm2329_vm15  ;;  %v2491_v13 = vld [vmem:[#allocation17 + $0xb8] sm:$0xff] }
 0x489   : > { %v2325_v43 = vsub.f32 1.0, %v2324_v51  ;;  %v2010_v19 = vsel %vm10132_vm6, %v2009_v21, %v2005_v12  ;;  %v2334_v57 = vand.u32 2147483648, %v10114_v27  ;;  %v2036_v7 = vand.u32 2147483648, %v10112_v58  ;;  %v2529_v21 = vld [vmem:[#allocation17 + $0x1e8] sm:$0xff]  ;;  %v2488_v12 = vld [vmem:[#allocation17 + $0xa0] sm:$0xff]  ;;  %2542 = vmatpush.msra.mxu0 %v2490_v10 }
 0x48a   : > { %v2083_v61 = vmul.f32 %v10037_v23, %v2010_v19  ;;  %2428 = vmatmul.f32.gmra.mxu3 %v2382_v17  ;;  %v2028_v47 = vmul.f32 %v10137_v0, %v2027_v11  ;;  %v2024_v53 = vsel %vm10174_vm0, %v2023_v25, %v2019_v38  ;;  %vm2031_vm4 = vweird.f32 %v10137_v0  ;;  %v2489_v19 = vld [vmem:[#allocation17 + $0xa8] sm:$0xff]  ;;  %v2487_v38 = vld [vmem:[#allocation17 + $0x98] sm:$0xff]  ;;  %v2476_v10 = vld [vmem:[#allocation17 + $0x40] sm:$0xff] }
 0x48b   : > { %v2326_v20 = vmul.f32 %v8534_v46, %v2325_v43  ;;  %v2335_v15 = vor.u32 1.1754944e-38, %v2334_v57  ;;  %v2348_v27 = vand.u32 2147483648, %v10139_v3  ;;  %v2346_v45 = vand.u32 2147483647, %v10139_v3  ;;  %2662 = vmatpush.msra.mxu3 %v2529_v21  ;;  %2543 = vmatpush.msra.mxu0 %v2488_v12  ;;  %v2480_v21 = vld [vmem:[#allocation17 + $0x60] sm:$0xff] }
 0x48c   : > { %v10171_v52 = vpop.eup %8535  ;;  %2127 = vmatmul.f32.gmra.mxu1 %v2083_v61  ;;  %v2029_v30 = vadd.f32 %v10137_v0, %v2028_v47  ;;  %v2084_v62 = vmul.f32 %v10039_v24, %v2024_v53  ;;  %vm2030_vm6 = vweird.f32 %v10112_v58  ;;  %v2034_v9 = vand.u32 2147483647, %v10112_v58  ;;  %v2472_v12 = vld [vmem:[#allocation17 + $0x20] sm:$0xff] }
 0x48d   : > { %v2338_v2 = vmul.f32 %v10171_v52, %v10139_v3  ;;  %v10183_v32 = vpop.xlane.xlu1 %2263  ;;  %v2327_v28 = vadd.f32 %v8534_v46, %v2326_v20  ;;  %vm2343_vm5 = vweird.f32 %v10171_v52  ;;  %vm10215_vm7 = vmor %vm2030_vm6, %vm2031_vm4  ;;  %vm2342_vm8 = vweird.f32 %v10139_v3 }
 0x48e   : > { %v10179_v60 = vpop.eup %8537  ;;  %8539 = vrcp.f32 %v10183_v32  ;;  %v10193_v50 = vpop.xlane.xlu2 %1965  ;;  %v2033_v58 = vsel %vm10215_vm7, %v10137_v0, %v2029_v30  ;;  %vm2344_vm9 = vmor %vm2342_vm8, %vm2343_vm5  ;;  %v2349_v11 = vor.u32 1.1754944e-38, %v2348_v27  ;;  %v2037_v3 = vor.u32 1.1754944e-38, %v2036_v7  ;;  %v2486_v0 = vld [vmem:[#allocation17 + $0x90] sm:$0xff]  ;;  %v2525_v30 = vld [vmem:[#allocation17 + $0x1c8] sm:$0xff] }
 0x48f   : > { %v2040_v49 = vmul.f32 %v10179_v60, %v10146_v29  ;;  %v2339_v56 = vsub.f32 1.0, %v2338_v2  ;;  %8541 = vrcp.f32 %v10193_v50  ;;  %v2331_v39 = vsel %vm2330_vm3, %v8534_v46, %v2327_v28  ;;  %v2493_v46 = vld [vmem:[#allocation17 + $0xc8] sm:$0xff]  ;;  %2544 = vmatpush.msra.mxu0 %v2486_v0  ;;  %v2483_v27 = vld [vmem:[#allocation17 + $0x78] sm:$0xff]  ;;  %v2468_v0 = vld [vmem:[#allocation17] sm:$0xff] }
 0x490   : > { %v2336_v40 = vsel %vm10185_vm2, %v2335_v15, %v2331_v39  ;;  %2623 = vmatpush.msra.mxu2 %v2493_v46  ;;  %vm2347_vm10 = vcmp.eq.f32.partialorder %v2346_v45, 8.507059e+37  ;;  %vm2035_vm11 = vcmp.eq.f32.partialorder %v2034_v9, 8.507059e+37  ;;  %vm2045_vm12 = vweird.f32 %v10179_v60  ;;  %v2478_v45 = vld [vmem:[#allocation17 + $0x50] sm:$0xff]  ;;  %v2479_v46 = vld [vmem:[#allocation17 + $0x58] sm:$0xff] }
 0x491   : > { %v2041_v54 = vsub.f32 1.0, %v2040_v49  ;;  %v2340_v22 = vmul.f32 %v10171_v52, %v2339_v56  ;;  %v2383_v4 = vmul.f32 %v10046_v26, %v2336_v40  ;;  %v2038_v57 = vsel %vm2035_vm11, %v2037_v3, %v2033_v58  ;;  %v2485_v40 = vld [vmem:[#allocation17 + $0x88] sm:$0xff]  ;;  %v2519_v9 = vld [vmem:[#allocation17 + $0x198] sm:$0xff]  ;;  %v2522_v58 = vld [vmem:[#allocation17 + $0x1b0] sm:$0xff] }
 0x492   : > { %2624 = vmatpush.msra.mxu2 %v2491_v13  ;;  %v2050_v41 = vand.u32 2147483648, %v10146_v29  ;;  %v2360_v37 = vand.u32 2147483647, %v10183_v32  ;;  %v2085_v1 = vmul.f32 %v10048_v35, %v2038_v57  ;;  %vm2044_vm14 = vweird.f32 %v10146_v29  ;;  %v2477_v26 = vld [vmem:[#allocation17 + $0x48] sm:$0xff]  ;;  %v2516_v57 = vld [vmem:[#allocation17 + $0x180] sm:$0xff] }
 0x493   : > { %2431 = vmatmul.f32.gmra.mxu3 %v2383_v4  ;;  %v2341_v51 = vadd.f32 %v10171_v52, %v2340_v22  ;;  %v2042_v14 = vmul.f32 %v10179_v60, %v2041_v54  ;;  %vm2046_vm15 = vmor %vm2044_vm14, %vm2045_vm12  ;;  %vm2356_vm0 = vweird.f32 %v10183_v32  ;;  %v2064_v16 = vand.u32 2147483648, %v10193_v50  ;;  %v2484_v54 = vld [vmem:[#allocation17 + $0x80] sm:$0xff]  ;;  %v2481_v22 = vld [vmem:[#allocation17 + $0x68] sm:$0xff] }
 0x494   : > { %v8540_v24 = vpop.eup %8539  ;;  %2130 = vmatmul.f32.gmra.mxu1 %v2084_v62  ;;  %2625 = vmatpush.msra.mxu2 %v2489_v19  ;;  %v2051_v44 = vor.u32 1.1754944e-38, %v2050_v41  ;;  %vm2361_vm2 = vcmp.eq.f32.partialorder %v2360_v37, 8.507059e+37  ;;  %vm2058_vm5 = vweird.f32 %v10193_v50  ;;  %v2528_v4 = vld [vmem:[#allocation17 + $0x1e0] sm:$0xff]  ;;  %v2526_v62 = vld [vmem:[#allocation17 + $0x1d0] sm:$0xff]  ;;  %v2517_v13 = vld [vmem:[#allocation17 + $0x188] sm:$0xff] }
 0x495   : > { %v8542_v17 = vpop.eup %8541  ;;  %v2352_v18 = vmul.f32 %v8540_v24, %v10183_v32  ;;  %v2345_v43 = vsel %vm2344_vm9, %v10171_v52, %v2341_v51  ;;  %v2043_v23 = vadd.f32 %v10179_v60, %v2042_v14  ;;  %v2362_v52 = vand.u32 2147483648, %v10183_v32  ;;  %2545 = vmatpush.msra.mxu0 %v2484_v54  ;;  %v2524_v51 = vld [vmem:[#allocation17 + $0x1c0] sm:$0xff]  ;;  %v2475_v14 = vld [vmem:[#allocation17 + $0x38] sm:$0xff]  ;;  %v2513_v3 = vld [vmem:[#allocation17 + $0x168] sm:$0xff] }
 0x496   : > { %v2054_v59 = vmul.f32 %v8542_v17, %v10193_v50  ;;  %v2350_v61 = vsel %vm2347_vm10, %v2349_v11, %v2345_v43  ;;  %vm2357_vm13 = vweird.f32 %v8540_v24  ;;  %2626 = vmatpush.msra.mxu2 %v2487_v38  ;;  %vm2059_vm4 = vweird.f32 %v8542_v17  ;;  %v2515_v11 = vld [vmem:[#allocation17 + $0x178] sm:$0xff]  ;;  %v2470_v43 = vld [vmem:[#allocation17 + $0x10] sm:$0xff] }
 0x497   : > { %v2353_v63 = vsub.f32 1.0, %v2352_v18  ;;  %v2384_v20 = vmul.f32 %v10054_v42, %v2350_v61  ;;  %v2048_v42 = vand.u32 2147483647, %v10146_v29  ;;  %v2047_v31 = vsel %vm2046_vm15, %v10179_v60, %v2043_v23  ;;  %vm2358_vm1 = vmor %vm2356_vm0, %vm2357_vm13  ;;  %v2520_v18 = vld [vmem:[#allocation17 + $0x1a0] sm:$0xff]  ;;  %v2471_v19 = vld [vmem:[#allocation17 + $0x18] sm:$0xff] }
 0x498   : > { %v2055_v47 = vsub.f32 1.0, %v2054_v59  ;;  %v2363_v7 = vor.u32 1.1754944e-38, %v2362_v52  ;;  %v2062_v60 = vand.u32 2147483647, %v10193_v50  ;;  %vm2060_vm6 = vmor %vm2058_vm5, %vm2059_vm4  ;;  %v2065_v56 = vor.u32 1.1754944e-38, %v2064_v16  ;;  %2627 = vmatpush.msra.mxu2 %v2485_v40  ;;  %v2530_v50 = vld [vmem:[#allocation17 + $0x1f0] sm:$0xff] }
 0x499   : > { %v2354_v25 = vmul.f32 %v8540_v24, %v2353_v63  ;;  %vm2049_vm3 = vcmp.eq.f32.partialorder %v2048_v42, 8.507059e+37  ;;  %2579 = vmatpush.msra.mxu1 %v2530_v50  ;;  %v2518_v59 = vld [vmem:[#allocation17 + $0x190] sm:$0xff]  ;;  %v2511_v61 = vld [vmem:[#allocation17 + $0x158] sm:$0xff]  ;;  %v2469_v63 = vld [vmem:[#allocation17 + $0x8] sm:$0xff] }
 0x49a   : > { %v2056_v28 = vmul.f32 %v8542_v17, %v2055_v47  ;;  %v2052_v53 = vsel %vm2049_vm3, %v2051_v44, %v2047_v31  ;;  %vm2063_vm7 = vcmp.eq.f32.partialorder %v2062_v60, 8.507059e+37  ;;  %2628 = vmatpush.msra.mxu2 %v2483_v27  ;;  %v2514_v38 = vld [vmem:[#allocation17 + $0x170] sm:$0xff]  ;;  %v2507_v47 = vld [vmem:[#allocation17 + $0x138] sm:$0xff]  ;;  %v2512_v23 = vld [vmem:[#allocation17 + $0x160] sm:$0xff] }
 0x49b   : > { %2434 = vmatmul.f32.gmra.mxu3 %v2384_v20  ;;  %v2355_v2 = vadd.f32 %v8540_v24, %v2354_v25  ;;  %v2086_v32 = vmul.f32 %v10056_v8, %v2052_v53  ;;  %v2482_v8 = vld [vmem:[#allocation17 + $0x70] sm:$0xff]  ;;  %2580 = vmatpush.msra.mxu1 %v2528_v4  ;;  %v2509_v20 = vld [vmem:[#allocation17 + $0x148] sm:$0xff]  ;;  %v2503_v37 = vld [vmem:[#allocation17 + $0x118] sm:$0xff] }
 0x49c   : > { %2133 = vmatmul.f32.gmra.mxu1 %v2085_v1  ;;  %v2057_v15 = vadd.f32 %v8542_v17, %v2056_v28  ;;  %2546 = vmatpush.msra.mxu0 %v2482_v8  ;;  %v2505_v52 = vld [vmem:[#allocation17 + $0x128] sm:$0xff]  ;;  %v2510_v41 = vld [vmem:[#allocation17 + $0x150] sm:$0xff]  ;;  %v2508_v1 = vld [vmem:[#allocation17 + $0x140] sm:$0xff] }
 0x49d   : > { %v2359_v49 = vsel %vm2358_vm1, %v8540_v24, %v2355_v2  ;;  %2629 = vmatpush.msra.mxu2 %v2481_v22  ;;  %2581 = vmatpush.msra.mxu1 %v2526_v62  ;;  %v2474_v24 = vld [vmem:[#allocation17 + $0x30] sm:$0xff]  ;;  %v2501_v42 = vld [vmem:[#allocation17 + $0x108] sm:$0xff]  ;;  %v2504_v31 = vld [vmem:[#allocation17 + $0x120] sm:$0xff] }
 0x49e   : > { %v2364_v35 = vsel %vm2361_vm2, %v2363_v7, %v2359_v49  ;;  %v2061_v55 = vsel %vm2060_vm6, %v8542_v17, %v2057_v15  ;;  %2547 = vmatpush.msra.mxu0 %v2480_v21  ;;  %v2473_v17 = vld [vmem:[#allocation17 + $0x28] sm:$0xff]  ;;  %v2506_v2 = vld [vmem:[#allocation17 + $0x130] sm:$0xff] }
 0x49f   : > { %v2385_v29 = vmul.f32 %v10060_v33, %v2364_v35  ;;  %v2066_v39 = vsel %vm2063_vm7, %v2065_v56, %v2061_v55  ;;  %v2527_v33 = vld [vmem:[#allocation17 + $0x1d8] sm:$0xff]  ;;  %2630 = vmatpush.msra.mxu2 %v2479_v46  ;;  %2582 = vmatpush.msra.mxu1 %v2524_v51  ;;  %v2502_v49 = vld [vmem:[#allocation17 + $0x110] sm:$0xff] }
 0x4a0   : > { %v2087_v6 = vmul.f32 %v10062_v34, %v2066_v39  ;;  %2663 = vmatpush.msra.mxu3 %v2527_v33  ;;  %v2521_v34 = vld [vmem:[#allocation17 + $0x1a8] sm:$0xff]  ;;  %2548 = vmatpush.msra.mxu0 %v2478_v45 }
 0x4a1   : > { %2631 = vmatpush.msra.mxu2 %v2477_v26  ;;  %2583 = vmatpush.msra.mxu1 %v2522_v58 }
 0x4a2   : > { %2664 = vmatpush.msra.mxu3 %v2525_v30  ;;  %2549 = vmatpush.msra.mxu0 %v2476_v10 }
 0x4a3   : > { %2437 = vmatmul.f32.gmra.mxu3 %v2385_v29  ;;  %2632 = vmatpush.msra.mxu2 %v2475_v14  ;;  %v2500_v29 = vld [vmem:[#allocation17 + $0x100] sm:$0xff] }
 0x4a4   : > { %2136 = vmatmul.f32.gmra.mxu1 %v2086_v32  ;;  %2665 = vmatpush.msra.mxu3 %v2523_v5 }
 0x4a5   : > { %2550 = vmatpush.msra.mxu0 %v2474_v24  ;;  %2633 = vmatpush.msra.mxu2 %v2473_v17  ;;  %v2532_v17 = vld [vmem:[#allocation19] sm:$0x3] }
 0x4a6   : > { %2666 = vmatpush.msra.mxu3 %v2521_v34  ;;  %2584 = vmatpush.msra.mxu1 %v2520_v18 }
 0x4a7   : > { %2551 = vmatpush.msra.mxu0 %v2472_v12  ;;  %2634 = vmatpush.msra.mxu2 %v2471_v19  ;;  %v10251_v19 = vperm.slane %v2532_v17, 0 }
 0x4a8   : > { %2667 = vmatpush.msra.mxu3 %v2519_v9  ;;  %2585 = vmatpush.msra.mxu1 %v2518_v59 }
 0x4a9   : > { %2552 = vmatpush.msra.mxu0 %v2470_v43  ;;  %2635 = vmatpush.msra.mxu2 %v2469_v63 }
 0x4aa   : > { %2668 = vmatpush.msra.mxu3 %v2517_v13  ;;  %2586 = vmatpush.msra.mxu1 %v2516_v57 }
 0x4ab   : > { %2553 = vmatpush.msra.mxu0 %v2468_v0 }
 0x4ac   : > { %2139 = vmatmul.f32.gmra.mxu1 %v2087_v6  ;;  %2669 = vmatpush.msra.mxu3 %v2515_v11 }
 0x4ad   : > { %2587 = vmatpush.msra.mxu1 %v2514_v38 }
 0x4ae   : > { %2670 = vmatpush.msra.mxu3 %v2513_v3  ;;  %v10249_v3 = vperm.slane %v2532_v17, 1  ;;  %v8717_v17 = vld [vmem:[%s9618_s7 + $0x40] sm:$0xff] }
 0x4af   : > { %2588 = vmatpush.msra.mxu1 %v2512_v23 }
 0x4b0   : > { %2671 = vmatpush.msra.mxu3 %v2511_v61 }
 0x4b1   : > { %2589 = vmatpush.msra.mxu1 %v2510_v41 }
 0x4b2   : > { %2672 = vmatpush.msra.mxu3 %v2509_v20 }
 0x4b3   : > { %2590 = vmatpush.msra.mxu1 %v2508_v1 }
 0x4b4   : > { %2673 = vmatpush.msra.mxu3 %v2507_v47  ;;  %v8709_v47 = vld [vmem:[%s9618_s7] sm:$0xff] }
 0x4b5   : > { %2591 = vmatpush.msra.mxu1 %v2506_v2 }
 0x4b6   : > { %2674 = vmatpush.msra.mxu3 %v2505_v52  ;;  %v8710_v52 = vld [vmem:[%s9618_s7 + $0x8] sm:$0xff] }
 0x4b7   : > { %2592 = vmatpush.msra.mxu1 %v2504_v31 }
 0x4b8   : > { %2675 = vmatpush.msra.mxu3 %v2503_v37 }
 0x4b9   : > { %2593 = vmatpush.msra.mxu1 %v2502_v49  ;;  %v8711_v49 = vld [vmem:[%s9618_s7 + $0x10] sm:$0xff] }
 0x4ba   : > { %2676 = vmatpush.msra.mxu3 %v2501_v42 }
 0x4bb   : > { %2594 = vmatpush.msra.mxu1 %v2500_v29 }
 0x4e4   : > { %v2266_v25 = vpop.xlane.xlu0 %2265 }
 0x4e5   : > { %8543 = vrcp.f32 %v2266_v25  ;;  %v2376_v53 = vand.u32 2147483648, %v2266_v25  ;;  %v2374_v16 = vand.u32 2147483647, %v2266_v25  ;;  %vm2370_vm9 = vweird.f32 %v2266_v25 }
 0x4e7   : > { %v2377_v60 = vor.u32 1.1754944e-38, %v2376_v53  ;;  %vm2375_vm11 = vcmp.eq.f32.partialorder %v2374_v16, 8.507059e+37  ;;  %v8712_v53 = vld [vmem:[%s9618_s7 + $0x18] sm:$0xff] }
 0x4eb   : > { %v8544_v28 = vpop.eup %8543 }
 0x4ec   : > { %v2366_v7 = vmul.f32 %v8544_v28, %v2266_v25  ;;  %vm2371_vm8 = vweird.f32 %v8544_v28 }
 0x4ed   : > { %v1968_v44 = vpop.xlane.xlu1 %1967  ;;  %vm2372_vm10 = vmor %vm2370_vm9, %vm2371_vm8 }
 0x4ee   : > { %v2367_v35 = vsub.f32 1.0, %v2366_v7  ;;  %8545 = vrcp.f32 %v1968_v44  ;;  %v2078_v8 = vand.u32 2147483648, %v1968_v44  ;;  %v2076_v50 = vand.u32 2147483647, %v1968_v44 }
 0x4ef   : > { %vm2072_vm13 = vweird.f32 %v1968_v44 }
 0x4f0   : > { %v2368_v15 = vmul.f32 %v8544_v28, %v2367_v35  ;;  %v2079_v21 = vor.u32 1.1754944e-38, %v2078_v8  ;;  %vm2077_vm15 = vcmp.eq.f32.partialorder %v2076_v50, 8.507059e+37 }
 0x4f2   : > { %v2369_v32 = vadd.f32 %v8544_v28, %v2368_v15 }
 0x4f4   : > { %v8546_v55 = vpop.eup %8545  ;;  %v2420_v56 = vpop.f32.mrf.mxu3  ;;  %v2373_v39 = vsel %vm2372_vm10, %v8544_v28, %v2369_v32 }
 0x4f5   : > { %v2068_v6 = vmul.f32 %v8546_v55, %v1968_v44  ;;  %v2378_v33 = vsel %vm2375_vm11, %v2377_v60, %v2373_v39  ;;  %vm2073_vm12 = vweird.f32 %v8546_v55 }
 0x4f6   : > { %v2386_v54 = vmul.f32 %v10075_v48, %v2378_v33  ;;  %vm2074_vm14 = vmor %vm2072_vm13, %vm2073_vm12 }
 0x4f7   : > { %v2069_v40 = vsub.f32 1.0, %v2068_v6  ;;  %v2122_v30 = vpop.f32.mrf.mxu1 }
 0x4f8   : > { %2554 = vmatmul.f32.vlgmr.msra.gmra.mxu0 %v2122_v30  ;;  %2636 = vmatmul.f32.vlgmr.msra.gmra.mxu2 %v2122_v30  ;;  %v8714_v30 = vld [vmem:[%s9618_s7 + $0x28] sm:$0xff] }
 0x4f9   : > { %v2070_v27 = vmul.f32 %v8546_v55, %v2069_v40  ;;  %2440 = vmatmul.f32.gmra.mxu3 %v2386_v54  ;;  %v8713_v54 = vld [vmem:[%s9618_s7 + $0x20] sm:$0xff] }
 0x4fb   : > { %v2071_v5 = vadd.f32 %v8546_v55, %v2070_v27 }
 0x4fc   : > { %v2423_v4 = vpop.f32.mrf.mxu3 }
 0x4fd   : > { %v2075_v22 = vsel %vm2074_vm14, %v8546_v55, %v2071_v5 }
 0x4fe   : > { %v2080_v34 = vsel %vm2077_vm15, %v2079_v21, %v2075_v22 }
 0x4ff   : > { %v2125_v45 = vpop.f32.mrf.mxu1  ;;  %v2088_v48 = vmul.f32 %v10093_v36, %v2080_v34 }
 0x500   : > { %2557 = vmatmul.f32.gmra.mxu0 %v2125_v45  ;;  %2639 = vmatmul.f32.gmra.mxu2 %v2125_v45 }
 0x501   : > { %2142 = vmatmul.f32.gmra.mxu1 %v2088_v48  ;;  %2677 = vmatmul.f32.vlgmr.msra.gmra.mxu3 %v2420_v56 }
 0x504   : > { %v2426_v46 = vpop.f32.mrf.mxu3 }
 0x509   : > { %v2128_v62 = vpop.f32.mrf.mxu1  ;;  %2595 = vmatmul.f32.vlgmr.msra.gmra.mxu1 %v2420_v56  ;;  %2680 = vmatmul.f32.gmra.mxu3 %v2423_v4 }
 0x50a   : > { %2560 = vmatmul.f32.gmra.mxu0 %v2128_v62  ;;  %2642 = vmatmul.f32.gmra.mxu2 %v2128_v62 }
 0x50d   : > { %v2429_v10 = vpop.f32.mrf.mxu3 }
 0x511   : > { %v2131_v9 = vpop.f32.mrf.mxu1  ;;  %2598 = vmatmul.f32.gmra.mxu1 %v2423_v4  ;;  %2683 = vmatmul.f32.gmra.mxu3 %v2426_v46 }
 0x512   : > { %2563 = vmatmul.f32.gmra.mxu0 %v2131_v9  ;;  %2645 = vmatmul.f32.gmra.mxu2 %v2131_v9  ;;  %v8716_v9 = vld [vmem:[%s9618_s7 + $0x38] sm:$0xff] }
 0x516   : > { %v2432_v36 = vpop.f32.mrf.mxu3 }
 0x519   : > { %v2134_v26 = vpop.f32.mrf.mxu1  ;;  %2601 = vmatmul.f32.gmra.mxu1 %v2426_v46  ;;  %2686 = vmatmul.f32.gmra.mxu3 %v2429_v10  ;;  %v8715_v46 = vld [vmem:[%s9618_s7 + $0x30] sm:$0xff] }
 0x51a   : > { %2566 = vmatmul.f32.gmra.mxu0 %v2134_v26  ;;  %2648 = vmatmul.f32.gmra.mxu2 %v2134_v26 }
 0x51e   : > { %v2435_v13 = vpop.f32.mrf.mxu3 }
 0x521   : > { %v2137_v51 = vpop.f32.mrf.mxu1  ;;  %2604 = vmatmul.f32.gmra.mxu1 %v2429_v10  ;;  %2689 = vmatmul.f32.gmra.mxu3 %v2432_v36 }
 0x522   : > { %2569 = vmatmul.f32.gmra.mxu0 %v2137_v51  ;;  %2651 = vmatmul.f32.gmra.mxu2 %v2137_v51 }
 0x526   : > { %v2438_v14 = vpop.f32.mrf.mxu3 }
 0x529   : > { %v2140_v24 = vpop.f32.mrf.mxu1  ;;  %2607 = vmatmul.f32.gmra.mxu1 %v2432_v36  ;;  %2692 = vmatmul.f32.gmra.mxu3 %v2435_v13 }
 0x52a   : > { %2572 = vmatmul.f32.gmra.mxu0 %v2140_v24  ;;  %2654 = vmatmul.f32.gmra.mxu2 %v2140_v24 }
 0x531   : > { %2610 = vmatmul.f32.gmra.mxu1 %v2435_v13  ;;  %2695 = vmatmul.f32.gmra.mxu3 %v2438_v14 }
 0x539   : > { %2613 = vmatmul.f32.gmra.mxu1 %v2438_v14 }
 0x575   : > { %v2555_v58 = vpop.f32.mrf.mxu0 }
 0x576   : > { %v2556_v63 = vadd.f32 %v2555_v58, %v10251_v19 }
 0x57b   : > { %v2637_v11 = vpop.f32.mrf.mxu2 }
 0x57c   : > { %v2441_v12 = vpop.f32.mrf.mxu3  ;;  %v2638_v59 = vadd.f32 %v2637_v11, %v10249_v3 }
 0x57d   : > { %2616 = vmatmul.f32.gmra.mxu1 %v2441_v12  ;;  %2698 = vmatmul.f32.gmra.mxu3 %v2441_v12  ;;  %v2558_v43 = vpop.f32.mrf.mxu0 }
 0x57e   : > { %v2143_v18 = vpop.f32.mrf.mxu1  ;;  %v2559_v2 = vadd.f32 %v2558_v43, %v10251_v19  ;;  %v8718_v43 = vld [vmem:[%s9618_s7 + $0x48] sm:$0xff] }
 0x57f   : > { %2575 = vmatmul.f32.gmra.mxu0 %v2143_v18  ;;  %2657 = vmatmul.f32.gmra.mxu2 %v2143_v18 }
 0x583   : > { %v2640_v61 = vpop.f32.mrf.mxu2 }
 0x584   : > { %v2678_v0 = vpop.f32.mrf.mxu3  ;;  %v2641_v37 = vadd.f32 %v2640_v61, %v10249_v3 }
 0x585   : > { %v2679_v57 = vadd.f32 %v2678_v0, %v2638_v59 }
 0x586   : > { %v2596_v20 = vpop.f32.mrf.mxu1 }
 0x587   : > { %v2597_v38 = vadd.f32 %v2596_v20, %v2556_v63  ;;  %v10259_v25 = vadd.f32 %v8710_v52, %v2679_v57  ;;  %v2561_v41 = vpop.f32.mrf.mxu0 }
 0x588   : > { %v2562_v55 = vadd.f32 %v2561_v41, %v10251_v19  ;;  %v8719_v41 = vld [vmem:[%s9618_s7 + $0x50] sm:$0xff] }
 0x589   : > { %v10256_v23 = vadd.f32 %v8709_v47, %v2597_v38 }
 0x58b   : > { %v2720_v1 = vadd.f32 %v10259_v25, %v10256_v23 }
 0x58c   : > { %v2681_v42 = vpop.f32.mrf.mxu3 }
 0x58d   : > { %v2643_v28 = vpop.f32.mrf.mxu2  ;;  %v2682_v31 = vadd.f32 %v2681_v42, %v2641_v37  ;;  %2721 = vadd.xlane.f32.xlu2 %v2720_v1  ;;  %v8720_v1 = vld [vmem:[%s9618_s7 + $0x58] sm:$0xff] }
 0x58e   : > { %v2599_v7 = vpop.f32.mrf.mxu1  ;;  %v2644_v15 = vadd.f32 %v2643_v28, %v10249_v3 }
 0x58f   : > { %v2600_v44 = vadd.f32 %v2599_v7, %v2559_v2  ;;  %v10269_v29 = vadd.f32 %v8712_v53, %v2682_v31  ;;  %v2564_v32 = vpop.f32.mrf.mxu0 }
 0x590   : > { %v2565_v21 = vadd.f32 %v2564_v32, %v10251_v19 }
 0x591   : > { %v10266_v35 = vadd.f32 %v8711_v49, %v2600_v44 }
 0x593   : > { %v2723_v16 = vadd.f32 %v10269_v29, %v10266_v35 }
 0x594   : > { %v2684_v60 = vpop.f32.mrf.mxu3 }
 0x595   : > { %v2646_v56 = vpop.f32.mrf.mxu2  ;;  %v2685_v39 = vadd.f32 %v2684_v60, %v2644_v15  ;;  %2724 = vadd.xlane.f32.xlu0 %v2723_v16  ;;  %v8721_v16 = vld [vmem:[%s9618_s7 + $0x60] sm:$0xff]  ;;  %v8722_v60 = vld [vmem:[%s9618_s7 + $0x68] sm:$0xff] }
 0x596   : > { %v2602_v6 = vpop.f32.mrf.mxu1  ;;  %v2647_v27 = vadd.f32 %v2646_v56, %v10249_v3 }
 0x597   : > { %v2603_v33 = vadd.f32 %v2602_v6, %v2562_v55  ;;  %v10279_v8 = vadd.f32 %v8714_v30, %v2685_v39  ;;  %v2567_v34 = vpop.f32.mrf.mxu0  ;;  %v9286_v39 = vmov 256.0  }
 0x598   : > { %v2568_v13 = vadd.f32 %v2567_v34, %v10251_v19  ;;  %8547 = vrcp.f32 %v9286_v39 }
 0x599   : > { %v10276_v40 = vadd.f32 %v8713_v54, %v2603_v33 }
 0x59b   : > { %v2726_v50 = vadd.f32 %v10279_v8, %v10276_v40 }
 0x59c   : > { %v2687_v5 = vpop.f32.mrf.mxu3 }
 0x59d   : > { %v2649_v22 = vpop.f32.mrf.mxu2  ;;  %v2688_v4 = vadd.f32 %v2687_v5, %v2647_v27  ;;  %2727 = vadd.xlane.f32.xlu1 %v2726_v50 }
 0x59e   : > { %v2605_v45 = vpop.f32.mrf.mxu1  ;;  %v2650_v26 = vadd.f32 %v2649_v22, %v10249_v3  ;;  %v8548_v6 = vpop.eup %8547 }
 0x59f   : > { %v2606_v48 = vadd.f32 %v2605_v45, %v2565_v21  ;;  %v10289_v10 = vadd.f32 %v8716_v9, %v2688_v4  ;;  %v2570_v12 = vpop.f32.mrf.mxu0  ;;  %v2745_v33 = vmul.f32 256.0, %v8548_v6  ;;  %vm2749_vm0 = vweird.f32 %v8548_v6 }
 0x5a0   : > { %v2571_v57 = vadd.f32 %v2570_v12, %v10251_v19 }
 0x5a1   : > { %v10286_v62 = vadd.f32 %v8715_v46, %v2606_v48  ;;  %v2746_v54 = vsub.f32 1.0, %v2745_v33 }
 0x5a3   : > { %v2729_v36 = vadd.f32 %v10289_v10, %v10286_v62  ;;  %v2747_v30 = vmul.f32 %v8548_v6, %v2746_v54 }
 0x5a4   : > { %v2690_v51 = vpop.f32.mrf.mxu3 }
 0x5a5   : > { %v2691_v24 = vadd.f32 %v2690_v51, %v2650_v26  ;;  %2730 = vadd.xlane.f32.xlu2 %v2729_v36  ;;  %v2652_v14 = vpop.f32.mrf.mxu2  ;;  %v2748_v27 = vadd.f32 %v8548_v6, %v2747_v30 }
 0x5a6   : > { %v2608_v58 = vpop.f32.mrf.mxu1  ;;  %v2653_v61 = vadd.f32 %v2652_v14, %v10249_v3  ;;  %v8723_v14 = vld [vmem:[%s9618_s7 + $0x70] sm:$0xff] }
 0x5a7   : > { %v2609_v11 = vadd.f32 %v2608_v58, %v2568_v13  ;;  %v10299_v59 = vadd.f32 %v8718_v43, %v2691_v24  ;;  %v2573_v2 = vpop.f32.mrf.mxu0  ;;  %v10323_v5 = vsel %vm2749_vm0, %v8548_v6, %v2748_v27 }
 0x5a8   : > { %v2574_v44 = vadd.f32 %v2573_v2, %v10251_v19  ;;  %14665 = vst [vmem:[#allocation45_spill] sm:$0xff] %v10323_v5  ;;  %v3089_v2 = vld [vmem:[#allocation20 + $0x3c0] sm:$0xff] }
 0x5a9   : > { %v10296_v18 = vadd.f32 %v8717_v17, %v2609_v11  ;;  %v8724_v11 = vld [vmem:[%s9618_s7 + $0x78] sm:$0xff]  ;;  %3243 = vmatpush.msrb.mxu0 %v3089_v2  ;;  %v3161_v2 = vld [vmem:[#allocation20 + $0x600] sm:$0xff]  ;;  %s15048_s7 = sld [smem:[#allocation136_spill]] }
 0x5ab   : > { %v2732_v0 = vadd.f32 %v10299_v59, %v10296_v18 }
 0x5ac   : > { %v2693_v63 = vpop.f32.mrf.mxu3 }
 0x5ad   : > { %v2694_v20 = vadd.f32 %v2693_v63, %v2653_v61  ;;  %2733 = vadd.xlane.f32.xlu0 %v2732_v0  ;;  %v2655_v52 = vpop.f32.mrf.mxu2 }
 0x5ae   : > { %v2611_v38 = vpop.f32.mrf.mxu1  ;;  %v2656_v28 = vadd.f32 %v2655_v52, %v10249_v3 }
 0x5af   : > { %v2612_v47 = vadd.f32 %v2611_v38, %v2571_v57  ;;  %v10309_v42 = vadd.f32 %v8720_v1, %v2694_v20 }
 0x5b1   : > { %v10306_v37 = vadd.f32 %v8719_v41, %v2612_v47 }
 0x5b3   : > { %v2735_v31 = vadd.f32 %v10309_v42, %v10306_v37 }
 0x5b4   : > { %v2696_v7 = vpop.f32.mrf.mxu3 }
 0x5b5   : > { %v2697_v49 = vadd.f32 %v2696_v7, %v2656_v28  ;;  %2736 = vadd.xlane.f32.xlu1 %v2735_v31  ;;  %v3217_v28 = vld [vmem:[#allocation20 + $0x7c0] sm:$0xff]  ;;  %v3090_v31 = vld [vmem:[#allocation20 + $0x3c8] sm:$0xff] }
 0x5b6   : > { %v2614_v53 = vpop.f32.mrf.mxu1  ;;  %3284 = vmatpush.msrb.mxu1 %v3217_v28  ;;  %v3081_v7 = vld [vmem:[#allocation20 + $0x380] sm:$0xff]  ;;  %3325 = vmatpush.msrb.mxu2 %v3090_v31  ;;  %v3034_v28 = vld [vmem:[#allocation20 + $0x208] sm:$0xff] }
 0x5b7   : > { %v2615_v15 = vadd.f32 %v2614_v53, %v2574_v44  ;;  %v10319_v55 = vadd.f32 %v8722_v60, %v2697_v49  ;;  %v3082_v53 = vld [vmem:[#allocation20 + $0x388] sm:$0xff]  ;;  %3244 = vmatpush.msrb.mxu0 %v3081_v7  ;;  %v3153_v7 = vld [vmem:[#allocation20 + $0x5c0] sm:$0xff] }
 0x5b8   : > { %3326 = vmatpush.msrb.mxu2 %v3082_v53  ;;  %v3162_v31 = vld [vmem:[#allocation20 + $0x608] sm:$0xff] }
 0x5b9   : > { %v10316_v32 = vadd.f32 %v8721_v16, %v2615_v15  ;;  %v3210_v15 = vld [vmem:[#allocation20 + $0x788] sm:$0xff] }
 0x5ba   : > { %v3154_v53 = vld [vmem:[#allocation20 + $0x5c8] sm:$0xff] }
 0x5bb   : > { %v2738_v56 = vadd.f32 %v10319_v55, %v10316_v32 }
 0x5bd   : > { %2739 = vadd.xlane.f32.xlu2 %v2738_v56 }
 0x5fa   : > { %v2617_v34 = vpop.f32.mrf.mxu1 }
 0x5fc   : > { %v2576_v50 = vpop.f32.mrf.mxu0 }
 0x5fd   : > { %v2577_v21 = vadd.f32 %v2576_v50, %v10251_v19 }
 0x5ff   : > { %v2618_v48 = vadd.f32 %v2617_v34, %v2577_v21 }
 0x600   : > { %v2722_v22 = vpop.xlane.xlu2 %2721  ;;  %v2699_v36 = vpop.f32.mrf.mxu3 }
 0x601   : > { %v2751_v4 = vmul.f32 %v10323_v5, %v2722_v22  ;;  %v10339_v58 = vadd.f32 %v8723_v14, %v2618_v48  ;;  %v3193_v14 = vld [vmem:[#allocation20 + $0x700] sm:$0xff] }
 0x602   : > { %v2658_v45 = vpop.f32.mrf.mxu2 }
 0x603   : > { %v10328_v46 = vsub.f32 %v10256_v23, %v2751_v4  ;;  %v10331_v9 = vsub.f32 %v10259_v25, %v2751_v4  ;;  %v2659_v26 = vadd.f32 %v2658_v45, %v10249_v3 }
 0x605   : > { %v2700_v51 = vadd.f32 %v2699_v36, %v2659_v26  ;;  %v2775_v19 = vmul.f32 %v10328_v46, %v10328_v46  ;;  %v2776_v13 = vmul.f32 %v10331_v9, %v10331_v9 }
 0x607   : > { %v2791_v24 = vadd.f32 %v2776_v13, %v2775_v19  ;;  %v10342_v23 = vadd.f32 %v8724_v11, %v2700_v51  ;;  %v3073_v51 = vld [vmem:[#allocation20 + $0x340] sm:$0xff]  ;;  %v3074_v13 = vld [vmem:[#allocation20 + $0x348] sm:$0xff] }
 0x608   : > { %v2725_v12 = vpop.xlane.xlu0 %2724  ;;  %v3201_v19 = vld [vmem:[#allocation20 + $0x740] sm:$0xff]  ;;  %3245 = vmatpush.msrb.mxu0 %v3073_v51  ;;  %3327 = vmatpush.msrb.mxu2 %v3074_v13  ;;  %v3194_v11 = vld [vmem:[#allocation20 + $0x708] sm:$0xff] }
 0x609   : > { %v2752_v25 = vmul.f32 %v10323_v5, %v2725_v12  ;;  %2792 = vadd.xlane.f32.xlu0 %v2791_v24  ;;  %v2741_v3 = vadd.f32 %v10342_v23, %v10339_v58  ;;  %v3202_v24 = vld [vmem:[#allocation20 + $0x748] sm:$0xff]  ;;  %v3057_v12 = vld [vmem:[#allocation20 + $0x2c0] sm:$0xff] }
 0x60a   : > { %v3113_v51 = vld [vmem:[#allocation20 + $0x480] sm:$0xff] }
 0x60b   : > { %v10348_v17 = vsub.f32 %v10266_v35, %v2752_v25  ;;  %v10351_v43 = vsub.f32 %v10269_v29, %v2752_v25  ;;  %2742 = vadd.xlane.f32.xlu1 %v2741_v3  ;;  %v3185_v25 = vld [vmem:[#allocation20 + $0x6c0] sm:$0xff]  ;;  %v3058_v3 = vld [vmem:[#allocation20 + $0x2c8] sm:$0xff] }
 0x60d   : > { %v2777_v61 = vmul.f32 %v10348_v17, %v10348_v17  ;;  %v2778_v0 = vmul.f32 %v10351_v43, %v10351_v43 }
 0x60f   : > { %v2794_v63 = vadd.f32 %v2778_v0, %v2777_v61  ;;  %v3186_v61 = vld [vmem:[#allocation20 + $0x6c8] sm:$0xff]  ;;  %v3049_v0 = vld [vmem:[#allocation20 + $0x280] sm:$0xff] }
 0x610   : > { %v2728_v57 = vpop.xlane.xlu1 %2727 }
 0x611   : > { %v2753_v20 = vmul.f32 %v10323_v5, %v2728_v57  ;;  %2795 = vadd.xlane.f32.xlu2 %v2794_v63  ;;  %v3177_v63 = vld [vmem:[#allocation20 + $0x680] sm:$0xff]  ;;  %v3050_v57 = vld [vmem:[#allocation20 + $0x288] sm:$0xff] }
 0x613   : > { %v10359_v38 = vsub.f32 %v10276_v40, %v2753_v20  ;;  %v10362_v35 = vsub.f32 %v10279_v8, %v2753_v20  ;;  %v3218_v40 = vld [vmem:[#allocation20 + $0x7c8] sm:$0xff]  ;;  %v3209_v8 = vld [vmem:[#allocation20 + $0x780] sm:$0xff] }
 0x614   : > { %3366 = vmatpush.msrb.mxu3 %v3218_v40  ;;  %3285 = vmatpush.msrb.mxu1 %v3209_v8  ;;  %v3178_v20 = vld [vmem:[#allocation20 + $0x688] sm:$0xff]  ;;  %v3025_v40 = vld [vmem:[#allocation20 + $0x1c0] sm:$0xff] }
 0x615   : > { %v2779_v29 = vmul.f32 %v10359_v38, %v10359_v38  ;;  %v2780_v47 = vmul.f32 %v10362_v35, %v10362_v35  ;;  %v3026_v8 = vld [vmem:[#allocation20 + $0x1c8] sm:$0xff] }
 0x616   : > { %3367 = vmatpush.msrb.mxu3 %v3210_v15  ;;  %3286 = vmatpush.msrb.mxu1 %v3201_v19  ;;  %v3017_v15 = vld [vmem:[#allocation20 + $0x180] sm:$0xff]  ;;  %v2986_v19 = vld [vmem:[#allocation20 + $0x88] sm:$0xff] }
 0x617   : > { %v2797_v52 = vadd.f32 %v2780_v47, %v2779_v29  ;;  %v3041_v29 = vld [vmem:[#allocation20 + $0x240] sm:$0xff] }
 0x618   : > { %v2731_v41 = vpop.xlane.xlu2 %2730  ;;  %3368 = vmatpush.msrb.mxu3 %v3202_v24  ;;  %3287 = vmatpush.msrb.mxu1 %v3193_v14  ;;  %v3169_v47 = vld [vmem:[#allocation20 + $0x640] sm:$0xff]  ;;  %v3114_v24 = vld [vmem:[#allocation20 + $0x488] sm:$0xff] }
 0x619   : > { %v2754_v1 = vmul.f32 %v10323_v5, %v2731_v41  ;;  %2798 = vadd.xlane.f32.xlu0 %v2797_v52  ;;  %v3042_v52 = vld [vmem:[#allocation20 + $0x248] sm:$0xff] }
 0x61a   : > { %3369 = vmatpush.msrb.mxu3 %v3194_v11  ;;  %3288 = vmatpush.msrb.mxu1 %v3185_v25  ;;  %v3170_v41 = vld [vmem:[#allocation20 + $0x648] sm:$0xff]  ;;  %v3105_v11 = vld [vmem:[#allocation20 + $0x440] sm:$0xff] }
 0x61b   : > { %v10370_v44 = vsub.f32 %v10286_v62, %v2754_v1  ;;  %v10373_v49 = vsub.f32 %v10289_v10, %v2754_v1  ;;  %v3033_v1 = vld [vmem:[#allocation20 + $0x200] sm:$0xff]  ;;  %v3106_v25 = vld [vmem:[#allocation20 + $0x448] sm:$0xff] }
 0x61c   : > { %3370 = vmatpush.msrb.mxu3 %v3186_v61  ;;  %3289 = vmatpush.msrb.mxu1 %v3177_v63  ;;  %v3097_v63 = vld [vmem:[#allocation20 + $0x400] sm:$0xff] }
 0x61d   : > { %v2781_v16 = vmul.f32 %v10370_v44, %v10370_v44  ;;  %v2782_v60 = vmul.f32 %v10373_v49, %v10373_v49 }
 0x61e   : > { %3371 = vmatpush.msrb.mxu3 %v3178_v20  ;;  %3290 = vmatpush.msrb.mxu1 %v3169_v47  ;;  %v3098_v20 = vld [vmem:[#allocation20 + $0x408] sm:$0xff] }
 0x61f   : > { %v2800_v56 = vadd.f32 %v2782_v60, %v2781_v16  ;;  %v3145_v16 = vld [vmem:[#allocation20 + $0x580] sm:$0xff]  ;;  %v3018_v60 = vld [vmem:[#allocation20 + $0x188] sm:$0xff] }
 0x620   : > { %v2734_v62 = vpop.xlane.xlu0 %2733  ;;  %3372 = vmatpush.msrb.mxu3 %v3170_v41  ;;  %3291 = vmatpush.msrb.mxu1 %v3161_v2 }
 0x621   : > { %v2755_v39 = vmul.f32 %v10323_v5, %v2734_v62  ;;  %2801 = vadd.xlane.f32.xlu1 %v2800_v56  ;;  %v3146_v56 = vld [vmem:[#allocation20 + $0x588] sm:$0xff]  ;;  %v3009_v62 = vld [vmem:[#allocation20 + $0x140] sm:$0xff] }
 0x622   : > { %3373 = vmatpush.msrb.mxu3 %v3162_v31  ;;  %3292 = vmatpush.msrb.mxu1 %v3153_v7 }
 0x623   : > { %v10381_v10 = vsub.f32 %v10296_v18, %v2755_v39  ;;  %v10384_v6 = vsub.f32 %v10299_v59, %v2755_v39  ;;  %v3137_v39 = vld [vmem:[#allocation20 + $0x540] sm:$0xff] }
 0x624   : > { %3374 = vmatpush.msrb.mxu3 %v3154_v53  ;;  %3293 = vmatpush.msrb.mxu1 %v3145_v16 }
 0x625   : > { %v2783_v33 = vmul.f32 %v10381_v10, %v10381_v10  ;;  %v2784_v54 = vmul.f32 %v10384_v6, %v10384_v6 }
 0x626   : > { %3375 = vmatpush.msrb.mxu3 %v3146_v56  ;;  %3294 = vmatpush.msrb.mxu1 %v3137_v39 }
 0x627   : > { %v2803_v30 = vadd.f32 %v2784_v54, %v2783_v33  ;;  %v3010_v33 = vld [vmem:[#allocation20 + $0x148] sm:$0xff] }
 0x628   : > { %v2737_v27 = vpop.xlane.xlu1 %2736  ;;  %v3138_v54 = vld [vmem:[#allocation20 + $0x548] sm:$0xff] }
 0x629   : > { %v2756_v50 = vmul.f32 %v10323_v5, %v2737_v27  ;;  %2804 = vadd.xlane.f32.xlu2 %v2803_v30  ;;  %3376 = vmatpush.msrb.mxu3 %v3138_v54  ;;  %v3001_v30 = vld [vmem:[#allocation20 + $0x100] sm:$0xff] }
 0x62a   : > { %v3129_v27 = vld [vmem:[#allocation20 + $0x500] sm:$0xff] }
 0x62b   : > { %v10392_v21 = vsub.f32 %v10306_v37, %v2756_v50  ;;  %v10395_v18 = vsub.f32 %v10309_v42, %v2756_v50  ;;  %v3002_v50 = vld [vmem:[#allocation20 + $0x108] sm:$0xff]  ;;  %3295 = vmatpush.msrb.mxu1 %v3129_v27 }
 0x62d   : > { %v2785_v59 = vmul.f32 %v10392_v21, %v10392_v21  ;;  %v2786_v22 = vmul.f32 %v10395_v18, %v10395_v18 }
 0x62f   : > { %v2806_v4 = vadd.f32 %v2786_v22, %v2785_v59  ;;  %v3130_v59 = vld [vmem:[#allocation20 + $0x508] sm:$0xff]  ;;  %v2993_v22 = vld [vmem:[#allocation20 + $0xc0] sm:$0xff] }
 0x630   : > { %v2740_v34 = vpop.xlane.xlu2 %2739  ;;  %3377 = vmatpush.msrb.mxu3 %v3130_v59 }
 0x631   : > { %v2757_v45 = vmul.f32 %v10323_v5, %v2740_v34  ;;  %2807 = vadd.xlane.f32.xlu0 %v2806_v4  ;;  %v3121_v4 = vld [vmem:[#allocation20 + $0x4c0] sm:$0xff]  ;;  %v2994_v34 = vld [vmem:[#allocation20 + $0xc8] sm:$0xff] }
 0x632   : > { %3296 = vmatpush.msrb.mxu1 %v3121_v4 }
 0x633   : > { %v10403_v48 = vsub.f32 %v10316_v32, %v2757_v45  ;;  %v10406_v37 = vsub.f32 %v10319_v55, %v2757_v45  ;;  %v3065_v32 = vld [vmem:[#allocation20 + $0x300] sm:$0xff]  ;;  %v3066_v55 = vld [vmem:[#allocation20 + $0x308] sm:$0xff] }
 0x634   : > { %3246 = vmatpush.msrb.mxu0 %v3065_v32  ;;  %3328 = vmatpush.msrb.mxu2 %v3066_v55  ;;  %v2977_v55 = vld [vmem:[#allocation20 + $0x40] sm:$0xff] }
 0x635   : > { %v2787_v42 = vmul.f32 %v10403_v48, %v10403_v48  ;;  %v2788_v26 = vmul.f32 %v10406_v37, %v10406_v37  ;;  %3297 = vmatpush.msrb.mxu1 %v3113_v51 }
 0x636   : > { %3247 = vmatpush.msrb.mxu0 %v3057_v12  ;;  %3329 = vmatpush.msrb.mxu2 %v3058_v3  ;;  %v2978_v12 = vld [vmem:[#allocation20 + $0x48] sm:$0xff] }
 0x637   : > { %v2809_v36 = vadd.f32 %v2788_v26, %v2787_v42  ;;  %v3122_v42 = vld [vmem:[#allocation20 + $0x4c8] sm:$0xff]  ;;  %3298 = vmatpush.msrb.mxu1 %v3105_v11 }
 0x638   : > { %3248 = vmatpush.msrb.mxu0 %v3049_v0  ;;  %3330 = vmatpush.msrb.mxu2 %v3050_v57  ;;  %v2969_v0 = vld [vmem:[#allocation20] sm:$0xff]  ;;  %v2970_v57 = vld [vmem:[#allocation20 + $0x8] sm:$0xff] }
 0x639   : > { %2810 = vadd.xlane.f32.xlu1 %v2809_v36  ;;  %3378 = vmatpush.msrb.mxu3 %v3122_v42  ;;  %v2985_v36 = vld [vmem:[#allocation20 + $0x80] sm:$0xff] }
 0x63a   : > { %3249 = vmatpush.msrb.mxu0 %v3041_v29  ;;  %3331 = vmatpush.msrb.mxu2 %v3042_v52 }
 0x63b   : > { %3379 = vmatpush.msrb.mxu3 %v3114_v24  ;;  %3299 = vmatpush.msrb.mxu1 %v3097_v63 }
 0x63c   : > { %3250 = vmatpush.msrb.mxu0 %v3033_v1  ;;  %3332 = vmatpush.msrb.mxu2 %v3034_v28 }
 0x63d   : > { %3380 = vmatpush.msrb.mxu3 %v3106_v25 }
 0x63e   : > { %3251 = vmatpush.msrb.mxu0 %v3025_v40  ;;  %3333 = vmatpush.msrb.mxu2 %v3026_v8  ;;  %v2718_v8 = vld [vmem:[#allocation23] sm:$0x3] }
 0x63f   : > { %3381 = vmatpush.msrb.mxu3 %v3098_v20  ;;  %v10429_v39 = vperm.slane %v2718_v8, 0 }
 0x640   : > { %3252 = vmatpush.msrb.mxu0 %v3017_v15  ;;  %3334 = vmatpush.msrb.mxu2 %v3018_v60  ;;  %v2719_v60 = vld [vmem:[%s14666_s5] sm:$0x3]  ;;  %s8257_s5 = sshll.u32 %s15046_s18, 4 }
 0x641   : > { %v10433_v27 = vperm.slane %v2719_v60, 0  ;;  %s7922_s17 = sadd.s32 %s8257_s5, %s8251_s1 }
 0x642   : > { %3253 = vmatpush.msrb.mxu0 %v3009_v62  ;;  %3335 = vmatpush.msrb.mxu2 %v3010_v33  ;;  %v10431_v33 = vperm.slane %v2718_v8, 1  ;;  %s8252_s8 = sshll.u32 %s7922_s17, 3 }
 0x643   : > { %s7924_s21 = scalar_lea.hbm %s15048_s7, %s8252_s8 }
 0x644   : > { %3254 = vmatpush.msrb.mxu0 %v3001_v30  ;;  %3336 = vmatpush.msrb.mxu2 %v3002_v50  ;;  %v10435_v50 = vperm.slane %v2719_v60, 1  ;;  %s7927_s10 = sshll.u32 %s7924_s21, 4  ;;  %s7928_s10 = int_to_ptr.hbm [resolvable:$true] %s7927_s10 }
 0x645   : > { %s9133_s26 = sshra.s32 %s7928_s10, 4  ;;  %s9134_s26 = int_to_ptr.hbm [resolvable:$true] %s9133_s26 }
 0x646   : > { %3255 = vmatpush.msrb.mxu0 %v2993_v22  ;;  %3337 = vmatpush.msrb.mxu2 %v2994_v34  ;;  %s9135_s14 = scalar_lea.hbm %s9134_s26, 128  ;;  %p9140_p6 = scmp.lt.s32.totalorder %s9134_s26, %s15048_s7 }
 0x647   : > { %p9136_p1 = scmp.ne.s32.totalorder %s9134_s26, %s9135_s14 }
 0x648   : > { %3256 = vmatpush.msrb.mxu0 %v2985_v36  ;;  %3338 = vmatpush.msrb.mxu2 %v2986_v19 }
 0x649   : > { %p9137_p8 = pnand %p9136_p1, %p9556_p2 }
 0x64a   : > { %3257 = vmatpush.msrb.mxu0 %v2977_v55  ;;  %3339 = vmatpush.msrb.mxu2 %v2978_v12 }
 0x64b   : > { %p9138_p0 = pneg %p9137_p8 }
 0x64c   : > { %3258 = vmatpush.msrb.mxu0 %v2969_v0  ;;  %3340 = vmatpush.msrb.mxu2 %v2970_v57 }
 0x67c   : > { %v2793_v45 = vpop.xlane.xlu0 %2792 }
 0x67d   : > { %v2815_v26 = vmul.f32 %v2793_v45, %v10323_v5 }
 0x67e   : > { %v2743_v13 = vpop.xlane.xlu1 %2742 }
 0x67f   : > { %v2823_v32 = vadd.f32 1e-05, %v2815_v26  ;;  %v2758_v14 = vmul.f32 %v10323_v5, %v2743_v13 }
 0x681   : > { %8549 = vrsqrt.f32 %v2823_v32  ;;  %v10415_v3 = vsub.f32 %v10339_v58, %v2758_v14  ;;  %v10418_v61 = vsub.f32 %v10342_v23, %v2758_v14  ;;  %vm2837_vm2 = vweird.f32 %v2823_v32 }
 0x683   : > { %v2789_v29 = vmul.f32 %v10415_v3, %v10415_v3  ;;  %v2790_v47 = vmul.f32 %v10418_v61, %v10418_v61 }
 0x684   : > { %v2796_v58 = vpop.xlane.xlu2 %2795 }
 0x685   : > { %v2816_v23 = vmul.f32 %v2796_v58, %v10323_v5  ;;  %v2812_v52 = vadd.f32 %v2790_v47, %v2789_v29 }
 0x687   : > { %v8550_v41 = vpop.eup %8549  ;;  %v2824_v1 = vadd.f32 1e-05, %v2816_v23  ;;  %2813 = vadd.xlane.f32.xlu2 %v2812_v52 }
 0x688   : > { %v2832_v2 = vmul.f32 %v8550_v41, %v2823_v32  ;;  %vm2838_vm1 = vweird.f32 %v8550_v41 }
 0x689   : > { %8551 = vrsqrt.f32 %v2824_v1  ;;  %vm2839_vm3 = vmor %vm2837_vm2, %vm2838_vm1  ;;  %vm2847_vm5 = vweird.f32 %v2824_v1 }
 0x68a   : > { %v2833_v28 = vmul.f32 %v8550_v41, %v2832_v2 }
 0x68c   : > { %v2834_v31 = vmul.f32 0.5, %v2833_v28  ;;  %v2799_v40 = vpop.xlane.xlu0 %2798 }
 0x68d   : > { %v2817_v7 = vmul.f32 %v2799_v40, %v10323_v5 }
 0x68e   : > { %v2835_v53 = vsub.f32 1.5, %v2834_v31 }
 0x68f   : > { %v8552_v15 = vpop.eup %8551  ;;  %v2825_v16 = vadd.f32 1e-05, %v2817_v7 }
 0x690   : > { %v2836_v56 = vmul.f32 %v8550_v41, %v2835_v53  ;;  %v2842_v62 = vmul.f32 %v8552_v15, %v2824_v1  ;;  %vm2848_vm4 = vweird.f32 %v8552_v15 }
 0x691   : > { %8553 = vrsqrt.f32 %v2825_v16  ;;  %vm2849_vm6 = vmor %vm2847_vm5, %vm2848_vm4  ;;  %vm2857_vm8 = vweird.f32 %v2825_v16 }
 0x692   : > { %v2840_v54 = vsel %vm2839_vm3, %v8550_v41, %v2836_v56  ;;  %v2843_v30 = vmul.f32 %v8552_v15, %v2842_v62 }
 0x693   : > { %v2911_v59 = vmul.f32 %v2840_v54, %v10328_v46  ;;  %v2912_v22 = vmul.f32 %v2840_v54, %v10331_v9 }
 0x694   : > { %v2844_v4 = vmul.f32 0.5, %v2843_v30  ;;  %v2802_v34 = vpop.xlane.xlu1 %2801  ;;  %v3092_v30 = vld [vmem:[#allocation20 + $0x3d8] sm:$0xff] }
 0x695   : > { %v2932_v45 = vmul.f32 %v10429_v39, %v2911_v59  ;;  %v2933_v42 = vmul.f32 %v10431_v33, %v2912_v22  ;;  %v2818_v26 = vmul.f32 %v2802_v34, %v10323_v5  ;;  %v3220_v59 = vld [vmem:[#allocation20 + $0x7d8] sm:$0xff]  ;;  %v3091_v22 = vld [vmem:[#allocation20 + $0x3d0] sm:$0xff]  ;;  %3489 = vmatpush.msra.mxu2 %v3092_v30 }
 0x696   : > { %v2845_v36 = vsub.f32 1.5, %v2844_v4  ;;  %3530 = vmatpush.msra.mxu3 %v3220_v59  ;;  %3407 = vmatpush.msra.mxu0 %v3091_v22  ;;  %v3179_v30 = vld [vmem:[#allocation20 + $0x690] sm:$0xff] }
 0x697   : > { %v8554_v51 = vpop.eup %8553  ;;  %v10443_v19 = vadd.f32 %v10433_v27, %v2932_v45  ;;  %v10446_v13 = vadd.f32 %v10435_v50, %v2933_v42  ;;  %v2826_v46 = vadd.f32 1e-05, %v2818_v26  ;;  %v3084_v45 = vld [vmem:[#allocation20 + $0x398] sm:$0xff]  ;;  %v3219_v42 = vld [vmem:[#allocation20 + $0x7d0] sm:$0xff] }
 0x698   : > { %v2846_v24 = vmul.f32 %v8552_v15, %v2845_v36  ;;  %v2852_v9 = vmul.f32 %v8554_v51, %v2825_v16  ;;  %vm2858_vm7 = vweird.f32 %v8554_v51  ;;  %v3212_v26 = vld [vmem:[#allocation20 + $0x798] sm:$0xff]  ;;  %3448 = vmatpush.msra.mxu1 %v3219_v42  ;;  %3490 = vmatpush.msra.mxu2 %v3084_v45 }
 0x699   : > { %14667 = vst [vmem:[#allocation46_spill] sm:$0xff] %v10443_v19  ;;  %8555 = vrsqrt.f32 %v2826_v46  ;;  %3259 = vmatmul.f32.vlgmr.msrb.gmra.mxu0 %v10443_v19  ;;  %3300 = vmatmul.f32.vlgmr.msrb.gmra.mxu1 %v10446_v13  ;;  %vm2859_vm9 = vmor %vm2857_vm8, %vm2858_vm7  ;;  %vm2867_vm11 = vweird.f32 %v2826_v46  ;;  %v3044_v45 = vld [vmem:[#allocation20 + $0x258] sm:$0xff] }
 0x69a   : > { %14668 = vst [vmem:[#allocation47_spill] sm:$0xff] %v10446_v13  ;;  %v2850_v32 = vsel %vm2849_vm6, %v8552_v15, %v2846_v24  ;;  %v2853_v14 = vmul.f32 %v8554_v51, %v2852_v9  ;;  %3341 = vmatmul.f32.vlgmr.msrb.gmra.mxu2 %v10443_v19  ;;  %3382 = vmatmul.f32.vlgmr.msrb.gmra.mxu3 %v10446_v13  ;;  %v3076_v24 = vld [vmem:[#allocation20 + $0x358] sm:$0xff]  ;;  %v3211_v9 = vld [vmem:[#allocation20 + $0x790] sm:$0xff] }
 0x69b   : > { %v2913_v55 = vmul.f32 %v2850_v32, %v10348_v17  ;;  %v2914_v11 = vmul.f32 %v2850_v32, %v10351_v43  ;;  %3531 = vmatpush.msra.mxu3 %v3212_v26  ;;  %3449 = vmatpush.msra.mxu1 %v3211_v9  ;;  %v3172_v42 = vld [vmem:[#allocation20 + $0x658] sm:$0xff] }
 0x69c   : > { %v2854_v12 = vmul.f32 0.5, %v2853_v14  ;;  %v2805_v25 = vpop.xlane.xlu2 %2804  ;;  %3491 = vmatpush.msra.mxu2 %v3076_v24 }
 0x69d   : > { %v2934_v0 = vmul.f32 %v10429_v39, %v2913_v55  ;;  %v2935_v63 = vmul.f32 %v10431_v33, %v2914_v11  ;;  %v2819_v57 = vmul.f32 %v2805_v25, %v10323_v5  ;;  %v3075_v55 = vld [vmem:[#allocation20 + $0x350] sm:$0xff] }
 0x69e   : > { %v2855_v20 = vsub.f32 1.5, %v2854_v12  ;;  %v3203_v12 = vld [vmem:[#allocation20 + $0x750] sm:$0xff] }
 0x69f   : > { %v8556_v29 = vpop.eup %8555  ;;  %v10458_v47 = vadd.f32 %v10433_v27, %v2934_v0  ;;  %v10461_v58 = vadd.f32 %v10435_v50, %v2935_v63  ;;  %v10463_v17 = vadd.f32 1e-05, %v2819_v57  ;;  %3450 = vmatpush.msra.mxu1 %v3203_v12 }
 0x6a0   : > { %v2856_v43 = vmul.f32 %v8554_v51, %v2855_v20  ;;  %v2862_v23 = vmul.f32 %v8556_v29, %v2826_v46  ;;  %vm2868_vm10 = vweird.f32 %v8556_v29  ;;  %v3083_v46 = vld [vmem:[#allocation20 + $0x390] sm:$0xff] }
 0x6a1   : > { %14669 = vst [vmem:[#allocation48_spill] sm:$0xff] %v10458_v47  ;;  %8557 = vrsqrt.f32 %v10463_v17  ;;  %3262 = vmatmul.f32.gmra.mxu0 %v10458_v47  ;;  %3303 = vmatmul.f32.gmra.mxu1 %v10461_v58  ;;  %vm2869_vm12 = vmor %vm2867_vm11, %vm2868_vm10  ;;  %vm2877_vm14 = vweird.f32 %v10463_v17 }
 0x6a2   : > { %14670 = vst [vmem:[#allocation49_spill] sm:$0xff] %v10461_v58  ;;  %v2860_v52 = vsel %vm2859_vm9, %v8554_v51, %v2856_v43  ;;  %v2863_v41 = vmul.f32 %v8556_v29, %v2862_v23  ;;  %3344 = vmatmul.f32.gmra.mxu2 %v10458_v47  ;;  %3385 = vmatmul.f32.gmra.mxu3 %v10461_v58  ;;  %v3068_v43 = vld [vmem:[#allocation20 + $0x318] sm:$0xff] }
 0x6a3   : > { %v2915_v1 = vmul.f32 %v2860_v52, %v10359_v38  ;;  %v2916_v2 = vmul.f32 %v2860_v52, %v10362_v35  ;;  %3408 = vmatpush.msra.mxu0 %v3083_v46  ;;  %v3196_v23 = vld [vmem:[#allocation20 + $0x718] sm:$0xff]  ;;  %v3067_v52 = vld [vmem:[#allocation20 + $0x310] sm:$0xff]  ;;  %3492 = vmatpush.msra.mxu2 %v3068_v43 }
 0x6a4   : > { %v2864_v28 = vmul.f32 0.5, %v2863_v41  ;;  %v2808_v31 = vpop.xlane.xlu0 %2807  ;;  %v3195_v41 = vld [vmem:[#allocation20 + $0x710] sm:$0xff] }
 0x6a5   : > { %v2936_v40 = vmul.f32 %v10429_v39, %v2915_v1  ;;  %v2937_v7 = vmul.f32 %v10431_v33, %v2916_v2  ;;  %v2820_v8 = vmul.f32 %v2808_v31, %v10323_v5  ;;  %3409 = vmatpush.msra.mxu0 %v3075_v55  ;;  %v3060_v2 = vld [vmem:[#allocation20 + $0x2d8] sm:$0xff]  ;;  %3451 = vmatpush.msra.mxu1 %v3195_v41  ;;  %v3035_v43 = vld [vmem:[#allocation20 + $0x210] sm:$0xff] }
 0x6a6   : > { %v2865_v53 = vsub.f32 1.5, %v2864_v28  ;;  %v3188_v28 = vld [vmem:[#allocation20 + $0x6d8] sm:$0xff]  ;;  %3493 = vmatpush.msra.mxu2 %v3060_v2  ;;  %v3155_v2 = vld [vmem:[#allocation20 + $0x5d0] sm:$0xff] }
 0x6a7   : > { %v10475_v15 = vpop.eup %8557  ;;  %v10478_v16 = vadd.f32 %v10433_v27, %v2936_v40  ;;  %v10481_v60 = vadd.f32 %v10435_v50, %v2937_v7  ;;  %v10483_v38 = vadd.f32 1e-05, %v2820_v8  ;;  %v3059_v7 = vld [vmem:[#allocation20 + $0x2d0] sm:$0xff]  ;;  %3410 = vmatpush.msra.mxu0 %v3067_v52  ;;  %v3156_v41 = vld [vmem:[#allocation20 + $0x5d8] sm:$0xff] }
 0x6a8   : > { %v2866_v35 = vmul.f32 %v8556_v29, %v2865_v53  ;;  %v2872_v56 = vmul.f32 %v10475_v15, %v10463_v17  ;;  %vm2878_vm13 = vweird.f32 %v10475_v15  ;;  %v3187_v8 = vld [vmem:[#allocation20 + $0x6d0] sm:$0xff] }
 0x6a9   : > { %14671 = vst [vmem:[#allocation50_spill] sm:$0xff] %v10478_v16  ;;  %8559 = vrsqrt.f32 %v10483_v38  ;;  %3265 = vmatmul.f32.gmra.mxu0 %v10478_v16  ;;  %3306 = vmatmul.f32.gmra.mxu1 %v10481_v60  ;;  %vm2879_vm15 = vmor %vm2877_vm14, %vm2878_vm13  ;;  %vm2887_vm1 = vweird.f32 %v10483_v38  ;;  %v3163_v52 = vld [vmem:[#allocation20 + $0x610] sm:$0xff] }
 0x6aa   : > { %14672 = vst [vmem:[#allocation51_spill] sm:$0xff] %v10481_v60  ;;  %v2870_v62 = vsel %vm2869_vm12, %v8556_v29, %v2866_v35  ;;  %v2873_v54 = vmul.f32 %v10475_v15, %v2872_v56  ;;  %3347 = vmatmul.f32.gmra.mxu2 %v10478_v16  ;;  %3388 = vmatmul.f32.gmra.mxu3 %v10481_v60  ;;  %v3052_v35 = vld [vmem:[#allocation20 + $0x298] sm:$0xff] }
 0x6ab   : > { %v2917_v4 = vmul.f32 %v2870_v62, %v10370_v44  ;;  %v2918_v34 = vmul.f32 %v2870_v62, %v10373_v49  ;;  %v3204_v49 = vld [vmem:[#allocation20 + $0x758] sm:$0xff]  ;;  %3411 = vmatpush.msra.mxu0 %v3059_v7  ;;  %3452 = vmatpush.msra.mxu1 %v3187_v8  ;;  %v3147_v8 = vld [vmem:[#allocation20 + $0x590] sm:$0xff] }
 0x6ac   : > { %v2874_v36 = vmul.f32 0.5, %v2873_v54  ;;  %v2811_v51 = vpop.xlane.xlu1 %2810  ;;  %3532 = vmatpush.msra.mxu3 %v3204_v49  ;;  %v3051_v54 = vld [vmem:[#allocation20 + $0x290] sm:$0xff]  ;;  %3494 = vmatpush.msra.mxu2 %v3052_v35 }
 0x6ad   : > { %v2938_v32 = vmul.f32 %v10429_v39, %v2917_v4  ;;  %v2939_v14 = vmul.f32 %v10431_v33, %v2918_v34  ;;  %v2821_v44 = vmul.f32 %v2811_v51, %v10323_v5  ;;  %3412 = vmatpush.msra.mxu0 %v3051_v54  ;;  %3453 = vmatpush.msra.mxu1 %v3179_v30  ;;  %v3132_v54 = vld [vmem:[#allocation20 + $0x518] sm:$0xff] }
 0x6ae   : > { %v2875_v11 = vsub.f32 1.5, %v2874_v36  ;;  %3533 = vmatpush.msra.mxu3 %v3196_v23  ;;  %3495 = vmatpush.msra.mxu2 %v3044_v45  ;;  %v3028_v23 = vld [vmem:[#allocation20 + $0x1d8] sm:$0xff]  ;;  %v2995_v45 = vld [vmem:[#allocation20 + $0xd0] sm:$0xff] }
 0x6af   : > { %v8560_v25 = vpop.eup %8559  ;;  %v10500_v0 = vadd.f32 %v10433_v27, %v2938_v32  ;;  %v10503_v63 = vadd.f32 %v10435_v50, %v2939_v14  ;;  %v10505_v57 = vadd.f32 1e-05, %v2821_v44 }
 0x6b0   : > { %v2876_v20 = vmul.f32 %v10475_v15, %v2875_v11  ;;  %v2882_v29 = vmul.f32 %v8560_v25, %v10483_v38  ;;  %3534 = vmatpush.msra.mxu3 %v3188_v28  ;;  %vm2888_vm0 = vweird.f32 %v8560_v25  ;;  %v3148_v28 = vld [vmem:[#allocation20 + $0x598] sm:$0xff] }
 0x6b1   : > { %14673 = vst [vmem:[#allocation52_spill] sm:$0xff] %v10500_v0  ;;  %8561 = vrsqrt.f32 %v10505_v57  ;;  %3268 = vmatmul.f32.gmra.mxu0 %v10500_v0  ;;  %3309 = vmatmul.f32.gmra.mxu1 %v10503_v63  ;;  %vm2889_vm2 = vmor %vm2887_vm1, %vm2888_vm0  ;;  %vm2897_vm4 = vweird.f32 %v10505_v57 }
 0x6b2   : > { %14674 = vst [vmem:[#allocation53_spill] sm:$0xff] %v10503_v63  ;;  %v2880_v1 = vsel %vm2879_vm15, %v10475_v15, %v2876_v20  ;;  %v2883_v17 = vmul.f32 %v8560_v25, %v2882_v29  ;;  %3350 = vmatmul.f32.gmra.mxu2 %v10500_v0  ;;  %3391 = vmatmul.f32.gmra.mxu3 %v10503_v63  ;;  %v3180_v15 = vld [vmem:[#allocation20 + $0x698] sm:$0xff]  ;;  %v3171_v20 = vld [vmem:[#allocation20 + $0x650] sm:$0xff] }
 0x6b3   : > { %v2919_v31 = vmul.f32 %v2880_v1, %v10381_v10  ;;  %v2920_v40 = vmul.f32 %v2880_v1, %v10384_v6  ;;  %3535 = vmatpush.msra.mxu3 %v3180_v15  ;;  %v3164_v29 = vld [vmem:[#allocation20 + $0x618] sm:$0xff]  ;;  %3454 = vmatpush.msra.mxu1 %v3171_v20  ;;  %v3027_v1 = vld [vmem:[#allocation20 + $0x1d0] sm:$0xff] }
 0x6b4   : > { %v2884_v53 = vmul.f32 0.5, %v2883_v17  ;;  %v3020_v17 = vld [vmem:[#allocation20 + $0x198] sm:$0xff]  ;;  %v3011_v15 = vld [vmem:[#allocation20 + $0x150] sm:$0xff] }
 0x6b5   : > { %v2940_v56 = vmul.f32 %v10429_v39, %v2919_v31  ;;  %v2941_v62 = vmul.f32 %v10431_v33, %v2920_v40  ;;  %3536 = vmatpush.msra.mxu3 %v3172_v42  ;;  %3455 = vmatpush.msra.mxu1 %v3163_v52  ;;  %v3019_v31 = vld [vmem:[#allocation20 + $0x190] sm:$0xff]  ;;  %v3012_v40 = vld [vmem:[#allocation20 + $0x158] sm:$0xff] }
 0x6b6   : > { %v2885_v10 = vsub.f32 1.5, %v2884_v53  ;;  %v3140_v53 = vld [vmem:[#allocation20 + $0x558] sm:$0xff] }
 0x6b7   : > { %v8562_v6 = vpop.eup %8561  ;;  %v10523_v59 = vadd.f32 %v10433_v27, %v2940_v56  ;;  %v10526_v22 = vadd.f32 %v10435_v50, %v2941_v62  ;;  %3537 = vmatpush.msra.mxu3 %v3164_v29  ;;  %3456 = vmatpush.msra.mxu1 %v3155_v2  ;;  %v3004_v56 = vld [vmem:[#allocation20 + $0x118] sm:$0xff]  ;;  %v3139_v62 = vld [vmem:[#allocation20 + $0x550] sm:$0xff] }
 0x6b8   : > { %v2886_v4 = vmul.f32 %v8560_v25, %v2885_v10  ;;  %v2892_v34 = vmul.f32 %v8562_v6, %v10505_v57  ;;  %vm2898_vm3 = vweird.f32 %v8562_v6  ;;  %v3003_v10 = vld [vmem:[#allocation20 + $0x110] sm:$0xff]  ;;  %v2988_v42 = vld [vmem:[#allocation20 + $0x98] sm:$0xff] }
 0x6b9   : > { %14675 = vst [vmem:[#allocation54_spill] sm:$0xff] %v10523_v59  ;;  %3271 = vmatmul.f32.gmra.mxu0 %v10523_v59  ;;  %3312 = vmatmul.f32.gmra.mxu1 %v10526_v22  ;;  %vm2899_vm5 = vmor %vm2897_vm4, %vm2898_vm3 }
 0x6ba   : > { %14676 = vst [vmem:[#allocation55_spill] sm:$0xff] %v10526_v22  ;;  %v2890_v26 = vsel %vm2889_vm2, %v8560_v25, %v2886_v4  ;;  %v2893_v36 = vmul.f32 %v8562_v6, %v2892_v34  ;;  %3353 = vmatmul.f32.gmra.mxu2 %v10523_v59  ;;  %3394 = vmatmul.f32.gmra.mxu3 %v10526_v22  ;;  %v3131_v4 = vld [vmem:[#allocation20 + $0x510] sm:$0xff]  ;;  %v3124_v34 = vld [vmem:[#allocation20 + $0x4d8] sm:$0xff] }
 0x6bb   : > { %v2921_v38 = vmul.f32 %v2890_v26, %v10392_v21  ;;  %v2922_v51 = vmul.f32 %v2890_v26, %v10395_v18  ;;  %3538 = vmatpush.msra.mxu3 %v3156_v41  ;;  %3457 = vmatpush.msra.mxu1 %v3147_v8  ;;  %v3123_v26 = vld [vmem:[#allocation20 + $0x4d0] sm:$0xff]  ;;  %v3077_v8 = vld [vmem:[#allocation20 + $0x360] sm:$0xff] }
 0x6bc   : > { %v2894_v46 = vmul.f32 0.5, %v2893_v36  ;;  %v3116_v36 = vld [vmem:[#allocation20 + $0x498] sm:$0xff] }
 0x6bd   : > { %v2942_v24 = vmul.f32 %v10429_v39, %v2921_v38  ;;  %v2943_v9 = vmul.f32 %v10431_v33, %v2922_v51  ;;  %3539 = vmatpush.msra.mxu3 %v3148_v28  ;;  %3458 = vmatpush.msra.mxu1 %v3139_v62  ;;  %v2987_v38 = vld [vmem:[#allocation20 + $0x90] sm:$0xff]  ;;  %v3085_v28 = vld [vmem:[#allocation20 + $0x3a0] sm:$0xff] }
 0x6be   : > { %v2895_v32 = vsub.f32 1.5, %v2894_v46  ;;  %v3115_v51 = vld [vmem:[#allocation20 + $0x490] sm:$0xff]  ;;  %v3069_v62 = vld [vmem:[#allocation20 + $0x320] sm:$0xff] }
 0x6bf   : > { %v10540_v14 = vadd.f32 %v10433_v27, %v2942_v24  ;;  %v10543_v44 = vadd.f32 %v10435_v50, %v2943_v9  ;;  %3540 = vmatpush.msra.mxu3 %v3140_v53  ;;  %3459 = vmatpush.msra.mxu1 %v3131_v4  ;;  %v2980_v24 = vld [vmem:[#allocation20 + $0x58] sm:$0xff]  ;;  %v3070_v53 = vld [vmem:[#allocation20 + $0x328] sm:$0xff]  ;;  %v3189_v4 = vld [vmem:[#allocation20 + $0x6e0] sm:$0xff] }
 0x6c0   : > { %v2896_v49 = vmul.f32 %v8562_v6, %v2895_v32  ;;  %v3108_v9 = vld [vmem:[#allocation20 + $0x458] sm:$0xff]  ;;  %v2979_v32 = vld [vmem:[#allocation20 + $0x50] sm:$0xff] }
 0x6c1   : > { %14677 = vst [vmem:[#allocation56_spill] sm:$0xff] %v10540_v14  ;;  %3274 = vmatmul.f32.gmra.mxu0 %v10540_v14  ;;  %3315 = vmatmul.f32.gmra.mxu1 %v10543_v44 }
 0x6c2   : > { %14678 = vst [vmem:[#allocation57_spill] sm:$0xff] %v10543_v44  ;;  %v2900_v21 = vsel %vm2899_vm5, %v8562_v6, %v2896_v49  ;;  %3356 = vmatmul.f32.gmra.mxu2 %v10540_v14  ;;  %3397 = vmatmul.f32.gmra.mxu3 %v10543_v44  ;;  %v2996_v6 = vld [vmem:[#allocation20 + $0xd8] sm:$0xff] }
 0x6c3   : > { %v2923_v18 = vmul.f32 %v2900_v21, %v10403_v48  ;;  %v2924_v55 = vmul.f32 %v2900_v21, %v10406_v37  ;;  %v3043_v48 = vld [vmem:[#allocation20 + $0x250] sm:$0xff]  ;;  %v3036_v37 = vld [vmem:[#allocation20 + $0x218] sm:$0xff]  ;;  %3541 = vmatpush.msra.mxu3 %v3132_v54  ;;  %3460 = vmatpush.msra.mxu1 %v3123_v26  ;;  %v3197_v54 = vld [vmem:[#allocation20 + $0x720] sm:$0xff] }
 0x6c4   : > { %3413 = vmatpush.msra.mxu0 %v3043_v48  ;;  %3496 = vmatpush.msra.mxu2 %v3036_v37  ;;  %v3107_v21 = vld [vmem:[#allocation20 + $0x450] sm:$0xff]  ;;  %v3182_v26 = vld [vmem:[#allocation20 + $0x6a8] sm:$0xff] }
 0x6c5   : > { %v2944_v11 = vmul.f32 %v10429_v39, %v2923_v18  ;;  %v2945_v12 = vmul.f32 %v10431_v33, %v2924_v55  ;;  %3542 = vmatpush.msra.mxu3 %v3124_v34  ;;  %3461 = vmatpush.msra.mxu1 %v3115_v51  ;;  %v2972_v18 = vld [vmem:[#allocation20 + $0x18] sm:$0xff]  ;;  %v3099_v48 = vld [vmem:[#allocation20 + $0x410] sm:$0xff]  ;;  %v3046_v51 = vld [vmem:[#allocation20 + $0x268] sm:$0xff] }
 0x6c6   : > { %3414 = vmatpush.msra.mxu0 %v3035_v43  ;;  %3497 = vmatpush.msra.mxu2 %v3028_v23  ;;  %v3100_v55 = vld [vmem:[#allocation20 + $0x418] sm:$0xff] }
 0x6c7   : > { %v10555_v25 = vadd.f32 %v10433_v27, %v2944_v11  ;;  %v10558_v57 = vadd.f32 %v10435_v50, %v2945_v12  ;;  %3543 = vmatpush.msra.mxu3 %v3116_v36  ;;  %3462 = vmatpush.msra.mxu1 %v3107_v21  ;;  %v2971_v12 = vld [vmem:[#allocation20 + $0x10] sm:$0xff]  ;;  %v3053_v36 = vld [vmem:[#allocation20 + $0x2a0] sm:$0xff]  ;;  %v3166_v21 = vld [vmem:[#allocation20 + $0x628] sm:$0xff] }
 0x6c8   : > { %3415 = vmatpush.msra.mxu0 %v3027_v1  ;;  %3498 = vmatpush.msra.mxu2 %v3020_v17 }
 0x6c9   : > { %14679 = vst [vmem:[#allocation58_spill] sm:$0xff] %v10555_v25  ;;  %3277 = vmatmul.f32.gmra.mxu0 %v10555_v25  ;;  %3318 = vmatmul.f32.gmra.mxu1 %v10558_v57 }
 0x6ca   : > { %14680 = vst [vmem:[#allocation59_spill] sm:$0xff] %v10558_v57  ;;  %3359 = vmatmul.f32.gmra.mxu2 %v10555_v25  ;;  %3400 = vmatmul.f32.gmra.mxu3 %v10558_v57 }
 0x6cb   : > { %3416 = vmatpush.msra.mxu0 %v3019_v31  ;;  %3499 = vmatpush.msra.mxu2 %v3012_v40  ;;  %v3078_v31 = vld [vmem:[#allocation20 + $0x368] sm:$0xff]  ;;  %v3213_v40 = vld [vmem:[#allocation20 + $0x7a0] sm:$0xff] }
 0x6cc   : > { %3544 = vmatpush.msra.mxu3 %v3108_v9  ;;  %3463 = vmatpush.msra.mxu1 %v3099_v48  ;;  %v3030_v48 = vld [vmem:[#allocation20 + $0x1e8] sm:$0xff] }
 0x6cd   : > { %3417 = vmatpush.msra.mxu0 %v3011_v15  ;;  %3500 = vmatpush.msra.mxu2 %v3004_v56  ;;  %v3198_v15 = vld [vmem:[#allocation20 + $0x728] sm:$0xff]  ;;  %v10594_v56 = vld [vmem:[%s14683_s4] sm:$0xff] }
 0x6ce   : > { %3545 = vmatpush.msra.mxu3 %v3100_v55  ;;  %v10597_v34 = vperm.slane %v10594_v56, 0 }
 0x6cf   : > { %3418 = vmatpush.msra.mxu0 %v3003_v10  ;;  %3501 = vmatpush.msra.mxu2 %v2996_v6  ;;  %v3190_v10 = vld [vmem:[#allocation20 + $0x6e8] sm:$0xff]  ;;  %v3061_v6 = vld [vmem:[#allocation20 + $0x2e0] sm:$0xff] }
 0x6d1   : > { %3419 = vmatpush.msra.mxu0 %v2995_v45  ;;  %3502 = vmatpush.msra.mxu2 %v2988_v42  ;;  %v3054_v45 = vld [vmem:[#allocation20 + $0x2a8] sm:$0xff] }
 0x6d3   : > { %3420 = vmatpush.msra.mxu0 %v2987_v38  ;;  %3503 = vmatpush.msra.mxu2 %v2980_v24  ;;  %v3181_v38 = vld [vmem:[#allocation20 + $0x6a0] sm:$0xff] }
 0x6d4   : > { %v3045_v24 = vld [vmem:[#allocation20 + $0x260] sm:$0xff] }
 0x6d5   : > { %3421 = vmatpush.msra.mxu0 %v2979_v32  ;;  %3504 = vmatpush.msra.mxu2 %v2972_v18  ;;  %v3173_v32 = vld [vmem:[#allocation20 + $0x660] sm:$0xff] }
 0x6d6   : > { %v3037_v18 = vld [vmem:[#allocation20 + $0x220] sm:$0xff] }
 0x6d7   : > { %3422 = vmatpush.msra.mxu0 %v2971_v12 }
 0x6fa   : > { %v2814_v7 = vpop.xlane.xlu2 %2813 }
 0x6fb   : > { %v2822_v35 = vmul.f32 %v2814_v7, %v10323_v5  ;;  %v3206_v7 = vld [vmem:[#allocation20 + $0x768] sm:$0xff] }
 0x6fd   : > { %v2830_v30 = vadd.f32 1e-05, %v2822_v35  ;;  %v3205_v35 = vld [vmem:[#allocation20 + $0x760] sm:$0xff] }
 0x6ff   : > { %8563 = vrsqrt.f32 %v2830_v30  ;;  %vm2907_vm7 = vweird.f32 %v2830_v30 }
 0x705   : > { %v8564_v46 = vpop.eup %8563 }
 0x706   : > { %v2902_v49 = vmul.f32 %v8564_v46, %v2830_v30  ;;  %vm2908_vm6 = vweird.f32 %v8564_v46  ;;  %v3062_v30 = vld [vmem:[#allocation20 + $0x2e8] sm:$0xff] }
 0x707   : > { %vm2909_vm8 = vmor %vm2907_vm7, %vm2908_vm6 }
 0x708   : > { %v2903_v11 = vmul.f32 %v8564_v46, %v2902_v49  ;;  %v3038_v49 = vld [vmem:[#allocation20 + $0x228] sm:$0xff] }
 0x70a   : > { %v2904_v37 = vmul.f32 0.5, %v2903_v11  ;;  %v3165_v11 = vld [vmem:[#allocation20 + $0x620] sm:$0xff] }
 0x70c   : > { %v2905_v20 = vsub.f32 1.5, %v2904_v37  ;;  %v3158_v37 = vld [vmem:[#allocation20 + $0x5e8] sm:$0xff] }
 0x70e   : > { %v2906_v29 = vmul.f32 %v8564_v46, %v2905_v20  ;;  %v3029_v20 = vld [vmem:[#allocation20 + $0x1e0] sm:$0xff] }
 0x710   : > { %v2910_v43 = vsel %vm2909_vm8, %v8564_v46, %v2906_v29  ;;  %v3174_v46 = vld [vmem:[#allocation20 + $0x668] sm:$0xff] }
 0x711   : > { %v2925_v23 = vmul.f32 %v2910_v43, %v10415_v3  ;;  %v2926_v52 = vmul.f32 %v2910_v43, %v10418_v61  ;;  %v3094_v3 = vld [vmem:[#allocation20 + $0x3e8] sm:$0xff]  ;;  %v3157_v43 = vld [vmem:[#allocation20 + $0x5e0] sm:$0xff] }
 0x712   : > { %v3222_v61 = vld [vmem:[#allocation20 + $0x7e8] sm:$0xff]  ;;  %3653 = vmatpush.msrb.mxu2 %v3094_v3 }
 0x713   : > { %v2946_v41 = vmul.f32 %v10429_v39, %v2925_v23  ;;  %v2947_v1 = vmul.f32 %v10431_v33, %v2926_v52  ;;  %v3093_v39 = vld [vmem:[#allocation20 + $0x3e0] sm:$0xff]  ;;  %3694 = vmatpush.msrb.mxu3 %v3222_v61  ;;  %v3086_v33 = vld [vmem:[#allocation20 + $0x3a8] sm:$0xff] }
 0x714   : > { %3571 = vmatpush.msrb.mxu0 %v3093_v39  ;;  %3654 = vmatpush.msrb.mxu2 %v3086_v33  ;;  %v3022_v29 = vld [vmem:[#allocation20 + $0x1a8] sm:$0xff]  ;;  %v3021_v52 = vld [vmem:[#allocation20 + $0x1a0] sm:$0xff] }
 0x715   : > { %v10570_v17 = vadd.f32 %v10433_v27, %v2946_v41  ;;  %v10573_v2 = vadd.f32 %v10435_v50, %v2947_v1  ;;  %v3221_v27 = vld [vmem:[#allocation20 + $0x7e0] sm:$0xff]  ;;  %v3214_v50 = vld [vmem:[#allocation20 + $0x7a8] sm:$0xff] }
 0x716   : > { %3612 = vmatpush.msrb.mxu1 %v3221_v27  ;;  %3695 = vmatpush.msrb.mxu3 %v3214_v50  ;;  %v3260_v42 = vpop.f32.mrf.mxu0  ;;  %v3301_v55 = vpop.f32.mrf.mxu1  ;;  %v3150_v23 = vld [vmem:[#allocation20 + $0x5a8] sm:$0xff]  ;;  %v3149_v1 = vld [vmem:[#allocation20 + $0x5a0] sm:$0xff]  ;;  %v10614_v27 = vperm.slane %v10594_v56, 1 }
 0x717   : > { %14681 = vst [vmem:[#allocation60_spill] sm:$0xff] %v10570_v17  ;;  %3280 = vmatmul.f32.gmra.mxu0 %v10570_v17  ;;  %3321 = vmatmul.f32.gmra.mxu1 %v10573_v2  ;;  %v3261_v9 = vadd.f32 %v3260_v42, %v10597_v34  ;;  %v3014_v3 = vld [vmem:[#allocation20 + $0x168] sm:$0xff]  ;;  %v3013_v39 = vld [vmem:[#allocation20 + $0x160] sm:$0xff] }
 0x718   : > { %14682 = vst [vmem:[#allocation61_spill] sm:$0xff] %v10573_v2  ;;  %3362 = vmatmul.f32.gmra.mxu2 %v10570_v17  ;;  %3403 = vmatmul.f32.gmra.mxu3 %v10573_v2  ;;  %v3142_v61 = vld [vmem:[#allocation20 + $0x568] sm:$0xff]  ;;  %v3141_v33 = vld [vmem:[#allocation20 + $0x560] sm:$0xff] }
 0x719   : > { %3572 = vmatpush.msrb.mxu0 %v3085_v28  ;;  %3655 = vmatpush.msrb.mxu2 %v3078_v31  ;;  %v10604_v12 = vadd.f32 %v3301_v55, %v3261_v9  ;;  %v3006_v50 = vld [vmem:[#allocation20 + $0x128] sm:$0xff]  ;;  %v3005_v31 = vld [vmem:[#allocation20 + $0x120] sm:$0xff] }
 0x71a   : > { %3613 = vmatpush.msrb.mxu1 %v3213_v40  ;;  %3696 = vmatpush.msrb.mxu3 %v3206_v7  ;;  %v3134_v28 = vld [vmem:[#allocation20 + $0x528] sm:$0xff]  ;;  %v3109_v9 = vld [vmem:[#allocation20 + $0x460] sm:$0xff] }
 0x71b   : > { %3573 = vmatpush.msrb.mxu0 %v3077_v8  ;;  %3656 = vmatpush.msrb.mxu2 %v3070_v53  ;;  %v10609_v41 = vmul.f32 0.70710677, %v10604_v12  ;;  %v2998_v8 = vld [vmem:[#allocation20 + $0xe8] sm:$0xff]  ;;  %v3133_v53 = vld [vmem:[#allocation20 + $0x520] sm:$0xff] }
 0x71c   : > { %3614 = vmatpush.msrb.mxu1 %v3205_v35  ;;  %3697 = vmatpush.msrb.mxu3 %v3198_v15  ;;  %v3126_v15 = vld [vmem:[#allocation20 + $0x4e8] sm:$0xff]  ;;  %v3101_v55 = vld [vmem:[#allocation20 + $0x420] sm:$0xff] }
 0x71d   : > { %3574 = vmatpush.msrb.mxu0 %v3069_v62  ;;  %3657 = vmatpush.msrb.mxu2 %v3062_v30  ;;  %v4027_v40 = vmul.f32 %v10609_v41, %v10609_v41  ;;  %v3342_v7 = vpop.f32.mrf.mxu2  ;;  %v2997_v62 = vld [vmem:[#allocation20 + $0xe0] sm:$0xff]  ;;  %v2990_v30 = vld [vmem:[#allocation20 + $0xa8] sm:$0xff] }
 0x71e   : > { %3615 = vmatpush.msrb.mxu1 %v3197_v54  ;;  %3698 = vmatpush.msrb.mxu3 %v3190_v10  ;;  %v3343_v35 = vadd.f32 %v3342_v7, %v10614_v27  ;;  %v3125_v10 = vld [vmem:[#allocation20 + $0x4e0] sm:$0xff]  ;;  %v2982_v42 = vld [vmem:[#allocation20 + $0x68] sm:$0xff]  ;;  %v3208_v7 = vld [vmem:[#allocation20 + $0x778] sm:$0xff] }
 0x71f   : > { %3423 = vmatmul.f32.vlgmr.msra.gmra.mxu0 %v10443_v19  ;;  %3464 = vmatmul.f32.vlgmr.msra.gmra.mxu1 %v10446_v13  ;;  %v10621_v54 = vmin.f32 %v4027_v40, 16.0  ;;  %v3215_v40 = vld [vmem:[#allocation20 + $0x7b0] sm:$0xff] }
 0x720   : > { %3505 = vmatmul.f32.vlgmr.msra.gmra.mxu2 %v10443_v19  ;;  %3546 = vmatmul.f32.vlgmr.msra.gmra.mxu3 %v10446_v13 }
 0x721   : > { %3575 = vmatpush.msrb.mxu0 %v3061_v6  ;;  %3616 = vmatpush.msrb.mxu1 %v3189_v4  ;;  %v3118_v6 = vld [vmem:[#allocation20 + $0x4a8] sm:$0xff]  ;;  %v2989_v4 = vld [vmem:[#allocation20 + $0xa0] sm:$0xff] }
 0x722   : > { %3658 = vmatpush.msrb.mxu2 %v3054_v45  ;;  %3699 = vmatpush.msrb.mxu3 %v3182_v26  ;;  %v3383_v45 = vpop.f32.mrf.mxu3  ;;  %v3117_v26 = vld [vmem:[#allocation20 + $0x4a0] sm:$0xff] }
 0x723   : > { %3576 = vmatpush.msrb.mxu0 %v3053_v36  ;;  %3617 = vmatpush.msrb.mxu1 %v3181_v38  ;;  %v10625_v36 = vadd.f32 %v3383_v45, %v3343_v35  ;;  %v3110_v38 = vld [vmem:[#allocation20 + $0x468] sm:$0xff]  ;;  %v3071_v45 = vld [vmem:[#allocation20 + $0x330] sm:$0xff] }
 0x724   : > { %3659 = vmatpush.msrb.mxu2 %v3046_v51  ;;  %3700 = vmatpush.msrb.mxu3 %v3174_v46  ;;  %v2981_v51 = vld [vmem:[#allocation20 + $0x60] sm:$0xff]  ;;  %v4040_v46 = vmul.f32 3.8918573e-05, %v10621_v54 }
 0x725   : > { %3577 = vmatpush.msrb.mxu0 %v3045_v24  ;;  %3618 = vmatpush.msrb.mxu1 %v3173_v32  ;;  %v2974_v24 = vld [vmem:[#allocation20 + $0x28] sm:$0xff]  ;;  %v10629_v32 = vmul.f32 0.70710677, %v10625_v36 }
 0x726   : > { %3660 = vmatpush.msrb.mxu2 %v3038_v49  ;;  %3701 = vmatpush.msrb.mxu3 %v3166_v21  ;;  %v3102_v49 = vld [vmem:[#allocation20 + $0x428] sm:$0xff]  ;;  %v2973_v21 = vld [vmem:[#allocation20 + $0x20] sm:$0xff] }
 0x727   : > { %3426 = vmatmul.f32.gmra.mxu0 %v10458_v47  ;;  %3467 = vmatmul.f32.gmra.mxu1 %v10461_v58 }
 0x728   : > { %3508 = vmatmul.f32.gmra.mxu2 %v10458_v47  ;;  %3549 = vmatmul.f32.gmra.mxu3 %v10461_v58 }
 0x729   : > { %3578 = vmatpush.msrb.mxu0 %v3037_v18  ;;  %3661 = vmatpush.msrb.mxu2 %v3030_v48  ;;  %v4041_v18 = vadd.f32 0.001143296, %v4040_v46  ;;  %v4067_v48 = vmul.f32 %v10629_v32, %v10629_v32  ;;  %v3064_v46 = vld [vmem:[#allocation20 + $0x2f8] sm:$0xff] }
 0x72a   : > { %3619 = vmatpush.msrb.mxu1 %v3165_v11  ;;  %3702 = vmatpush.msrb.mxu3 %v3158_v37  ;;  %v3263_v11 = vpop.f32.mrf.mxu0 }
 0x72b   : > { %3579 = vmatpush.msrb.mxu0 %v3029_v20  ;;  %3662 = vmatpush.msrb.mxu2 %v3022_v29  ;;  %v4042_v37 = vmul.f32 %v4041_v18, %v10621_v54  ;;  %v3096_v20 = vld [vmem:[#allocation20 + $0x3f8] sm:$0xff]  ;;  %v3191_v18 = vld [vmem:[#allocation20 + $0x6f0] sm:$0xff] }
 0x72c   : > { %3620 = vmatpush.msrb.mxu1 %v3157_v43  ;;  %3703 = vmatpush.msrb.mxu3 %v3150_v23  ;;  %v3224_v29 = vld [vmem:[#allocation20 + $0x7f8] sm:$0xff]  ;;  %v3095_v43 = vld [vmem:[#allocation20 + $0x3f0] sm:$0xff] }
 0x72d   : > { %3580 = vmatpush.msrb.mxu0 %v3021_v52  ;;  %3663 = vmatpush.msrb.mxu2 %v3014_v3  ;;  %v3223_v23 = vld [vmem:[#allocation20 + $0x7f0] sm:$0xff]  ;;  %v3264_v52 = vadd.f32 %v3263_v11, %v10597_v34  ;;  %v3216_v3 = vld [vmem:[#allocation20 + $0x7b8] sm:$0xff] }
 0x72e   : > { %3621 = vmatpush.msrb.mxu1 %v3149_v1  ;;  %3704 = vmatpush.msrb.mxu3 %v3142_v61  ;;  %v3088_v1 = vld [vmem:[#allocation20 + $0x3b8] sm:$0xff]  ;;  %v10639_v61 = vmin.f32 %v4067_v48, 16.0 }
 0x72f   : > { %3429 = vmatmul.f32.gmra.mxu0 %v10478_v16  ;;  %3470 = vmatmul.f32.gmra.mxu1 %v10481_v60  ;;  %v3056_v11 = vld [vmem:[#allocation20 + $0x2b8] sm:$0xff] }
 0x730   : > { %3511 = vmatmul.f32.gmra.mxu2 %v10478_v16  ;;  %3552 = vmatmul.f32.gmra.mxu3 %v10481_v60  ;;  %v3184_v48 = vld [vmem:[#allocation20 + $0x6b8] sm:$0xff] }
 0x731   : > { %3581 = vmatpush.msrb.mxu0 %v3013_v39  ;;  %3664 = vmatpush.msrb.mxu2 %v3006_v50  ;;  %v3304_v39 = vpop.f32.mrf.mxu1  ;;  %v4043_v50 = vadd.f32 0.014752088, %v4042_v37 }
 0x732   : > { %3622 = vmatpush.msrb.mxu1 %v3141_v33  ;;  %3705 = vmatpush.msrb.mxu3 %v3134_v28  ;;  %v3345_v33 = vpop.f32.mrf.mxu2  ;;  %v3087_v28 = vld [vmem:[#allocation20 + $0x3b0] sm:$0xff] }
 0x733   : > { %3582 = vmatpush.msrb.mxu0 %v3005_v31  ;;  %3665 = vmatpush.msrb.mxu2 %v2998_v8  ;;  %v3080_v31 = vld [vmem:[#allocation20 + $0x378] sm:$0xff]  ;;  %v3079_v8 = vld [vmem:[#allocation20 + $0x370] sm:$0xff]  ;;  %v3346_v35 = vadd.f32 %v3345_v33, %v10614_v27 }
 0x734   : > { %3623 = vmatpush.msrb.mxu1 %v3133_v53  ;;  %3706 = vmatpush.msrb.mxu3 %v3126_v15  ;;  %v10645_v53 = vadd.f32 %v3304_v39, %v3264_v52  ;;  %v3072_v15 = vld [vmem:[#allocation20 + $0x338] sm:$0xff]  ;;  %v3047_v33 = vld [vmem:[#allocation20 + $0x270] sm:$0xff] }
 0x735   : > { %3583 = vmatpush.msrb.mxu0 %v2997_v62  ;;  %3666 = vmatpush.msrb.mxu2 %v2990_v30  ;;  %v4080_v62 = vmul.f32 3.8918573e-05, %v10639_v61  ;;  %v3207_v30 = vld [vmem:[#allocation20 + $0x770] sm:$0xff]  ;;  %v3048_v52 = vld [vmem:[#allocation20 + $0x278] sm:$0xff] }
 0x736   : > { %3624 = vmatpush.msrb.mxu1 %v3125_v10  ;;  %3707 = vmatpush.msrb.mxu3 %v3118_v6  ;;  %v3200_v10 = vld [vmem:[#allocation20 + $0x738] sm:$0xff]  ;;  %v4044_v6 = vmul.f32 %v4043_v50, %v10621_v54  ;;  %v3175_v50 = vld [vmem:[#allocation20 + $0x670] sm:$0xff] }
 0x737   : > { %3432 = vmatmul.f32.gmra.mxu0 %v10500_v0  ;;  %3473 = vmatmul.f32.gmra.mxu1 %v10503_v63 }
 0x738   : > { %3514 = vmatmul.f32.gmra.mxu2 %v10500_v0  ;;  %3555 = vmatmul.f32.gmra.mxu3 %v10503_v63 }
 0x739   : > { %3584 = vmatpush.msrb.mxu0 %v2989_v4  ;;  %3667 = vmatpush.msrb.mxu2 %v2982_v42  ;;  %v3266_v4 = vpop.f32.mrf.mxu0  ;;  %v3199_v42 = vld [vmem:[#allocation20 + $0x730] sm:$0xff]  ;;  %v3307_v37 = vpop.f32.mrf.mxu1 }
 0x73a   : > { %3625 = vmatpush.msrb.mxu1 %v3117_v26  ;;  %3708 = vmatpush.msrb.mxu3 %v3110_v38  ;;  %v3386_v26 = vpop.f32.mrf.mxu3  ;;  %v10651_v38 = vmul.f32 0.70710677, %v10645_v53 }
 0x73b   : > { %3585 = vmatpush.msrb.mxu0 %v2981_v51  ;;  %3668 = vmatpush.msrb.mxu2 %v2974_v24  ;;  %v10653_v51 = vadd.f32 %v3386_v26, %v3346_v35  ;;  %v3192_v24 = vld [vmem:[#allocation20 + $0x6f8] sm:$0xff] }
 0x73c   : > { %3626 = vmatpush.msrb.mxu1 %v3109_v9  ;;  %3709 = vmatpush.msrb.mxu3 %v3102_v49  ;;  %v4081_v9 = vadd.f32 0.001143296, %v4080_v62  ;;  %v3267_v49 = vadd.f32 %v3266_v4, %v10597_v34  ;;  %v3168_v35 = vld [vmem:[#allocation20 + $0x638] sm:$0xff] }
 0x73d   : > { %3586 = vmatpush.msrb.mxu0 %v2973_v21  ;;  %3817 = vmatpush.msra.mxu2 %v3096_v20  ;;  %v3063_v21 = vld [vmem:[#allocation20 + $0x2f0] sm:$0xff]  ;;  %v3032_v26 = vld [vmem:[#allocation20 + $0x1f8] sm:$0xff] }
 0x73e   : > { %3627 = vmatpush.msrb.mxu1 %v3101_v55  ;;  %3858 = vmatpush.msra.mxu3 %v3224_v29  ;;  %v4045_v55 = vadd.f32 0.112945676, %v4044_v6  ;;  %v3055_v20 = vld [vmem:[#allocation20 + $0x2b0] sm:$0xff]  ;;  %v10666_v39 = vadd.f32 %v3307_v37, %v3267_v49 }
 0x73f   : > { %3435 = vmatmul.f32.gmra.mxu0 %v10523_v59  ;;  %3476 = vmatmul.f32.gmra.mxu1 %v10526_v22  ;;  %v3183_v29 = vld [vmem:[#allocation20 + $0x6b0] sm:$0xff] }
 0x740   : > { %3517 = vmatmul.f32.gmra.mxu2 %v10523_v59  ;;  %3558 = vmatmul.f32.gmra.mxu3 %v10526_v22  ;;  %v10675_v62 = vmul.f32 0.70710677, %v10666_v39  ;;  %v3159_v49 = vld [vmem:[#allocation20 + $0x5f0] sm:$0xff] }
 0x741   : > { %3735 = vmatpush.msra.mxu0 %v3095_v43  ;;  %3776 = vmatpush.msra.mxu1 %v3223_v23  ;;  %v4347_v43 = vmul.f32 %v10651_v38, %v10651_v38  ;;  %v10663_v23 = vmul.f32 0.70710677, %v10653_v51 }
 0x742   : > { %3818 = vmatpush.msra.mxu2 %v3088_v1  ;;  %3859 = vmatpush.msra.mxu3 %v3216_v3  ;;  %v3176_v1 = vld [vmem:[#allocation20 + $0x678] sm:$0xff]  ;;  %v4082_v3 = vmul.f32 %v4081_v9, %v10639_v61  ;;  %v3031_v9 = vld [vmem:[#allocation20 + $0x1f0] sm:$0xff]  ;;  %v4667_v37 = vmul.f32 %v10675_v62, %v10675_v62 }
 0x743   : > { %3736 = vmatpush.msra.mxu0 %v3087_v28  ;;  %3777 = vmatpush.msra.mxu1 %v3215_v40  ;;  %v4029_v28 = vmul.f32 2.1237322e-06, %v10621_v54  ;;  %v10670_v40 = vmin.f32 %v4347_v43, 16.0  ;;  %v3023_v43 = vld [vmem:[#allocation20 + $0x1b0] sm:$0xff] }
 0x744   : > { %3819 = vmatpush.msra.mxu2 %v3080_v31  ;;  %3860 = vmatpush.msra.mxu3 %v3208_v7  ;;  %v4046_v31 = vmul.f32 %v4045_v55, %v10621_v54  ;;  %v4387_v7 = vmul.f32 %v10663_v23, %v10663_v23  ;;  %v3024_v55 = vld [vmem:[#allocation20 + $0x1b8] sm:$0xff] }
 0x745   : > { %3737 = vmatpush.msra.mxu0 %v3079_v8  ;;  %3778 = vmatpush.msra.mxu1 %v3207_v30  ;;  %v3040_v8 = vld [vmem:[#allocation20 + $0x238] sm:$0xff]  ;;  %v3039_v30 = vld [vmem:[#allocation20 + $0x230] sm:$0xff]  ;;  %v4030_v6 = vadd.f32 0.00028619796, %v4029_v28 }
 0x746   : > { %3820 = vmatpush.msra.mxu2 %v3072_v15  ;;  %3861 = vmatpush.msra.mxu3 %v3200_v10  ;;  %v4083_v15 = vadd.f32 0.014752088, %v4082_v3  ;;  %v3167_v10 = vld [vmem:[#allocation20 + $0x630] sm:$0xff]  ;;  %v4047_v4 = vadd.f32 0.4994258, %v4046_v31 }
 0x747   : > { %3438 = vmatmul.f32.gmra.mxu0 %v10540_v14  ;;  %3479 = vmatmul.f32.gmra.mxu1 %v10543_v44 }
 0x748   : > { %3520 = vmatmul.f32.gmra.mxu2 %v10540_v14  ;;  %3561 = vmatmul.f32.gmra.mxu3 %v10543_v44  ;;  %v4048_v3 = vmul.f32 %v4047_v4, %v10621_v54 }
 0x749   : > { %3738 = vmatpush.msra.mxu0 %v3071_v45  ;;  %3779 = vmatpush.msra.mxu1 %v3199_v42  ;;  %v3348_v45 = vpop.f32.mrf.mxu2  ;;  %v3389_v42 = vpop.f32.mrf.mxu3 }
 0x74a   : > { %3821 = vmatpush.msra.mxu2 %v3064_v46  ;;  %3862 = vmatpush.msra.mxu3 %v3192_v24  ;;  %v3160_v46 = vld [vmem:[#allocation20 + $0x5f8] sm:$0xff]  ;;  %v4069_v24 = vmul.f32 2.1237322e-06, %v10639_v61  ;;  %v10700_v4 = vadd.f32 1.0, %v4048_v3 }
 0x74b   : > { %3739 = vmatpush.msra.mxu0 %v3063_v21  ;;  %3780 = vmatpush.msra.mxu1 %v3191_v18  ;;  %v4349_v21 = vmul.f32 2.1237322e-06, %v10670_v40  ;;  %v10683_v18 = vmin.f32 %v4387_v7, 16.0  ;;  %v3016_v7 = vld [vmem:[#allocation20 + $0x178] sm:$0xff] }
 0x74c   : > { %3822 = vmatpush.msra.mxu2 %v3056_v11  ;;  %3863 = vmatpush.msra.mxu3 %v3184_v48  ;;  %v3152_v11 = vld [vmem:[#allocation20 + $0x5b8] sm:$0xff]  ;;  %v4084_v48 = vmul.f32 %v4083_v15, %v10639_v61  ;;  %v10696_v15 = vmin.f32 %v4667_v37, 16.0  ;;  %8565 = vrcp.f32 %v10700_v4  ;;  %vm4055_vm10 = vweird.f32 %v10700_v4 }
 0x74d   : > { %3740 = vmatpush.msra.mxu0 %v3055_v20  ;;  %3781 = vmatpush.msra.mxu1 %v3183_v29  ;;  %v10688_v20 = vpop.f32.mrf.mxu0  ;;  %v10690_v29 = vpop.f32.mrf.mxu1  ;;  %v4350_v28 = vadd.f32 0.00028619796, %v4349_v21  ;;  %v4389_v31 = vmul.f32 2.1237322e-06, %v10683_v18  ;;  %v3128_v37 = vld [vmem:[#allocation20 + $0x4f8] sm:$0xff] }
 0x74e   : > { %3823 = vmatpush.msra.mxu2 %v3048_v52  ;;  %3864 = vmatpush.msra.mxu3 %v3176_v1  ;;  %v3151_v52 = vld [vmem:[#allocation20 + $0x5b0] sm:$0xff]  ;;  %v4031_v1 = vmul.f32 %v4030_v6, %v10621_v54 }
 0x74f   : > { %3441 = vmatmul.f32.gmra.mxu0 %v10555_v25  ;;  %3482 = vmatmul.f32.gmra.mxu1 %v10558_v57  ;;  %v4351_v21 = vmul.f32 %v4350_v28, %v10670_v40 }
 0x750   : > { %3523 = vmatmul.f32.gmra.mxu2 %v10555_v25  ;;  %3564 = vmatmul.f32.gmra.mxu3 %v10558_v57  ;;  %v4032_v6 = vadd.f32 0.0036580483, %v4031_v1  ;;  %v2999_v1 = vld [vmem:[#allocation20 + $0xf0] sm:$0xff] }
 0x751   : > { %3741 = vmatpush.msra.mxu0 %v3047_v33  ;;  %3782 = vmatpush.msra.mxu1 %v3175_v50  ;;  %v3349_v33 = vadd.f32 %v3348_v45, %v10614_v27  ;;  %v4070_v50 = vadd.f32 0.00028619796, %v4069_v24 }
 0x752   : > { %3824 = vmatpush.msra.mxu2 %v3040_v8  ;;  %3865 = vmatpush.msra.mxu3 %v3168_v35  ;;  %v3144_v8 = vld [vmem:[#allocation20 + $0x578] sm:$0xff]  ;;  %v4085_v35 = vadd.f32 0.112945676, %v4084_v48  ;;  %v10708_v48 = vpop.f32.mrf.mxu3  ;;  %v4033_v3 = vmul.f32 %v4032_v6, %v10621_v54  ;;  %v3270_v6 = vadd.f32 %v10688_v20, %v10597_v34 }
 0x753   : > { %3742 = vmatpush.msra.mxu0 %v3039_v30  ;;  %3783 = vmatpush.msra.mxu1 %v3167_v10  ;;  %v3015_v30 = vld [vmem:[#allocation20 + $0x170] sm:$0xff]  ;;  %v10702_v45 = vadd.f32 %v3389_v42, %v3349_v33  ;;  %v4071_v24 = vmul.f32 %v4070_v50, %v10639_v61  ;;  %v3000_v42 = vld [vmem:[#allocation20 + $0xf8] sm:$0xff] }
 0x754   : > { %3825 = vmatpush.msra.mxu2 %v3032_v26  ;;  %3866 = vmatpush.msra.mxu3 %v3160_v46  ;;  %v3143_v10 = vld [vmem:[#allocation20 + $0x570] sm:$0xff]  ;;  %v3008_v26 = vld [vmem:[#allocation20 + $0x138] sm:$0xff] }
 0x755   : > { %3743 = vmatpush.msra.mxu0 %v3031_v9  ;;  %3784 = vmatpush.msra.mxu1 %v3159_v49  ;;  %v3136_v46 = vld [vmem:[#allocation20 + $0x538] sm:$0xff]  ;;  %v3007_v9 = vld [vmem:[#allocation20 + $0x130] sm:$0xff]  ;;  %v10715_v33 = vmul.f32 0.70710677, %v10702_v45  ;;  %v4072_v50 = vadd.f32 0.0036580483, %v4071_v24  ;;  %v10717_v28 = vpop.f32.mrf.mxu0 }
 0x756   : > { %3826 = vmatpush.msra.mxu2 %v3024_v55  ;;  %3867 = vmatpush.msra.mxu3 %v3152_v11  ;;  %v3135_v49 = vld [vmem:[#allocation20 + $0x530] sm:$0xff]  ;;  %v4390_v55 = vadd.f32 0.00028619796, %v4389_v31  ;;  %v3351_v11 = vpop.f32.mrf.mxu2  ;;  %v10719_v31 = vpop.f32.mrf.mxu1 }
 0x757   : > { %3444 = vmatmul.f32.gmra.mxu0 %v10570_v17  ;;  %3485 = vmatmul.f32.gmra.mxu1 %v10573_v2  ;;  %14684 = vst [vmem:[#allocation62_spill] sm:$0xff] %v10715_v33  ;;  %v4073_v24 = vmul.f32 %v4072_v50, %v10639_v61 }
 0x758   : > { %3526 = vmatmul.f32.gmra.mxu2 %v10570_v17  ;;  %3567 = vmatmul.f32.gmra.mxu3 %v10573_v2 }
 0x759   : > { %3744 = vmatpush.msra.mxu0 %v3023_v43  ;;  %3785 = vmatpush.msra.mxu1 %v3151_v52  ;;  %v4086_v43 = vmul.f32 %v4085_v35, %v10639_v61  ;;  %v4669_v52 = vmul.f32 2.1237322e-06, %v10696_v15  ;;  %v2992_v35 = vld [vmem:[#allocation20 + $0xb8] sm:$0xff]  ;;  %v4074_v50 = vadd.f32 0.05243302, %v4073_v24  ;;  %v3352_v24 = vadd.f32 %v3351_v11, %v10614_v27 }
 0x75a   : > { %3827 = vmatpush.msra.mxu2 %v3016_v7  ;;  %3868 = vmatpush.msra.mxu3 %v3144_v8  ;;  %v4352_v7 = vadd.f32 0.0036580483, %v4351_v21  ;;  %v4391_v8 = vmul.f32 %v4390_v55, %v10683_v18 }
 0x75b   : > { %3745 = vmatpush.msra.mxu0 %v3015_v30  ;;  %3786 = vmatpush.msra.mxu1 %v3143_v10  ;;  %v4087_v30 = vadd.f32 0.4994258, %v4086_v43  ;;  %v4670_v10 = vadd.f32 0.00028619796, %v4669_v52 }
 0x75c   : > { %3828 = vmatpush.msra.mxu2 %v3008_v26  ;;  %3869 = vmatpush.msra.mxu3 %v3136_v46  ;;  %v4034_v26 = vadd.f32 0.05243302, %v4033_v3  ;;  %v4707_v46 = vmul.f32 %v10715_v33, %v10715_v33  ;;  %v4392_v20 = vadd.f32 0.0036580483, %v4391_v8 }
 0x75d   : > { %3746 = vmatpush.msra.mxu0 %v3007_v9  ;;  %3787 = vmatpush.msra.mxu1 %v3135_v49  ;;  %v10731_v9 = vpop.eup %8565  ;;  %v4353_v49 = vmul.f32 %v4352_v7, %v10670_v40  ;;  %v4088_v21 = vmul.f32 %v4087_v30, %v10639_v61  ;;  %v4671_v55 = vmul.f32 %v4670_v10, %v10696_v15  ;;  %v10754_v10 = vpop.f32.mrf.mxu0 }
 0x75e   : > { %3829 = vmatpush.msra.mxu2 %v3000_v42  ;;  %3870 = vmatpush.msra.mxu3 %v3128_v37  ;;  %v10737_v42 = vadd.f32 %v10690_v29, %v3270_v6  ;;  %v4035_v37 = vmul.f32 %v4034_v26, %v10621_v54  ;;  %v10740_v43 = vmin.f32 %v4707_v46, 16.0  ;;  %v10742_v52 = vpop.f32.mrf.mxu2  ;;  %v4051_v3 = vmul.f32 %v10731_v9, %v10700_v4  ;;  %v10756_v6 = vpop.f32.mrf.mxu1 }
 0x75f   : > { %3587 = vmatmul.f32.vlgmr.msrb.gmra.mxu0 %v10443_v19  ;;  %3628 = vmatmul.f32.vlgmr.msrb.gmra.mxu1 %v10446_v13  ;;  %v4354_v7 = vadd.f32 0.05243302, %v4353_v49  ;;  %v4393_v8 = vmul.f32 %v4392_v20, %v10683_v18  ;;  %v4672_v30 = vadd.f32 0.0036580483, %v4671_v55  ;;  %v4075_v20 = vmul.f32 %v4074_v50, %v10639_v61 }
 0x760   : > { %3669 = vmatmul.f32.vlgmr.msrb.gmra.mxu2 %v10443_v19  ;;  %3710 = vmatmul.f32.vlgmr.msrb.gmra.mxu3 %v10446_v13  ;;  %v10752_v29 = vmul.f32 0.70710677, %v10737_v42  ;;  %v4036_v26 = vadd.f32 0.18741608, %v4035_v37  ;;  %v4709_v46 = vmul.f32 2.1237322e-06, %v10740_v43  ;;  %vm4056_vm9 = vweird.f32 %v10731_v9 }
 0x761   : > { %3747 = vmatpush.msra.mxu0 %v2999_v1  ;;  %3830 = vmatpush.msra.mxu2 %v2992_v35  ;;  %v10744_v1 = vpop.f32.mrf.mxu3  ;;  %v10749_v35 = vadd.f32 1.0, %v4088_v21  ;;  %v4052_v49 = vsub.f32 1.0, %v4051_v3  ;;  %v4355_v21 = vmul.f32 %v4354_v7, %v10670_v40  ;;  %v4394_v55 = vadd.f32 0.05243302, %v4393_v8  ;;  %v3127_v8 = vld [vmem:[#allocation20 + $0x4f0] sm:$0xff]  ;;  %vm10824_vm11 = vmor %vm4055_vm10, %vm4056_vm9 }
 0x762   : > { %14685 = vst [vmem:[#allocation63_spill] sm:$0xff] %v10752_v29  ;;  %v4673_v5 = vmul.f32 %v4672_v30, %v10696_v15  ;;  %v4987_v37 = vmul.f32 %v10752_v29, %v10752_v29  ;;  %v4037_v33 = vmul.f32 %v4036_v26, %v10621_v54  ;;  %v4710_v11 = vadd.f32 0.00028619796, %v4709_v46  ;;  %3788 = vmatpush.msra.mxu1 %v3127_v8 }
 0x763   : > { %8567 = vrcp.f32 %v10749_v35  ;;  %v10775_v3 = vmul.f32 0.5, %v10604_v12  ;;  %v4053_v50 = vmul.f32 %v10731_v9, %v4052_v49  ;;  %v4076_v7 = vadd.f32 0.18741608, %v4075_v20  ;;  %v3119_v49 = vld [vmem:[#allocation20 + $0x4b0] sm:$0xff] }
 0x764   : > { %v10782_v30 = vmul.f32 0.5, %v10645_v53  ;;  %v4356_v29 = vadd.f32 0.18741608, %v4355_v21  ;;  %v4395_v54 = vmul.f32 %v4394_v55, %v10683_v18  ;;  %v4674_v12 = vadd.f32 0.05243302, %v4673_v5  ;;  %3789 = vmatpush.msra.mxu1 %v3119_v49 }
 0x765   : > { %14686 = vst [vmem:[#allocation64_spill] sm:$0xff] %v10775_v3  ;;  %v10789_v46 = vmin.f32 %v4987_v37, 16.0  ;;  %v4038_v53 = vadd.f32 1.1283791, %v4037_v33  ;;  %v10794_v20 = vmul.f32 0.5, %v10653_v51  ;;  %v4711_v21 = vmul.f32 %v4710_v11, %v10740_v43  ;;  %v10809_v8 = vpop.f32.mrf.mxu0  ;;  %v2975_v3 = vld [vmem:[#allocation20 + $0x30] sm:$0xff] }
 0x766   : > { %14688 = vst [vmem:[#allocation66_spill] sm:$0xff] %v10782_v30  ;;  %v10785_v26 = vpop.f32.mrf.mxu2  ;;  %v4054_v37 = vadd.f32 %v10731_v9, %v4053_v50  ;;  %v4077_v33 = vmul.f32 %v4076_v7, %v10639_v61  ;;  %v3273_v51 = vadd.f32 %v10717_v28, %v10597_v34  ;;  %v10811_v11 = vpop.f32.mrf.mxu1  ;;  %v3112_v30 = vld [vmem:[#allocation20 + $0x478] sm:$0xff]  ;;  %v4061_v50 = vand.u32 2147483648, %v10700_v4  ;;  %v3111_v61 = vld [vmem:[#allocation20 + $0x470] sm:$0xff] }
 0x767   : > { %3590 = vmatmul.f32.gmra.mxu0 %v10458_v47  ;;  %3631 = vmatmul.f32.gmra.mxu1 %v10461_v58  ;;  %14689 = vst [vmem:[#allocation67_spill] sm:$0xff] %v10794_v20  ;;  %v2984_v20 = vld [vmem:[#allocation20 + $0x78] sm:$0xff]  ;;  %v10818_v28 = vmul.f32 0.5, %v10666_v39  ;;  %v4675_v7 = vmul.f32 %v4674_v12, %v10696_v15  ;;  %v10831_v39 = vmul.f32 0.5, %v10702_v45  ;;  %v4360_v45 = vmul.f32 3.8918573e-05, %v10670_v40 }
 0x768   : > { %3672 = vmatmul.f32.gmra.mxu2 %v10458_v47  ;;  %3713 = vmatmul.f32.gmra.mxu3 %v10461_v58  ;;  %v4058_v12 = vsel %vm10824_vm11, %v10731_v9, %v4054_v37  ;;  %v4078_v49 = vadd.f32 1.1283791, %v4077_v33  ;;  %vm4095_vm13 = vweird.f32 %v10749_v35 }
 0x769   : > { %v10802_v5 = vpop.eup %8567  ;;  %3831 = vmatpush.msra.mxu2 %v2984_v20  ;;  %14691 = vst [vmem:[#allocation69_spill] sm:$0xff] %v10818_v28  ;;  %3790 = vmatpush.msra.mxu1 %v3111_v61  ;;  %v10839_v20 = vadd.f32 %v10719_v31, %v3273_v51 }
 0x76a   : > { %14694 = vst [vmem:[#allocation70_spill] sm:$0xff] %v10831_v39  ;;  %v4062_v39 = vor.u32 1.1754944e-38, %v4061_v50  ;;  %v4361_v50 = vadd.f32 0.001143296, %v4360_v45  ;;  %vm4096_vm14 = vweird.f32 %v10802_v5 }
 0x76b   : > { %v10923_v28 = vmul.f32 0.5, %v10839_v20  ;;  %vm10945_vm0 = vmor %vm4095_vm13, %vm4096_vm14 }
 0x76d   : > { %14705 = vst [vmem:[#allocation79_spill] sm:$0xff] %v10923_v28 }
 0x76f   : > { %3593 = vmatmul.f32.gmra.mxu0 %v10478_v16  ;;  %3634 = vmatmul.f32.gmra.mxu1 %v10481_v60 }
 0x770   : > { %3675 = vmatmul.f32.gmra.mxu2 %v10478_v16  ;;  %3716 = vmatmul.f32.gmra.mxu3 %v10481_v60 }
 0x777   : > { %3596 = vmatmul.f32.gmra.mxu0 %v10500_v0  ;;  %3637 = vmatmul.f32.gmra.mxu1 %v10503_v63 }
 0x778   : > { %3678 = vmatmul.f32.gmra.mxu2 %v10500_v0  ;;  %3719 = vmatmul.f32.gmra.mxu3 %v10503_v63  ;;  %v4396_v63 = vadd.f32 0.18741608, %v4395_v54  ;;  %v3104_v0 = vld [vmem:[#allocation20 + $0x438] sm:$0xff]  ;;  %v4712_v54 = vadd.f32 0.0036580483, %v4711_v21  ;;  %v4039_v21 = vmul.f32 %v4038_v53, %v10609_v41  ;;  %v10850_v41 = vpop.f32.mrf.mxu2 }
 0x77a   : > { %v4397_v61 = vmul.f32 %v4396_v63, %v10683_v18  ;;  %v10857_v63 = vmul.f32 %v4078_v49, %v10629_v32  ;;  %v4400_v32 = vmul.f32 3.8918573e-05, %v10683_v18 }
 0x77f   : > { %3599 = vmatmul.f32.gmra.mxu0 %v10523_v59  ;;  %3640 = vmatmul.f32.gmra.mxu1 %v10526_v22 }
 0x780   : > { %3681 = vmatmul.f32.gmra.mxu2 %v10523_v59  ;;  %3722 = vmatmul.f32.gmra.mxu3 %v10526_v22  ;;  %v10772_v59 = vadd.f32 %v10708_v48, %v3352_v24  ;;  %v10779_v22 = vmul.f32 0.5, %v10625_v36  ;;  %v10787_v48 = vpop.f32.mrf.mxu3  ;;  %v3120_v36 = vld [vmem:[#allocation20 + $0x4b8] sm:$0xff]  ;;  %v2991_v24 = vld [vmem:[#allocation20 + $0xb0] sm:$0xff] }
 0x781   : > { %3871 = vmatpush.msra.mxu3 %v3120_v36  ;;  %3748 = vmatpush.msra.mxu0 %v2991_v24  ;;  %v4989_v36 = vmul.f32 2.1237322e-06, %v10789_v46  ;;  %v2976_v24 = vld [vmem:[#allocation20 + $0x38] sm:$0xff] }
 0x782   : > { %14687 = vst [vmem:[#allocation65_spill] sm:$0xff] %v10779_v22  ;;  %v10798_v55 = vmul.f32 0.70710677, %v10772_v59  ;;  %v4357_v22 = vmul.f32 %v4356_v29, %v10670_v40  ;;  %3832 = vmatpush.msra.mxu2 %v2976_v24  ;;  %v4676_v29 = vadd.f32 0.18741608, %v4675_v7 }
 0x783   : > { %3872 = vmatpush.msra.mxu3 %v3112_v30  ;;  %v4990_v9 = vadd.f32 0.00028619796, %v4989_v36  ;;  %v4099_v7 = vand.u32 2147483647, %v10749_v35 }
 0x784   : > { %14690 = vst [vmem:[#allocation68_spill] sm:$0xff] %v10798_v55  ;;  %v5027_v30 = vmul.f32 %v10798_v55, %v10798_v55  ;;  %v4101_v55 = vand.u32 2147483648, %v10749_v35  ;;  %v4358_v24 = vadd.f32 1.1283791, %v4357_v22  ;;  %v10860_v22 = vmul.f32 0.70710677, %v10839_v20 }
 0x785   : > { %3873 = vmatpush.msra.mxu3 %v3104_v0  ;;  %vm10913_vm15 = vcmp.eq.f32.partialorder %v4099_v7, 8.507059e+37  ;;  %v8725_v20 = vld [vmem:[%s14683_s4] sm:$0xff] }
 0x786   : > { %v10848_v37 = vmin.f32 %v5027_v30, 16.0  ;;  %14696 = vst [vmem:[#allocation72_spill] sm:$0xff] %v10860_v22  ;;  %v10869_v36 = vor.u32 1.1754944e-38, %v4101_v55  ;;  %v10876_v30 = vmul.f32 0.5, %v10737_v42  ;;  %v4362_v42 = vmul.f32 %v4361_v50, %v10670_v40 }
 0x787   : > { %3602 = vmatmul.f32.gmra.mxu0 %v10540_v14  ;;  %3643 = vmatmul.f32.gmra.mxu1 %v10543_v44 }
 0x788   : > { %3684 = vmatmul.f32.gmra.mxu2 %v10540_v14  ;;  %3725 = vmatmul.f32.gmra.mxu3 %v10543_v44  ;;  %v2983_v44 = vld [vmem:[#allocation20 + $0x70] sm:$0xff]  ;;  %v4059_v14 = vand.u32 2147483647, %v10700_v4  ;;  %v4091_v4 = vmul.f32 %v10802_v5, %v10749_v35  ;;  %14695 = vst [vmem:[#allocation71_spill] sm:$0xff] %v10848_v37  ;;  %v10852_v53 = vpop.f32.mrf.mxu3  ;;  %v5029_v55 = vmul.f32 2.1237322e-06, %v10848_v37 }
 0x789   : > { %3749 = vmatpush.msra.mxu0 %v2983_v44  ;;  %v3103_v44 = vld [vmem:[#allocation20 + $0x430] sm:$0xff]  ;;  %14697 = vst [vmem:[#allocation73_spill] sm:$0xff] %v10876_v30 }
 0x78a   : > { %3791 = vmatpush.msra.mxu1 %v3103_v44  ;;  %vm4060_vm12 = vcmp.eq.f32.partialorder %v4059_v14, 8.507059e+37  ;;  %v4092_v31 = vsub.f32 1.0, %v4091_v4  ;;  %v3355_v14 = vadd.f32 %v10742_v52, %v10614_v27  ;;  %v10872_v4 = vmul.f32 %v4358_v24, %v10651_v38 }
 0x78b   : > { %3750 = vmatpush.msra.mxu0 %v2975_v3  ;;  %v4063_v0 = vsel %vm4060_vm12, %v4062_v39, %v4058_v12  ;;  %v4713_v3 = vmul.f32 %v4712_v54, %v10740_v43  ;;  %v4398_v54 = vadd.f32 1.1283791, %v4397_v61  ;;  %v4991_v52 = vmul.f32 %v4990_v9, %v10789_v46 }
 0x78c   : > { %v4064_v39 = vmul.f32 %v4063_v0, %v4039_v21  ;;  %v4093_v44 = vmul.f32 %v10802_v5, %v4092_v31  ;;  %v4677_v12 = vmul.f32 %v4676_v29, %v10696_v15  ;;  %v5307_v38 = vmul.f32 %v10860_v22, %v10860_v22 }
 0x78d   : > { %v4714_v49 = vadd.f32 0.05243302, %v4713_v3  ;;  %v10886_v45 = vadd.f32 %v10744_v1, %v3355_v14  ;;  %v4680_v21 = vmul.f32 3.8918573e-05, %v10696_v15  ;;  %v10892_v24 = vperm.slane %v10594_v56, 2 }
 0x78e   : > { %v4401_v61 = vadd.f32 0.001143296, %v4400_v32  ;;  %v4720_v29 = vmul.f32 3.8918573e-05, %v10740_v43  ;;  %v8184_v9 = vclamps-f32 %v4064_v39, 1.0  ;;  %v10896_v0 = vmul.f32 %v4398_v54, %v10663_v23 }
 0x78f   : > { %3605 = vmatmul.f32.gmra.mxu0 %v10555_v25  ;;  %3646 = vmatmul.f32.gmra.mxu1 %v10558_v57  ;;  %14698 = vst [vmem:[#allocation74_spill] sm:$0xff] %v10892_v24  ;;  %v4992_v31 = vadd.f32 0.0036580483, %v4991_v52  ;;  %v10899_v1 = vmul.f32 0.5, %v10772_v59  ;;  %v4094_v3 = vadd.f32 %v10802_v5, %v4093_v44  ;;  %v4678_v14 = vadd.f32 1.1283791, %v4677_v12 }
 0x790   : > { %3687 = vmatmul.f32.gmra.mxu2 %v10555_v25  ;;  %3728 = vmatmul.f32.gmra.mxu3 %v10558_v57  ;;  %14699 = vst [vmem:[#allocation75_spill] sm:$0xff] %v10896_v0  ;;  %v4715_v56 = vmul.f32 %v4714_v49, %v10740_v43  ;;  %v5030_v50 = vadd.f32 0.00028619796, %v5029_v55  ;;  %v10907_v39 = vmin.f32 %v5307_v38, 16.0  ;;  %v10910_v59 = vmul.f32 0.70710677, %v10886_v45 }
 0x791   : > { %14700 = vst [vmem:[#allocation76_spill] sm:$0xff] %v10899_v1  ;;  %v4363_v1 = vadd.f32 0.014752088, %v4362_v42  ;;  %v4402_v49 = vmul.f32 %v4401_v61, %v10683_v18  ;;  %v4681_v55 = vadd.f32 0.001143296, %v4680_v21  ;;  %v10919_v22 = vadd.f32 1.0, %v8184_v9 }
 0x792   : > { %14701 = vst [vmem:[#allocation77_spill] sm:$0xff] %v10907_v39  ;;  %v4721_v30 = vadd.f32 0.001143296, %v4720_v29  ;;  %v4993_v38 = vmul.f32 %v4992_v31, %v10789_v46  ;;  %v4716_v7 = vadd.f32 0.18741608, %v4715_v56  ;;  %v5031_v0 = vmul.f32 %v5030_v50, %v10848_v37 }
 0x793   : > { %14702 = vst [vmem:[#allocation78_spill] sm:$0xff] %v10910_v59  ;;  %v5309_v21 = vmul.f32 2.1237322e-06, %v10907_v39  ;;  %v5347_v61 = vmul.f32 %v10910_v59, %v10910_v59  ;;  %v10938_v29 = vperm.slane %v8725_v20, 3  ;;  %v4364_v9 = vmul.f32 %v4363_v1, %v10670_v40 }
 0x794   : > { %v10864_v33 = vpop.f32.mrf.mxu0  ;;  %v10866_v51 = vpop.f32.mrf.mxu1  ;;  %v4403_v56 = vadd.f32 0.014752088, %v4402_v49  ;;  %v4682_v50 = vmul.f32 %v4681_v55, %v10696_v15  ;;  %v4098_v1 = vsel %vm10945_vm0, %v10802_v5, %v4094_v3  ;;  %v4994_v35 = vadd.f32 0.05243302, %v4993_v38 }
 0x795   : > { %v4717_v49 = vmul.f32 %v4716_v7, %v10740_v43  ;;  %v5032_v55 = vadd.f32 0.0036580483, %v5031_v0  ;;  %v5310_v3 = vadd.f32 0.00028619796, %v5309_v21  ;;  %v4365_v38 = vadd.f32 0.112945676, %v4364_v9 }
 0x796   : > { %v4683_v7 = vadd.f32 0.014752088, %v4682_v50  ;;  %v4103_v20 = vsel %vm10913_vm15, %v10869_v36, %v4098_v1 }
 0x797   : > { %3608 = vmatmul.f32.gmra.mxu0 %v10570_v17  ;;  %3649 = vmatmul.f32.gmra.mxu1 %v10573_v2  ;;  %v5033_v9 = vmul.f32 %v5032_v55, %v10848_v37  ;;  %v5311_v50 = vmul.f32 %v5310_v3, %v10907_v39 }
 0x798   : > { %3690 = vmatmul.f32.gmra.mxu2 %v10570_v17  ;;  %3731 = vmatmul.f32.gmra.mxu3 %v10573_v2 }
 0x79b   : > { %v3363_v23 = vpop.f32.mrf.mxu2  ;;  %v3404_v32 = vpop.f32.mrf.mxu3 }
 0x79c   : > { %v3364_v54 = vadd.f32 %v3363_v23, %v10614_v27  ;;  %v3424_v52 = vpop.f32.mrf.mxu0  ;;  %v3465_v42 = vpop.f32.mrf.mxu1 }
 0x79d   : > { %v3425_v12 = vadd.f32 %v3424_v52, %v10892_v24  ;;  %v3276_v52 = vadd.f32 %v10754_v10, %v10597_v34  ;;  %v4995_v10 = vmul.f32 %v4994_v35, %v10789_v46  ;;  %v4684_v35 = vmul.f32 %v4683_v7, %v10696_v15 }
 0x79e   : > { %v10925_v23 = vadd.f32 %v3404_v32, %v3364_v54  ;;  %v4722_v32 = vmul.f32 %v4721_v30, %v10740_v43  ;;  %v10958_v54 = vmul.f32 %v4678_v14, %v10675_v62 }
 0x79f   : > { %v10930_v24 = vadd.f32 %v3465_v42, %v3425_v12  ;;  %v3358_v12 = vadd.f32 %v10785_v26, %v10614_v27  ;;  %3751 = vmatmul.f32.vlgmr.msra.gmra.mxu0 %v10443_v19  ;;  %3792 = vmatmul.f32.vlgmr.msra.gmra.mxu1 %v10446_v13  ;;  %v10966_v30 = vadd.f32 %v10756_v6, %v3276_v52  ;;  %v10972_v26 = vmin.f32 %v5347_v61, 16.0 }
 0x7a0   : > { %14708 = vst [vmem:[#allocation80_spill] sm:$0xff] %v10958_v54  ;;  %3833 = vmatmul.f32.vlgmr.msra.gmra.mxu2 %v10443_v19  ;;  %3874 = vmatmul.f32.vlgmr.msra.gmra.mxu3 %v10446_v13  ;;  %v4404_v6 = vmul.f32 %v4403_v56, %v10683_v18  ;;  %v4723_v52 = vadd.f32 0.014752088, %v4722_v32  ;;  %v4685_v28 = vadd.f32 0.112945676, %v4684_v35 }
 0x7a1   : > { %v10950_v31 = vmul.f32 0.70710677, %v10930_v24  ;;  %14709 = vst [vmem:[#allocation81_spill] sm:$0xff] %v10972_v26  ;;  %v10983_v21 = vadd.f32 %v10787_v48, %v3358_v12  ;;  %v5349_v36 = vmul.f32 2.1237322e-06, %v10972_v26  ;;  %v4366_v48 = vmul.f32 %v4365_v38, %v10670_v40 }
 0x7a2   : > { %v4405_v1 = vadd.f32 0.112945676, %v4404_v6  ;;  %v4724_v12 = vmul.f32 %v4723_v52, %v10740_v43  ;;  %v11010_v38 = vadd.f32 0.05243302, %v5033_v9  ;;  %v3279_v6 = vadd.f32 %v10809_v8, %v10597_v34 }
 0x7a3   : > { %v4107_v5 = vmul.f32 %v10950_v31, %v10950_v31  ;;  %v3506_v62 = vpop.f32.mrf.mxu2  ;;  %v3547_v0 = vpop.f32.mrf.mxu3  ;;  %v11003_v55 = vmul.f32 0.70710677, %v10983_v21  ;;  %v11019_v52 = vadd.f32 0.0036580483, %v5311_v50  ;;  %v4367_v9 = vadd.f32 0.4994258, %v4366_v48 }
 0x7a4   : > { %v3507_v14 = vadd.f32 %v3506_v62, %v10938_v29  ;;  %v10987_v62 = vadd.f32 1.1283791, %v4717_v49  ;;  %v4996_v49 = vadd.f32 0.18741608, %v4995_v10  ;;  %v3361_v10 = vadd.f32 %v10850_v41, %v10614_v27 }
 0x7a5   : > { %v10975_v42 = vmin.f32 %v4107_v5, 16.0  ;;  %v10991_v5 = vmul.f32 0.70710677, %v10966_v30  ;;  %14711 = vst [vmem:[#allocation83_spill] sm:$0xff] %v11003_v55  ;;  %v4406_v19 = vmul.f32 %v4405_v1, %v10683_v18  ;;  %v11027_v8 = vmul.f32 %v4103_v20, %v10857_v63 }
 0x7a6   : > { %v10985_v61 = vadd.f32 %v3547_v0, %v3507_v14  ;;  %v5667_v27 = vmul.f32 %v11003_v55, %v11003_v55  ;;  %v11036_v41 = vadd.f32 %v10811_v11, %v3279_v6  ;;  %v11040_v1 = vadd.f32 %v10852_v53, %v3361_v10  ;;  %v6777_v53 = vld [vmem:[#allocation22 + $0x1f0] sm:$0xff] }
 0x7a7   : > { %14710 = vst [vmem:[#allocation82_spill] sm:$0xff] %v10991_v5  ;;  %v4120_v56 = vmul.f32 3.8918573e-05, %v10975_v42  ;;  %v4109_v14 = vmul.f32 2.1237322e-06, %v10975_v42  ;;  %3754 = vmatmul.f32.gmra.mxu0 %v10458_v47  ;;  %3795 = vmatmul.f32.gmra.mxu1 %v10461_v58  ;;  %v5627_v0 = vmul.f32 %v10991_v5, %v10991_v5  ;;  %v4368_v35 = vmul.f32 %v4367_v9, %v10670_v40  ;;  %v6809_v40 = vld [vmem:[#allocation22 + $0x2f0] sm:$0xff] }
 0x7a8   : > { %v10997_v44 = vmul.f32 0.70710677, %v10985_v61  ;;  %3836 = vmatmul.f32.gmra.mxu2 %v10458_v47  ;;  %3877 = vmatmul.f32.gmra.mxu3 %v10461_v58  ;;  %v4725_v5 = vadd.f32 0.112945676, %v4724_v12  ;;  %14713 = vst [vmem:[#allocation85_spill] sm:$0xff] %v11040_v1  ;;  %v11058_v6 = vmin.f32 %v5667_v27, 16.0 }
 0x7a9   : > { %v4121_v32 = vadd.f32 0.001143296, %v4120_v56  ;;  %v11031_v58 = vmin.f32 %v5627_v0, 16.0  ;;  %v5350_v55 = vadd.f32 0.00028619796, %v5349_v36  ;;  %7018 = vmatpush.msrb.mxu1 %v6777_v53  ;;  %7059 = vmatpush.msrb.mxu2 %v6809_v40  ;;  %v8185_v27 = vclamps-f32 %v11027_v8, 1.0 }
 0x7aa   : > { %v4147_v3 = vmul.f32 %v10997_v44, %v10997_v44  ;;  %v4726_v0 = vmul.f32 %v4725_v5, %v10740_v43  ;;  %v11061_v10 = vmul.f32 0.70710677, %v11040_v1  ;;  %v6775_v53 = vld [vmem:[#allocation22 + $0x1e0] sm:$0xff] }
 0x7ab   : > { %v4122_v7 = vmul.f32 %v4121_v32, %v10975_v42  ;;  %v4110_v32 = vadd.f32 0.00028619796, %v4109_v14  ;;  %14712 = vst [vmem:[#allocation84_spill] sm:$0xff] %v11031_v58  ;;  %v4407_v14 = vadd.f32 0.4994258, %v4406_v19  ;;  %v5351_v40 = vmul.f32 %v5350_v55, %v10972_v26  ;;  %7019 = vmatpush.msrb.mxu1 %v6775_v53  ;;  %v14719_v53 = vld [vmem:[#allocation52_spill] sm:$0xff] }
 0x7ac   : > { %v11023_v56 = vmin.f32 %v4147_v3, 16.0  ;;  %v4686_v3 = vmul.f32 %v4685_v28, %v10696_v15  ;;  %v5629_v19 = vmul.f32 2.1237322e-06, %v11031_v58  ;;  %v11052_v28 = vmul.f32 0.70710677, %v11036_v41  ;;  %14715 = vst [vmem:[#allocation87_spill] sm:$0xff] %v11061_v10 }
 0x7ad   : > { %v4123_v13 = vadd.f32 0.014752088, %v4122_v7  ;;  %v4997_v7 = vmul.f32 %v4996_v49, %v10789_v46  ;;  %v4111_v11 = vmul.f32 %v4110_v32, %v10975_v42  ;;  %v6841_v49 = vld [vmem:[#allocation22 + $0x3f0] sm:$0xff]  ;;  %v11063_v32 = vadd.f32 1.0, %v4368_v35  ;;  %v6807_v35 = vld [vmem:[#allocation22 + $0x2e0] sm:$0xff] }
 0x7ae   : > { %v4149_v47 = vmul.f32 2.1237322e-06, %v11023_v56  ;;  %v4160_v50 = vmul.f32 3.8918573e-05, %v11023_v56  ;;  %14714 = vst [vmem:[#allocation86_spill] sm:$0xff] %v11052_v28  ;;  %7100 = vmatpush.msrb.mxu3 %v6841_v49  ;;  %7060 = vmatpush.msrb.mxu2 %v6807_v35  ;;  %v14720_v35 = vld [vmem:[#allocation53_spill] sm:$0xff] }
 0x7af   : > { %v4124_v48 = vmul.f32 %v4123_v13, %v10975_v42  ;;  %3757 = vmatmul.f32.gmra.mxu0 %v10478_v16  ;;  %3798 = vmatmul.f32.gmra.mxu1 %v10481_v60  ;;  %v11077_v8 = vadd.f32 1.1283791, %v4997_v7  ;;  %8569 = vrcp.f32 %v11063_v32  ;;  %vm4375_vm2 = vweird.f32 %v11063_v32 }
 0x7b0   : > { %v4150_v63 = vadd.f32 0.00028619796, %v4149_v47  ;;  %v4161_v20 = vadd.f32 0.001143296, %v4160_v50  ;;  %v6745_v47 = vld [vmem:[#allocation22 + $0xf0] sm:$0xff]  ;;  %3839 = vmatmul.f32.gmra.mxu2 %v10478_v16  ;;  %3880 = vmatmul.f32.gmra.mxu3 %v10481_v60 }
 0x7b1   : > { %v4125_v12 = vadd.f32 0.112945676, %v4124_v48  ;;  %6977 = vmatpush.msrb.mxu0 %v6745_v47  ;;  %v4408_v48 = vmul.f32 %v4407_v14, %v10683_v18  ;;  %v4112_v16 = vadd.f32 0.0036580483, %v4111_v11  ;;  %v6743_v47 = vld [vmem:[#allocation22 + $0xe0] sm:$0xff]  ;;  %v5947_v11 = vmul.f32 %v11052_v28, %v11052_v28 }
 0x7b2   : > { %v4162_v13 = vmul.f32 %v4161_v20, %v11023_v56  ;;  %v4151_v36 = vmul.f32 %v4150_v63, %v11023_v56  ;;  %v4687_v63 = vadd.f32 0.4994258, %v4686_v3  ;;  %v4727_v20 = vadd.f32 0.4994258, %v4726_v0  ;;  %v6741_v3 = vld [vmem:[#allocation22 + $0xd0] sm:$0xff] }
 0x7b3   : > { %v4126_v5 = vmul.f32 %v4125_v12, %v10975_v42  ;;  %v14716_v12 = vld [vmem:[#allocation64_spill] sm:$0xff]  ;;  %6978 = vmatpush.msrb.mxu0 %v6743_v47  ;;  %v6773_v0 = vld [vmem:[#allocation22 + $0x1d0] sm:$0xff] }
 0x7b4   : > { %v4163_v9 = vadd.f32 0.014752088, %v4162_v13  ;;  %v11068_v60 = vmul.f32 %v10919_v22, %v14716_v12  ;;  %v4152_v14 = vadd.f32 0.0036580483, %v4151_v36  ;;  %v6839_v22 = vld [vmem:[#allocation22 + $0x3e0] sm:$0xff]  ;;  %7020 = vmatpush.msrb.mxu1 %v6773_v0  ;;  %v6805_v36 = vld [vmem:[#allocation22 + $0x2d0] sm:$0xff]  ;;  %v4688_v7 = vmul.f32 %v4687_v63, %v10696_v15 }
 0x7b5   : > { %v4127_v50 = vadd.f32 0.4994258, %v4126_v5  ;;  %v11073_v5 = vmul.f32 0.5, %v10886_v45  ;;  %7101 = vmatpush.msrb.mxu3 %v6839_v22  ;;  %v5669_v45 = vmul.f32 2.1237322e-06, %v11058_v6  ;;  %6979 = vmatpush.msrb.mxu0 %v6741_v3  ;;  %v6739_v22 = vld [vmem:[#allocation22 + $0xc0] sm:$0xff]  ;;  %v4728_v63 = vmul.f32 %v4727_v20, %v10740_v43 }
 0x7b6   : > { %14717 = vst [vmem:[#allocation64_spill] sm:$0xff] %v11068_v60  ;;  %v4164_v13 = vmul.f32 %v4163_v9, %v11023_v56  ;;  %v11085_v9 = vadd.f32 1.0, %v4408_v48  ;;  %v5630_v12 = vadd.f32 0.00028619796, %v5629_v19  ;;  %v6771_v3 = vld [vmem:[#allocation22 + $0x1c0] sm:$0xff]  ;;  %v5987_v48 = vmul.f32 %v11061_v10, %v11061_v10  ;;  %7061 = vmatpush.msrb.mxu2 %v6805_v36  ;;  %v6769_v10 = vld [vmem:[#allocation22 + $0x1b0] sm:$0xff] }
 0x7b7   : > { %14718 = vst [vmem:[#allocation88_spill] sm:$0xff] %v11073_v5  ;;  %v4128_v18 = vmul.f32 %v4127_v50, %v10975_v42  ;;  %v11088_v50 = vadd.f32 1.0, %v8185_v27  ;;  %3760 = vmatmul.f32.gmra.mxu0 %v14719_v53  ;;  %3801 = vmatmul.f32.gmra.mxu1 %v14720_v35  ;;  %v4153_v15 = vmul.f32 %v4152_v14, %v11023_v56  ;;  %v6835_v19 = vld [vmem:[#allocation22 + $0x3c0] sm:$0xff]  ;;  %v6737_v14 = vld [vmem:[#allocation22 + $0xb0] sm:$0xff]  ;;  %v5670_v28 = vadd.f32 0.00028619796, %v5669_v45 }
 0x7b8   : > { %v4165_v49 = vadd.f32 0.112945676, %v4164_v13  ;;  %v4113_v13 = vmul.f32 %v4112_v16, %v10975_v42  ;;  %3842 = vmatmul.f32.gmra.mxu2 %v14719_v53  ;;  %3883 = vmatmul.f32.gmra.mxu3 %v14720_v35  ;;  %v6803_v16 = vld [vmem:[#allocation22 + $0x2c0] sm:$0xff]  ;;  %v5035_v27 = vmul.f32 %v11010_v38, %v10848_v37  ;;  %v5313_v0 = vmul.f32 %v11019_v52, %v10907_v39  ;;  %v6801_v35 = vld [vmem:[#allocation22 + $0x2b0] sm:$0xff]  ;;  %v11110_v38 = vpop.eup %8569 }
 0x7b9   : > { %v11083_v55 = vadd.f32 1.0, %v4128_v18  ;;  %v6837_v18 = vld [vmem:[#allocation22 + $0x3d0] sm:$0xff]  ;;  %v5352_v53 = vadd.f32 0.0036580483, %v5351_v40  ;;  %6980 = vmatpush.msrb.mxu0 %v6739_v22  ;;  %7021 = vmatpush.msrb.mxu1 %v6771_v3  ;;  %v11108_v43 = vadd.f32 1.0, %v4688_v7  ;;  %v5631_v7 = vmul.f32 %v5630_v12, %v11031_v58  ;;  %v6795_v39 = vld [vmem:[#allocation22 + $0x280] sm:$0xff] }
 0x7ba   : > { %v4166_v47 = vmul.f32 %v4165_v49, %v11023_v56  ;;  %v11105_v49 = vmin.f32 %v5947_v11, 16.0  ;;  %7102 = vmatpush.msrb.mxu3 %v6837_v18  ;;  %v14722_v20 = vld [vmem:[#allocation62_spill] sm:$0xff]  ;;  %v11117_v11 = vmul.f32 0.5, %v10966_v30  ;;  %v4114_v36 = vadd.f32 0.05243302, %v4113_v13  ;;  %7062 = vmatpush.msrb.mxu2 %v6803_v16  ;;  %v6767_v18 = vld [vmem:[#allocation22 + $0x1a0] sm:$0xff] }
 0x7bb   : > { %8571 = vrcp.f32 %v11083_v55  ;;  %v11114_v52 = vmul.f32 %v10987_v62, %v14722_v20  ;;  %v6833_v45 = vld [vmem:[#allocation22 + $0x3b0] sm:$0xff]  ;;  %v11121_v22 = vmin.f32 %v5987_v48, 16.0  ;;  %v4154_v3 = vadd.f32 0.05243302, %v4153_v15  ;;  %6981 = vmatpush.msrb.mxu0 %v6737_v14  ;;  %7022 = vmatpush.msrb.mxu1 %v6769_v10  ;;  %v6799_v10 = vld [vmem:[#allocation22 + $0x2a0] sm:$0xff] }
 0x7bc   : > { %14721 = vst [vmem:[#allocation89_spill] sm:$0xff] %v11105_v49  ;;  %v4167_v5 = vadd.f32 0.4994258, %v4166_v47  ;;  %8573 = vrcp.f32 %v11085_v9  ;;  %7103 = vmatpush.msrb.mxu3 %v6835_v19  ;;  %v6735_v47 = vld [vmem:[#allocation22 + $0xa0] sm:$0xff]  ;;  %v11123_v62 = vadd.f32 1.0, %v4728_v63  ;;  %v11126_v30 = vmul.f32 0.5, %v10983_v21  ;;  %7063 = vmatpush.msrb.mxu2 %v6801_v35 }
 0x7bd   : > { %14723 = vst [vmem:[#allocation62_spill] sm:$0xff] %v11114_v52  ;;  %v5036_v20 = vadd.f32 0.18741608, %v5035_v27  ;;  %v11133_v12 = vadd.f32 0.05243302, %v5313_v0  ;;  %v5353_v48 = vmul.f32 %v5352_v53, %v10972_v26  ;;  %6982 = vmatpush.msrb.mxu0 %v6735_v47  ;;  %7023 = vmatpush.msrb.mxu1 %v6767_v18  ;;  %v6831_v15 = vld [vmem:[#allocation22 + $0x3a0] sm:$0xff]  ;;  %v11138_v21 = vmul.f32 %v11110_v38, %v11063_v32 }
 0x7be   : > { %14724 = vst [vmem:[#allocation90_spill] sm:$0xff] %v11117_v11  ;;  %v4168_v40 = vmul.f32 %v4167_v5, %v11023_v56  ;;  %v5949_v5 = vmul.f32 2.1237322e-06, %v11105_v49  ;;  %7104 = vmatpush.msrb.mxu3 %v6833_v45  ;;  %8575 = vrcp.f32 %v11108_v43  ;;  %v5671_v19 = vmul.f32 %v5670_v28, %v11058_v6  ;;  %v14728_v53 = vld [vmem:[#allocation54_spill] sm:$0xff]  ;;  %v14729_v27 = vld [vmem:[#allocation55_spill] sm:$0xff]  ;;  %7064 = vmatpush.msrb.mxu2 %v6799_v10  ;;  %v6763_v26 = vld [vmem:[#allocation22 + $0x180] sm:$0xff] }
 0x7bf   : > { %14725 = vst [vmem:[#allocation91_spill] sm:$0xff] %v11121_v22  ;;  %v4115_v35 = vmul.f32 %v4114_v36, %v10975_v42  ;;  %3763 = vmatmul.f32.gmra.mxu0 %v14728_v53  ;;  %3804 = vmatmul.f32.gmra.mxu1 %v14729_v27  ;;  %v6733_v0 = vld [vmem:[#allocation22 + $0x90] sm:$0xff]  ;;  %v5632_v45 = vadd.f32 0.0036580483, %v5631_v7  ;;  %v5989_v47 = vmul.f32 2.1237322e-06, %v11121_v22  ;;  %v4155_v28 = vmul.f32 %v4154_v3, %v11023_v56 }
 0x7c0   : > { %14726 = vst [vmem:[#allocation92_spill] sm:$0xff] %v11126_v30  ;;  %v11129_v13 = vadd.f32 1.0, %v4168_v40  ;;  %v6765_v14 = vld [vmem:[#allocation22 + $0x190] sm:$0xff]  ;;  %3845 = vmatmul.f32.gmra.mxu2 %v14728_v53  ;;  %3886 = vmatmul.f32.gmra.mxu3 %v14729_v27  ;;  %v14730_v30 = vld [vmem:[#allocation65_spill] sm:$0xff]  ;;  %v5950_v59 = vadd.f32 0.00028619796, %v5949_v5  ;;  %v11170_v10 = vmul.f32 %v5036_v20, %v10848_v37  ;;  %vm4376_vm1 = vweird.f32 %v11110_v38 }
 0x7c1   : > { %v11131_v16 = vpop.eup %8571  ;;  %14727 = vst [vmem:[#allocation93_spill] sm:$0xff] %v11133_v12  ;;  %v6797_v36 = vld [vmem:[#allocation22 + $0x290] sm:$0xff]  ;;  %v11157_v11 = vmul.f32 %v11088_v50, %v14730_v30  ;;  %7105 = vmatpush.msrb.mxu3 %v6831_v15  ;;  %v6731_v7 = vld [vmem:[#allocation22 + $0x80] sm:$0xff]  ;;  %v4381_v3 = vand.u32 2147483648, %v11063_v32  ;;  %v11165_v27 = vmul.f32 0.5, %v11036_v41  ;;  %6983 = vmatpush.msrb.mxu0 %v6733_v0  ;;  %v4372_v30 = vsub.f32 1.0, %v11138_v21  ;;  %vm11276_vm13 = vmor %vm4375_vm2, %vm4376_vm1 }
 0x7c2   : > { %v4131_v63 = vmul.f32 %v11131_v16, %v11083_v55  ;;  %8577 = vrcp.f32 %v11129_v13  ;;  %v11148_v40 = vpop.eup %8573  ;;  %v6829_v18 = vld [vmem:[#allocation22 + $0x390] sm:$0xff]  ;;  %7024 = vmatpush.msrb.mxu1 %v6765_v14  ;;  %v6827_v50 = vld [vmem:[#allocation22 + $0x380] sm:$0xff]  ;;  %v5000_v5 = vmul.f32 3.8918573e-05, %v10789_v46  ;;  %14735 = vst [vmem:[#allocation95_spill] sm:$0xff] %v11170_v10  ;;  %7065 = vmatpush.msrb.mxu2 %v6797_v36  ;;  %v11181_v21 = vmul.f32 %v5632_v45, %v11031_v58 }
 0x7c3   : > { %8579 = vrcp.f32 %v11123_v62  ;;  %14731 = vst [vmem:[#allocation65_spill] sm:$0xff] %v11157_v11  ;;  %v14732_v12 = vld [vmem:[#allocation63_spill] sm:$0xff]  ;;  %v11172_v15 = vadd.f32 0.05243302, %v5353_v48  ;;  %7106 = vmatpush.msrb.mxu3 %v6829_v18  ;;  %v11176_v41 = vmul.f32 %v11148_v40, %v11085_v9  ;;  %v11183_v14 = vadd.f32 0.0036580483, %v5671_v19  ;;  %6984 = vmatpush.msrb.mxu0 %v6731_v7 }
 0x7c4   : > { %v4132_v1 = vsub.f32 1.0, %v4131_v63  ;;  %v11162_v53 = vmul.f32 %v11077_v8, %v14732_v12  ;;  %14734 = vst [vmem:[#allocation94_spill] sm:$0xff] %v11165_v27  ;;  %v4116_v63 = vadd.f32 0.18741608, %v4115_v35  ;;  %v6729_v8 = vld [vmem:[#allocation22 + $0x70] sm:$0xff]  ;;  %v11178_v0 = vpop.eup %8575  ;;  %7025 = vmatpush.msrb.mxu1 %v6763_v26  ;;  %v11189_v36 = vmul.f32 %v5950_v59, %v11105_v49  ;;  %7066 = vmatpush.msrb.mxu2 %v6795_v39  ;;  %v14737_v7 = vld [vmem:[#allocation56_spill] sm:$0xff] }
 0x7c5   : > { %14736 = vst [vmem:[#allocation96_spill] sm:$0xff] %v11172_v15  ;;  %v6761_v12 = vld [vmem:[#allocation22 + $0x170] sm:$0xff]  ;;  %v4156_v48 = vadd.f32 0.18741608, %v4155_v28  ;;  %v11191_v18 = vadd.f32 0.00028619796, %v5989_v47  ;;  %7107 = vmatpush.msrb.mxu3 %v6827_v50  ;;  %6985 = vmatpush.msrb.mxu0 %v6729_v8  ;;  %v4373_v59 = vmul.f32 %v11110_v38, %v4372_v30  ;;  %vm4416_vm3 = vweird.f32 %v11148_v40 }
 0x7c6   : > { %14733 = vst [vmem:[#allocation63_spill] sm:$0xff] %v11162_v53  ;;  %v4133_v20 = vmul.f32 %v11131_v16, %v4132_v1  ;;  %v4379_v27 = vand.u32 2147483647, %v11063_v32  ;;  %v11194_v45 = vor.u32 1.1754944e-38, %v4381_v3  ;;  %7026 = vmatpush.msrb.mxu1 %v6761_v12  ;;  %v6793_v26 = vld [vmem:[#allocation22 + $0x270] sm:$0xff]  ;;  %v4117_v39 = vmul.f32 %v4116_v63, %v10975_v42  ;;  %v14738_v3 = vld [vmem:[#allocation57_spill] sm:$0xff] }
 0x7c7   : > { %v6825_v28 = vld [vmem:[#allocation22 + $0x370] sm:$0xff]  ;;  %v5001_v47 = vadd.f32 0.001143296, %v5000_v5  ;;  %3766 = vmatmul.f32.gmra.mxu0 %v14737_v7  ;;  %3807 = vmatmul.f32.gmra.mxu1 %v14738_v3  ;;  %v6727_v50 = vld [vmem:[#allocation22 + $0x60] sm:$0xff]  ;;  %v4412_v8 = vsub.f32 1.0, %v11176_v41  ;;  %v11210_v30 = vmul.f32 %v11178_v0, %v11108_v43  ;;  %vm4136_vm4 = vweird.f32 %v11131_v16 }
 0x7c8   : > { %v11186_v35 = vpop.eup %8577  ;;  %v6759_v37 = vld [vmem:[#allocation22 + $0x160] sm:$0xff]  ;;  %v4134_v5 = vadd.f32 %v11131_v16, %v4133_v20  ;;  %v4157_v42 = vmul.f32 %v4156_v48, %v11023_v56  ;;  %3848 = vmatmul.f32.gmra.mxu2 %v14737_v7  ;;  %3889 = vmatmul.f32.gmra.mxu3 %v14738_v3  ;;  %vm4135_vm5 = vweird.f32 %v11083_v55  ;;  %v4141_v41 = vand.u32 2147483648, %v11083_v55  ;;  %v6725_v20 = vld [vmem:[#allocation22 + $0x50] sm:$0xff] }
 0x7c9   : > { %v11196_v19 = vpop.eup %8579  ;;  %v4171_v1 = vmul.f32 %v11186_v35, %v11129_v13  ;;  %v6791_v12 = vld [vmem:[#allocation22 + $0x260] sm:$0xff]  ;;  %v4181_v10 = vand.u32 2147483648, %v11129_v13  ;;  %7067 = vmatpush.msrb.mxu2 %v6793_v26  ;;  %7108 = vmatpush.msrb.mxu3 %v6825_v28  ;;  %v6757_v58 = vld [vmem:[#allocation22 + $0x150] sm:$0xff]  ;;  %v4139_v48 = vand.u32 2147483647, %v11083_v55  ;;  %vm4176_vm6 = vweird.f32 %v11186_v35  ;;  %vm11232_vm7 = vmor %vm4135_vm5, %vm4136_vm4 }
 0x7ca   : > { %v6823_v53 = vld [vmem:[#allocation22 + $0x360] sm:$0xff]  ;;  %v11222_v56 = vmul.f32 %v11196_v19, %v11123_v62  ;;  %v4179_v3 = vand.u32 2147483647, %v11129_v13  ;;  %6986 = vmatpush.msrb.mxu0 %v6727_v50  ;;  %7027 = vmatpush.msrb.mxu1 %v6759_v37  ;;  %v6789_v7 = vld [vmem:[#allocation22 + $0x250] sm:$0xff]  ;;  %v4118_v26 = vadd.f32 1.1283791, %v4117_v39  ;;  %v11237_v52 = vadd.f32 %v11110_v38, %v4373_v59 }
 0x7cb   : > { %v4172_v63 = vsub.f32 1.0, %v4171_v1  ;;  %v6821_v15 = vld [vmem:[#allocation22 + $0x350] sm:$0xff]  ;;  %7068 = vmatpush.msrb.mxu2 %v6791_v12  ;;  %7109 = vmatpush.msrb.mxu3 %v6823_v53  ;;  %v6755_v49 = vld [vmem:[#allocation22 + $0x140] sm:$0xff]  ;;  %vm11239_vm8 = vcmp.eq.f32.partialorder %v4379_v27, 8.507059e+37  ;;  %v4413_v39 = vmul.f32 %v11148_v40, %v4412_v8  ;;  %v5002_v50 = vmul.f32 %v5001_v47, %v10789_v46  ;;  %v11256_v47 = vpop.f32.mrf.mxu0 }
 0x7cc   : > { %v4138_v55 = vsel %vm11232_vm7, %v11131_v16, %v4134_v5  ;;  %v4158_v54 = vadd.f32 1.1283791, %v4157_v42  ;;  %vm4175_vm9 = vweird.f32 %v11129_v13  ;;  %6987 = vmatpush.msrb.mxu0 %v6725_v20  ;;  %7028 = vmatpush.msrb.mxu1 %v6757_v58  ;;  %v4142_v59 = vor.u32 1.1754944e-38, %v4141_v41  ;;  %v6819_v42 = vld [vmem:[#allocation22 + $0x340] sm:$0xff]  ;;  %v14753_v20 = vld [vmem:[#allocation74_spill] sm:$0xff] }
 0x7cd   : > { %v4173_v1 = vmul.f32 %v11186_v35, %v4172_v63  ;;  %v6723_v63 = vld [vmem:[#allocation22 + $0x40] sm:$0xff]  ;;  %vm11252_vm10 = vmor %vm4175_vm9, %vm4176_vm6  ;;  %v4182_v8 = vor.u32 1.1754944e-38, %v4181_v10  ;;  %7069 = vmatpush.msrb.mxu2 %v6789_v7  ;;  %7110 = vmatpush.msrb.mxu3 %v6821_v15  ;;  %v4692_v16 = vsub.f32 1.0, %v11210_v30  ;;  %v4732_v5 = vsub.f32 1.0, %v11222_v56  ;;  %v6721_v15 = vld [vmem:[#allocation22 + $0x30] sm:$0xff] }
 0x7ce   : > { %v3282_v13 = vadd.f32 %v10864_v33, %v10597_v34  ;;  %vm4140_vm11 = vcmp.eq.f32.partialorder %v4139_v48, 8.507059e+37  ;;  %vm4180_vm12 = vcmp.eq.f32.partialorder %v4179_v3, 8.507059e+37  ;;  %6988 = vmatpush.msrb.mxu0 %v6723_v63  ;;  %7029 = vmatpush.msrb.mxu1 %v6755_v49  ;;  %v6787_v10 = vld [vmem:[#allocation22 + $0x240] sm:$0xff]  ;;  %v6753_v30 = vld [vmem:[#allocation22 + $0x130] sm:$0xff]  ;;  %v4414_v34 = vadd.f32 %v11148_v40, %v4413_v39  ;;  %v3509_v39 = vpop.f32.mrf.mxu2 }
 0x7cf   : > { %v4174_v53 = vadd.f32 %v11186_v35, %v4173_v1  ;;  %v4143_v12 = vsel %vm4140_vm11, %v4142_v59, %v4138_v55  ;;  %3769 = vmatmul.f32.gmra.mxu0 %v10555_v25  ;;  %3810 = vmatmul.f32.gmra.mxu1 %v10558_v57  ;;  %v5003_v33 = vadd.f32 0.014752088, %v5002_v50  ;;  %v4119_v41 = vmul.f32 %v4118_v26, %v10950_v31  ;;  %v6785_v49 = vld [vmem:[#allocation22 + $0x230] sm:$0xff]  ;;  %v6783_v50 = vld [vmem:[#allocation22 + $0x220] sm:$0xff] }
 0x7d0   : > { %3851 = vmatmul.f32.gmra.mxu2 %v10555_v25  ;;  %3892 = vmatmul.f32.gmra.mxu3 %v10558_v57  ;;  %v6817_v3 = vld [vmem:[#allocation22 + $0x330] sm:$0xff]  ;;  %v4419_v56 = vand.u32 2147483647, %v11085_v9  ;;  %v4421_v31 = vand.u32 2147483648, %v11085_v9  ;;  %v4378_v48 = vsel %vm11276_vm13, %v11110_v38, %v11237_v52  ;;  %vm4415_vm14 = vweird.f32 %v11085_v9  ;;  %v6815_v55 = vld [vmem:[#allocation22 + $0x320] sm:$0xff]  ;;  %v11303_v38 = vpop.f32.mrf.mxu1 }
 0x7d1   : > { %v4178_v58 = vsel %vm11252_vm10, %v11186_v35, %v4174_v53  ;;  %v4159_v35 = vmul.f32 %v4158_v54, %v10997_v44  ;;  %7070 = vmatpush.msrb.mxu2 %v6787_v10  ;;  %7111 = vmatpush.msrb.mxu3 %v6819_v42  ;;  %v6719_v54 = vld [vmem:[#allocation22 + $0x20] sm:$0xff]  ;;  %v4693_v32 = vmul.f32 %v11178_v0, %v4692_v16  ;;  %vm11298_vm15 = vmor %vm4415_vm14, %vm4416_vm3  ;;  %vm4695_vm0 = vweird.f32 %v11108_v43  ;;  %v6749_v52 = vld [vmem:[#allocation22 + $0x110] sm:$0xff] }
 0x7d2   : > { %v4183_v7 = vsel %vm4180_vm12, %v4182_v8, %v4178_v58  ;;  %v6751_v44 = vld [vmem:[#allocation22 + $0x120] sm:$0xff]  ;;  %v4733_v1 = vmul.f32 %v11196_v19, %v4732_v5  ;;  %v11290_v26 = vadd.f32 %v10866_v51, %v3282_v13  ;;  %v11292_v28 = vmul.f32 %v4143_v12, %v4119_v41  ;;  %6989 = vmatpush.msrb.mxu0 %v6721_v15  ;;  %v6717_v51 = vld [vmem:[#allocation22 + $0x10] sm:$0xff] }
 0x7d3   : > { %v11294_v63 = vmul.f32 %v4183_v7, %v4159_v35  ;;  %7030 = vmatpush.msrb.mxu1 %v6753_v30  ;;  %7071 = vmatpush.msrb.mxu2 %v6785_v49  ;;  %v4418_v53 = vsel %vm11298_vm15, %v11148_v40, %v4414_v34  ;;  %v4699_v59 = vand.u32 2147483647, %v11108_v43  ;;  %v4701_v27 = vand.u32 2147483648, %v11108_v43  ;;  %v6781_v12 = vld [vmem:[#allocation22 + $0x210] sm:$0xff]  ;;  %v3430_v30 = vpop.f32.mrf.mxu0  ;;  %v6715_v34 = vld [vmem:[#allocation22] sm:$0xff] }
 0x7d4   : > { %7112 = vmatpush.msrb.mxu3 %v6817_v3  ;;  %v5004_v8 = vmul.f32 %v5003_v33, %v10789_v46  ;;  %6990 = vmatpush.msrb.mxu0 %v6719_v54  ;;  %v4383_v16 = vsel %vm11239_vm8, %v11194_v45, %v4378_v48  ;;  %vm11314_vm1 = vcmp.eq.f32.partialorder %v4419_v56, 8.507059e+37  ;;  %v4422_v13 = vor.u32 1.1754944e-38, %v4421_v31  ;;  %v6813_v7 = vld [vmem:[#allocation22 + $0x310] sm:$0xff]  ;;  %v6747_v33 = vld [vmem:[#allocation22 + $0x100] sm:$0xff]  ;;  %v3550_v54 = vpop.f32.mrf.mxu3 }
 0x7d5   : > { %7031 = vmatpush.msrb.mxu1 %v6751_v44  ;;  %vm4696_vm2 = vweird.f32 %v11178_v0  ;;  %7072 = vmatpush.msrb.mxu2 %v6783_v50  ;;  %v4694_v40 = vadd.f32 %v11178_v0, %v4693_v32  ;;  %v4734_v58 = vadd.f32 %v11196_v19, %v4733_v1  ;;  %vm4736_vm3 = vweird.f32 %v11196_v19  ;;  %v6811_v43 = vld [vmem:[#allocation22 + $0x300] sm:$0xff] }
 0x7d6   : > { %7113 = vmatpush.msrb.mxu3 %v6815_v55  ;;  %v4739_v10 = vand.u32 2147483647, %v11123_v62  ;;  %v11324_v37 = vmul.f32 0.70710677, %v11290_v26  ;;  %v8186_v45 = vclamps-f32 %v11292_v28, 1.0  ;;  %v8187_v42 = vclamps-f32 %v11294_v63, 1.0  ;;  %6991 = vmatpush.msrb.mxu0 %v6717_v51  ;;  %vm11337_vm4 = vmor %vm4695_vm0, %vm4696_vm2 }
 0x7d7   : > { %7032 = vmatpush.msrb.mxu1 %v6749_v52  ;;  %v4423_v15 = vsel %vm11314_vm1, %v4422_v13, %v4418_v53  ;;  %3772 = vmatmul.f32.gmra.mxu0 %v10570_v17  ;;  %v4384_v41 = vmul.f32 %v4383_v16, %v10872_v4  ;;  %vm4735_vm5 = vweird.f32 %v11123_v62  ;;  %v4741_v49 = vand.u32 2147483648, %v11123_v62  ;;  %v6779_v4 = vld [vmem:[#allocation22 + $0x200] sm:$0xff]  ;;  %v3512_v16 = vpop.f32.mrf.mxu2 }
 0x7d8   : > { %3813 = vmatmul.f32.gmra.mxu1 %v10573_v2  ;;  %v5005_v3 = vadd.f32 0.112945676, %v5004_v8  ;;  %v3428_v56 = vadd.f32 %v11256_v47, %v14753_v20  ;;  %v3510_v31 = vadd.f32 %v3509_v39, %v10938_v29  ;;  %3854 = vmatmul.f32.gmra.mxu2 %v10570_v17  ;;  %vm11348_vm6 = vcmp.eq.f32.partialorder %v4699_v59, 8.507059e+37  ;;  %vm11354_vm7 = vmor %vm4735_vm5, %vm4736_vm3  ;;  %v14758_v47 = vld [vmem:[#allocation75_spill] sm:$0xff]  ;;  %v3471_v13 = vpop.f32.mrf.mxu1 }
 0x7d9   : > { %3895 = vmatmul.f32.gmra.mxu3 %v10573_v2  ;;  %v4702_v48 = vor.u32 1.1754944e-38, %v4701_v27  ;;  %7073 = vmatpush.msrb.mxu2 %v6781_v12  ;;  %v4424_v32 = vmul.f32 %v4423_v15, %v14758_v47  ;;  %v4698_v1 = vsel %vm11337_vm4, %v11178_v0, %v4694_v40  ;;  %v4738_v28 = vsel %vm11354_vm7, %v11196_v19, %v4734_v58 }
 0x7da   : > { %7114 = vmatpush.msrb.mxu3 %v6813_v7  ;;  %vm11365_vm8 = vcmp.eq.f32.partialorder %v4739_v10, 8.507059e+37  ;;  %v6267_v39 = vmul.f32 %v11324_v37, %v11324_v37  ;;  %v6589_v50 = vadd.f32 1.0, %v8186_v45  ;;  %v6590_v55 = vadd.f32 1.0, %v8187_v42  ;;  %6992 = vmatpush.msrb.mxu0 %v6715_v34 }
 0x7db   : > { %v3431_v9 = vadd.f32 %v3430_v30, %v14753_v20  ;;  %7033 = vmatpush.msrb.mxu1 %v6747_v33  ;;  %v11373_v51 = vmul.f32 0.70710677, %v10925_v23  ;;  %7074 = vmatpush.msrb.mxu2 %v6779_v4  ;;  %v8192_v0 = vclamps-f32 %v4384_v41, 1.0  ;;  %v4742_v19 = vor.u32 1.1754944e-38, %v4741_v49  ;;  %v14764_v41 = vld [vmem:[#allocation80_spill] sm:$0xff]  ;;  %v14765_v49 = vld [vmem:[#allocation62_spill] sm:$0xff]  ;;  %v3433_v62 = vpop.f32.mrf.mxu0 }
 0x7dc   : > { %7115 = vmatpush.msrb.mxu3 %v6811_v43  ;;  %v5006_v52 = vmul.f32 %v5005_v3, %v10789_v46  ;;  %v3901_v53 = vmul.f32 0.5, %v10930_v24  ;;  %v3902_v59 = vmul.f32 0.5, %v10985_v61  ;;  %v11379_v27 = vadd.f32 %v11303_v38, %v3428_v56  ;;  %v14766_v56 = vld [vmem:[#allocation77_spill] sm:$0xff] }
 0x7dd   : > { %v11381_v8 = vadd.f32 %v3550_v54, %v3510_v31  ;;  %v5991_v5 = vmul.f32 %v11191_v18, %v11121_v22  ;;  %v8193_v40 = vclamps-f32 %v4424_v32, 1.0  ;;  %v4703_v58 = vsel %vm11348_vm6, %v4702_v48, %v4698_v1  ;;  %v14767_v31 = vld [vmem:[#allocation93_spill] sm:$0xff]  ;;  %v3553_v48 = vpop.f32.mrf.mxu3 }
 0x7de   : > { %v4743_v10 = vsel %vm11365_vm8, %v4742_v19, %v4738_v28  ;;  %v11389_v24 = vmin.f32 %v6267_v39, 16.0  ;;  %v11391_v61 = vmul.f32 %v6589_v50, %v3901_v53  ;;  %v11393_v38 = vmul.f32 %v6590_v55, %v3902_v59  ;;  %v14768_v32 = vld [vmem:[#allocation89_spill] sm:$0xff]  ;;  %v14769_v28 = vld [vmem:[#allocation66_spill] sm:$0xff]  ;;  %v14772_v19 = vld [vmem:[#allocation67_spill] sm:$0xff] }
 0x7df   : > { %v11395_v45 = vadd.f32 %v3471_v13, %v3431_v9  ;;  %v5673_v42 = vmul.f32 %v11183_v14, %v11058_v6  ;;  %v5952_v18 = vadd.f32 0.0036580483, %v11189_v36  ;;  %v3513_v12 = vadd.f32 %v3512_v16, %v10938_v29  ;;  %6993 = vmatmul.f32.vlgmr.msrb.gmra.mxu0 %v11068_v60  ;;  %v14774_v16 = vld [vmem:[#allocation81_spill] sm:$0xff] }
 0x7e0   : > { %14761 = vst [vmem:[#allocation74_spill] sm:$0xff] %v11389_v24  ;;  %7034 = vmatmul.f32.vlgmr.msrb.gmra.mxu1 %v11157_v11  ;;  %v6595_v7 = vadd.f32 1.0, %v8192_v0  ;;  %v6307_v15 = vmul.f32 %v11373_v51, %v11373_v51  ;;  %v11406_v30 = vmul.f32 0.70710677, %v11379_v27  ;;  %v11409_v34 = vmul.f32 0.70710677, %v11381_v8  ;;  %7075 = vmatmul.f32.vlgmr.msrb.gmra.mxu2 %v11391_v61 }
 0x7e1   : > { %14762 = vst [vmem:[#allocation75_spill] sm:$0xff] %v11391_v61  ;;  %7116 = vmatmul.f32.vlgmr.msrb.gmra.mxu3 %v11393_v38  ;;  %v5007_v14 = vadd.f32 0.4994258, %v5006_v52  ;;  %v5634_v36 = vadd.f32 0.05243302, %v11181_v21  ;;  %v6596_v33 = vadd.f32 1.0, %v8193_v40  ;;  %v4704_v35 = vmul.f32 %v4703_v58, %v14764_v41  ;;  %v3474_v41 = vpop.f32.mrf.mxu1 }
 0x7e2   : > { %14763 = vst [vmem:[#allocation97_spill] sm:$0xff] %v11393_v38  ;;  %v4744_v3 = vmul.f32 %v4743_v10, %v14765_v49  ;;  %v5315_v54 = vmul.f32 %v14767_v31, %v14766_v56  ;;  %v5992_v4 = vadd.f32 0.0036580483, %v5991_v5  ;;  %v6269_v43 = vmul.f32 2.1237322e-06, %v11389_v24  ;;  %v14775_v5 = vld [vmem:[#allocation96_spill] sm:$0xff] }
 0x7e3   : > { %v11420_v44 = vmul.f32 0.70710677, %v11395_v45  ;;  %v5674_v47 = vadd.f32 0.05243302, %v5673_v42  ;;  %v5953_v1 = vmul.f32 %v5952_v18, %v14768_v32  ;;  %v11423_v21 = vadd.f32 %v3553_v48, %v3513_v12  ;;  %v14776_v42 = vld [vmem:[#allocation84_spill] sm:$0xff] }
 0x7e4   : > { %v11426_v63 = vmul.f32 %v6595_v7, %v14769_v28  ;;  %v11428_v39 = vmin.f32 %v6307_v15, 16.0  ;;  %v4427_v50 = vmul.f32 %v11406_v30, %v11406_v30  ;;  %v4467_v55 = vmul.f32 %v11409_v34, %v11409_v34 }
 0x7e5   : > { %v5008_v9 = vmul.f32 %v5007_v14, %v10789_v46  ;;  %v3434_v0 = vadd.f32 %v3433_v62, %v14753_v20  ;;  %v11437_v52 = vmul.f32 %v6596_v33, %v14772_v19  ;;  %v8200_v53 = vclamps-f32 %v4704_v35, 1.0 }
 0x7e6   : > { %14770 = vst [vmem:[#allocation80_spill] sm:$0xff] %v11426_v63  ;;  %v8201_v59 = vclamps-f32 %v4744_v3, 1.0  ;;  %v5355_v13 = vmul.f32 %v14775_v5, %v14774_v16  ;;  %v5993_v40 = vmul.f32 %v5992_v4, %v11121_v22  ;;  %v6270_v58 = vadd.f32 0.00028619796, %v6269_v43 }
 0x7e7   : > { %14771 = vst [vmem:[#allocation62_spill] sm:$0xff] %v11428_v39  ;;  %v4747_v10 = vmul.f32 %v11420_v44, %v11420_v44  ;;  %v5635_v18 = vmul.f32 %v5634_v36, %v14776_v42  ;;  %v5675_v46 = vmul.f32 %v5674_v47, %v11058_v6  ;;  %v5954_v12 = vadd.f32 0.05243302, %v5953_v1  ;;  %6996 = vmatmul.f32.gmra.mxu0 %v11426_v63  ;;  %v3515_v47 = vpop.f32.mrf.mxu2  ;;  %v3436_v63 = vpop.f32.mrf.mxu0 }
 0x7e8   : > { %14773 = vst [vmem:[#allocation77_spill] sm:$0xff] %v11437_v52  ;;  %v11447_v7 = vmul.f32 0.70710677, %v11423_v21  ;;  %7037 = vmatmul.f32.gmra.mxu1 %v11437_v52  ;;  %v6309_v15 = vmul.f32 2.1237322e-06, %v11428_v39  ;;  %v11452_v14 = vmin.f32 %v4427_v50, 16.0  ;;  %v11458_v49 = vadd.f32 %v3474_v41, %v3434_v0 }
 0x7e9   : > { %v11454_v33 = vmin.f32 %v4467_v55, 16.0  ;;  %v11456_v35 = vadd.f32 1.0, %v5008_v9  ;;  %v5316_v36 = vadd.f32 0.18741608, %v5315_v54  ;;  %v6603_v3 = vadd.f32 1.0, %v8200_v53  ;;  %v14788_v52 = vld [vmem:[#allocation83_spill] sm:$0xff] }
 0x7ea   : > { %v6604_v31 = vadd.f32 1.0, %v8201_v59  ;;  %v5356_v4 = vadd.f32 0.18741608, %v5355_v13  ;;  %v5994_v43 = vadd.f32 0.05243302, %v5993_v40  ;;  %v6271_v48 = vmul.f32 %v6270_v58, %v11389_v24  ;;  %v14777_v59 = vld [vmem:[#allocation69_spill] sm:$0xff] }
 0x7eb   : > { %v11461_v62 = vmin.f32 %v4747_v10, 16.0  ;;  %v5636_v1 = vadd.f32 0.18741608, %v5635_v18  ;;  %v5676_v28 = vadd.f32 0.18741608, %v5675_v46  ;;  %v5955_v50 = vmul.f32 %v5954_v12, %v14768_v32  ;;  %v14779_v13 = vld [vmem:[#allocation70_spill] sm:$0xff] }
 0x7ec   : > { %v4787_v55 = vmul.f32 %v11447_v7, %v11447_v7  ;;  %v6310_v9 = vadd.f32 0.00028619796, %v6309_v15  ;;  %v4429_v54 = vmul.f32 2.1237322e-06, %v11452_v14  ;;  %v4469_v0 = vmul.f32 2.1237322e-06, %v11454_v33 }
 0x7ed   : > { %8581 = vrcp.f32 %v11456_v35  ;;  %v11470_v19 = vmul.f32 0.70710677, %v11458_v49  ;;  %v3516_v53 = vadd.f32 %v3515_v47, %v10938_v29  ;;  %v11474_v5 = vmul.f32 %v6603_v3, %v14777_v59  ;;  %v14781_v47 = vld [vmem:[#allocation95_spill] sm:$0xff] }
 0x7ee   : > { %v11477_v40 = vmul.f32 %v6604_v31, %v14779_v13  ;;  %v5317_v58 = vmul.f32 %v5316_v36, %v14766_v56  ;;  %v5995_v10 = vmul.f32 %v5994_v43, %v11121_v22  ;;  %v6272_v18 = vadd.f32 0.0036580483, %v6271_v48  ;;  %v3556_v48 = vpop.f32.mrf.mxu3  ;;  %v14782_v13 = vld [vmem:[#allocation85_spill] sm:$0xff] }
 0x7ef   : > { %14778 = vst [vmem:[#allocation93_spill] sm:$0xff] %v11474_v5  ;;  %v4749_v46 = vmul.f32 2.1237322e-06, %v11461_v62  ;;  %v5357_v12 = vmul.f32 %v5356_v4, %v14774_v16  ;;  %v5637_v15 = vmul.f32 %v5636_v1, %v14776_v42  ;;  %v5956_v41 = vadd.f32 0.18741608, %v5955_v50  ;;  %6999 = vmatmul.f32.gmra.mxu0 %v11474_v5 }
 0x7f0   : > { %14780 = vst [vmem:[#allocation89_spill] sm:$0xff] %v11477_v40  ;;  %v11484_v2 = vmin.f32 %v4787_v55, 16.0  ;;  %7040 = vmatmul.f32.gmra.mxu1 %v11477_v40  ;;  %v5677_v3 = vmul.f32 %v5676_v28, %v11058_v6  ;;  %v6311_v36 = vmul.f32 %v6310_v9, %v11428_v39  ;;  %v4430_v31 = vadd.f32 0.00028619796, %v4429_v54 }
 0x7f1   : > { %v4470_v43 = vadd.f32 0.00028619796, %v4469_v0  ;;  %v5038_v59 = vadd.f32 1.1283791, %v14781_v47  ;;  %v11492_v4 = vmul.f32 0.5, %v14782_v13  ;;  %v5067_v1 = vmul.f32 %v11470_v19, %v11470_v19 }
 0x7f2   : > { %v11496_v50 = vadd.f32 %v3556_v48, %v3516_v53  ;;  %v5318_v17 = vadd.f32 1.1283791, %v5317_v58  ;;  %v5996_v57 = vadd.f32 0.18741608, %v5995_v10  ;;  %v6273_v28 = vmul.f32 %v6272_v18, %v11389_v24  ;;  %v14784_v48 = vld [vmem:[#allocation68_spill] sm:$0xff] }
 0x7f3   : > { %14783 = vst [vmem:[#allocation66_spill] sm:$0xff] %v11492_v4  ;;  %v11498_v55 = vpop.eup %8581  ;;  %v4750_v9 = vadd.f32 0.00028619796, %v4749_v46  ;;  %v5358_v54 = vadd.f32 1.1283791, %v5357_v12  ;;  %v5957_v25 = vmul.f32 %v5956_v41, %v14768_v32  ;;  %v4431_v61 = vmul.f32 %v4430_v31, %v11452_v14  ;;  %v14785_v46 = vld [vmem:[#allocation72_spill] sm:$0xff] }
 0x7f4   : > { %v5638_v0 = vadd.f32 1.1283791, %v5637_v15  ;;  %v4789_v47 = vmul.f32 2.1237322e-06, %v11484_v2  ;;  %v5678_v13 = vadd.f32 1.1283791, %v5677_v3  ;;  %v4471_v53 = vmul.f32 %v4470_v43, %v11454_v33 }
 0x7f5   : > { %v6312_v38 = vadd.f32 0.0036580483, %v6311_v36  ;;  %v11506_v40 = vmul.f32 %v5038_v59, %v14784_v48  ;;  %v11508_v58 = vmin.f32 %v5067_v1, 16.0  ;;  %v11511_v10 = vmul.f32 0.70710677, %v11496_v50  ;;  %v14786_v36 = vld [vmem:[#allocation78_spill] sm:$0xff] }
 0x7f6   : > { %v5011_v18 = vmul.f32 %v11498_v55, %v11456_v35  ;;  %v11516_v12 = vmul.f32 %v5318_v17, %v14785_v46  ;;  %v5997_v15 = vmul.f32 %v5996_v57, %v11121_v22  ;;  %v6274_v41 = vadd.f32 0.05243302, %v6273_v28  ;;  %v14787_v43 = vld [vmem:[#allocation82_spill] sm:$0xff] }
 0x7f7   : > { %v4751_v3 = vmul.f32 %v4750_v9, %v11461_v62  ;;  %v11521_v31 = vmul.f32 %v5358_v54, %v14786_v36  ;;  %v11524_v59 = vmul.f32 %v5638_v0, %v14787_v43  ;;  %v5958_v1 = vadd.f32 1.1283791, %v5957_v25 }
 0x7f8   : > { %v4790_v48 = vadd.f32 0.00028619796, %v4789_v47  ;;  %v11527_v5 = vmul.f32 %v5678_v13, %v14788_v52  ;;  %v6313_v11 = vmul.f32 %v6312_v38, %v11428_v39  ;;  %v4432_v17 = vadd.f32 0.0036580483, %v4431_v61  ;;  %v14790_v13 = vld [vmem:[#allocation86_spill] sm:$0xff] }
 0x7f9   : > { %v4472_v46 = vadd.f32 0.0036580483, %v4471_v53  ;;  %v5069_v57 = vmul.f32 2.1237322e-06, %v11508_v58  ;;  %v5107_v28 = vmul.f32 %v11511_v10, %v11511_v10  ;;  %v4440_v9 = vmul.f32 3.8918573e-05, %v11452_v14 }
 0x7fa   : > { %14789 = vst [vmem:[#allocation67_spill] sm:$0xff] %v11527_v5  ;;  %v5012_v54 = vsub.f32 1.0, %v5011_v18  ;;  %v5998_v0 = vadd.f32 1.1283791, %v5997_v15  ;;  %v6275_v25 = vmul.f32 %v6274_v41, %v11389_v24  ;;  %v4752_v47 = vadd.f32 0.0036580483, %v4751_v3 }
 0x7fb   : > { %v5021_v52 = vand.u32 2147483648, %v11456_v35  ;;  %v11537_v36 = vmul.f32 %v5958_v1, %v14790_v13  ;;  %v11540_v61 = vmul.f32 0.5, %v11290_v26  ;;  %v4791_v38 = vmul.f32 %v4790_v48, %v11484_v2 }
 0x7fc   : > { %v3437_v53 = vadd.f32 %v3436_v63, %v14753_v20  ;;  %v6314_v43 = vadd.f32 0.05243302, %v6313_v11  ;;  %v4433_v60 = vmul.f32 %v4432_v17, %v11452_v14  ;;  %v4473_v18 = vmul.f32 %v4472_v46, %v11454_v33 }
 0x7fd   : > { %14791 = vst [vmem:[#allocation81_spill] sm:$0xff] %v11537_v36  ;;  %v4441_v15 = vadd.f32 0.001143296, %v4440_v9  ;;  %v5070_v41 = vadd.f32 0.00028619796, %v5069_v57  ;;  %v11546_v3 = vmin.f32 %v5107_v28, 16.0  ;;  %v5013_v4 = vmul.f32 %v11498_v55, %v5012_v54  ;;  %v3518_v54 = vpop.f32.mrf.mxu2 }
 0x7fe   : > { %14792 = vst [vmem:[#allocation96_spill] sm:$0xff] %v11540_v61  ;;  %v5019_v1 = vand.u32 2147483647, %v11456_v35  ;;  %v6276_v13 = vadd.f32 0.18741608, %v6275_v25  ;;  %v4753_v26 = vmul.f32 %v4752_v47, %v11461_v62  ;;  %v3477_v61 = vpop.f32.mrf.mxu1  ;;  %vm5015_vm9 = vweird.f32 %v11456_v35 }
 0x7ff   : > { %v5022_v63 = vor.u32 1.1754944e-38, %v5021_v52  ;;  %v11553_v11 = vmul.f32 0.5, %v10925_v23  ;;  %v4792_v48 = vadd.f32 0.0036580483, %v4791_v38  ;;  %v11555_v17 = vadd.f32 %v3477_v61, %v3437_v53 }
 0x800   : > { %v4442_v46 = vmul.f32 %v4441_v15, %v11452_v14  ;;  %v6315_v57 = vmul.f32 %v6314_v43, %v11428_v39  ;;  %v4434_v28 = vadd.f32 0.05243302, %v4433_v60  ;;  %v4474_v9 = vadd.f32 0.05243302, %v4473_v18 }
 0x801   : > { %14793 = vst [vmem:[#allocation84_spill] sm:$0xff] %v11553_v11  ;;  %vm5016_vm10 = vweird.f32 %v11498_v55  ;;  %v5071_v25 = vmul.f32 %v5070_v41, %v11508_v58  ;;  %v5109_v47 = vmul.f32 2.1237322e-06, %v11546_v3  ;;  %v5014_v23 = vadd.f32 %v11498_v55, %v5013_v4 }
 0x802   : > { %v4443_v52 = vadd.f32 0.014752088, %v4442_v46  ;;  %vm11563_vm11 = vcmp.eq.f32.partialorder %v5019_v1, 8.507059e+37  ;;  %v6277_v61 = vmul.f32 %v6276_v13, %v11389_v24  ;;  %v11569_v53 = vmul.f32 0.5, %v11379_v27  ;;  %v14796_v27 = vld [vmem:[#allocation87_spill] sm:$0xff]  ;;  %vm11587_vm12 = vmor %vm5015_vm9, %vm5016_vm10 }
 0x803   : > { %v4754_v60 = vadd.f32 0.05243302, %v4753_v26  ;;  %v4480_v43 = vmul.f32 3.8918573e-05, %v11454_v33  ;;  %v4793_v18 = vmul.f32 %v4792_v48, %v11484_v2  ;;  %v11574_v15 = vmul.f32 0.70710677, %v11555_v17 }
 0x804   : > { %v3519_v41 = vadd.f32 %v3518_v54, %v10938_v29  ;;  %v4444_v4 = vmul.f32 %v4443_v52, %v11452_v14  ;;  %v6316_v1 = vadd.f32 0.18741608, %v6315_v57  ;;  %v4435_v46 = vmul.f32 %v4434_v28, %v11452_v14  ;;  %v3559_v54 = vpop.f32.mrf.mxu3 }
 0x805   : > { %v4475_v13 = vmul.f32 %v4474_v9, %v11454_v33  ;;  %v4481_v11 = vadd.f32 0.001143296, %v4480_v43  ;;  %v11581_v24 = vmul.f32 %v5998_v0, %v14796_v27  ;;  %v5072_v26 = vadd.f32 0.0036580483, %v5071_v25  ;;  %v3439_v9 = vpop.f32.mrf.mxu0 }
 0x806   : > { %v5110_v36 = vadd.f32 0.00028619796, %v5109_v47  ;;  %v4445_v5 = vadd.f32 0.112945676, %v4444_v4  ;;  %v6278_v57 = vadd.f32 1.1283791, %v6277_v61  ;;  %v4755_v28 = vmul.f32 %v4754_v60, %v11461_v62 }
 0x807   : > { %14797 = vst [vmem:[#allocation69_spill] sm:$0xff] %v11581_v24  ;;  %v4482_v52 = vmul.f32 %v4481_v11, %v11454_v33  ;;  %v5018_v0 = vsel %vm11587_vm12, %v11498_v55, %v5014_v23  ;;  %v4794_v25 = vadd.f32 0.05243302, %v4793_v18  ;;  %v5387_v47 = vmul.f32 %v11574_v15, %v11574_v15 }
 0x808   : > { %v11598_v35 = vadd.f32 %v3559_v54, %v3519_v41  ;;  %v4446_v43 = vmul.f32 %v4445_v5, %v11452_v14  ;;  %v6317_v61 = vmul.f32 %v6316_v1, %v11428_v39  ;;  %v4436_v4 = vadd.f32 0.18741608, %v4435_v46 }
 0x809   : > { %v4476_v60 = vadd.f32 0.18741608, %v4475_v13  ;;  %v4483_v27 = vadd.f32 0.014752088, %v4482_v52  ;;  %v5073_v24 = vmul.f32 %v5072_v26, %v11508_v58  ;;  %v5111_v11 = vmul.f32 %v5110_v36, %v11546_v3 }
 0x80a   : > { %v3440_v48 = vadd.f32 %v3439_v9, %v14753_v20  ;;  %v4447_v55 = vadd.f32 0.4994258, %v4446_v43  ;;  %v11606_v23 = vmul.f32 %v6278_v57, %v11324_v37  ;;  %v4756_v18 = vadd.f32 0.18741608, %v4755_v28  ;;  %v3480_v57 = vpop.f32.mrf.mxu1  ;;  %v3521_v28 = vpop.f32.mrf.mxu2 }
 0x80b   : > { %v4484_v41 = vmul.f32 %v4483_v27, %v11454_v33  ;;  %v5023_v5 = vsel %vm11563_vm11, %v5022_v63, %v5018_v0  ;;  %v4795_v1 = vmul.f32 %v4794_v25, %v11484_v2  ;;  %v11612_v46 = vmin.f32 %v5387_v47, 16.0 }
 0x80c   : > { %14800 = vst [vmem:[#allocation70_spill] sm:$0xff] %v11606_v23  ;;  %v11615_v13 = vmul.f32 0.70710677, %v11598_v35  ;;  %v4448_v36 = vmul.f32 %v4447_v55, %v11452_v14  ;;  %v6318_v26 = vadd.f32 1.1283791, %v6317_v61  ;;  %v4437_v54 = vmul.f32 %v4436_v4, %v11452_v14  ;;  %v14801_v61 = vld [vmem:[#allocation63_spill] sm:$0xff] }
 0x80d   : > { %v4477_v37 = vmul.f32 %v4476_v60, %v11454_v33  ;;  %v4485_v9 = vadd.f32 0.112945676, %v4484_v41  ;;  %v5074_v52 = vadd.f32 0.05243302, %v5073_v24  ;;  %v5112_v38 = vadd.f32 0.0036580483, %v5111_v11 }
 0x80e   : > { %v3481_v63 = vadd.f32 %v3480_v57, %v3440_v48  ;;  %v11620_v0 = vadd.f32 1.0, %v4448_v36  ;;  %v11623_v25 = vmul.f32 0.5, %v11381_v8  ;;  %v4757_v47 = vmul.f32 %v4756_v18, %v11461_v62 }
 0x80f   : > { %v4760_v43 = vmul.f32 3.8918573e-05, %v11461_v62  ;;  %v11628_v27 = vmul.f32 %v5023_v5, %v14801_v61  ;;  %v11631_v14 = vmul.f32 0.5, %v11395_v45  ;;  %v4796_v4 = vadd.f32 0.18741608, %v4795_v1 }
 0x810   : > { %v5389_v24 = vmul.f32 2.1237322e-06, %v11612_v46  ;;  %v5427_v60 = vmul.f32 %v11615_v13, %v11615_v13  ;;  %v11637_v11 = vmul.f32 %v6318_v26, %v11373_v51  ;;  %v4438_v8 = vadd.f32 1.1283791, %v4437_v54  ;;  %v3562_v51 = vpop.f32.mrf.mxu3 }
 0x811   : > { %v4478_v48 = vadd.f32 1.1283791, %v4477_v37  ;;  %v4486_v55 = vmul.f32 %v4485_v9, %v11454_v33  ;;  %v5075_v18 = vmul.f32 %v5074_v52, %v11508_v58  ;;  %v5113_v41 = vmul.f32 %v5112_v38, %v11546_v3 }
 0x812   : > { %14802 = vst [vmem:[#allocation95_spill] sm:$0xff] %v11637_v11  ;;  %v11642_v5 = vmul.f32 0.70710677, %v3481_v63  ;;  %8583 = vrcp.f32 %v11620_v0  ;;  %v4758_v45 = vadd.f32 1.1283791, %v4757_v47  ;;  %v11646_v1 = vmul.f32 0.5, %v11423_v21  ;;  %v3483_v11 = vpop.f32.mrf.mxu1 }
 0x813   : > { %v3522_v36 = vadd.f32 %v3521_v28, %v10938_v29  ;;  %v4761_v26 = vadd.f32 0.001143296, %v4760_v43  ;;  %v4797_v54 = vmul.f32 %v4796_v4, %v11484_v2  ;;  %v11651_v37 = vmul.f32 0.5, %v11458_v49  ;;  %v3442_v4 = vpop.f32.mrf.mxu0 }
 0x814   : > { %v5390_v57 = vadd.f32 0.00028619796, %v5389_v24  ;;  %v11653_v9 = vmin.f32 %v5427_v60, 16.0  ;;  %v11656_v52 = vmul.f32 %v4438_v8, %v11406_v30  ;;  %v11659_v38 = vmul.f32 0.5, %v11496_v50  ;;  %v3524_v60 = vpop.f32.mrf.mxu2 }
 0x815   : > { %v11662_v21 = vmul.f32 0.5, %v11555_v17  ;;  %v4487_v28 = vadd.f32 0.4994258, %v4486_v55  ;;  %v11665_v47 = vmul.f32 %v4478_v48, %v11409_v34  ;;  %v5076_v43 = vadd.f32 0.18741608, %v5075_v18 }
 0x816   : > { %v5114_v61 = vadd.f32 0.05243302, %v5113_v41  ;;  %v5707_v49 = vmul.f32 %v11642_v5, %v11642_v5  ;;  %v11670_v24 = vmul.f32 %v4758_v45, %v11420_v44  ;;  %v3563_v30 = vadd.f32 %v3562_v51, %v3522_v36 }
 0x817   : > { %14803 = vst [vmem:[#allocation85_spill] sm:$0xff] %v11662_v21  ;;  %v4488_v50 = vmul.f32 %v4487_v28, %v11454_v33  ;;  %v4762_v17 = vmul.f32 %v4761_v26, %v11461_v62  ;;  %v4798_v55 = vadd.f32 1.1283791, %v4797_v54  ;;  %v5391_v34 = vmul.f32 %v5390_v57, %v11612_v46 }
 0x818   : > { %v8584_v8 = vpop.eup %8583  ;;  %v11676_v48 = vmul.f32 0.5, %v11598_v35  ;;  %v5429_v18 = vmul.f32 2.1237322e-06, %v11653_v9  ;;  %v11679_v41 = vmul.f32 0.5, %v3481_v63  ;;  %v3443_v44 = vadd.f32 %v3442_v4, %v14753_v20 }
 0x819   : > { %v4451_v45 = vmul.f32 %v8584_v8, %v11620_v0  ;;  %v11683_v36 = vadd.f32 1.0, %v4488_v50  ;;  %v5077_v33 = vmul.f32 %v5076_v43, %v11508_v58  ;;  %v5115_v51 = vmul.f32 %v5114_v61, %v11546_v3  ;;  %v3565_v61 = vpop.f32.mrf.mxu3 }
 0x81a   : > { %14804 = vst [vmem:[#allocation68_spill] sm:$0xff] %v11676_v48  ;;  %v11687_v26 = vmin.f32 %v5707_v49, 16.0  ;;  %v3525_v54 = vadd.f32 %v3524_v60, %v10938_v29  ;;  %v11690_v35 = vmul.f32 0.70710677, %v3563_v30  ;;  %v4763_v63 = vadd.f32 0.014752088, %v4762_v17 }
 0x81b   : > { %14805 = vst [vmem:[#allocation72_spill] sm:$0xff] %v11679_v41  ;;  %v4452_v57 = vsub.f32 1.0, %v4451_v45  ;;  %8585 = vrcp.f32 %v11683_v36  ;;  %v11694_v28 = vmul.f32 %v4798_v55, %v11447_v7  ;;  %v5392_v4 = vadd.f32 0.0036580483, %v5391_v34 }
 0x81c   : > { %v5430_v50 = vadd.f32 0.00028619796, %v5429_v18  ;;  %v4461_v43 = vand.u32 2147483648, %v11620_v0  ;;  %v11697_v23 = vadd.f32 %v3483_v11, %v3443_v44  ;;  %vm4456_vm13 = vweird.f32 %v8584_v8 }
 0x81d   : > { %v4453_v49 = vmul.f32 %v8584_v8, %v4452_v57  ;;  %v4459_v60 = vand.u32 2147483647, %v11620_v0  ;;  %v11700_v39 = vadd.f32 1.1283791, %v5077_v33  ;;  %v5116_v45 = vadd.f32 0.18741608, %v5115_v51 }
 0x81e   : > { %v5709_v17 = vmul.f32 2.1237322e-06, %v11687_v26  ;;  %v11703_v41 = vadd.f32 %v3565_v61, %v3525_v54  ;;  %v5747_v7 = vmul.f32 %v11690_v35, %v11690_v35  ;;  %vm4455_vm14 = vweird.f32 %v11620_v0 }
 0x81f   : > { %v4454_v55 = vadd.f32 %v8584_v8, %v4453_v49  ;;  %v4764_v11 = vmul.f32 %v4763_v63, %v11461_v62  ;;  %v5393_v34 = vmul.f32 %v5392_v4, %v11612_v46  ;;  %v5431_v18 = vmul.f32 %v5430_v50, %v11653_v9  ;;  %vm4457_vm15 = vmor %vm4455_vm14, %vm4456_vm13 }
 0x820   : > { %v11711_v44 = vmul.f32 0.5, %v3563_v30  ;;  %v4462_v33 = vor.u32 1.1754944e-38, %v4461_v43  ;;  %vm4460_vm0 = vcmp.eq.f32.partialorder %v4459_v60, 8.507059e+37  ;;  %v4800_v61 = vmul.f32 3.8918573e-05, %v11484_v2 }
 0x821   : > { %v8586_v51 = vpop.eup %8585  ;;  %v4458_v57 = vsel %vm4457_vm15, %v8584_v8, %v4454_v55  ;;  %v4765_v54 = vadd.f32 0.112945676, %v4764_v11  ;;  %v5710_v48 = vadd.f32 0.00028619796, %v5709_v17  ;;  %v11715_v49 = vmul.f32 0.70710677, %v11697_v23 }
 0x822   : > { %14806 = vst [vmem:[#allocation78_spill] sm:$0xff] %v11711_v44  ;;  %v4463_v0 = vsel %vm4460_vm0, %v4462_v33, %v4458_v57  ;;  %v4491_v63 = vmul.f32 %v8586_v51, %v11683_v36  ;;  %v5117_v4 = vmul.f32 %v5116_v45, %v11546_v3  ;;  %v11719_v50 = vmin.f32 %v5747_v7, 16.0 }
 0x823   : > { %v11722_v30 = vmul.f32 0.70710677, %v11703_v41  ;;  %v4464_v8 = vmul.f32 %v4463_v0, %v11656_v52  ;;  %v5394_v43 = vadd.f32 0.05243302, %v5393_v34  ;;  %v5432_v60 = vadd.f32 0.0036580483, %v5431_v18  ;;  %v3445_v0 = vpop.f32.mrf.mxu0 }
 0x824   : > { %v4492_v55 = vsub.f32 1.0, %v4491_v63  ;;  %v4766_v17 = vmul.f32 %v4765_v54, %v11461_v62  ;;  %v4501_v44 = vand.u32 2147483648, %v11683_v36  ;;  %v4801_v33 = vadd.f32 0.001143296, %v4800_v61 }
 0x825   : > { %v8194_v11 = vclamps-f32 %v4464_v8, 1.0  ;;  %v8208_v57 = vclamps-f32 %v11628_v27, 1.0  ;;  %vm4496_vm1 = vweird.f32 %v8586_v51  ;;  %v4499_v45 = vand.u32 2147483647, %v11683_v36 }
 0x826   : > { %v4493_v21 = vmul.f32 %v8586_v51, %v4492_v55  ;;  %v4767_v7 = vadd.f32 0.4994258, %v4766_v17  ;;  %v5711_v22 = vmul.f32 %v5710_v48, %v11687_v26  ;;  %v6027_v52 = vmul.f32 %v11715_v49, %v11715_v49 }
 0x827   : > { %v6597_v34 = vadd.f32 1.0, %v8194_v11  ;;  %v4802_v18 = vmul.f32 %v4801_v33, %v11484_v2  ;;  %v5749_v54 = vmul.f32 2.1237322e-06, %v11719_v50  ;;  %vm4495_vm2 = vweird.f32 %v11683_v36 }
 0x828   : > { %v4494_v63 = vadd.f32 %v8586_v51, %v4493_v21  ;;  %v4768_v27 = vmul.f32 %v4767_v7, %v11461_v62  ;;  %vm4497_vm3 = vmor %vm4495_vm2, %vm4496_vm1  ;;  %v4502_v8 = vor.u32 1.1754944e-38, %v4501_v44  ;;  %v6611_v55 = vadd.f32 1.0, %v8208_v57 }
 0x829   : > { %v11737_v61 = vmul.f32 %v6597_v34, %v11569_v53  ;;  %v4803_v48 = vadd.f32 0.014752088, %v4802_v18  ;;  %v6067_v17 = vmul.f32 %v11722_v30, %v11722_v30  ;;  %vm4500_vm4 = vcmp.eq.f32.partialorder %v4499_v45, 8.507059e+37  ;;  %v14808_v53 = vld [vmem:[#allocation73_spill] sm:$0xff] }
 0x82a   : > { %v4498_v11 = vsel %vm4497_vm3, %v8586_v51, %v4494_v63  ;;  %v11741_v33 = vadd.f32 1.0, %v4768_v27  ;;  %v3446_v21 = vadd.f32 %v3445_v0, %v14753_v20  ;;  %v11747_v7 = vmul.f32 %v6611_v55, %v14808_v53 }
 0x82b   : > { %14807 = vst [vmem:[#allocation82_spill] sm:$0xff] %v11737_v61  ;;  %7078 = vmatmul.f32.gmra.mxu2 %v11737_v61  ;;  %v4503_v36 = vsel %vm4500_vm4, %v4502_v8, %v4498_v11  ;;  %v4804_v62 = vmul.f32 %v4803_v48, %v11484_v2  ;;  %v5395_v44 = vmul.f32 %v5394_v43, %v11612_v46  ;;  %v5712_v57 = vadd.f32 0.0036580483, %v5711_v22  ;;  %v3486_v22 = vpop.f32.mrf.mxu1 }
 0x82c   : > { %14809 = vst [vmem:[#allocation83_spill] sm:$0xff] %v11747_v7  ;;  %v4504_v34 = vmul.f32 %v4503_v36, %v11665_v47  ;;  %8587 = vrcp.f32 %v11741_v33  ;;  %v11754_v51 = vmul.f32 %v11700_v39, %v11470_v19  ;;  %v5118_v20 = vadd.f32 1.1283791, %v5117_v4  ;;  %7002 = vmatmul.f32.gmra.mxu0 %v11747_v7  ;;  %v14810_v47 = vld [vmem:[#allocation71_spill] sm:$0xff] }
 0x82d   : > { %v11757_v45 = vmul.f32 0.5, %v11697_v23  ;;  %v4805_v18 = vadd.f32 0.112945676, %v4804_v62  ;;  %v5433_v0 = vmul.f32 %v5432_v60, %v11653_v9  ;;  %v11761_v63 = vmin.f32 %v6027_v52, 16.0 }
 0x82e   : > { %v8195_v43 = vclamps-f32 %v4504_v34, 1.0  ;;  %v5040_v27 = vmul.f32 3.8918573e-05, %v14810_v47  ;;  %v5750_v8 = vadd.f32 0.00028619796, %v5749_v54  ;;  %v11764_v48 = vmin.f32 %v6067_v17, 16.0 }
 0x82f   : > { %v3487_v39 = vadd.f32 %v3486_v22, %v3446_v21  ;;  %v4806_v19 = vmul.f32 %v4805_v18, %v11484_v2  ;;  %v5396_v4 = vadd.f32 0.18741608, %v5395_v44  ;;  %v5713_v23 = vmul.f32 %v5712_v57, %v11687_v26 }
 0x830   : > { %v6598_v55 = vadd.f32 1.0, %v8195_v43  ;;  %v5041_v11 = vadd.f32 0.001143296, %v5040_v27  ;;  %v11769_v36 = vmul.f32 %v5118_v20, %v11511_v10  ;;  %v11772_v60 = vmul.f32 0.5, %v11703_v41 }
 0x831   : > { %v4807_v52 = vadd.f32 0.4994258, %v4806_v19  ;;  %v5320_v62 = vmul.f32 3.8918573e-05, %v14766_v56  ;;  %v5434_v17 = vadd.f32 0.05243302, %v5433_v0  ;;  %v5751_v57 = vmul.f32 %v5750_v8, %v11719_v50 }
 0x832   : > { %v8588_v54 = vpop.eup %8587  ;;  %v6029_v21 = vmul.f32 2.1237322e-06, %v11761_v63  ;;  %v11777_v53 = vmul.f32 %v6598_v55, %v11623_v25  ;;  %v5042_v44 = vmul.f32 %v5041_v11, %v14810_v47  ;;  %v6069_v10 = vmul.f32 2.1237322e-06, %v11764_v48  ;;  %v3527_v25 = vpop.f32.mrf.mxu2 }
 0x833   : > { %v4771_v34 = vmul.f32 %v8588_v54, %v11741_v33  ;;  %v4808_v41 = vmul.f32 %v4807_v52, %v11484_v2  ;;  %v5397_v20 = vmul.f32 %v5396_v4, %v11612_v46  ;;  %v5714_v18 = vadd.f32 0.05243302, %v5713_v23 }
 0x834   : > { %14811 = vst [vmem:[#allocation86_spill] sm:$0xff] %v11777_v53  ;;  %v11785_v22 = vmul.f32 0.5, %v3487_v39  ;;  %v11787_v0 = vmul.f32 0.70710677, %v3487_v39  ;;  %7119 = vmatmul.f32.gmra.mxu3 %v11777_v53  ;;  %v5043_v8 = vadd.f32 0.014752088, %v5042_v44  ;;  %v5435_v55 = vmul.f32 %v5434_v17, %v11653_v9 }
 0x835   : > { %v4772_v43 = vsub.f32 1.0, %v4771_v34  ;;  %v11790_v27 = vadd.f32 1.0, %v4808_v41  ;;  %v5321_v19 = vadd.f32 0.001143296, %v5320_v62  ;;  %v6030_v11 = vadd.f32 0.00028619796, %v6029_v21 }
 0x836   : > { %14812 = vst [vmem:[#allocation87_spill] sm:$0xff] %v11785_v22  ;;  %v4779_v2 = vand.u32 2147483647, %v11741_v33  ;;  %v4781_v4 = vand.u32 2147483648, %v11741_v33  ;;  %vm4776_vm5 = vweird.f32 %v8588_v54  ;;  %v5360_v39 = vmul.f32 3.8918573e-05, %v14774_v16 }
 0x837   : > { %14813 = vst [vmem:[#allocation63_spill] sm:$0xff] %v11787_v0  ;;  %v4773_v23 = vmul.f32 %v8588_v54, %v4772_v43  ;;  %8589 = vrcp.f32 %v11790_v27  ;;  %v5752_v52 = vadd.f32 0.0036580483, %v5751_v57  ;;  %v6070_v53 = vadd.f32 0.00028619796, %v6069_v10 }
 0x838   : > { %v6347_v34 = vmul.f32 %v11787_v0, %v11787_v0  ;;  %v3528_v62 = vadd.f32 %v3527_v25, %v10938_v29  ;;  %vm4775_vm6 = vweird.f32 %v11741_v33  ;;  %v5044_v17 = vmul.f32 %v5043_v8, %v14810_v47 }
 0x839   : > { %v4774_v44 = vadd.f32 %v8588_v54, %v4773_v23  ;;  %v5322_v21 = vmul.f32 %v5321_v19, %v14766_v56  ;;  %v5398_v41 = vadd.f32 1.1283791, %v5397_v20  ;;  %v5436_v43 = vadd.f32 0.18741608, %v5435_v55  ;;  %vm4777_vm7 = vmor %vm4775_vm6, %vm4776_vm5  ;;  %v3568_v19 = vpop.f32.mrf.mxu3 }
 0x83a   : > { %vm4780_vm8 = vcmp.eq.f32.partialorder %v4779_v2, 8.507059e+37  ;;  %v4782_v61 = vor.u32 1.1754944e-38, %v4781_v4  ;;  %v5045_v57 = vadd.f32 0.112945676, %v5044_v17  ;;  %v5361_v22 = vadd.f32 0.001143296, %v5360_v39 }
 0x83b   : > { %v4778_v7 = vsel %vm4777_vm7, %v8588_v54, %v4774_v44  ;;  %v5323_v10 = vadd.f32 0.014752088, %v5322_v21  ;;  %v5715_v0 = vmul.f32 %v5714_v18, %v11687_v26  ;;  %v5753_v29 = vmul.f32 %v5752_v52, %v11719_v50 }
 0x83c   : > { %v6031_v25 = vmul.f32 %v6030_v11, %v11761_v63  ;;  %v4783_v33 = vsel %vm4780_vm8, %v4782_v61, %v4778_v7  ;;  %v6071_v8 = vmul.f32 %v6070_v53, %v11764_v48  ;;  %v5046_v55 = vmul.f32 %v5045_v57, %v14810_v47 }
 0x83d   : > { %v8590_v23 = vpop.eup %8589  ;;  %v4784_v20 = vmul.f32 %v4783_v33, %v11670_v24  ;;  %v5324_v54 = vmul.f32 %v5323_v10, %v14766_v56  ;;  %v11810_v2 = vmin.f32 %v6347_v34, 16.0  ;;  %v3569_v4 = vadd.f32 %v3568_v19, %v3528_v62 }
 0x83e   : > { %v4811_v18 = vmul.f32 %v8590_v23, %v11790_v27  ;;  %v5640_v39 = vmul.f32 3.8918573e-05, %v14776_v42  ;;  %v5047_v11 = vadd.f32 0.4994258, %v5046_v55  ;;  %v5080_v61 = vmul.f32 3.8918573e-05, %v11508_v58 }
 0x83f   : > { %v8202_v52 = vclamps-f32 %v4784_v20, 1.0  ;;  %v5362_v7 = vmul.f32 %v5361_v22, %v14774_v16  ;;  %v5437_v53 = vmul.f32 %v5436_v43, %v11653_v9  ;;  %v4819_v44 = vand.u32 2147483647, %v11790_v27 }
 0x840   : > { %v4812_v24 = vsub.f32 1.0, %v4811_v18  ;;  %v5325_v17 = vadd.f32 0.112945676, %v5324_v54  ;;  %v4821_v34 = vand.u32 2147483648, %v11790_v27  ;;  %v5048_v62 = vmul.f32 %v5047_v11, %v14810_v47 }
 0x841   : > { %v6605_v21 = vadd.f32 1.0, %v8202_v52  ;;  %v5081_v57 = vadd.f32 0.001143296, %v5080_v61  ;;  %vm4816_vm9 = vweird.f32 %v8590_v23  ;;  %v5641_v19 = vadd.f32 0.001143296, %v5640_v39 }
 0x842   : > { %v4813_v10 = vmul.f32 %v8590_v23, %v4812_v24  ;;  %v5326_v33 = vmul.f32 %v5325_v17, %v14766_v56  ;;  %v11824_v22 = vadd.f32 1.0, %v5048_v62  ;;  %v5363_v55 = vadd.f32 0.014752088, %v5362_v7 }
 0x843   : > { %v11822_v20 = vmul.f32 %v6605_v21, %v11631_v14  ;;  %v5082_v43 = vmul.f32 %v5081_v57, %v11508_v58  ;;  %v5716_v54 = vadd.f32 0.18741608, %v5715_v0  ;;  %vm4815_vm10 = vweird.f32 %v11790_v27 }
 0x844   : > { %v4814_v18 = vadd.f32 %v8590_v23, %v4813_v10  ;;  %v5327_v52 = vadd.f32 0.4994258, %v5326_v33  ;;  %v5754_v47 = vadd.f32 0.05243302, %v5753_v29  ;;  %v6032_v11 = vadd.f32 0.0036580483, %v6031_v25  ;;  %vm4817_vm11 = vmor %vm4815_vm10, %vm4816_vm9 }
 0x845   : > { %14814 = vst [vmem:[#allocation73_spill] sm:$0xff] %v11822_v20  ;;  %7081 = vmatmul.f32.gmra.mxu2 %v11822_v20  ;;  %v4822_v61 = vor.u32 1.1754944e-38, %v4821_v34  ;;  %8591 = vrcp.f32 %v11824_v22  ;;  %v6072_v14 = vadd.f32 0.0036580483, %v6071_v8  ;;  %vm4820_vm12 = vcmp.eq.f32.partialorder %v4819_v44, 8.507059e+37 }
 0x846   : > { %v4818_v39 = vsel %vm4817_vm11, %v8590_v23, %v4814_v18  ;;  %v5083_v24 = vadd.f32 0.014752088, %v5082_v43  ;;  %v5328_v7 = vmul.f32 %v5327_v52, %v14766_v56  ;;  %v5364_v0 = vmul.f32 %v5363_v55, %v14774_v16 }
 0x847   : > { %v4823_v17 = vsel %vm4820_vm12, %v4822_v61, %v4818_v39  ;;  %v5642_v27 = vmul.f32 %v5641_v19, %v14776_v42  ;;  %v11834_v29 = vmul.f32 %v5398_v41, %v11574_v15  ;;  %v6349_v25 = vmul.f32 2.1237322e-06, %v11810_v2  ;;  %v8726_v61 = vld [vmem:[%s14683_s4] sm:$0xff] }
 0x848   : > { %v4824_v21 = vmul.f32 %v4823_v17, %v11694_v28  ;;  %v5084_v34 = vmul.f32 %v5083_v24, %v11508_v58  ;;  %v5438_v8 = vadd.f32 1.1283791, %v5437_v53  ;;  %v5717_v23 = vmul.f32 %v5716_v54, %v11687_v26 }
 0x849   : > { %v6033_v44 = vmul.f32 %v6032_v11, %v11761_v63  ;;  %v11841_v62 = vadd.f32 1.0, %v5328_v7  ;;  %v5755_v56 = vmul.f32 %v5754_v47, %v11719_v50  ;;  %v11844_v57 = vmul.f32 0.5, %v3569_v4 }
 0x84a   : > { %v8203_v10 = vclamps-f32 %v4824_v21, 1.0  ;;  %v5085_v15 = vadd.f32 0.112945676, %v5084_v34  ;;  %v6073_v33 = vmul.f32 %v6072_v14, %v11764_v48  ;;  %v5365_v28 = vadd.f32 0.112945676, %v5364_v0 }
 0x84b   : > { %14815 = vst [vmem:[#allocation71_spill] sm:$0xff] %v11844_v57  ;;  %v8592_v41 = vpop.eup %8591  ;;  %8593 = vrcp.f32 %v11841_v62  ;;  %v5643_v19 = vadd.f32 0.014752088, %v5642_v27  ;;  %v6350_v53 = vadd.f32 0.00028619796, %v6349_v25  ;;  %v11852_v18 = vmul.f32 %v5438_v8, %v11615_v13 }
 0x84c   : > { %v11848_v43 = vmul.f32 0.70710677, %v3569_v4  ;;  %v6606_v55 = vadd.f32 1.0, %v8203_v10  ;;  %v5051_v54 = vmul.f32 %v8592_v41, %v11824_v22  ;;  %v5718_v52 = vadd.f32 1.1283791, %v5717_v23 }
 0x84d   : > { %v6034_v47 = vadd.f32 0.05243302, %v6033_v44  ;;  %v5086_v11 = vmul.f32 %v5085_v15, %v11508_v58  ;;  %v11858_v14 = vperm.slane %v8726_v61, 4  ;;  %v5061_v24 = vand.u32 2147483648, %v11824_v22 }
 0x84e   : > { %v11861_v39 = vmul.f32 %v6606_v55, %v11646_v1  ;;  %v5052_v4 = vsub.f32 1.0, %v5051_v54  ;;  %v5120_v13 = vmul.f32 3.8918573e-05, %v11546_v3  ;;  %v5366_v7 = vmul.f32 %v5365_v28, %v14774_v16 }
 0x84f   : > { %v5087_v17 = vadd.f32 0.4994258, %v5086_v11  ;;  %v5644_v0 = vmul.f32 %v5643_v19, %v14776_v42  ;;  %v5756_v27 = vadd.f32 0.18741608, %v5755_v56  ;;  %vm5056_vm13 = vweird.f32 %v8592_v41 }
 0x850   : > { %14816 = vst [vmem:[#allocation98_spill] sm:$0xff] %v11861_v39  ;;  %7122 = vmatmul.f32.gmra.mxu3 %v11861_v39  ;;  %v5053_v25 = vmul.f32 %v8592_v41, %v5052_v4  ;;  %v5059_v21 = vand.u32 2147483647, %v11824_v22  ;;  %v5121_v8 = vadd.f32 0.001143296, %v5120_v13  ;;  %vm5055_vm14 = vweird.f32 %v11824_v22 }
 0x851   : > { %v8594_v34 = vpop.eup %8593  ;;  %v5088_v1 = vmul.f32 %v5087_v17, %v11508_v58  ;;  %v5367_v23 = vadd.f32 0.4994258, %v5366_v7  ;;  %v5645_v44 = vadd.f32 0.112945676, %v5644_v0  ;;  %v5062_v15 = vor.u32 1.1754944e-38, %v5061_v24  ;;  %vm5057_vm15 = vmor %vm5055_vm14, %vm5056_vm13 }
 0x852   : > { %v5054_v10 = vadd.f32 %v8592_v41, %v5053_v25  ;;  %v5331_v28 = vmul.f32 %v8594_v34, %v11841_v62  ;;  %v5122_v19 = vmul.f32 %v5121_v8, %v11546_v3  ;;  %v6074_v11 = vadd.f32 0.05243302, %v6073_v33 }
 0x853   : > { %v11872_v56 = vadd.f32 1.0, %v5088_v1  ;;  %v5368_v55 = vmul.f32 %v5367_v23, %v14774_v16  ;;  %v5646_v54 = vmul.f32 %v5645_v44, %v14776_v42  ;;  %vm5060_vm0 = vcmp.eq.f32.partialorder %v5059_v21, 8.507059e+37  ;;  %v3588_v21 = vpop.f32.mrf.mxu0 }
 0x854   : > { %v5058_v58 = vsel %vm5057_vm15, %v8592_v41, %v5054_v10  ;;  %v5332_v4 = vsub.f32 1.0, %v5331_v28  ;;  %v5339_v22 = vand.u32 2147483647, %v11841_v62  ;;  %v5341_v24 = vand.u32 2147483648, %v11841_v62 }
 0x855   : > { %v5063_v17 = vsel %vm5060_vm0, %v5062_v15, %v5058_v58  ;;  %8595 = vrcp.f32 %v11872_v56  ;;  %v5123_v7 = vadd.f32 0.014752088, %v5122_v19  ;;  %vm5336_vm1 = vweird.f32 %v8594_v34 }
 0x856   : > { %v5064_v13 = vmul.f32 %v5063_v17, %v11506_v40  ;;  %v5333_v0 = vmul.f32 %v8594_v34, %v5332_v4  ;;  %v6351_v16 = vmul.f32 %v6350_v53, %v11810_v2  ;;  %v6387_v33 = vmul.f32 %v11848_v43, %v11848_v43 }
 0x857   : > { %v11884_v41 = vadd.f32 1.0, %v5368_v55  ;;  %v5647_v25 = vadd.f32 0.4994258, %v5646_v54  ;;  %v5124_v8 = vmul.f32 %v5123_v7, %v11546_v3  ;;  %vm5335_vm2 = vweird.f32 %v11841_v62 }
 0x858   : > { %v8209_v1 = vclamps-f32 %v5064_v13, 1.0  ;;  %v5334_v23 = vadd.f32 %v8594_v34, %v5333_v0  ;;  %v11889_v40 = vmul.f32 %v5718_v52, %v11642_v5  ;;  %vm5337_vm3 = vmor %vm5335_vm2, %vm5336_vm1  ;;  %vm5340_vm4 = vcmp.eq.f32.partialorder %v5339_v22, 8.507059e+37  ;;  %v14817_v52 = vld [vmem:[#allocation76_spill] sm:$0xff] }
 0x859   : > { %v5342_v44 = vor.u32 1.1754944e-38, %v5341_v24  ;;  %8597 = vrcp.f32 %v11884_v41  ;;  %v5125_v10 = vadd.f32 0.112945676, %v5124_v8  ;;  %v5648_v28 = vmul.f32 %v5647_v25, %v14776_v42 }
 0x85a   : > { %v6612_v53 = vadd.f32 1.0, %v8209_v1  ;;  %v5338_v15 = vsel %vm5337_vm3, %v8594_v34, %v5334_v23  ;;  %v6035_v55 = vmul.f32 %v6034_v47, %v11761_v63  ;;  %v3589_v54 = vadd.f32 %v3588_v21, %v11858_v14 }
 0x85b   : > { %v8596_v19 = vpop.eup %8595  ;;  %v11895_v58 = vperm.slane %v8726_v61, 5  ;;  %v5343_v62 = vsel %vm5340_vm4, %v5342_v44, %v5338_v15  ;;  %v11898_v5 = vmul.f32 %v5756_v27, %v11719_v50  ;;  %v5126_v34 = vmul.f32 %v5125_v10, %v11546_v3 }
 0x85c   : > { %v11901_v4 = vmul.f32 %v6612_v53, %v14817_v52  ;;  %v5091_v17 = vmul.f32 %v8596_v19, %v11872_v56  ;;  %v5344_v42 = vmul.f32 %v5343_v62, %v11516_v12  ;;  %v5400_v22 = vmul.f32 3.8918573e-05, %v11612_v46  ;;  %v3670_v53 = vpop.f32.mrf.mxu2 }
 0x85d   : > { %v11907_v47 = vadd.f32 1.0, %v5648_v28  ;;  %v5680_v61 = vmul.f32 3.8918573e-05, %v11058_v6  ;;  %v11911_v24 = vmul.f32 %v6074_v11, %v11764_v48  ;;  %v5099_v13 = vand.u32 2147483647, %v11872_v56  ;;  %v3629_v28 = vpop.f32.mrf.mxu1 }
 0x85e   : > { %14818 = vst [vmem:[#allocation76_spill] sm:$0xff] %v11901_v4  ;;  %7043 = vmatmul.f32.gmra.mxu1 %v11901_v4  ;;  %v5092_v27 = vsub.f32 1.0, %v5091_v17  ;;  %v5127_v7 = vadd.f32 0.4994258, %v5126_v34  ;;  %v5101_v25 = vand.u32 2147483648, %v11872_v56  ;;  %v8216_v12 = vclamps-f32 %v5344_v42, 1.0 }
 0x85f   : > { %v11915_v0 = vpop.eup %8597  ;;  %v5401_v21 = vadd.f32 0.001143296, %v5400_v22  ;;  %8599 = vrcp.f32 %v11907_v47  ;;  %vm5096_vm5 = vweird.f32 %v8596_v19  ;;  %v11922_v23 = vadd.f32 0.0036580483, %v6351_v16  ;;  %v14819_v42 = vld [vmem:[#allocation79_spill] sm:$0xff] }
 0x860   : > { %v5093_v1 = vmul.f32 %v8596_v19, %v5092_v27  ;;  %v5128_v8 = vmul.f32 %v5127_v7, %v11546_v3  ;;  %v5371_v11 = vmul.f32 %v11915_v0, %v11884_v41  ;;  %v11924_v44 = vmin.f32 %v6387_v33, 16.0 }
 0x861   : > { %v6619_v10 = vadd.f32 1.0, %v8216_v12  ;;  %v5681_v15 = vadd.f32 0.001143296, %v5680_v61  ;;  %vm5095_vm6 = vweird.f32 %v11872_v56  ;;  %v5402_v17 = vmul.f32 %v5401_v21, %v11612_v46 }
 0x862   : > { %v5094_v62 = vadd.f32 %v8596_v19, %v5093_v1  ;;  %v11927_v52 = vadd.f32 1.0, %v5128_v8  ;;  %v11930_v34 = vadd.f32 %v3629_v28, %v3589_v54  ;;  %vm5097_vm7 = vmor %vm5095_vm6, %vm5096_vm5  ;;  %v5102_v3 = vor.u32 1.1754944e-38, %v5101_v25 }
 0x863   : > { %v11933_v16 = vmul.f32 %v6619_v10, %v14819_v42  ;;  %v5372_v33 = vsub.f32 1.0, %v5371_v11  ;;  %v3671_v22 = vadd.f32 %v3670_v53, %v11895_v58  ;;  %vm5100_vm8 = vcmp.eq.f32.partialorder %v5099_v13, 8.507059e+37  ;;  %v3711_v53 = vpop.f32.mrf.mxu3 }
 0x864   : > { %v5098_v27 = vsel %vm5097_vm7, %v8596_v19, %v5094_v62  ;;  %8601 = vrcp.f32 %v11927_v52  ;;  %v6389_v56 = vmul.f32 2.1237322e-06, %v11924_v44  ;;  %v5381_v54 = vand.u32 2147483648, %v11884_v41 }
 0x865   : > { %14820 = vst [vmem:[#allocation79_spill] sm:$0xff] %v11933_v16  ;;  %v11937_v61 = vpop.eup %8599  ;;  %v5103_v7 = vsel %vm5100_vm8, %v5102_v3, %v5098_v27  ;;  %7005 = vmatmul.f32.gmra.mxu0 %v11933_v16  ;;  %v5682_v25 = vmul.f32 %v5681_v15, %v11058_v6  ;;  %v5373_v21 = vmul.f32 %v11915_v0, %v5372_v33  ;;  %vm5376_vm9 = vweird.f32 %v11915_v0 }
 0x866   : > { %v5104_v12 = vmul.f32 %v5103_v7, %v11754_v51  ;;  %v5403_v19 = vadd.f32 0.014752088, %v5402_v17  ;;  %v11946_v13 = vadd.f32 0.18741608, %v6035_v55  ;;  %v11949_v1 = vmul.f32 0.70710677, %v11930_v34 }
 0x867   : > { %v5379_v8 = vand.u32 2147483647, %v11884_v41  ;;  %v5651_v11 = vmul.f32 %v11937_v61, %v11907_v47  ;;  %v5374_v15 = vadd.f32 %v11915_v0, %v5373_v21  ;;  %vm5375_vm10 = vweird.f32 %v11884_v41 }
 0x868   : > { %v8210_v10 = vclamps-f32 %v5104_v12, 1.0  ;;  %v5404_v51 = vmul.f32 %v5403_v19, %v11612_v46  ;;  %v11957_v28 = vadd.f32 0.00028619796, %v6389_v56  ;;  %v11959_v55 = vadd.f32 %v3711_v53, %v3671_v22  ;;  %vm5377_vm11 = vmor %vm5375_vm10, %vm5376_vm9 }
 0x869   : > { %v5652_v62 = vsub.f32 1.0, %v5651_v11  ;;  %v5683_v17 = vadd.f32 0.014752088, %v5682_v25  ;;  %v5378_v33 = vsel %vm5377_vm11, %v11915_v0, %v5374_v15  ;;  %v5382_v27 = vor.u32 1.1754944e-38, %v5381_v54 }
 0x86a   : > { %v8602_v3 = vpop.eup %8601  ;;  %v6613_v42 = vadd.f32 1.0, %v8210_v10  ;;  %v5405_v7 = vadd.f32 0.112945676, %v5404_v51  ;;  %v4187_v12 = vmul.f32 %v11949_v1, %v11949_v1  ;;  %vm5380_vm12 = vcmp.eq.f32.partialorder %v5379_v8, 8.507059e+37 }
 0x86b   : > { %v5131_v41 = vmul.f32 %v8602_v3, %v11927_v52  ;;  %v5960_v56 = vmul.f32 3.8918573e-05, %v14768_v32  ;;  %v5383_v21 = vsel %vm5380_vm12, %v5382_v27, %v5378_v33  ;;  %v5653_v19 = vmul.f32 %v11937_v61, %v5652_v62 }
 0x86c   : > { %v11967_v22 = vmul.f32 %v6613_v42, %v11651_v37  ;;  %v5406_v25 = vmul.f32 %v5405_v7, %v11612_v46  ;;  %v5139_v0 = vand.u32 2147483647, %v11927_v52  ;;  %v5384_v54 = vmul.f32 %v5383_v21, %v11521_v31  ;;  %v3591_v21 = vpop.f32.mrf.mxu0 }
 0x86d   : > { %v5132_v11 = vsub.f32 1.0, %v5131_v41  ;;  %v5684_v53 = vmul.f32 %v5683_v17, %v11058_v6  ;;  %v5141_v8 = vand.u32 2147483648, %v11927_v52  ;;  %v5440_v37 = vmul.f32 3.8918573e-05, %v11653_v9 }
 0x86e   : > { %14821 = vst [vmem:[#allocation99_spill] sm:$0xff] %v11967_v22  ;;  %7084 = vmatmul.f32.gmra.mxu2 %v11967_v22  ;;  %v5407_v10 = vadd.f32 0.4994258, %v5406_v25  ;;  %vm5656_vm13 = vweird.f32 %v11937_v61  ;;  %vm5136_vm14 = vweird.f32 %v8602_v3  ;;  %v8217_v51 = vclamps-f32 %v5384_v54, 1.0 }
 0x86f   : > { %v5133_v15 = vmul.f32 %v8602_v3, %v5132_v11  ;;  %v5654_v62 = vadd.f32 %v11937_v61, %v5653_v19  ;;  %v5441_v33 = vadd.f32 0.001143296, %v5440_v37  ;;  %vm5655_vm15 = vweird.f32 %v11907_v47 }
 0x870   : > { %v5408_v42 = vmul.f32 %v5407_v10, %v11612_v46  ;;  %v5661_v31 = vand.u32 2147483648, %v11907_v47  ;;  %vm5135_vm0 = vweird.f32 %v11927_v52  ;;  %v6620_v27 = vadd.f32 1.0, %v8217_v51  ;;  %vm11983_vm1 = vmor %vm5655_vm15, %vm5656_vm13  ;;  %v14824_v10 = vld [vmem:[#allocation88_spill] sm:$0xff] }
 0x871   : > { %v5134_v17 = vadd.f32 %v8602_v3, %v5133_v15  ;;  %v5659_v41 = vand.u32 2147483647, %v11907_v47  ;;  %vm5137_vm2 = vmor %vm5135_vm0, %vm5136_vm14  ;;  %v5142_v25 = vor.u32 1.1754944e-38, %v5141_v8  ;;  %v5442_v46 = vmul.f32 %v5441_v33, %v11653_v9 }
 0x872   : > { %v11988_v19 = vadd.f32 1.0, %v5408_v42  ;;  %v5685_v11 = vadd.f32 0.112945676, %v5684_v53  ;;  %vm5140_vm3 = vcmp.eq.f32.partialorder %v5139_v0, 8.507059e+37  ;;  %v11992_v37 = vmul.f32 %v6620_v27, %v14824_v10 }
 0x873   : > { %v5138_v54 = vsel %vm5137_vm2, %v8602_v3, %v5134_v17  ;;  %v5658_v52 = vsel %vm11983_vm1, %v11937_v61, %v5654_v62  ;;  %v5662_v47 = vor.u32 1.1754944e-38, %v5661_v31  ;;  %v5961_v51 = vadd.f32 0.001143296, %v5960_v56 }
 0x874   : > { %14825 = vst [vmem:[#allocation88_spill] sm:$0xff] %v11992_v37  ;;  %v5143_v15 = vsel %vm5140_vm3, %v5142_v25, %v5138_v54  ;;  %8603 = vrcp.f32 %v11988_v19  ;;  %v5758_v8 = vadd.f32 1.1283791, %v11898_v5  ;;  %v3592_v42 = vadd.f32 %v3591_v21, %v11858_v14  ;;  %7046 = vmatmul.f32.gmra.mxu1 %v11992_v37 }
 0x875   : > { %v5144_v53 = vmul.f32 %v5143_v15, %v11769_v36  ;;  %vm5660_vm4 = vcmp.eq.f32.partialorder %v5659_v41, 8.507059e+37  ;;  %v12003_v3 = vmul.f32 0.70710677, %v11959_v55  ;;  %v5443_v0 = vadd.f32 0.014752088, %v5442_v46 }
 0x876   : > { %v5663_v33 = vsel %vm5660_vm4, %v5662_v47, %v5658_v52  ;;  %v5686_v61 = vmul.f32 %v5685_v11, %v11058_v6  ;;  %v12007_v62 = vadd.f32 0.18741608, %v11911_v24  ;;  %v6391_v5 = vmul.f32 %v11957_v28, %v11924_v44 }
 0x877   : > { %v12011_v56 = vmin.f32 %v4187_v12, 16.0  ;;  %v8211_v31 = vclamps-f32 %v5144_v53, 1.0  ;;  %v5444_v36 = vmul.f32 %v5443_v0, %v11653_v9  ;;  %v5664_v17 = vmul.f32 %v5663_v33, %v11524_v59  ;;  %v6873_v33 = vld [vmem:[#allocation22 + $0x4f0] sm:$0xff] }
 0x878   : > { %v5687_v27 = vadd.f32 0.4994258, %v5686_v61  ;;  %v5962_v7 = vmul.f32 %v5961_v51, %v14768_v32  ;;  %v12018_v41 = vmul.f32 %v11946_v13, %v11761_v63  ;;  %v6353_v24 = vmul.f32 %v11922_v23, %v11810_v2  ;;  %v6905_v61 = vld [vmem:[#allocation22 + $0x5f0] sm:$0xff]  ;;  %7141 = vmatpush.msra.mxu0 %v6873_v33  ;;  %v6899_v33 = vld [vmem:[#allocation22 + $0x5c0] sm:$0xff] }
 0x879   : > { %v12023_v21 = vmul.f32 0.5, %v11930_v34  ;;  %v6614_v28 = vadd.f32 1.0, %v8211_v31  ;;  %v4227_v25 = vmul.f32 %v12003_v3, %v12003_v3  ;;  %v5445_v59 = vadd.f32 0.112945676, %v5444_v36  ;;  %v3632_v34 = vpop.f32.mrf.mxu1  ;;  %7182 = vmatpush.msra.mxu1 %v6905_v61 }
 0x87a   : > { %v12025_v12 = vpop.eup %8603  ;;  %v8224_v46 = vclamps-f32 %v5664_v17, 1.0  ;;  %v5688_v11 = vmul.f32 %v5687_v27, %v11058_v6  ;;  %v6392_v54 = vadd.f32 0.0036580483, %v6391_v5  ;;  %v4189_v13 = vmul.f32 2.1237322e-06, %v12011_v56  ;;  %v6871_v17 = vld [vmem:[#allocation22 + $0x4e0] sm:$0xff] }
 0x87b   : > { %v12032_v10 = vmul.f32 %v6614_v28, %v11659_v38  ;;  %v5411_v23 = vmul.f32 %v12025_v12, %v11988_v19  ;;  %v5446_v52 = vmul.f32 %v5445_v59, %v11653_v9  ;;  %v5963_v51 = vadd.f32 0.014752088, %v5962_v7  ;;  %v6903_v27 = vld [vmem:[#allocation22 + $0x5e0] sm:$0xff]  ;;  %v6901_v7 = vld [vmem:[#allocation22 + $0x5d0] sm:$0xff]  ;;  %7142 = vmatpush.msra.mxu0 %v6871_v17 }
 0x87c   : > { %v6627_v15 = vadd.f32 1.0, %v8224_v46  ;;  %v12037_v47 = vadd.f32 1.0, %v5688_v11  ;;  %v12040_v53 = vmul.f32 %v5758_v8, %v11690_v35  ;;  %v4200_v6 = vmul.f32 3.8918573e-05, %v12011_v56  ;;  %v14827_v28 = vld [vmem:[#allocation90_spill] sm:$0xff]  ;;  %7183 = vmatpush.msra.mxu1 %v6903_v27 }
 0x87d   : > { %14826 = vst [vmem:[#allocation100_spill] sm:$0xff] %v12032_v10  ;;  %v12043_v0 = vadd.f32 %v3632_v34, %v3592_v42  ;;  %7125 = vmatmul.f32.gmra.mxu3 %v12032_v10  ;;  %v5412_v38 = vsub.f32 1.0, %v5411_v23  ;;  %v12046_v5 = vmin.f32 %v4227_v25, 16.0  ;;  %v5421_v31 = vand.u32 2147483648, %v11988_v19  ;;  %v6869_v42 = vld [vmem:[#allocation22 + $0x4d0] sm:$0xff] }
 0x87e   : > { %v5447_v36 = vadd.f32 0.4994258, %v5446_v52  ;;  %8605 = vrcp.f32 %v12037_v47  ;;  %vm5416_vm5 = vweird.f32 %v12025_v12  ;;  %v5419_v8 = vand.u32 2147483647, %v11988_v19  ;;  %7143 = vmatpush.msra.mxu0 %v6869_v42  ;;  %7184 = vmatpush.msra.mxu1 %v6901_v7 }
 0x87f   : > { %v5413_v35 = vmul.f32 %v12025_v12, %v5412_v38  ;;  %v12054_v25 = vmul.f32 %v6627_v15, %v14827_v28  ;;  %v6354_v59 = vadd.f32 0.05243302, %v6353_v24  ;;  %v5720_v11 = vmul.f32 3.8918573e-05, %v11687_v26  ;;  %v6867_v15 = vld [vmem:[#allocation22 + $0x4c0] sm:$0xff] }
 0x880   : > { %v5448_v46 = vmul.f32 %v5447_v36, %v11653_v9  ;;  %v5964_v23 = vmul.f32 %v5963_v51, %v14768_v32  ;;  %v6393_v34 = vmul.f32 %v6392_v54, %v11924_v44  ;;  %v12061_v52 = vmul.f32 0.70710677, %v12043_v0  ;;  %7144 = vmatpush.msra.mxu0 %v6867_v15  ;;  %7185 = vmatpush.msra.mxu1 %v6899_v33 }
 0x881   : > { %14828 = vst [vmem:[#allocation90_spill] sm:$0xff] %v12054_v25  ;;  %v5414_v38 = vadd.f32 %v12025_v12, %v5413_v35  ;;  %vm5415_vm6 = vweird.f32 %v11988_v19  ;;  %7008 = vmatmul.f32.gmra.mxu0 %v12054_v25  ;;  %v4190_v9 = vadd.f32 0.00028619796, %v4189_v13  ;;  %v4201_v24 = vadd.f32 0.001143296, %v4200_v6  ;;  %v6853_v25 = vld [vmem:[#allocation22 + $0x450] sm:$0xff] }
 0x882   : > { %vm5417_vm7 = vmor %vm5415_vm6, %vm5416_vm5  ;;  %v5422_v61 = vor.u32 1.1754944e-38, %v5421_v31  ;;  %v12068_v51 = vadd.f32 1.0, %v5448_v46  ;;  %v4229_v54 = vmul.f32 2.1237322e-06, %v12046_v5  ;;  %vm5420_vm8 = vcmp.eq.f32.partialorder %v5419_v8, 8.507059e+37 }
 0x883   : > { %v5418_v36 = vsel %vm5417_vm7, %v12025_v12, %v5414_v38  ;;  %v5721_v19 = vadd.f32 0.001143296, %v5720_v11  ;;  %v12074_v27 = vmul.f32 %v12007_v62, %v11764_v48  ;;  %v5965_v6 = vadd.f32 0.112945676, %v5964_v23 }
 0x884   : > { %v8606_v17 = vpop.eup %8605  ;;  %v5423_v13 = vsel %vm5420_vm8, %v5422_v61, %v5418_v36  ;;  %8607 = vrcp.f32 %v12068_v51  ;;  %v12078_v31 = vadd.f32 1.1283791, %v12018_v41  ;;  %v12081_v35 = vmul.f32 %v6354_v59, %v11810_v2  ;;  %v14829_v36 = vld [vmem:[#allocation91_spill] sm:$0xff] }
 0x885   : > { %v4240_v12 = vmul.f32 3.8918573e-05, %v12046_v5  ;;  %v5424_v8 = vmul.f32 %v5423_v13, %v11834_v29  ;;  %v12085_v42 = vadd.f32 0.05243302, %v6393_v34  ;;  %v4507_v62 = vmul.f32 %v12061_v52, %v12061_v52 }
 0x886   : > { %v5691_v7 = vmul.f32 %v8606_v17, %v12037_v47  ;;  %v5722_v28 = vmul.f32 %v5721_v19, %v11687_v26  ;;  %v4191_v46 = vmul.f32 %v4190_v9, %v12011_v56  ;;  %v4202_v41 = vmul.f32 %v4201_v24, %v12011_v56 }
 0x887   : > { %v4230_v11 = vadd.f32 0.00028619796, %v4229_v54  ;;  %v8218_v59 = vclamps-f32 %v5424_v8, 1.0  ;;  %v5699_v38 = vand.u32 2147483647, %v12037_v47  ;;  %v5966_v29 = vmul.f32 %v5965_v6, %v14768_v32  ;;  %v14830_v8 = vld [vmem:[#allocation85_spill] sm:$0xff] }
 0x888   : > { %v5692_v23 = vsub.f32 1.0, %v5691_v7  ;;  %v5723_v15 = vadd.f32 0.014752088, %v5722_v28  ;;  %v4241_v34 = vadd.f32 0.001143296, %v4240_v12  ;;  %v5701_v61 = vand.u32 2147483648, %v12037_v47 }
 0x889   : > { %v6621_v33 = vadd.f32 1.0, %v8218_v59  ;;  %v6000_v13 = vmul.f32 3.8918573e-05, %v14829_v36  ;;  %vm5696_vm9 = vweird.f32 %v8606_v17  ;;  %v5967_v24 = vadd.f32 0.4994258, %v5966_v29 }
 0x88a   : > { %v8608_v10 = vpop.eup %8607  ;;  %v5693_v19 = vmul.f32 %v8606_v17, %v5692_v23  ;;  %v5724_v9 = vmul.f32 %v5723_v15, %v11687_v26  ;;  %v12098_v54 = vmin.f32 %v4507_v62, 16.0  ;;  %vm5695_vm10 = vweird.f32 %v12037_v47 }
 0x88b   : > { %v12101_v7 = vmul.f32 %v6621_v33, %v14830_v8  ;;  %v5451_v28 = vmul.f32 %v8608_v10, %v12068_v51  ;;  %vm5700_vm11 = vcmp.eq.f32.partialorder %v5699_v38, 8.507059e+37  ;;  %v5968_v59 = vmul.f32 %v5967_v24, %v14768_v32  ;;  %vm5697_vm12 = vmor %vm5695_vm10, %vm5696_vm9  ;;  %v14832_v24 = vld [vmem:[#allocation67_spill] sm:$0xff] }
 0x88c   : > { %v5694_v6 = vadd.f32 %v8606_v17, %v5693_v19  ;;  %v5725_v12 = vadd.f32 0.112945676, %v5724_v9  ;;  %v5459_v15 = vand.u32 2147483647, %v12068_v51  ;;  %v5461_v62 = vand.u32 2147483648, %v12068_v51 }
 0x88d   : > { %14831 = vst [vmem:[#allocation91_spill] sm:$0xff] %v12101_v7  ;;  %7087 = vmatmul.f32.gmra.mxu2 %v12101_v7  ;;  %v5452_v23 = vsub.f32 1.0, %v5451_v28  ;;  %v5702_v29 = vor.u32 1.1754944e-38, %v5701_v61  ;;  %v12111_v22 = vadd.f32 1.0, %v5968_v59  ;;  %v6001_v47 = vadd.f32 0.001143296, %v6000_v13 }
 0x88e   : > { %v5698_v33 = vsel %vm5697_vm12, %v8606_v17, %v5694_v6  ;;  %v5726_v8 = vmul.f32 %v5725_v12, %v11687_v26  ;;  %vm5456_vm13 = vweird.f32 %v8608_v10  ;;  %v5760_v32 = vmul.f32 3.8918573e-05, %v11719_v50 }
 0x88f   : > { %v5453_v38 = vmul.f32 %v8608_v10, %v5452_v23  ;;  %v5703_v19 = vsel %vm5700_vm11, %v5702_v29, %v5698_v33  ;;  %v4192_v9 = vadd.f32 0.0036580483, %v4191_v46  ;;  %8609 = vrcp.f32 %v12111_v22 }
 0x890   : > { %v5704_v28 = vmul.f32 %v5703_v19, %v14832_v24  ;;  %v5727_v7 = vadd.f32 0.4994258, %v5726_v8  ;;  %v4203_v39 = vadd.f32 0.014752088, %v4202_v41  ;;  %vm5455_vm14 = vweird.f32 %v12068_v51 }
 0x891   : > { %v5454_v20 = vadd.f32 %v8608_v10, %v5453_v38  ;;  %v5761_v17 = vadd.f32 0.001143296, %v5760_v32  ;;  %v4242_v61 = vmul.f32 %v4241_v34, %v12046_v5  ;;  %vm5457_vm15 = vmor %vm5455_vm14, %vm5456_vm13  ;;  %v5462_v13 = vor.u32 1.1754944e-38, %v5461_v62 }
 0x892   : > { %v8225_v6 = vclamps-f32 %v5704_v28, 1.0  ;;  %v5728_v12 = vmul.f32 %v5727_v7, %v11687_v26  ;;  %vm5460_vm0 = vcmp.eq.f32.partialorder %v5459_v15, 8.507059e+37  ;;  %v6002_v23 = vmul.f32 %v6001_v47, %v14829_v36  ;;  %v14833_v7 = vld [vmem:[#allocation92_spill] sm:$0xff] }
 0x893   : > { %v5458_v59 = vsel %vm5457_vm15, %v8608_v10, %v5454_v20  ;;  %v5762_v46 = vmul.f32 %v5761_v17, %v11719_v50  ;;  %v4231_v29 = vmul.f32 %v4230_v11, %v12046_v5  ;;  %v4204_v51 = vmul.f32 %v4203_v39, %v12011_v56 }
 0x894   : > { %v5463_v41 = vsel %vm5460_vm0, %v5462_v13, %v5458_v59  ;;  %v6628_v33 = vadd.f32 1.0, %v8225_v6  ;;  %v12122_v8 = vadd.f32 1.0, %v5728_v12  ;;  %v4509_v34 = vmul.f32 2.1237322e-06, %v12098_v54  ;;  %v14835_v12 = vld [vmem:[#allocation68_spill] sm:$0xff] }
 0x895   : > { %v5464_v62 = vmul.f32 %v5463_v41, %v11852_v18  ;;  %v5763_v38 = vadd.f32 0.014752088, %v5762_v46  ;;  %v12127_v26 = vpop.eup %8609  ;;  %v4193_v20 = vmul.f32 %v4192_v9, %v12011_v56  ;;  %v4243_v10 = vadd.f32 0.014752088, %v4242_v61 }
 0x896   : > { %v12131_v15 = vmul.f32 %v6628_v33, %v14833_v7  ;;  %8611 = vrcp.f32 %v12122_v8  ;;  %v12135_v11 = vadd.f32 1.1283791, %v12074_v27  ;;  %v12138_v39 = vmul.f32 0.5, %v11959_v55  ;;  %v6863_v7 = vld [vmem:[#allocation22 + $0x4a0] sm:$0xff] }
 0x897   : > { %v8219_v47 = vclamps-f32 %v5464_v62, 1.0  ;;  %v6003_v19 = vadd.f32 0.014752088, %v6002_v23  ;;  %v12141_v18 = vadd.f32 0.18741608, %v12081_v35  ;;  %v5764_v9 = vmul.f32 %v5763_v38, %v11719_v50 }
 0x898   : > { %14834 = vst [vmem:[#allocation85_spill] sm:$0xff] %v12131_v15  ;;  %v4232_v32 = vadd.f32 0.0036580483, %v4231_v29  ;;  %7049 = vmatmul.f32.gmra.mxu1 %v12131_v15  ;;  %v5971_v24 = vmul.f32 %v12127_v26, %v12111_v22  ;;  %v6395_v27 = vmul.f32 %v12085_v42, %v11924_v44  ;;  %v4205_v28 = vadd.f32 0.112945676, %v4204_v51  ;;  %v6889_v15 = vld [vmem:[#allocation22 + $0x570] sm:$0xff] }
 0x899   : > { %v4510_v17 = vadd.f32 0.00028619796, %v4509_v34  ;;  %v6622_v55 = vadd.f32 1.0, %v8219_v47  ;;  %v4194_v61 = vadd.f32 0.05243302, %v4193_v20  ;;  %v4244_v13 = vmul.f32 %v4243_v10, %v12046_v5  ;;  %v6865_v20 = vld [vmem:[#allocation22 + $0x4b0] sm:$0xff] }
 0x89a   : > { %v5765_v6 = vadd.f32 0.112945676, %v5764_v9  ;;  %v5972_v35 = vsub.f32 1.0, %v5971_v24  ;;  %v5979_v46 = vand.u32 2147483647, %v12111_v22  ;;  %v5981_v23 = vand.u32 2147483648, %v12111_v22  ;;  %7145 = vmatpush.msra.mxu0 %v6865_v20 }
 0x89b   : > { %v12151_v59 = vmul.f32 %v6622_v55, %v14835_v12  ;;  %v6004_v29 = vmul.f32 %v6003_v19, %v14829_v36  ;;  %v4233_v42 = vmul.f32 %v4232_v32, %v12046_v5  ;;  %vm5976_vm1 = vweird.f32 %v12127_v26  ;;  %v6897_v10 = vld [vmem:[#allocation22 + $0x5b0] sm:$0xff]  ;;  %v6895_v9 = vld [vmem:[#allocation22 + $0x5a0] sm:$0xff] }
 0x89c   : > { %v12156_v41 = vpop.eup %8611  ;;  %v5766_v33 = vmul.f32 %v5765_v6, %v11719_v50  ;;  %v5973_v51 = vmul.f32 %v12127_v26, %v5972_v35  ;;  %v4206_v34 = vmul.f32 %v4205_v28, %v12011_v56  ;;  %v4511_v62 = vmul.f32 %v4510_v17, %v12098_v54  ;;  %7186 = vmatpush.msra.mxu1 %v6897_v10  ;;  %v6861_v17 = vld [vmem:[#allocation22 + $0x490] sm:$0xff] }
 0x89d   : > { %14836 = vst [vmem:[#allocation67_spill] sm:$0xff] %v12151_v59  ;;  %7128 = vmatmul.f32.gmra.mxu3 %v12151_v59  ;;  %v5731_v38 = vmul.f32 %v12156_v41, %v12122_v8  ;;  %v6005_v47 = vadd.f32 0.112945676, %v6004_v29  ;;  %v4245_v19 = vadd.f32 0.112945676, %v4244_v13  ;;  %vm5975_vm2 = vweird.f32 %v12111_v22  ;;  %v6893_v55 = vld [vmem:[#allocation22 + $0x590] sm:$0xff]  ;;  %7146 = vmatpush.msra.mxu0 %v6863_v7 }
 0x89e   : > { %v5767_v32 = vadd.f32 0.4994258, %v5766_v33  ;;  %v5974_v24 = vadd.f32 %v12127_v26, %v5973_v51  ;;  %vm5977_vm3 = vmor %vm5975_vm2, %vm5976_vm1  ;;  %vm5980_vm4 = vcmp.eq.f32.partialorder %v5979_v46, 8.507059e+37  ;;  %v5982_v6 = vor.u32 1.1754944e-38, %v5981_v23  ;;  %7187 = vmatpush.msra.mxu1 %v6895_v9  ;;  %v6859_v51 = vld [vmem:[#allocation22 + $0x480] sm:$0xff] }
 0x89f   : > { %v5732_v28 = vsub.f32 1.0, %v5731_v38  ;;  %v6006_v35 = vmul.f32 %v6005_v47, %v14829_v36  ;;  %v5739_v13 = vand.u32 2147483647, %v12122_v8  ;;  %v5741_v12 = vand.u32 2147483648, %v12122_v8  ;;  %v6891_v38 = vld [vmem:[#allocation22 + $0x580] sm:$0xff]  ;;  %7147 = vmatpush.msra.mxu0 %v6861_v17 }
 0x8a0   : > { %v5768_v29 = vmul.f32 %v5767_v32, %v11719_v50  ;;  %v5978_v22 = vsel %vm5977_vm3, %v12127_v26, %v5974_v24  ;;  %vm5736_vm5 = vweird.f32 %v12156_v41  ;;  %v6396_v20 = vadd.f32 0.18741608, %v6395_v27  ;;  %7188 = vmatpush.msra.mxu1 %v6893_v55  ;;  %v14837_v50 = vld [vmem:[#allocation81_spill] sm:$0xff] }
 0x8a1   : > { %v5733_v33 = vmul.f32 %v12156_v41, %v5732_v28  ;;  %v5983_v46 = vsel %vm5980_vm4, %v5982_v6, %v5978_v22  ;;  %v6007_v23 = vadd.f32 0.4994258, %v6006_v35  ;;  %v4195_v10 = vmul.f32 %v4194_v61, %v12011_v56  ;;  %7148 = vmatpush.msra.mxu0 %v6859_v51  ;;  %v3673_v22 = vpop.f32.mrf.mxu2  ;;  %v14838_v51 = vld [vmem:[#allocation94_spill] sm:$0xff] }
 0x8a2   : > { %v12179_v47 = vadd.f32 1.0, %v5768_v29  ;;  %v5984_v7 = vmul.f32 %v5983_v46, %v14837_v50  ;;  %v4234_v32 = vadd.f32 0.05243302, %v4233_v42  ;;  %vm5735_vm6 = vweird.f32 %v12122_v8  ;;  %7189 = vmatpush.msra.mxu1 %v6891_v38 }
 0x8a3   : > { %v5734_v26 = vadd.f32 %v12156_v41, %v5733_v33  ;;  %v6008_v9 = vmul.f32 %v6007_v23, %v14829_v36  ;;  %v4207_v24 = vadd.f32 0.4994258, %v4206_v34  ;;  %v4246_v28 = vmul.f32 %v4245_v19, %v12046_v5  ;;  %vm5737_vm7 = vmor %vm5735_vm6, %vm5736_vm5  ;;  %v3594_v23 = vpop.f32.mrf.mxu0 }
 0x8a4   : > { %v5742_v27 = vor.u32 1.1754944e-38, %v5741_v12  ;;  %8613 = vrcp.f32 %v12179_v47  ;;  %v4512_v61 = vadd.f32 0.0036580483, %v4511_v62  ;;  %vm5740_vm8 = vcmp.eq.f32.partialorder %v5739_v13, 8.507059e+37  ;;  %7190 = vmatpush.msra.mxu1 %v6889_v15 }
 0x8a5   : > { %v5738_v42 = vsel %vm5737_vm7, %v12156_v41, %v5734_v26  ;;  %v8232_v17 = vclamps-f32 %v5984_v7, 1.0  ;;  %v6357_v8 = vmul.f32 %v12141_v18, %v11810_v2  ;;  %v4196_v36 = vadd.f32 0.18741608, %v4195_v10 }
 0x8a6   : > { %v5743_v34 = vsel %vm5740_vm8, %v5742_v27, %v5738_v42  ;;  %v12192_v55 = vadd.f32 1.0, %v6008_v9  ;;  %v6397_v19 = vmul.f32 %v6396_v20, %v11924_v44  ;;  %v4235_v6 = vmul.f32 %v4234_v32, %v12046_v5 }
 0x8a7   : > { %v5744_v35 = vmul.f32 %v5743_v34, %v11889_v40  ;;  %v6635_v12 = vadd.f32 1.0, %v8232_v17  ;;  %v12199_v62 = vmul.f32 %v12078_v31, %v11715_v49  ;;  %v4208_v41 = vmul.f32 %v4207_v24, %v12011_v56  ;;  %v14841_v24 = vld [vmem:[#allocation72_spill] sm:$0xff] }
 0x8a8   : > { %v4247_v13 = vadd.f32 0.4994258, %v4246_v28  ;;  %8615 = vrcp.f32 %v12192_v55  ;;  %v12205_v18 = vmul.f32 %v12135_v11, %v11722_v30  ;;  %v4513_v29 = vmul.f32 %v4512_v61, %v12098_v54 }
 0x8a9   : > { %v8226_v33 = vclamps-f32 %v5744_v35, 1.0  ;;  %v12209_v40 = vmul.f32 %v6635_v12, %v14838_v51  ;;  %v12211_v46 = vadd.f32 1.1283791, %v6357_v8  ;;  %v4197_v49 = vmul.f32 %v4196_v36, %v12011_v56 }
 0x8aa   : > { %v8614_v38 = vpop.eup %8613  ;;  %v12215_v31 = vmul.f32 0.5, %v12043_v0  ;;  %v6040_v20 = vmul.f32 3.8918573e-05, %v11761_v63  ;;  %v12218_v30 = vadd.f32 1.1283791, %v6397_v19  ;;  %v12222_v7 = vadd.f32 1.0, %v4208_v41  ;;  %v3714_v19 = vpop.f32.mrf.mxu3 }
 0x8ab   : > { %14839 = vst [vmem:[#allocation92_spill] sm:$0xff] %v12209_v40  ;;  %v4236_v11 = vadd.f32 0.18741608, %v4235_v6  ;;  %v6629_v10 = vadd.f32 1.0, %v8226_v33  ;;  %v5771_v50 = vmul.f32 %v8614_v38, %v12179_v47  ;;  %7011 = vmatmul.f32.gmra.mxu0 %v12209_v40  ;;  %v4248_v32 = vmul.f32 %v4247_v13, %v12046_v5  ;;  %v3635_v13 = vpop.f32.mrf.mxu1  ;;  %v6855_v40 = vld [vmem:[#allocation22 + $0x460] sm:$0xff] }
 0x8ac   : > { %14840 = vst [vmem:[#allocation68_spill] sm:$0xff] %v12215_v31  ;;  %v3674_v56 = vadd.f32 %v3673_v22, %v11895_v58  ;;  %v6041_v26 = vadd.f32 0.001143296, %v6040_v20  ;;  %v4514_v0 = vadd.f32 0.05243302, %v4513_v29  ;;  %v3595_v9 = vadd.f32 %v3594_v23, %v11858_v14  ;;  %v3676_v20 = vpop.f32.mrf.mxu2 }
 0x8ad   : > { %v12228_v28 = vmul.f32 %v6629_v10, %v14841_v24  ;;  %v5772_v27 = vsub.f32 1.0, %v5771_v50  ;;  %v4198_v42 = vadd.f32 1.1283791, %v4197_v49  ;;  %v5779_v17 = vand.u32 2147483647, %v12179_v47 }
 0x8ae   : > { %v8616_v61 = vpop.eup %8615  ;;  %v5781_v8 = vand.u32 2147483648, %v12179_v47  ;;  %v6042_v36 = vmul.f32 %v6041_v26, %v11761_v63  ;;  %v4237_v34 = vmul.f32 %v4236_v11, %v12046_v5  ;;  %vm5776_vm9 = vweird.f32 %v8614_v38 }
 0x8af   : > { %14842 = vst [vmem:[#allocation81_spill] sm:$0xff] %v12228_v28  ;;  %7090 = vmatmul.f32.gmra.mxu2 %v12228_v28  ;;  %v5773_v6 = vmul.f32 %v8614_v38, %v5772_v27  ;;  %v6011_v35 = vmul.f32 %v8616_v61, %v12192_v55  ;;  %8617 = vrcp.f32 %v12222_v7  ;;  %v12237_v12 = vadd.f32 1.0, %v4248_v32 }
 0x8b0   : > { %v12239_v41 = vadd.f32 %v3714_v19, %v3674_v56  ;;  %v6043_v29 = vadd.f32 0.014752088, %v6042_v36  ;;  %v12241_v22 = vadd.f32 %v3635_v13, %v3595_v9  ;;  %vm5775_vm10 = vweird.f32 %v12179_v47  ;;  %v3597_v36 = vpop.f32.mrf.mxu0 }
 0x8b1   : > { %v5774_v33 = vadd.f32 %v8614_v38, %v5773_v6  ;;  %v6012_v5 = vsub.f32 1.0, %v6011_v35  ;;  %vm5777_vm11 = vmor %vm5775_vm10, %vm5776_vm9  ;;  %vm5780_vm12 = vcmp.eq.f32.partialorder %v5779_v17, 8.507059e+37  ;;  %v5782_v51 = vor.u32 1.1754944e-38, %v5781_v8 }
 0x8b2   : > { %v6021_v49 = vand.u32 2147483648, %v12192_v55  ;;  %v6044_v23 = vmul.f32 %v6043_v29, %v11761_v63  ;;  %vm6016_vm13 = vweird.f32 %v8616_v61  ;;  %v6019_v50 = vand.u32 2147483647, %v12192_v55 }
 0x8b3   : > { %v5778_v11 = vsel %vm5777_vm11, %v8614_v38, %v5774_v33  ;;  %v6013_v10 = vmul.f32 %v8616_v61, %v6012_v5  ;;  %8619 = vrcp.f32 %v12237_v12  ;;  %v4515_v32 = vmul.f32 %v4514_v0, %v12098_v54 }
 0x8b4   : > { %v5783_v56 = vsel %vm5780_vm12, %v5782_v51, %v5778_v11  ;;  %v6045_v47 = vadd.f32 0.112945676, %v6044_v23  ;;  %v12250_v26 = vmul.f32 0.70710677, %v12239_v41  ;;  %vm6015_vm14 = vweird.f32 %v12192_v55  ;;  %v14843_v51 = vld [vmem:[#allocation69_spill] sm:$0xff] }
 0x8b5   : > { %v5784_v9 = vmul.f32 %v5783_v56, %v12040_v53  ;;  %v6014_v24 = vadd.f32 %v8616_v61, %v6013_v10  ;;  %v12254_v27 = vpop.eup %8617  ;;  %v12257_v38 = vmul.f32 0.70710677, %v12241_v22  ;;  %v3677_v17 = vadd.f32 %v3676_v20, %v11895_v58  ;;  %vm6017_vm15 = vmor %vm6015_vm14, %vm6016_vm13  ;;  %v14844_v56 = vld [vmem:[#allocation78_spill] sm:$0xff] }
 0x8b6   : > { %v6022_v8 = vor.u32 1.1754944e-38, %v6021_v49  ;;  %v6046_v0 = vmul.f32 %v6045_v47, %v11761_v63  ;;  %vm6020_vm0 = vcmp.eq.f32.partialorder %v6019_v50, 8.507059e+37  ;;  %v6080_v53 = vmul.f32 3.8918573e-05, %v11764_v48 }
 0x8b7   : > { %v8227_v19 = vclamps-f32 %v5784_v9, 1.0  ;;  %v6018_v6 = vsel %vm6017_vm15, %v8616_v61, %v6014_v24  ;;  %v12263_v35 = vmul.f32 %v4198_v42, %v11949_v1  ;;  %v4219_v55 = vand.u32 2147483647, %v12222_v7  ;;  %v3717_v42 = vpop.f32.mrf.mxu3 }
 0x8b8   : > { %v6023_v13 = vsel %vm6020_vm0, %v6022_v8, %v6018_v6  ;;  %v6047_v29 = vadd.f32 0.4994258, %v6046_v0  ;;  %v4211_v33 = vmul.f32 %v12254_v27, %v12222_v7  ;;  %v6081_v23 = vadd.f32 0.001143296, %v6080_v53  ;;  %v14846_v6 = vld [vmem:[#allocation74_spill] sm:$0xff] }
 0x8b9   : > { %v6630_v5 = vadd.f32 1.0, %v8227_v19  ;;  %v6024_v49 = vmul.f32 %v6023_v13, %v14843_v51  ;;  %v12269_v20 = vpop.eup %8619  ;;  %v4547_v61 = vmul.f32 %v12250_v26, %v12250_v26  ;;  %v4827_v1 = vmul.f32 %v12257_v38, %v12257_v38  ;;  %v3638_v51 = vpop.f32.mrf.mxu1 }
 0x8ba   : > { %v3598_v11 = vadd.f32 %v3597_v36, %v11858_v14  ;;  %v6048_v10 = vmul.f32 %v6047_v29, %v11761_v63  ;;  %v12277_v50 = vadd.f32 %v3717_v42, %v3677_v17  ;;  %v6082_v24 = vmul.f32 %v6081_v23, %v11764_v48  ;;  %v14847_v23 = vld [vmem:[#allocation66_spill] sm:$0xff] }
 0x8bb   : > { %v12280_v47 = vmul.f32 %v6630_v5, %v14844_v56  ;;  %v8233_v9 = vclamps-f32 %v6024_v49, 1.0  ;;  %v4221_v8 = vand.u32 2147483648, %v12222_v7  ;;  %v4238_v0 = vadd.f32 1.1283791, %v4237_v34 }
 0x8bc   : > { %v12284_v19 = vadd.f32 1.0, %v6048_v10  ;;  %v6280_v53 = vmul.f32 3.8918573e-05, %v14846_v6  ;;  %v4212_v13 = vsub.f32 1.0, %v4211_v33  ;;  %v4261_v36 = vand.u32 2147483648, %v12237_v12 }
 0x8bd   : > { %14845 = vst [vmem:[#allocation94_spill] sm:$0xff] %v12280_v47  ;;  %7131 = vmatmul.f32.gmra.mxu3 %v12280_v47  ;;  %v6636_v63 = vadd.f32 1.0, %v8233_v9  ;;  %v6083_v17 = vadd.f32 0.014752088, %v6082_v24  ;;  %v12289_v29 = vmin.f32 %v4547_v61, 16.0  ;;  %v12291_v5 = vmin.f32 %v4827_v1, 16.0 }
 0x8be   : > { %v12293_v49 = vadd.f32 %v3638_v51, %v3598_v11  ;;  %8621 = vrcp.f32 %v12284_v19  ;;  %v12297_v34 = vmul.f32 0.70710677, %v12277_v50  ;;  %v6281_v10 = vadd.f32 0.001143296, %v6280_v53 }
 0x8bf   : > { %v12300_v33 = vmul.f32 %v6636_v63, %v14847_v23  ;;  %v6084_v42 = vmul.f32 %v6083_v17, %v11764_v48  ;;  %v12303_v56 = vor.u32 1.1754944e-38, %v4221_v8  ;;  %v4251_v61 = vmul.f32 %v12269_v20, %v12237_v12  ;;  %v14849_v17 = vld [vmem:[#allocation62_spill] sm:$0xff] }
 0x8c0   : > { %v4516_v11 = vadd.f32 0.18741608, %v4515_v32  ;;  %v4213_v9 = vmul.f32 %v12254_v27, %v4212_v13  ;;  %v12309_v24 = vor.u32 1.1754944e-38, %v4261_v36  ;;  %v6282_v63 = vmul.f32 %v6281_v10, %v14846_v6 }
 0x8c1   : > { %14848 = vst [vmem:[#allocation72_spill] sm:$0xff] %v12300_v33  ;;  %7052 = vmatmul.f32.gmra.mxu1 %v12300_v33  ;;  %v6085_v51 = vadd.f32 0.112945676, %v6084_v42  ;;  %vm4215_vm1 = vweird.f32 %v12222_v7  ;;  %v4549_v8 = vmul.f32 2.1237322e-06, %v12289_v29  ;;  %v4867_v32 = vmul.f32 %v12297_v34, %v12297_v34  ;;  %v6857_v33 = vld [vmem:[#allocation22 + $0x470] sm:$0xff] }
 0x8c2   : > { %v4829_v53 = vmul.f32 2.1237322e-06, %v12291_v5  ;;  %v6320_v23 = vmul.f32 3.8918573e-05, %v14849_v17  ;;  %v12320_v13 = vmul.f32 0.70710677, %v12293_v49  ;;  %v12330_v47 = vmul.f32 %v4238_v0, %v12003_v3  ;;  %7149 = vmatpush.msra.mxu0 %v6857_v33 }
 0x8c3   : > { %v6086_v36 = vmul.f32 %v6085_v51, %v11764_v48  ;;  %v6283_v1 = vadd.f32 0.014752088, %v6282_v63  ;;  %vm12325_vm2 = vcmp.eq.f32.partialorder %v4219_v55, 8.507059e+37  ;;  %v4252_v28 = vsub.f32 1.0, %v4251_v61  ;;  %v6887_v3 = vld [vmem:[#allocation22 + $0x560] sm:$0xff] }
 0x8c4   : > { %v12323_v42 = vpop.eup %8621  ;;  %v12333_v59 = vmul.f32 %v4516_v11, %v12098_v54  ;;  %v6321_v37 = vadd.f32 0.001143296, %v6320_v23  ;;  %v4214_v51 = vadd.f32 %v12254_v27, %v4213_v9  ;;  %vm4216_vm3 = vweird.f32 %v12254_v27  ;;  %v6885_v11 = vld [vmem:[#allocation22 + $0x550] sm:$0xff]  ;;  %7150 = vmatpush.msra.mxu0 %v6855_v40  ;;  %7191 = vmatpush.msra.mxu1 %v6887_v3 }
 0x8c5   : > { %v6051_v55 = vmul.f32 %v12323_v42, %v12284_v19  ;;  %v6087_v63 = vadd.f32 0.4994258, %v6086_v36  ;;  %v4550_v0 = vadd.f32 0.00028619796, %v4549_v8  ;;  %v4830_v61 = vadd.f32 0.00028619796, %v4829_v53  ;;  %vm12353_vm5 = vmor %vm4215_vm1, %vm4216_vm3 }
 0x8c6   : > { %v6284_v4 = vmul.f32 %v6283_v1, %v14846_v6  ;;  %v6322_v16 = vmul.f32 %v6321_v37, %v14849_v17  ;;  %v12341_v23 = vmin.f32 %v4867_v32, 16.0  ;;  %v6061_v31 = vand.u32 2147483648, %v12284_v19  ;;  %v6851_v8 = vld [vmem:[#allocation22 + $0x440] sm:$0xff]  ;;  %7151 = vmatpush.msra.mxu0 %v6853_v25  ;;  %7192 = vmatpush.msra.mxu1 %v6885_v11 }
 0x8c7   : > { %v6052_v9 = vsub.f32 1.0, %v6051_v55  ;;  %v6088_v57 = vmul.f32 %v6087_v63, %v11764_v48  ;;  %v4253_v15 = vmul.f32 %v12269_v20, %v4252_v28  ;;  %vm4255_vm4 = vweird.f32 %v12237_v12  ;;  %v6883_v1 = vld [vmem:[#allocation22 + $0x540] sm:$0xff] }
 0x8c8   : > { %v5147_v33 = vmul.f32 %v12320_v13, %v12320_v13  ;;  %v6285_v53 = vadd.f32 0.112945676, %v6284_v4  ;;  %v6323_v37 = vadd.f32 0.014752088, %v6322_v16  ;;  %vm6056_vm6 = vweird.f32 %v12323_v42  ;;  %7152 = vmatpush.msra.mxu0 %v6851_v8  ;;  %7193 = vmatpush.msra.mxu1 %v6883_v1  ;;  %v12389_v8 = vpop.f32.mrf.mxu1 }
 0x8c9   : > { %v6053_v48 = vmul.f32 %v12323_v42, %v6052_v9  ;;  %v6059_v40 = vand.u32 2147483647, %v12284_v19  ;;  %v12360_v28 = vadd.f32 1.0, %v6088_v57  ;;  %v4218_v4 = vsel %vm12353_vm5, %v12254_v27, %v4214_v51  ;;  %v3600_v27 = vpop.f32.mrf.mxu0 }
 0x8ca   : > { %v4551_v16 = vmul.f32 %v4550_v0, %v12289_v29  ;;  %v6286_v7 = vmul.f32 %v6285_v53, %v14846_v6  ;;  %v6324_v36 = vmul.f32 %v6323_v37, %v14849_v17  ;;  %v4831_v55 = vmul.f32 %v4830_v61, %v12291_v5 }
 0x8cb   : > { %v6054_v63 = vadd.f32 %v12323_v42, %v6053_v48  ;;  %vm6055_vm7 = vweird.f32 %v12284_v19  ;;  %8623 = vrcp.f32 %v12360_v28  ;;  %v4869_v57 = vmul.f32 2.1237322e-06, %v12341_v23 }
 0x8cc   : > { %v12373_v25 = vmin.f32 %v5147_v33, 16.0  ;;  %vm6057_vm8 = vmor %vm6055_vm7, %vm6056_vm6  ;;  %v6062_v51 = vor.u32 1.1754944e-38, %v6061_v31  ;;  %v6287_v3 = vadd.f32 0.4994258, %v6286_v7  ;;  %v4223_v0 = vsel %vm12325_vm2, %v12303_v56, %v4218_v4 }
 0x8cd   : > { %v14855_v19 = vand.u32 2147483647, %v12237_v12  ;;  %v6058_v11 = vsel %vm6057_vm8, %v12323_v42, %v6054_v63  ;;  %vm6060_vm10 = vcmp.eq.f32.partialorder %v6059_v40, 8.507059e+37  ;;  %v6325_v9 = vadd.f32 0.112945676, %v6324_v36  ;;  %v3679_v40 = vpop.f32.mrf.mxu2 }
 0x8ce   : > { %14854 = vst [vmem:[#allocation69_spill] sm:$0xff] %v12373_v25  ;;  %v4254_v33 = vadd.f32 %v12269_v20, %v4253_v15  ;;  %vm4256_vm11 = vweird.f32 %v12269_v20  ;;  %v4552_v31 = vadd.f32 0.0036580483, %v4551_v16  ;;  %v6063_v1 = vsel %vm6060_vm10, %v6062_v51, %v6058_v11 }
 0x8cf   : > { %vm12382_vm9 = vcmp.eq.f32.partialorder %v14855_v19, 8.507059e+37  ;;  %v4832_v10 = vadd.f32 0.0036580483, %v4831_v55  ;;  %v6064_v56 = vmul.f32 %v6063_v1, %v12199_v62  ;;  %v6288_v53 = vmul.f32 %v6287_v3, %v14846_v6  ;;  %vm12401_vm12 = vmor %vm4255_vm4, %vm4256_vm11 }
 0x8d0   : > { %v6326_v37 = vmul.f32 %v6325_v9, %v14849_v17  ;;  %v4224_v32 = vmul.f32 %v4223_v0, %v12263_v35  ;;  %v12396_v42 = vadd.f32 1.1283791, %v12333_v59  ;;  %v4870_v48 = vadd.f32 0.00028619796, %v4869_v57  ;;  %v12440_v61 = vpop.f32.mrf.mxu1 }
 0x8d1   : > { %v5149_v15 = vmul.f32 2.1237322e-06, %v12373_v25  ;;  %v8624_v4 = vpop.eup %8623  ;;  %v12406_v62 = vmul.f32 0.5, %v12239_v41  ;;  %v8234_v6 = vclamps-f32 %v6064_v56, 1.0  ;;  %v12408_v7 = vadd.f32 1.0, %v6288_v53  ;;  %v12431_v1 = vpop.f32.mrf.mxu0 }
 0x8d2   : > { %v6327_v35 = vadd.f32 0.4994258, %v6326_v37  ;;  %v4258_v59 = vsel %vm12401_vm12, %v12269_v20, %v4254_v33  ;;  %v4553_v36 = vmul.f32 %v4552_v31, %v12289_v29  ;;  %v12415_v55 = vmul.f32 0.5, %v12241_v22  ;;  %v3720_v31 = vpop.f32.mrf.mxu3 }
 0x8d3   : > { %14860 = vst [vmem:[#allocation78_spill] sm:$0xff] %v12406_v62  ;;  %v6091_v12 = vmul.f32 %v8624_v4, %v12360_v28  ;;  %v4833_v63 = vmul.f32 %v4832_v10, %v12291_v5  ;;  %v3680_v41 = vadd.f32 %v3679_v40, %v11895_v58  ;;  %v6637_v57 = vadd.f32 1.0, %v8234_v6 }
 0x8d4   : > { %14861 = vst [vmem:[#allocation74_spill] sm:$0xff] %v12415_v55  ;;  %8625 = vrcp.f32 %v12408_v7  ;;  %v8188_v51 = vclamps-f32 %v4224_v32, 1.0  ;;  %v4871_v3 = vmul.f32 %v4870_v48, %v12341_v23  ;;  %v5150_v0 = vadd.f32 0.00028619796, %v5149_v15 }
 0x8d5   : > { %v6092_v19 = vsub.f32 1.0, %v6091_v12  ;;  %v12423_v20 = vmul.f32 %v6637_v57, %v11757_v45  ;;  %v6101_v22 = vand.u32 2147483648, %v12360_v28  ;;  %v6328_v11 = vmul.f32 %v6327_v35, %v14849_v17 }
 0x8d6   : > { %v6360_v9 = vmul.f32 3.8918573e-05, %v11810_v2  ;;  %v4263_v33 = vsel %vm12382_vm9, %v12309_v24, %v4258_v59  ;;  %vm6096_vm13 = vweird.f32 %v8624_v4  ;;  %v6099_v56 = vand.u32 2147483647, %v12360_v28 }
 0x8d7   : > { %14862 = vst [vmem:[#allocation66_spill] sm:$0xff] %v12423_v20  ;;  %v6093_v10 = vmul.f32 %v8624_v4, %v6092_v19  ;;  %v4554_v53 = vadd.f32 0.05243302, %v4553_v36  ;;  %v4834_v45 = vadd.f32 0.05243302, %v4833_v63  ;;  %v12434_v37 = vadd.f32 %v3720_v31, %v3680_v41  ;;  %7093 = vmatmul.f32.gmra.mxu2 %v12423_v20  ;;  %v3682_v19 = vpop.f32.mrf.mxu2  ;;  %v6879_v20 = vld [vmem:[#allocation22 + $0x520] sm:$0xff] }
 0x8d8   : > { %v12437_v17 = vadd.f32 1.0, %v6328_v11  ;;  %v4872_v32 = vadd.f32 0.0036580483, %v4871_v3  ;;  %v5151_v48 = vmul.f32 %v5150_v0, %v12373_v25  ;;  %vm6095_vm14 = vweird.f32 %v12360_v28 }
 0x8d9   : > { %v6094_v24 = vadd.f32 %v8624_v4, %v6093_v10  ;;  %v3601_v40 = vadd.f32 %v3600_v27, %v11858_v14  ;;  %vm6097_vm15 = vmor %vm6095_vm14, %vm6096_vm13  ;;  %v6102_v16 = vor.u32 1.1754944e-38, %v6101_v22  ;;  %v6361_v6 = vadd.f32 0.001143296, %v6360_v9 }
 0x8da   : > { %v8626_v15 = vpop.eup %8625  ;;  %8627 = vrcp.f32 %v12437_v17  ;;  %v12446_v35 = vmul.f32 %v4263_v33, %v12330_v47  ;;  %vm6100_vm0 = vcmp.eq.f32.partialorder %v6099_v56, 8.507059e+37  ;;  %v4555_v12 = vmul.f32 %v4554_v53, %v12289_v29 }
 0x8db   : > { %v6098_v59 = vsel %vm6097_vm15, %v8624_v4, %v6094_v24  ;;  %v6291_v36 = vmul.f32 %v8626_v15, %v12408_v7  ;;  %v4835_v63 = vmul.f32 %v4834_v45, %v12291_v5  ;;  %v12452_v28 = vmul.f32 0.70710677, %v12434_v37 }
 0x8dc   : > { %v6103_v27 = vsel %vm6100_vm0, %v6102_v16, %v6098_v59  ;;  %v12454_v41 = vadd.f32 1.0, %v8188_v51  ;;  %v4873_v57 = vmul.f32 %v4872_v32, %v12341_v23  ;;  %v5152_v0 = vadd.f32 0.0036580483, %v5151_v48 }
 0x8dd   : > { %v6104_v3 = vmul.f32 %v6103_v27, %v12205_v18  ;;  %v6292_v47 = vsub.f32 1.0, %v6291_v36  ;;  %v12459_v4 = vadd.f32 %v12389_v8, %v3601_v40  ;;  %v6301_v22 = vand.u32 2147483648, %v12408_v7  ;;  %v3606_v8 = vpop.f32.mrf.mxu0  ;;  %v3647_v36 = vpop.f32.mrf.mxu1 }
 0x8de   : > { %v6362_v11 = vmul.f32 %v6361_v6, %v11810_v2  ;;  %vm6296_vm1 = vweird.f32 %v8626_v15  ;;  %v6299_v51 = vand.u32 2147483647, %v12408_v7  ;;  %v4556_v10 = vadd.f32 0.18741608, %v4555_v12 }
 0x8df   : > { %v8235_v9 = vclamps-f32 %v6104_v3, 1.0  ;;  %v6293_v33 = vmul.f32 %v8626_v15, %v6292_v47  ;;  %v4836_v56 = vadd.f32 0.18741608, %v4835_v63  ;;  %v5187_v18 = vmul.f32 %v12452_v28, %v12452_v28 }
 0x8e0   : > { %v8628_v31 = vpop.eup %8627  ;;  %v6363_v53 = vadd.f32 0.014752088, %v6362_v11  ;;  %v4874_v45 = vadd.f32 0.05243302, %v4873_v57  ;;  %vm6295_vm2 = vweird.f32 %v12408_v7  ;;  %v5153_v24 = vmul.f32 %v5152_v0, %v12373_v25  ;;  %v3723_v7 = vpop.f32.mrf.mxu3  ;;  %v14864_v11 = vld [vmem:[#allocation70_spill] sm:$0xff] }
 0x8e1   : > { %v6638_v32 = vadd.f32 1.0, %v8235_v9  ;;  %v6294_v48 = vadd.f32 %v8626_v15, %v6293_v33  ;;  %vm6297_vm3 = vmor %vm6295_vm2, %vm6296_vm1  ;;  %v6302_v40 = vor.u32 1.1754944e-38, %v6301_v22  ;;  %v6331_v16 = vmul.f32 %v8628_v31, %v12437_v17 }
 0x8e2   : > { %v6364_v6 = vmul.f32 %v6363_v53, %v11810_v2  ;;  %v12471_v59 = vmul.f32 0.70710677, %v12459_v4  ;;  %vm6300_vm4 = vcmp.eq.f32.partialorder %v6299_v51, 8.507059e+37  ;;  %v12476_v27 = vmin.f32 %v5187_v18, 16.0 }
 0x8e3   : > { %v12474_v12 = vmul.f32 %v6638_v32, %v11772_v60  ;;  %v6298_v63 = vsel %vm6297_vm3, %v8626_v15, %v6294_v48  ;;  %v6332_v3 = vsub.f32 1.0, %v6331_v16  ;;  %v3683_v0 = vadd.f32 %v3682_v19, %v11895_v58  ;;  %v3685_v48 = vpop.f32.mrf.mxu2 }
 0x8e4   : > { %v6303_v57 = vsel %vm6300_vm4, %v6302_v40, %v6298_v63  ;;  %v6365_v47 = vadd.f32 0.112945676, %v6364_v6  ;;  %v3604_v22 = vadd.f32 %v12431_v1, %v11858_v14  ;;  %v6341_v60 = vand.u32 2147483648, %v12437_v17 }
 0x8e5   : > { %14863 = vst [vmem:[#allocation62_spill] sm:$0xff] %v12474_v12  ;;  %7134 = vmatmul.f32.gmra.mxu3 %v12474_v12  ;;  %v6304_v9 = vmul.f32 %v6303_v57, %v14864_v11  ;;  %v6333_v33 = vmul.f32 %v8628_v31, %v6332_v3  ;;  %vm6336_vm5 = vweird.f32 %v8628_v31  ;;  %v6339_v15 = vand.u32 2147483647, %v12437_v17  ;;  %v12498_v12 = vpop.f32.mrf.mxu0 }
 0x8e6   : > { %v6366_v51 = vmul.f32 %v6365_v47, %v11810_v2  ;;  %v5154_v18 = vadd.f32 0.05243302, %v5153_v24  ;;  %v5467_v53 = vmul.f32 %v12471_v59, %v12471_v59  ;;  %v6400_v32 = vmul.f32 3.8918573e-05, %v11924_v44 }
 0x8e7   : > { %v8240_v19 = vclamps-f32 %v6304_v9, 1.0  ;;  %v5189_v1 = vmul.f32 2.1237322e-06, %v12476_v27  ;;  %v6334_v40 = vadd.f32 %v8628_v31, %v6333_v33  ;;  %vm6335_vm6 = vweird.f32 %v12437_v17  ;;  %v14865_v33 = vld [vmem:[#allocation96_spill] sm:$0xff] }
 0x8e8   : > { %v6367_v16 = vadd.f32 0.4994258, %v6366_v51  ;;  %v12491_v6 = vadd.f32 %v3723_v7, %v3683_v0  ;;  %vm6337_vm7 = vmor %vm6335_vm6, %vm6336_vm5  ;;  %v6342_v57 = vor.u32 1.1754944e-38, %v6341_v60  ;;  %v6401_v3 = vadd.f32 0.001143296, %v6400_v32  ;;  %v12513_v32 = vpop.f32.mrf.mxu1 }
 0x8e9   : > { %v6643_v63 = vadd.f32 1.0, %v8240_v19  ;;  %v12494_v24 = vadd.f32 %v12440_v61, %v3604_v22  ;;  %v6338_v47 = vsel %vm6337_vm7, %v8628_v31, %v6334_v40  ;;  %vm6340_vm8 = vcmp.eq.f32.partialorder %v6339_v15, 8.507059e+37  ;;  %v14867_v61 = vld [vmem:[#allocation95_spill] sm:$0xff] }
 0x8ea   : > { %v6368_v11 = vmul.f32 %v6367_v16, %v11810_v2  ;;  %v3686_v9 = vadd.f32 %v3685_v48, %v11895_v58  ;;  %v6343_v7 = vsel %vm6340_vm8, %v6342_v57, %v6338_v47  ;;  %v6402_v0 = vmul.f32 %v6401_v3, %v11924_v44 }
 0x8eb   : > { %v12501_v17 = vmul.f32 %v6643_v63, %v14865_v33  ;;  %v4557_v60 = vmul.f32 %v4556_v10, %v12289_v29  ;;  %v3607_v51 = vadd.f32 %v3606_v8, %v11858_v14  ;;  %v6344_v22 = vmul.f32 %v6343_v7, %v14867_v61  ;;  %v3726_v8 = vpop.f32.mrf.mxu3 }
 0x8ec   : > { %v12507_v31 = vadd.f32 1.0, %v6368_v11  ;;  %v4837_v2 = vmul.f32 %v4836_v56, %v12291_v5  ;;  %v4875_v15 = vmul.f32 %v4874_v45, %v12341_v23  ;;  %v12511_v19 = vmin.f32 %v5467_v53, 16.0  ;;  %v14868_v11 = vld [vmem:[#allocation63_spill] sm:$0xff] }
 0x8ed   : > { %14866 = vst [vmem:[#allocation70_spill] sm:$0xff] %v12501_v17  ;;  %7014 = vmatmul.f32.gmra.mxu0 %v12501_v17  ;;  %v6403_v48 = vadd.f32 0.014752088, %v6402_v0  ;;  %v5190_v40 = vadd.f32 0.00028619796, %v5189_v1  ;;  %v8241_v16 = vclamps-f32 %v6344_v22, 1.0  ;;  %v5155_v63 = vmul.f32 %v5154_v18, %v12373_v25  ;;  %v3752_v17 = vpop.f32.mrf.mxu0 }
 0x8ee   : > { %v12517_v10 = vmul.f32 0.70710677, %v12491_v6  ;;  %8629 = vrcp.f32 %v12507_v31  ;;  %v12522_v56 = vmul.f32 0.70710677, %v12494_v24  ;;  %v12524_v45 = vadd.f32 %v3726_v8, %v3686_v9 }
 0x8ef   : > { %v6404_v53 = vmul.f32 %v6403_v48, %v11924_v44  ;;  %v8189_v57 = vclamps-f32 %v12446_v35, 1.0  ;;  %v12528_v3 = vadd.f32 1.1283791, %v4557_v60  ;;  %v12530_v1 = vadd.f32 %v3647_v36, %v3607_v51  ;;  %v14869_v60 = vld [vmem:[#allocation84_spill] sm:$0xff] }
 0x8f0   : > { %v6644_v47 = vadd.f32 1.0, %v8241_v16  ;;  %v12534_v33 = vmul.f32 %v12211_v46, %v14868_v11  ;;  %v12536_v7 = vadd.f32 1.1283791, %v4837_v2  ;;  %v12538_v18 = vadd.f32 0.18741608, %v4875_v15  ;;  %v6849_v16 = vld [vmem:[#allocation22 + $0x430] sm:$0xff] }
 0x8f1   : > { %v6405_v0 = vadd.f32 0.112945676, %v6404_v53  ;;  %v5191_v9 = vmul.f32 %v5190_v40, %v12476_v27  ;;  %v5469_v61 = vmul.f32 2.1237322e-06, %v12511_v19  ;;  %v5507_v35 = vmul.f32 %v12517_v10, %v12517_v10  ;;  %v6937_v53 = vld [vmem:[#allocation22 + $0x6f0] sm:$0xff]  ;;  %7153 = vmatpush.msra.mxu0 %v6849_v16 }
 0x8f2   : > { %v12545_v36 = vmul.f32 %v6644_v47, %v14869_v60  ;;  %v12547_v51 = vadd.f32 0.18741608, %v5155_v63  ;;  %v5787_v46 = vmul.f32 %v12522_v56, %v12522_v56  ;;  %v12552_v22 = vmul.f32 0.70710677, %v12524_v45  ;;  %v6881_v63 = vld [vmem:[#allocation22 + $0x530] sm:$0xff]  ;;  %v12572_v47 = vld [vmem:[%s14683_s4] sm:$0xff]  ;;  %7223 = vmatpush.msra.mxu2 %v6937_v53 }
 0x8f3   : > { %v6406_v2 = vmul.f32 %v6405_v0, %v11924_v44  ;;  %v12559_v48 = vmul.f32 %v12218_v30, %v11848_v43  ;;  %v12563_v40 = vmul.f32 %v12396_v42, %v12061_v52  ;;  %v12566_v8 = vmul.f32 0.70710677, %v12530_v1  ;;  %v3688_v42 = vpop.f32.mrf.mxu2  ;;  %7194 = vmatpush.msra.mxu1 %v6881_v63  ;;  %v6847_v60 = vld [vmem:[#allocation22 + $0x420] sm:$0xff]  ;;  %v3793_v63 = vpop.f32.mrf.mxu1 }
 0x8f4   : > { %14870 = vst [vmem:[#allocation96_spill] sm:$0xff] %v12545_v36  ;;  %v12555_v15 = vpop.eup %8629  ;;  %7055 = vmatmul.f32.gmra.mxu1 %v12545_v36  ;;  %v12575_v43 = vperm.slane %v12572_v47, 6  ;;  %v12579_v52 = vmul.f32 %v12454_v41, %v12023_v21  ;;  %v6592_v30 = vadd.f32 1.0, %v8189_v57  ;;  %v6969_v36 = vld [vmem:[#allocation22 + $0x7f0] sm:$0xff]  ;;  %v5192_v55 = vadd.f32 0.0036580483, %v5191_v9  ;;  %7154 = vmatpush.msra.mxu0 %v6847_v60  ;;  %v3729_v60 = vpop.f32.mrf.mxu3 }
 0x8f5   : > { %14871 = vst [vmem:[#allocation95_spill] sm:$0xff] %v12563_v40  ;;  %v6371_v11 = vmul.f32 %v12555_v15, %v12507_v31  ;;  %v6407_v0 = vadd.f32 0.4994258, %v6406_v2  ;;  %v5470_v62 = vadd.f32 0.00028619796, %v5469_v61  ;;  %v12583_v40 = vmin.f32 %v5507_v35, 16.0  ;;  %7264 = vmatpush.msra.mxu3 %v6969_v36  ;;  %7195 = vmatpush.msra.mxu1 %v6879_v20 }
 0x8f6   : > { %14872 = vst [vmem:[#allocation63_spill] sm:$0xff] %v12575_v43  ;;  %v3753_v21 = vadd.f32 %v3752_v17, %v12575_v43  ;;  %v12586_v41 = vmin.f32 %v5787_v46, 16.0  ;;  %v5827_v57 = vmul.f32 %v12552_v22, %v12552_v22  ;;  %v6107_v9 = vmul.f32 %v12566_v8, %v12566_v8 }
 0x8f7   : > { %14873 = vst [vmem:[#allocation84_spill] sm:$0xff] %v12579_v52  ;;  %v6372_v2 = vsub.f32 1.0, %v6371_v11  ;;  %v6408_v16 = vmul.f32 %v6407_v0, %v11924_v44  ;;  %v3689_v61 = vadd.f32 %v3688_v42, %v11895_v58  ;;  %v6381_v35 = vand.u32 2147483648, %v12507_v31 }
 0x8f8   : > { %v12595_v36 = vadd.f32 %v3793_v63, %v3753_v21  ;;  %vm6376_vm9 = vweird.f32 %v12555_v15  ;;  %v6379_v46 = vand.u32 2147483647, %v12507_v31  ;;  %v5193_v44 = vmul.f32 %v5192_v55, %v12476_v27 }
 0x8f9   : > { %v6373_v17 = vmul.f32 %v12555_v15, %v6372_v2  ;;  %v12600_v53 = vadd.f32 1.0, %v6408_v16  ;;  %v5471_v20 = vmul.f32 %v5470_v62, %v12511_v19  ;;  %v3610_v11 = vadd.f32 %v12498_v12, %v11858_v14 }
 0x8fa   : > { %14874 = vst [vmem:[#allocation101_spill] sm:$0xff] %v12595_v36  ;;  %v12607_v42 = vmul.f32 0.70710677, %v12595_v36  ;;  %v12609_v0 = vmin.f32 %v5827_v57, 16.0  ;;  %vm6375_vm10 = vweird.f32 %v12507_v31  ;;  %v5509_v2 = vmul.f32 2.1237322e-06, %v12583_v40 }
 0x8fb   : > { %v6374_v21 = vadd.f32 %v12555_v15, %v6373_v17  ;;  %8631 = vrcp.f32 %v12600_v53  ;;  %v12615_v55 = vmin.f32 %v6107_v9, 16.0  ;;  %vm6377_vm11 = vmor %vm6375_vm10, %vm6376_vm9  ;;  %v6382_v62 = vor.u32 1.1754944e-38, %v6381_v35 }
 0x8fc   : > { %14875 = vst [vmem:[#allocation102_spill] sm:$0xff] %v12607_v42  ;;  %v4267_v14 = vmul.f32 %v12607_v42, %v12607_v42  ;;  %v5789_v12 = vmul.f32 2.1237322e-06, %v12586_v41  ;;  %v12620_v57 = vadd.f32 %v3729_v60, %v3689_v61  ;;  %vm6380_vm12 = vcmp.eq.f32.partialorder %v6379_v46, 8.507059e+37 }
 0x8fd   : > { %v6378_v16 = vsel %vm6377_vm11, %v12555_v15, %v6374_v21  ;;  %v4877_v31 = vmul.f32 %v12538_v18, %v12341_v23  ;;  %v5157_v63 = vmul.f32 %v12547_v51, %v12373_v25  ;;  %v12628_v9 = vadd.f32 %v12513_v32, %v3610_v11 }
 0x8fe   : > { %v6383_v35 = vsel %vm6380_vm12, %v6382_v62, %v6378_v16  ;;  %v5472_v17 = vadd.f32 0.0036580483, %v5471_v20  ;;  %v5829_v36 = vmul.f32 2.1237322e-06, %v12609_v0  ;;  %v12632_v61 = vmin.f32 %v4267_v14, 16.0 }
 0x8ff   : > { %14876 = vst [vmem:[#allocation103_spill] sm:$0xff] %v12628_v9  ;;  %v6384_v42 = vmul.f32 %v6383_v35, %v12534_v33  ;;  %v12635_v15 = vmul.f32 %v6592_v30, %v12138_v39  ;;  %v5194_v46 = vadd.f32 0.05243302, %v5193_v44  ;;  %v5510_v60 = vadd.f32 0.00028619796, %v5509_v2  ;;  %v3691_v44 = vpop.f32.mrf.mxu2 }
 0x900   : > { %v6109_v18 = vmul.f32 2.1237322e-06, %v12615_v55  ;;  %v12640_v32 = vmul.f32 %v12528_v3, %v12250_v26  ;;  %v5790_v51 = vadd.f32 0.00028619796, %v5789_v12  ;;  %v12643_v20 = vmul.f32 0.70710677, %v12620_v57 }
 0x901   : > { %14877 = vst [vmem:[#allocation104_spill] sm:$0xff] %v12635_v15  ;;  %v8632_v21 = vpop.eup %8631  ;;  %v8242_v11 = vclamps-f32 %v6384_v42, 1.0  ;;  %v12645_v33 = vadd.f32 1.1283791, %v4877_v31  ;;  %v12647_v62 = vadd.f32 1.1283791, %v5157_v63  ;;  %v5473_v2 = vmul.f32 %v5472_v17, %v12511_v19 }
 0x902   : > { %14878 = vst [vmem:[#allocation105_spill] sm:$0xff] %v12640_v32  ;;  %v12650_v39 = vmul.f32 0.70710677, %v12628_v9  ;;  %v6411_v30 = vmul.f32 %v8632_v21, %v12600_v53  ;;  %v5830_v14 = vadd.f32 0.00028619796, %v5829_v36  ;;  %v5195_v12 = vmul.f32 %v5194_v46, %v12476_v27  ;;  %v14881_v32 = vld [vmem:[#allocation87_spill] sm:$0xff]  ;;  %v3732_v36 = vpop.f32.mrf.mxu3 }
 0x903   : > { %14879 = vst [vmem:[#allocation106_spill] sm:$0xff] %v12643_v20  ;;  %v6645_v26 = vadd.f32 1.0, %v8242_v11  ;;  %v4280_v3 = vmul.f32 3.8918573e-05, %v12632_v61  ;;  %v5511_v42 = vmul.f32 %v5510_v60, %v12583_v40  ;;  %v6110_v16 = vadd.f32 0.00028619796, %v6109_v18 }
 0x904   : > { %14880 = vst [vmem:[#allocation107_spill] sm:$0xff] %v12650_v39  ;;  %v6412_v31 = vsub.f32 1.0, %v6411_v30  ;;  %v5791_v63 = vmul.f32 %v5790_v51, %v12586_v41  ;;  %v6147_v35 = vmul.f32 %v12643_v20, %v12643_v20  ;;  %v6421_v17 = vand.u32 2147483648, %v12600_v53 }
 0x905   : > { %v12661_v25 = vmul.f32 %v6645_v26, %v14881_v32  ;;  %v6427_v11 = vmul.f32 %v12650_v39, %v12650_v39  ;;  %vm6416_vm13 = vweird.f32 %v8632_v21  ;;  %v6419_v46 = vand.u32 2147483647, %v12600_v53 }
 0x906   : > { %v6413_v43 = vmul.f32 %v8632_v21, %v6412_v31  ;;  %v5474_v60 = vadd.f32 0.05243302, %v5473_v2  ;;  %v5831_v18 = vmul.f32 %v5830_v14, %v12609_v0  ;;  %v3692_v51 = vadd.f32 %v3691_v44, %v11895_v58 }
 0x907   : > { %14882 = vst [vmem:[#allocation87_spill] sm:$0xff] %v12661_v25  ;;  %7096 = vmatmul.f32.gmra.mxu2 %v12661_v25  ;;  %v4281_v30 = vadd.f32 0.001143296, %v4280_v3  ;;  %v12670_v32 = vadd.f32 0.18741608, %v5195_v12  ;;  %v6111_v26 = vmul.f32 %v6110_v16, %v12615_v55  ;;  %vm6415_vm14 = vweird.f32 %v12600_v53  ;;  %v6845_v16 = vld [vmem:[#allocation22 + $0x410] sm:$0xff] }
 0x908   : > { %v6414_v20 = vadd.f32 %v8632_v21, %v6413_v43  ;;  %v12675_v31 = vmul.f32 0.5, %v12277_v50  ;;  %v5512_v39 = vadd.f32 0.0036580483, %v5511_v42  ;;  %v5792_v9 = vadd.f32 0.0036580483, %v5791_v63  ;;  %vm6417_vm15 = vmor %vm6415_vm14, %vm6416_vm13  ;;  %v6877_v63 = vld [vmem:[#allocation22 + $0x510] sm:$0xff]  ;;  %7155 = vmatpush.msra.mxu0 %v6845_v16 }
 0x909   : > { %v6422_v2 = vor.u32 1.1754944e-38, %v6421_v17  ;;  %v12677_v14 = vmin.f32 %v6147_v35, 16.0  ;;  %v12679_v25 = vmin.f32 %v6427_v11, 16.0  ;;  %vm6420_vm0 = vcmp.eq.f32.partialorder %v6419_v46, 8.507059e+37  ;;  %v6935_v17 = vld [vmem:[#allocation22 + $0x6e0] sm:$0xff]  ;;  %v3834_v11 = vpop.f32.mrf.mxu2  ;;  %7196 = vmatpush.msra.mxu1 %v6877_v63 }
 0x90a   : > { %v6418_v58 = vsel %vm6417_vm15, %v8632_v21, %v6414_v20  ;;  %v5832_v44 = vadd.f32 0.0036580483, %v5831_v18  ;;  %v12681_v12 = vadd.f32 %v3732_v36, %v3692_v51  ;;  %v4282_v43 = vmul.f32 %v4281_v30, %v12632_v61  ;;  %v6843_v46 = vld [vmem:[#allocation22 + $0x400] sm:$0xff]  ;;  %7224 = vmatpush.msra.mxu2 %v6935_v17 }
 0x90b   : > { %v6423_v3 = vsel %vm6420_vm0, %v6422_v2, %v6418_v58  ;;  %v5475_v53 = vmul.f32 %v5474_v60, %v12511_v19  ;;  %v6112_v50 = vadd.f32 0.0036580483, %v6111_v26  ;;  %v12687_v35 = vperm.slane %v12572_v47, 7  ;;  %v6967_v60 = vld [vmem:[#allocation22 + $0x7e0] sm:$0xff]  ;;  %7156 = vmatpush.msra.mxu0 %v6843_v46  ;;  %v3875_v2 = vpop.f32.mrf.mxu3  ;;  %v14886_v46 = vld [vmem:[#allocation71_spill] sm:$0xff] }
 0x90c   : > { %v6424_v42 = vmul.f32 %v6423_v3, %v12559_v48  ;;  %v12691_v21 = vmul.f32 %v12536_v7, %v12257_v38  ;;  %v12694_v20 = vmul.f32 0.5, %v12293_v49  ;;  %v5513_v36 = vmul.f32 %v5512_v39, %v12583_v40  ;;  %v6875_v48 = vld [vmem:[#allocation22 + $0x500] sm:$0xff]  ;;  %7265 = vmatpush.msra.mxu3 %v6967_v60  ;;  %v6933_v38 = vld [vmem:[#allocation22 + $0x6d0] sm:$0xff]  ;;  %7157 = vmatmul.f32.vlgmr.msra.gmra.mxu0 %v12579_v52 }
 0x90d   : > { %v4520_v18 = vmul.f32 3.8918573e-05, %v12098_v54  ;;  %v6149_v47 = vmul.f32 2.1237322e-06, %v12677_v14  ;;  %v6429_v51 = vmul.f32 2.1237322e-06, %v12679_v25  ;;  %v3835_v49 = vadd.f32 %v3834_v11, %v12687_v35  ;;  %7197 = vmatpush.msra.mxu1 %v6875_v48  ;;  %7225 = vmatpush.msra.mxu2 %v6933_v38 }
 0x90e   : > { %14883 = vst [vmem:[#allocation108_spill] sm:$0xff] %v12694_v20  ;;  %v8243_v30 = vclamps-f32 %v6424_v42, 1.0  ;;  %v12703_v7 = vmul.f32 %v12645_v33, %v12297_v34  ;;  %v12706_v39 = vmul.f32 0.70710677, %v12681_v12  ;;  %v4283_v26 = vadd.f32 0.014752088, %v4282_v43  ;;  %7198 = vmatmul.f32.vlgmr.msra.gmra.mxu1 %v12635_v15 }
 0x90f   : > { %v4521_v58 = vadd.f32 0.001143296, %v4520_v18  ;;  %v5476_v3 = vadd.f32 0.18741608, %v5475_v53  ;;  %v5793_v42 = vmul.f32 %v5792_v9, %v12586_v41  ;;  %v12711_v63 = vadd.f32 %v3875_v2, %v3835_v49 }
 0x910   : > { %14884 = vst [vmem:[#allocation109_spill] sm:$0xff] %v12706_v39  ;;  %v6646_v16 = vadd.f32 1.0, %v8243_v30  ;;  %v5514_v34 = vadd.f32 0.05243302, %v5513_v36  ;;  %v5833_v33 = vmul.f32 %v5832_v44, %v12609_v0  ;;  %v6113_v17 = vmul.f32 %v6112_v50, %v12615_v55 }
 0x911   : > { %v4522_v43 = vmul.f32 %v4521_v58, %v12098_v54  ;;  %v12717_v11 = vmul.f32 0.5, %v12434_v37  ;;  %v6150_v53 = vadd.f32 0.00028619796, %v6149_v47  ;;  %v6430_v9 = vadd.f32 0.00028619796, %v6429_v51 }
 0x912   : > { %v12720_v48 = vmul.f32 %v6646_v16, %v14886_v46  ;;  %v6467_v60 = vmul.f32 %v12706_v39, %v12706_v39  ;;  %v4284_v36 = vmul.f32 %v4283_v26, %v12632_v61  ;;  %v12726_v44 = vmul.f32 0.70710677, %v12711_v63 }
 0x913   : > { %14885 = vst [vmem:[#allocation110_spill] sm:$0xff] %v12717_v11  ;;  %v4523_v50 = vadd.f32 0.014752088, %v4522_v43  ;;  %v5197_v18 = vmul.f32 %v12670_v32, %v12476_v27  ;;  %v5477_v37 = vmul.f32 %v5476_v3, %v12511_v19  ;;  %v5794_v30 = vadd.f32 0.05243302, %v5793_v42 }
 0x914   : > { %14887 = vst [vmem:[#allocation71_spill] sm:$0xff] %v12720_v48  ;;  %7137 = vmatmul.f32.gmra.mxu3 %v12720_v48  ;;  %v4560_v47 = vmul.f32 3.8918573e-05, %v12289_v29  ;;  %v5515_v51 = vmul.f32 %v5514_v34, %v12583_v40  ;;  %v5834_v38 = vadd.f32 0.05243302, %v5833_v33  ;;  %v4307_v2 = vmul.f32 %v12726_v44, %v12726_v44 }
 0x915   : > { %v6114_v49 = vadd.f32 0.05243302, %v6113_v17  ;;  %v4269_v26 = vmul.f32 2.1237322e-06, %v12632_v61  ;;  %v4524_v58 = vmul.f32 %v4523_v50, %v12098_v54  ;;  %v4840_v32 = vmul.f32 3.8918573e-05, %v12291_v5 }
 0x916   : > { %v4561_v16 = vadd.f32 0.001143296, %v4560_v47  ;;  %v6151_v3 = vmul.f32 %v6150_v53, %v12677_v14  ;;  %v6431_v42 = vmul.f32 %v6430_v9, %v12679_v25  ;;  %v12741_v43 = vmin.f32 %v6467_v60, 16.0 }
 0x917   : > { %v4285_v46 = vadd.f32 0.112945676, %v4284_v36  ;;  %v12743_v34 = vmin.f32 %v4307_v2, 16.0  ;;  %v4525_v33 = vadd.f32 0.112945676, %v4524_v58  ;;  %v12747_v52 = vmul.f32 0.5, %v12459_v4 }
 0x918   : > { %14888 = vst [vmem:[#allocation111_spill] sm:$0xff] %v12741_v43  ;;  %v4562_v17 = vmul.f32 %v4561_v16, %v12289_v29  ;;  %v4841_v48 = vadd.f32 0.001143296, %v4840_v32  ;;  %v5198_v15 = vadd.f32 1.1283791, %v5197_v18  ;;  %v5795_v50 = vmul.f32 %v5794_v30, %v12586_v41 }
 0x919   : > { %14889 = vst [vmem:[#allocation112_spill] sm:$0xff] %v12747_v52  ;;  %v4270_v47 = vadd.f32 0.00028619796, %v4269_v26  ;;  %v5835_v53 = vmul.f32 %v5834_v38, %v12609_v0  ;;  %v6115_v9 = vmul.f32 %v6114_v49, %v12615_v55  ;;  %v4526_v60 = vmul.f32 %v4525_v33, %v12098_v54 }
 0x91a   : > { %v4563_v36 = vadd.f32 0.014752088, %v4562_v17  ;;  %v5478_v2 = vadd.f32 1.1283791, %v5477_v37  ;;  %v5516_v39 = vadd.f32 0.18741608, %v5515_v51  ;;  %v4842_v16 = vmul.f32 %v4841_v48, %v12291_v5 }
 0x91b   : > { %v4320_v58 = vmul.f32 3.8918573e-05, %v12743_v34  ;;  %v6152_v18 = vadd.f32 0.0036580483, %v6151_v3  ;;  %v6432_v32 = vadd.f32 0.0036580483, %v6431_v42  ;;  %v4286_v30 = vmul.f32 %v4285_v46, %v12632_v61 }
 0x91c   : > { %v6469_v4 = vmul.f32 2.1237322e-06, %v12741_v43  ;;  %v4271_v26 = vmul.f32 %v4270_v47, %v12632_v61  ;;  %v4527_v38 = vadd.f32 0.4994258, %v4526_v60  ;;  %v4564_v49 = vmul.f32 %v4563_v36, %v12289_v29 }
 0x91d   : > { %v4843_v52 = vadd.f32 0.014752088, %v4842_v16  ;;  %v12761_v37 = vmul.f32 %v12647_v62, %v12320_v13  ;;  %v5796_v51 = vadd.f32 0.18741608, %v5795_v50  ;;  %v5836_v33 = vadd.f32 0.18741608, %v5835_v53 }
 0x91e   : > { %v6116_v17 = vadd.f32 0.18741608, %v6115_v9  ;;  %v4321_v48 = vadd.f32 0.001143296, %v4320_v58  ;;  %v4528_v3 = vmul.f32 %v4527_v38, %v12098_v54  ;;  %v4565_v42 = vadd.f32 0.112945676, %v4564_v49 }
 0x91f   : > { %v4844_v11 = vmul.f32 %v4843_v52, %v12291_v5  ;;  %v5517_v46 = vmul.f32 %v5516_v39, %v12583_v40  ;;  %v6153_v47 = vmul.f32 %v6152_v18, %v12677_v14  ;;  %v6433_v60 = vmul.f32 %v6432_v32, %v12679_v25  ;;  %v6965_v38 = vld [vmem:[#allocation22 + $0x7d0] sm:$0xff]  ;;  %v6931_v49 = vld [vmem:[#allocation22 + $0x6c0] sm:$0xff] }
 0x920   : > { %v4287_v36 = vadd.f32 0.4994258, %v4286_v30  ;;  %v6470_v16 = vadd.f32 0.00028619796, %v6469_v4  ;;  %v4272_v20 = vadd.f32 0.0036580483, %v4271_v26  ;;  %v4566_v62 = vmul.f32 %v4565_v42, %v12289_v29  ;;  %7266 = vmatpush.msra.mxu3 %v6965_v38  ;;  %7226 = vmatpush.msra.mxu2 %v6931_v49 }
 0x921   : > { %v12768_v13 = vadd.f32 1.0, %v4528_v3  ;;  %v12772_v50 = vmul.f32 %v5198_v15, %v12452_v28  ;;  %v5797_v54 = vmul.f32 %v5796_v51, %v12586_v41  ;;  %v4845_v53 = vadd.f32 0.112945676, %v4844_v11  ;;  %v6963_v51 = vld [vmem:[#allocation22 + $0x7c0] sm:$0xff] }
 0x922   : > { %v4880_v52 = vmul.f32 3.8918573e-05, %v12341_v23  ;;  %v5837_v39 = vmul.f32 %v5836_v33, %v12609_v0  ;;  %v6117_v9 = vmul.f32 %v6116_v17, %v12615_v55  ;;  %v4322_v58 = vmul.f32 %v4321_v48, %v12743_v34  ;;  %v6929_v48 = vld [vmem:[#allocation22 + $0x6b0] sm:$0xff]  ;;  %7267 = vmatpush.msra.mxu3 %v6963_v51 }
 0x923   : > { %8633 = vrcp.f32 %v12768_v13  ;;  %v6154_v18 = vadd.f32 0.05243302, %v6153_v47  ;;  %v6434_v32 = vadd.f32 0.05243302, %v6433_v60  ;;  %v4288_v4 = vmul.f32 %v4287_v36, %v12632_v61  ;;  %7227 = vmatpush.msra.mxu2 %v6929_v48 }
 0x924   : > { %v4567_v30 = vadd.f32 0.4994258, %v4566_v62  ;;  %v12782_v28 = vmul.f32 %v5478_v2, %v12471_v59  ;;  %v5518_v15 = vadd.f32 1.1283791, %v5517_v46  ;;  %v6471_v11 = vmul.f32 %v6470_v16, %v12741_v43 }
 0x925   : > { %v4273_v26 = vmul.f32 %v4272_v20, %v12632_v61  ;;  %v12787_v33 = vmul.f32 0.5, %v12491_v6  ;;  %v5798_v17 = vadd.f32 1.1283791, %v5797_v54  ;;  %v4846_v3 = vmul.f32 %v4845_v53, %v12291_v5 }
 0x926   : > { %v4881_v42 = vadd.f32 0.001143296, %v4880_v52  ;;  %v12791_v59 = vmul.f32 0.5, %v12494_v24  ;;  %v5838_v2 = vadd.f32 1.1283791, %v5837_v39  ;;  %v4568_v20 = vmul.f32 %v4567_v30, %v12289_v29  ;;  %v6961_v39 = vld [vmem:[#allocation22 + $0x7b0] sm:$0xff] }
 0x927   : > { %v4323_v46 = vadd.f32 0.014752088, %v4322_v58  ;;  %v6118_v47 = vadd.f32 1.1283791, %v6117_v9  ;;  %v6155_v60 = vmul.f32 %v6154_v18, %v12677_v14  ;;  %v6435_v6 = vmul.f32 %v6434_v32, %v12679_v25  ;;  %7268 = vmatpush.msra.mxu3 %v6961_v39 }
 0x928   : > { %v12796_v36 = vadd.f32 1.0, %v4288_v4  ;;  %v12799_v62 = vmul.f32 %v5518_v15, %v12517_v10  ;;  %v6472_v54 = vadd.f32 0.0036580483, %v6471_v11  ;;  %v4274_v24 = vadd.f32 0.05243302, %v4273_v26 }
 0x929   : > { %v8634_v16 = vpop.eup %8633  ;;  %v12801_v53 = vadd.f32 1.0, %v4568_v20  ;;  %v12804_v52 = vmul.f32 %v5798_v17, %v12522_v56  ;;  %v12807_v29 = vmul.f32 0.5, %v12524_v45  ;;  %v4847_v9 = vadd.f32 0.4994258, %v4846_v3  ;;  %v6927_v20 = vld [vmem:[#allocation22 + $0x6a0] sm:$0xff] }
 0x92a   : > { %v4882_v58 = vmul.f32 %v4881_v42, %v12341_v23  ;;  %v12811_v18 = vmul.f32 0.5, %v12530_v1  ;;  %v4324_v10 = vmul.f32 %v4323_v46, %v12743_v34  ;;  %v4531_v32 = vmul.f32 %v8634_v16, %v12768_v13  ;;  %v14894_v42 = vld [vmem:[#allocation103_spill] sm:$0xff]  ;;  %7228 = vmatpush.msra.mxu2 %v6927_v20 }
 0x92b   : > { %14890 = vst [vmem:[#allocation113_spill] sm:$0xff] %v12807_v29  ;;  %8635 = vrcp.f32 %v12801_v53  ;;  %v12817_v56 = vmul.f32 %v5838_v2, %v12552_v22  ;;  %v6156_v4 = vadd.f32 0.18741608, %v6155_v60  ;;  %v6436_v45 = vadd.f32 0.18741608, %v6435_v6  ;;  %v3755_v6 = vpop.f32.mrf.mxu0 }
 0x92c   : > { %14891 = vst [vmem:[#allocation114_spill] sm:$0xff] %v12811_v18  ;;  %8637 = vrcp.f32 %v12796_v36  ;;  %v12821_v30 = vmul.f32 %v6118_v47, %v12566_v8  ;;  %v6473_v1 = vmul.f32 %v6472_v54, %v12741_v43  ;;  %v4275_v15 = vmul.f32 %v4274_v24, %v12632_v61  ;;  %v6959_v24 = vld [vmem:[#allocation22 + $0x7a0] sm:$0xff] }
 0x92d   : > { %v4532_v11 = vsub.f32 1.0, %v4531_v32  ;;  %v4309_v26 = vmul.f32 2.1237322e-06, %v12743_v34  ;;  %v4541_v38 = vand.u32 2147483648, %v12768_v13  ;;  %v4848_v49 = vmul.f32 %v4847_v9, %v12291_v5  ;;  %7269 = vmatpush.msra.mxu3 %v6959_v24 }
 0x92e   : > { %14892 = vst [vmem:[#allocation115_spill] sm:$0xff] %v12821_v30  ;;  %v4883_v22 = vadd.f32 0.014752088, %v4882_v58  ;;  %v4325_v51 = vadd.f32 0.112945676, %v4324_v10  ;;  %vm4536_vm1 = vweird.f32 %v8634_v16  ;;  %v12830_v8 = vmul.f32 0.5, %v12620_v57 }
 0x92f   : > { %v4533_v17 = vmul.f32 %v8634_v16, %v4532_v11  ;;  %v4539_v48 = vand.u32 2147483647, %v12768_v13  ;;  %v6157_v3 = vmul.f32 %v6156_v4, %v12677_v14  ;;  %v12834_v2 = vmul.f32 0.5, %v14894_v42 }
 0x930   : > { %14893 = vst [vmem:[#allocation116_spill] sm:$0xff] %v12830_v8  ;;  %v12837_v46 = vmul.f32 %v6436_v45, %v12679_v25  ;;  %v6474_v5 = vadd.f32 0.05243302, %v6473_v1  ;;  %v4276_v60 = vadd.f32 0.18741608, %v4275_v15  ;;  %vm4535_vm2 = vweird.f32 %v12768_v13  ;;  %v14896_v13 = vld [vmem:[#allocation63_spill] sm:$0xff] }
 0x931   : > { %14895 = vst [vmem:[#allocation103_spill] sm:$0xff] %v12834_v2  ;;  %v8636_v47 = vpop.eup %8635  ;;  %v4534_v54 = vadd.f32 %v8634_v16, %v4533_v17  ;;  %v4310_v39 = vadd.f32 0.00028619796, %v4309_v26  ;;  %vm4537_vm3 = vmor %vm4535_vm2, %vm4536_vm1  ;;  %v4542_v9 = vor.u32 1.1754944e-38, %v4541_v38  ;;  %v12844_v10 = vadd.f32 1.0, %v4848_v49  ;;  %v14897_v17 = vld [vmem:[#allocation95_spill] sm:$0xff] }
 0x932   : > { %v12840_v57 = vpop.eup %8637  ;;  %v4571_v58 = vmul.f32 %v8636_v47, %v12801_v53  ;;  %v4326_v32 = vmul.f32 %v4325_v51, %v12743_v34  ;;  %vm4540_vm4 = vcmp.eq.f32.partialorder %v4539_v48, 8.507059e+37  ;;  %v4884_v45 = vmul.f32 %v4883_v22, %v12341_v23 }
 0x933   : > { %v4538_v4 = vsel %vm4537_vm3, %v8634_v16, %v4534_v54  ;;  %v3756_v1 = vadd.f32 %v3755_v6, %v14896_v13  ;;  %8639 = vrcp.f32 %v12844_v10  ;;  %v12850_v26 = vadd.f32 1.1283791, %v6157_v3  ;;  %v3796_v6 = vpop.f32.mrf.mxu1  ;;  %v3837_v3 = vpop.f32.mrf.mxu2 }
 0x934   : > { %v4543_v15 = vsel %vm4540_vm4, %v4542_v9, %v4538_v4  ;;  %v4572_v11 = vsub.f32 1.0, %v4571_v58  ;;  %v4291_v38 = vmul.f32 %v12840_v57, %v12796_v36  ;;  %v4581_v42 = vand.u32 2147483648, %v12801_v53 }
 0x935   : > { %v4544_v49 = vmul.f32 %v4543_v15, %v14897_v17  ;;  %v4311_v16 = vmul.f32 %v4310_v39, %v12743_v34  ;;  %vm4576_vm5 = vweird.f32 %v8636_v47  ;;  %v4579_v22 = vand.u32 2147483647, %v12801_v53  ;;  %v14898_v17 = vld [vmem:[#allocation69_spill] sm:$0xff] }
 0x936   : > { %v4573_v51 = vmul.f32 %v8636_v47, %v4572_v11  ;;  %v6475_v48 = vmul.f32 %v6474_v5, %v12741_v43  ;;  %v4327_v20 = vadd.f32 0.4994258, %v4326_v32  ;;  %v4885_v24 = vadd.f32 0.112945676, %v4884_v45 }
 0x937   : > { %v8196_v54 = vclamps-f32 %v4544_v49, 1.0  ;;  %v4277_v9 = vmul.f32 %v4276_v60, %v12632_v61  ;;  %v12860_v58 = vadd.f32 %v3796_v6, %v3756_v1  ;;  %vm4575_vm6 = vweird.f32 %v12801_v53  ;;  %v14899_v60 = vld [vmem:[#allocation68_spill] sm:$0xff] }
 0x938   : > { %v4574_v4 = vadd.f32 %v8636_v47, %v4573_v51  ;;  %v4292_v15 = vsub.f32 1.0, %v4291_v38  ;;  %vm4577_vm7 = vmor %vm4575_vm6, %vm4576_vm5  ;;  %v4582_v11 = vor.u32 1.1754944e-38, %v4581_v42  ;;  %v5160_v2 = vmul.f32 3.8918573e-05, %v14898_v17  ;;  %v14901_v51 = vld [vmem:[#allocation105_spill] sm:$0xff] }
 0x939   : > { %v6599_v39 = vadd.f32 1.0, %v8196_v54  ;;  %v12864_v8 = vpop.eup %8639  ;;  %v4312_v5 = vadd.f32 0.0036580483, %v4311_v16  ;;  %vm4580_vm8 = vcmp.eq.f32.partialorder %v4579_v22, 8.507059e+37  ;;  %v3838_v45 = vadd.f32 %v3837_v3, %v12687_v35  ;;  %v3878_v54 = vpop.f32.mrf.mxu3 }
 0x93a   : > { %v4578_v32 = vsel %vm4577_vm7, %v8636_v47, %v4574_v4  ;;  %v4328_v61 = vmul.f32 %v4327_v20, %v12743_v34  ;;  %v4886_v53 = vmul.f32 %v4885_v24, %v12341_v23  ;;  %v6476_v38 = vadd.f32 0.18741608, %v6475_v48  ;;  %v3758_v48 = vpop.f32.mrf.mxu0 }
 0x93b   : > { %v12869_v1 = vmul.f32 %v6599_v39, %v14899_v60  ;;  %v4583_v49 = vsel %vm4580_vm8, %v4582_v11, %v4578_v32  ;;  %v12873_v42 = vmul.f32 0.70710677, %v12860_v58  ;;  %v4851_v47 = vmul.f32 %v12864_v8, %v12844_v10  ;;  %v6925_v39 = vld [vmem:[#allocation22 + $0x690] sm:$0xff] }
 0x93c   : > { %v4584_v6 = vmul.f32 %v4583_v49, %v14901_v51  ;;  %v12878_v16 = vadd.f32 1.1283791, %v4277_v9  ;;  %v4293_v22 = vmul.f32 %v12840_v57, %v4292_v15  ;;  %vm4295_vm9 = vweird.f32 %v12796_v36  ;;  %7229 = vmatpush.msra.mxu2 %v6925_v39  ;;  %v6957_v60 = vld [vmem:[#allocation22 + $0x790] sm:$0xff] }
 0x93d   : > { %14900 = vst [vmem:[#allocation63_spill] sm:$0xff] %v12869_v1  ;;  %v4299_v20 = vand.u32 2147483647, %v12796_v36  ;;  %7160 = vmatmul.f32.gmra.mxu0 %v12869_v1  ;;  %v4313_v3 = vmul.f32 %v4312_v5, %v12743_v34  ;;  %v12885_v4 = vadd.f32 %v3878_v54, %v3838_v45  ;;  %v5161_v11 = vadd.f32 0.001143296, %v5160_v2  ;;  %7270 = vmatpush.msra.mxu3 %v6957_v60 }
 0x93e   : > { %v8197_v24 = vclamps-f32 %v4584_v6, 1.0  ;;  %vm4296_vm10 = vweird.f32 %v12840_v57  ;;  %v12888_v9 = vadd.f32 1.0, %v4328_v61  ;;  %v4852_v15 = vsub.f32 1.0, %v4851_v47  ;;  %v14902_v47 = vld [vmem:[#allocation78_spill] sm:$0xff] }
 0x93f   : > { %v4887_v32 = vadd.f32 0.4994258, %v4886_v53  ;;  %v4587_v49 = vmul.f32 %v12873_v42, %v12873_v42  ;;  %v3759_v1 = vadd.f32 %v3758_v48, %v14896_v13  ;;  %v4861_v5 = vand.u32 2147483648, %v12844_v10  ;;  %vm12921_vm14 = vmor %vm4295_vm9, %vm4296_vm10 }
 0x940   : > { %v6600_v51 = vadd.f32 1.0, %v8197_v24  ;;  %v4853_v45 = vmul.f32 %v12864_v8, %v4852_v15  ;;  %vm4856_vm11 = vweird.f32 %v12864_v8  ;;  %v4859_v2 = vand.u32 2147483647, %v12844_v10 }
 0x941   : > { %v4888_v61 = vmul.f32 %v4887_v32, %v12341_v23  ;;  %v4294_v53 = vadd.f32 %v12840_v57, %v4293_v22  ;;  %v4314_v6 = vadd.f32 0.05243302, %v4313_v3  ;;  %v12903_v24 = vmul.f32 0.70710677, %v12885_v4  ;;  %v3799_v22 = vpop.f32.mrf.mxu1 }
 0x942   : > { %v12900_v54 = vmul.f32 %v6600_v51, %v14902_v47  ;;  %v4301_v48 = vand.u32 2147483648, %v12796_v36  ;;  %v4854_v39 = vadd.f32 %v12864_v8, %v4853_v45  ;;  %vm4855_vm12 = vweird.f32 %v12844_v10  ;;  %v6955_v47 = vld [vmem:[#allocation22 + $0x780] sm:$0xff] }
 0x943   : > { %v12908_v15 = vadd.f32 1.0, %v4888_v61  ;;  %8641 = vrcp.f32 %v12888_v9  ;;  %v12911_v23 = vmin.f32 %v4587_v49, 16.0  ;;  %vm4857_vm13 = vmor %vm4855_vm12, %vm4856_vm11  ;;  %v4862_v3 = vor.u32 1.1754944e-38, %v4861_v5  ;;  %7271 = vmatpush.msra.mxu3 %v6955_v47 }
 0x944   : > { %14903 = vst [vmem:[#allocation95_spill] sm:$0xff] %v12900_v54  ;;  %7201 = vmatmul.f32.gmra.mxu1 %v12900_v54  ;;  %v5162_v32 = vmul.f32 %v5161_v11, %v14898_v17  ;;  %v12925_v60 = vadd.f32 %v3799_v22, %v3759_v1  ;;  %v4858_v49 = vsel %vm4857_vm13, %v12864_v8, %v4854_v39  ;;  %vm4860_vm15 = vcmp.eq.f32.partialorder %v4859_v2, 8.507059e+37  ;;  %v6923_v2 = vld [vmem:[#allocation22 + $0x680] sm:$0xff]  ;;  %v14906_v39 = vld [vmem:[#allocation106_spill] sm:$0xff] }
 0x945   : > { %8643 = vrcp.f32 %v12908_v15  ;;  %v4298_v51 = vsel %vm12921_vm14, %v12840_v57, %v4294_v53  ;;  %v4315_v11 = vmul.f32 %v4314_v6, %v12743_v34  ;;  %v4627_v36 = vmul.f32 %v12903_v24, %v12903_v24  ;;  %7230 = vmatpush.msra.mxu2 %v6923_v2 }
 0x946   : > { %v4863_v5 = vsel %vm4860_vm15, %v4862_v3, %v4858_v49  ;;  %v12936_v45 = vadd.f32 1.1283791, %v12837_v46  ;;  %v6477_v1 = vmul.f32 %v6476_v38, %v12741_v43  ;;  %v4302_v61 = vor.u32 1.1754944e-38, %v4301_v48  ;;  %v14909_v3 = vld [vmem:[#allocation102_spill] sm:$0xff] }
 0x947   : > { %v4864_v8 = vmul.f32 %v4863_v5, %v12691_v21  ;;  %v12942_v22 = vmul.f32 %v12850_v26, %v14906_v39  ;;  %vm4300_vm0 = vcmp.eq.f32.partialorder %v4299_v20, 8.507059e+37  ;;  %v4589_v57 = vmul.f32 2.1237322e-06, %v12911_v23  ;;  %v14911_v39 = vld [vmem:[#allocation74_spill] sm:$0xff] }
 0x948   : > { %v5163_v53 = vadd.f32 0.014752088, %v5162_v32  ;;  %v12946_v46 = vmul.f32 0.5, %v12681_v12  ;;  %v4303_v6 = vsel %vm4300_vm0, %v4302_v61, %v4298_v51  ;;  %v12949_v38 = vmul.f32 0.70710677, %v12925_v60  ;;  %v14910_v12 = vld [vmem:[#allocation101_spill] sm:$0xff] }
 0x949   : > { %14907 = vst [vmem:[#allocation69_spill] sm:$0xff] %v12942_v22  ;;  %v8204_v21 = vclamps-f32 %v4864_v8, 1.0  ;;  %v12951_v48 = vpop.eup %8641  ;;  %v4279_v26 = vmul.f32 %v12878_v16, %v14909_v3  ;;  %v4316_v10 = vadd.f32 0.18741608, %v4315_v11  ;;  %v12955_v20 = vmin.f32 %v4627_v36, 16.0 }
 0x94a   : > { %14908 = vst [vmem:[#allocation68_spill] sm:$0xff] %v12946_v46  ;;  %v5164_v49 = vmul.f32 %v5163_v53, %v14898_v17  ;;  %v12958_v32 = vadd.f32 1.1283791, %v6477_v1  ;;  %v12961_v2 = vmul.f32 0.5, %v14910_v12  ;;  %v5200_v61 = vmul.f32 3.8918573e-05, %v12476_v27 }
 0x94b   : > { %v8644_v5 = vpop.eup %8643  ;;  %v6607_v51 = vadd.f32 1.0, %v8204_v21  ;;  %v12964_v8 = vmul.f32 %v4303_v6, %v4279_v26  ;;  %v12967_v47 = vmul.f32 0.5, %v12711_v63  ;;  %v4590_v16 = vadd.f32 0.00028619796, %v4589_v57 }
 0x94c   : > { %v4891_v11 = vmul.f32 %v8644_v5, %v12908_v15  ;;  %v4331_v36 = vmul.f32 %v12951_v48, %v12888_v9  ;;  %v4907_v1 = vmul.f32 %v12949_v38, %v12949_v38  ;;  %v5165_v21 = vadd.f32 0.112945676, %v5164_v49 }
 0x94d   : > { %v12975_v53 = vmul.f32 %v6607_v51, %v14911_v39  ;;  %v4317_v3 = vmul.f32 %v4316_v10, %v12743_v34  ;;  %v4629_v6 = vmul.f32 2.1237322e-06, %v12955_v20  ;;  %v5201_v63 = vadd.f32 0.001143296, %v5200_v61  ;;  %v3840_v51 = vpop.f32.mrf.mxu2 }
 0x94e   : > { %v4892_v26 = vsub.f32 1.0, %v4891_v11  ;;  %v4899_v57 = vand.u32 2147483647, %v12908_v15  ;;  %v4901_v12 = vand.u32 2147483648, %v12908_v15  ;;  %v5166_v54 = vmul.f32 %v5165_v21, %v14898_v17 }
 0x94f   : > { %14912 = vst [vmem:[#allocation105_spill] sm:$0xff] %v12975_v53  ;;  %7163 = vmatmul.f32.gmra.mxu0 %v12975_v53  ;;  %v5480_v46 = vmul.f32 3.8918573e-05, %v12511_v19  ;;  %vm4896_vm1 = vweird.f32 %v8644_v5  ;;  %v5202_v49 = vmul.f32 %v5201_v63, %v12476_v27  ;;  %v5520_v34 = vmul.f32 3.8918573e-05, %v12583_v40 }
 0x950   : > { %v4893_v22 = vmul.f32 %v8644_v5, %v4892_v26  ;;  %v4332_v10 = vsub.f32 1.0, %v4331_v36  ;;  %v12986_v11 = vmin.f32 %v4907_v1, 16.0  ;;  %vm4895_vm2 = vweird.f32 %v12908_v15 }
 0x951   : > { %v5167_v61 = vadd.f32 0.4994258, %v5166_v54  ;;  %v5203_v53 = vadd.f32 0.014752088, %v5202_v49  ;;  %v5481_v18 = vadd.f32 0.001143296, %v5480_v46  ;;  %vm4897_vm3 = vmor %vm4895_vm2, %vm4896_vm1  ;;  %v3841_v26 = vadd.f32 %v3840_v51, %v12687_v35  ;;  %v3881_v49 = vpop.f32.mrf.mxu3 }
 0x952   : > { %v4894_v39 = vadd.f32 %v8644_v5, %v4893_v22  ;;  %v5521_v30 = vadd.f32 0.001143296, %v5520_v34  ;;  %vm4900_vm4 = vcmp.eq.f32.partialorder %v4899_v57, 8.507059e+37  ;;  %v4902_v21 = vor.u32 1.1754944e-38, %v4901_v12 }
 0x953   : > { %v5168_v29 = vmul.f32 %v5167_v61, %v14898_v17  ;;  %v5204_v43 = vmul.f32 %v5203_v53, %v12476_v27  ;;  %v5482_v36 = vmul.f32 %v5481_v18, %v12511_v19  ;;  %v8190_v54 = vclamps-f32 %v12964_v8, 1.0 }
 0x954   : > { %v4898_v63 = vsel %vm4897_vm3, %v8644_v5, %v4894_v39  ;;  %v5522_v1 = vmul.f32 %v5521_v30, %v12583_v40  ;;  %v4591_v15 = vmul.f32 %v4590_v16, %v12911_v23  ;;  %v4333_v57 = vmul.f32 %v12951_v48, %v4332_v10  ;;  %v6953_v39 = vld [vmem:[#allocation22 + $0x770] sm:$0xff] }
 0x955   : > { %v4903_v22 = vsel %vm4900_vm4, %v4902_v21, %v4898_v63  ;;  %v12996_v46 = vadd.f32 1.0, %v5168_v29  ;;  %v5205_v51 = vadd.f32 0.112945676, %v5204_v43  ;;  %v5483_v17 = vadd.f32 0.014752088, %v5482_v36  ;;  %v6921_v43 = vld [vmem:[#allocation22 + $0x670] sm:$0xff]  ;;  %7272 = vmatpush.msra.mxu3 %v6953_v39 }
 0x956   : > { %v4904_v12 = vmul.f32 %v4903_v22, %v12703_v7  ;;  %v4630_v5 = vadd.f32 0.00028619796, %v4629_v6  ;;  %v4909_v53 = vmul.f32 2.1237322e-06, %v12986_v11  ;;  %v5523_v18 = vadd.f32 0.014752088, %v5522_v1  ;;  %7231 = vmatpush.msra.mxu2 %v6921_v43 }
 0x957   : > { %8645 = vrcp.f32 %v12996_v46  ;;  %v4318_v30 = vadd.f32 1.1283791, %v4317_v3  ;;  %v13002_v34 = vadd.f32 %v3881_v49, %v3841_v26  ;;  %v5206_v29 = vmul.f32 %v5205_v51, %v12476_v27  ;;  %v6951_v51 = vld [vmem:[#allocation22 + $0x760] sm:$0xff] }
 0x958   : > { %v8205_v8 = vclamps-f32 %v4904_v12, 1.0  ;;  %vm4335_vm5 = vweird.f32 %v12888_v9  ;;  %v4339_v16 = vand.u32 2147483647, %v12888_v9  ;;  %v4341_v7 = vand.u32 2147483648, %v12888_v9  ;;  %v6919_v12 = vld [vmem:[#allocation22 + $0x660] sm:$0xff]  ;;  %7273 = vmatpush.msra.mxu3 %v6951_v51  ;;  %v3802_v51 = vpop.f32.mrf.mxu1 }
 0x959   : > { %v5484_v6 = vmul.f32 %v5483_v17, %v12511_v19  ;;  %v4334_v10 = vadd.f32 %v12951_v48, %v4333_v57  ;;  %vm4336_vm6 = vweird.f32 %v12951_v48  ;;  %v5207_v3 = vadd.f32 0.4994258, %v5206_v29  ;;  %7232 = vmatpush.msra.mxu2 %v6919_v12 }
 0x95a   : > { %v6608_v61 = vadd.f32 1.0, %v8205_v8  ;;  %v4592_v21 = vadd.f32 0.0036580483, %v4591_v15  ;;  %v4631_v26 = vmul.f32 %v4630_v5, %v12955_v20  ;;  %v4910_v63 = vadd.f32 0.00028619796, %v4909_v53  ;;  %vm13027_vm7 = vmor %vm4335_vm5, %vm4336_vm6 }
 0x95b   : > { %v5524_v36 = vmul.f32 %v5523_v18, %v12583_v40  ;;  %v13017_v22 = vmul.f32 0.70710677, %v13002_v34  ;;  %v5208_v57 = vmul.f32 %v5207_v3, %v12476_v27  ;;  %v5485_v17 = vadd.f32 0.112945676, %v5484_v6 }
 0x95c   : > { %v13014_v1 = vmul.f32 %v6608_v61, %v12675_v31  ;;  %v13020_v8 = vadd.f32 1.0, %v8190_v54  ;;  %v4319_v15 = vmul.f32 %v4318_v30, %v12726_v44  ;;  %v4342_v5 = vor.u32 1.1754944e-38, %v4341_v7  ;;  %v3761_v44 = vpop.f32.mrf.mxu0 }
 0x95d   : > { %v8646_v49 = vpop.eup %8645  ;;  %v13032_v53 = vmul.f32 0.5, %v12860_v58  ;;  %v4338_v27 = vsel %vm13027_vm7, %v12951_v48, %v4334_v10  ;;  %v13039_v9 = vadd.f32 1.0, %v5208_v57  ;;  %v5486_v18 = vmul.f32 %v5485_v17, %v12511_v19 }
 0x95e   : > { %14913 = vst [vmem:[#allocation78_spill] sm:$0xff] %v13014_v1  ;;  %7204 = vmatmul.f32.gmra.mxu1 %v13014_v1  ;;  %v5171_v54 = vmul.f32 %v8646_v49, %v12996_v46  ;;  %v4593_v30 = vmul.f32 %v4592_v21, %v12911_v23  ;;  %v4632_v29 = vadd.f32 0.0036580483, %v4631_v26  ;;  %v4911_v58 = vmul.f32 %v4910_v63, %v12986_v11 }
 0x95f   : > { %v5525_v7 = vadd.f32 0.112945676, %v5524_v36  ;;  %vm4340_vm8 = vcmp.eq.f32.partialorder %v4339_v16, 8.507059e+37  ;;  %v4947_v43 = vmul.f32 %v13017_v22, %v13017_v22  ;;  %8647 = vrcp.f32 %v13039_v9 }
 0x960   : > { %v5172_v48 = vsub.f32 1.0, %v5171_v54  ;;  %v4343_v6 = vsel %vm4340_vm8, %v4342_v5, %v4338_v27  ;;  %v13048_v10 = vmul.f32 0.5, %v12885_v4  ;;  %v3762_v61 = vadd.f32 %v3761_v44, %v14896_v13 }
 0x961   : > { %v5181_v3 = vand.u32 2147483648, %v12996_v46  ;;  %vm5176_vm9 = vweird.f32 %v8646_v49  ;;  %v5179_v21 = vand.u32 2147483647, %v12996_v46  ;;  %v5487_v26 = vadd.f32 0.4994258, %v5486_v18 }
 0x962   : > { %v5173_v39 = vmul.f32 %v8646_v49, %v5172_v48  ;;  %v4594_v16 = vadd.f32 0.05243302, %v4593_v30  ;;  %v4633_v63 = vmul.f32 %v4632_v29, %v12955_v20  ;;  %v4912_v36 = vadd.f32 0.0036580483, %v4911_v58  ;;  %v6778_v48 = vld [vmem:[#allocation22 + $0x1f8] sm:$0xff] }
 0x963   : > { %v5526_v57 = vmul.f32 %v5525_v7, %v12583_v40  ;;  %v13055_v12 = vmin.f32 %v4947_v43, 16.0  ;;  %vm5175_vm10 = vweird.f32 %v12996_v46  ;;  %v5488_v17 = vmul.f32 %v5487_v26, %v12511_v19  ;;  %v6917_v7 = vld [vmem:[#allocation22 + $0x650] sm:$0xff]  ;;  %v6746_v43 = vld [vmem:[#allocation22 + $0xf8] sm:$0xff]  ;;  %7346 = vmatpush.msrb.mxu1 %v6778_v48 }
 0x964   : > { %v5174_v4 = vadd.f32 %v8646_v49, %v5173_v39  ;;  %v4344_v31 = vmul.f32 %v4343_v6, %v4319_v15  ;;  %v13059_v5 = vadd.f32 %v3802_v51, %v3762_v61  ;;  %vm5177_vm11 = vmor %vm5175_vm10, %vm5176_vm9  ;;  %v5182_v27 = vor.u32 1.1754944e-38, %v5181_v3  ;;  %7233 = vmatpush.msra.mxu2 %v6917_v7  ;;  %7305 = vmatpush.msrb.mxu0 %v6746_v43  ;;  %v14917_v48 = vld [vmem:[#allocation108_spill] sm:$0xff] }
 0x965   : > { %v5800_v44 = vmul.f32 3.8918573e-05, %v12586_v41  ;;  %v13062_v54 = vpop.eup %8647  ;;  %vm5180_vm12 = vcmp.eq.f32.partialorder %v5179_v21, 8.507059e+37  ;;  %v13064_v30 = vadd.f32 1.0, %v5488_v17  ;;  %v5527_v29 = vadd.f32 0.4994258, %v5526_v57  ;;  %v3843_v17 = vpop.f32.mrf.mxu2 }
 0x966   : > { %v5178_v18 = vsel %vm5177_vm11, %v8646_v49, %v5174_v4  ;;  %v13067_v58 = vmul.f32 0.5, %v12925_v60  ;;  %v4913_v46 = vmul.f32 %v4912_v36, %v12986_v11  ;;  %v5211_v15 = vmul.f32 %v13062_v54, %v13039_v9 }
 0x967   : > { %v5183_v19 = vsel %vm5180_vm12, %v5182_v27, %v5178_v18  ;;  %v4595_v6 = vmul.f32 %v4594_v16, %v12911_v23  ;;  %v4949_v49 = vmul.f32 2.1237322e-06, %v13055_v12  ;;  %8649 = vrcp.f32 %v13064_v30 }
 0x968   : > { %v5184_v61 = vmul.f32 %v5183_v19, %v12761_v37  ;;  %v8191_v60 = vclamps-f32 %v4344_v31, 1.0  ;;  %v4634_v3 = vadd.f32 0.05243302, %v4633_v63  ;;  %v5212_v39 = vsub.f32 1.0, %v5211_v15  ;;  %v14916_v63 = vld [vmem:[#allocation107_spill] sm:$0xff]  ;;  %v6744_v15 = vld [vmem:[#allocation22 + $0xe8] sm:$0xff] }
 0x969   : > { %v5801_v21 = vadd.f32 0.001143296, %v5800_v44  ;;  %v13077_v26 = vmul.f32 0.70710677, %v13059_v5  ;;  %v5221_v57 = vand.u32 2147483648, %v13039_v9  ;;  %v5528_v16 = vmul.f32 %v5527_v29, %v12583_v40  ;;  %v6949_v19 = vld [vmem:[#allocation22 + $0x750] sm:$0xff]  ;;  %7306 = vmatpush.msrb.mxu0 %v6744_v15 }
 0x96a   : > { %v8212_v36 = vclamps-f32 %v5184_v61, 1.0  ;;  %v4914_v51 = vadd.f32 0.05243302, %v4913_v46  ;;  %v5213_v37 = vmul.f32 %v13062_v54, %v5212_v39  ;;  %vm5216_vm13 = vweird.f32 %v13062_v54  ;;  %7274 = vmatpush.msra.mxu3 %v6949_v19  ;;  %v6776_v29 = vld [vmem:[#allocation22 + $0x1e8] sm:$0xff]  ;;  %v3764_v39 = vpop.f32.mrf.mxu0  ;;  %v6742_v19 = vld [vmem:[#allocation22 + $0xd8] sm:$0xff] }
 0x96b   : > { %v5219_v4 = vand.u32 2147483647, %v13039_v9  ;;  %v13086_v31 = vmul.f32 %v12936_v45, %v14916_v63  ;;  %v4950_v27 = vadd.f32 0.00028619796, %v4949_v49  ;;  %v13088_v18 = vadd.f32 1.0, %v5528_v16  ;;  %7347 = vmatpush.msrb.mxu1 %v6776_v29  ;;  %v6774_v15 = vld [vmem:[#allocation22 + $0x1d8] sm:$0xff]  ;;  %7307 = vmatpush.msrb.mxu0 %v6742_v19 }
 0x96c   : > { %v6615_v44 = vadd.f32 1.0, %v8212_v36  ;;  %v4596_v7 = vadd.f32 0.18741608, %v4595_v6  ;;  %v5214_v40 = vadd.f32 %v13062_v54, %v5213_v37  ;;  %vm5215_vm14 = vweird.f32 %v13039_v9 }
 0x96d   : > { %v5802_v46 = vmul.f32 %v5801_v21, %v12586_v41  ;;  %v13093_v43 = vpop.eup %8649  ;;  %v5227_v45 = vmul.f32 %v13077_v26, %v13077_v26  ;;  %vm5217_vm15 = vmor %vm5215_vm14, %vm5216_vm13  ;;  %v5222_v6 = vor.u32 1.1754944e-38, %v5221_v57  ;;  %8651 = vrcp.f32 %v13088_v18  ;;  %7348 = vmatpush.msrb.mxu1 %v6774_v15  ;;  %v3846_v19 = vpop.f32.mrf.mxu2 }
 0x96e   : > { %v13098_v49 = vmul.f32 %v6615_v44, %v14917_v48  ;;  %v4635_v9 = vmul.f32 %v4634_v3, %v12955_v20  ;;  %v5218_v61 = vsel %vm5217_vm15, %v13062_v54, %v5214_v40  ;;  %vm5220_vm0 = vcmp.eq.f32.partialorder %v5219_v4, 8.507059e+37  ;;  %v3884_v54 = vpop.f32.mrf.mxu3  ;;  %v6915_v44 = vld [vmem:[#allocation22 + $0x640] sm:$0xff] }
 0x96f   : > { %v5491_v21 = vmul.f32 %v13093_v43, %v13064_v30  ;;  %v13107_v36 = vadd.f32 1.0, %v8191_v60  ;;  %v4915_v16 = vmul.f32 %v4914_v51, %v12986_v11  ;;  %v4951_v37 = vmul.f32 %v4950_v27, %v13055_v12  ;;  %7234 = vmatpush.msra.mxu2 %v6915_v44 }
 0x970   : > { %14918 = vst [vmem:[#allocation106_spill] sm:$0xff] %v13098_v49  ;;  %7166 = vmatmul.f32.gmra.mxu0 %v13098_v49  ;;  %v5223_v57 = vsel %vm5220_vm0, %v5222_v6, %v5218_v61  ;;  %v13113_v63 = vmul.f32 %v4596_v7, %v12911_v23  ;;  %v5803_v40 = vadd.f32 0.014752088, %v5802_v46  ;;  %v13116_v60 = vmin.f32 %v5227_v45, 16.0  ;;  %v6947_v7 = vld [vmem:[#allocation22 + $0x740] sm:$0xff]  ;;  %v6740_v46 = vld [vmem:[#allocation22 + $0xc8] sm:$0xff] }
 0x971   : > { %v5224_v3 = vmul.f32 %v5223_v57, %v12772_v50  ;;  %v5492_v4 = vsub.f32 1.0, %v5491_v21  ;;  %v3844_v51 = vadd.f32 %v3843_v17, %v12687_v35  ;;  %v3765_v27 = vadd.f32 %v3764_v39, %v14896_v13  ;;  %7275 = vmatpush.msra.mxu3 %v6947_v7  ;;  %v6772_v45 = vld [vmem:[#allocation22 + $0x1c8] sm:$0xff]  ;;  %7308 = vmatpush.msrb.mxu0 %v6740_v46 }
 0x972   : > { %v5501_v29 = vand.u32 2147483648, %v13064_v30  ;;  %vm5496_vm1 = vweird.f32 %v13093_v43  ;;  %v5499_v6 = vand.u32 2147483647, %v13064_v30  ;;  %v4636_v17 = vadd.f32 0.18741608, %v4635_v9  ;;  %7349 = vmatpush.msrb.mxu1 %v6772_v45 }
 0x973   : > { %v8213_v48 = vclamps-f32 %v5224_v3, 1.0  ;;  %v5493_v50 = vmul.f32 %v13093_v43, %v5492_v4  ;;  %v8652_v61 = vpop.eup %8651  ;;  %v13124_v21 = vadd.f32 0.18741608, %v4915_v16  ;;  %v4952_v39 = vadd.f32 0.0036580483, %v4951_v37  ;;  %v3805_v3 = vpop.f32.mrf.mxu1  ;;  %v14919_v16 = vld [vmem:[#allocation110_spill] sm:$0xff] }
 0x974   : > { %vm5495_vm2 = vweird.f32 %v13064_v30  ;;  %v5531_v44 = vmul.f32 %v8652_v61, %v13088_v18  ;;  %v5804_v15 = vmul.f32 %v5803_v40, %v12586_v41  ;;  %v5229_v7 = vmul.f32 2.1237322e-06, %v13116_v60 }
 0x975   : > { %v6616_v57 = vadd.f32 1.0, %v8213_v48  ;;  %v5494_v4 = vadd.f32 %v13093_v43, %v5493_v50  ;;  %v13131_v49 = vadd.f32 %v3884_v54, %v3844_v51  ;;  %v13133_v9 = vadd.f32 %v3805_v3, %v3765_v27  ;;  %vm5497_vm3 = vmor %vm5495_vm2, %vm5496_vm1 }
 0x976   : > { %v5502_v30 = vor.u32 1.1754944e-38, %v5501_v29  ;;  %vm5500_vm4 = vcmp.eq.f32.partialorder %v5499_v6, 8.507059e+37  ;;  %v5532_v50 = vsub.f32 1.0, %v5531_v44  ;;  %v5539_v40 = vand.u32 2147483647, %v13088_v18 }
 0x977   : > { %v13138_v37 = vmul.f32 %v6616_v57, %v14919_v16  ;;  %v5498_v48 = vsel %vm5497_vm3, %v13093_v43, %v5494_v4  ;;  %v5541_v45 = vand.u32 2147483648, %v13088_v18  ;;  %v3847_v54 = vadd.f32 %v3846_v19, %v12687_v35  ;;  %v3887_v19 = vpop.f32.mrf.mxu3 }
 0x978   : > { %v5503_v46 = vsel %vm5500_vm4, %v5502_v30, %v5498_v48  ;;  %v5533_v27 = vmul.f32 %v8652_v61, %v5532_v50  ;;  %vm5536_vm5 = vweird.f32 %v8652_v61  ;;  %v5805_v29 = vadd.f32 0.112945676, %v5804_v15 }
 0x979   : > { %14920 = vst [vmem:[#allocation102_spill] sm:$0xff] %v13138_v37  ;;  %7207 = vmatmul.f32.gmra.mxu1 %v13138_v37  ;;  %v5504_v51 = vmul.f32 %v5503_v46, %v12782_v28  ;;  %v4637_v57 = vmul.f32 %v4636_v17, %v12955_v20  ;;  %v13148_v43 = vmul.f32 0.70710677, %v13131_v49  ;;  %v13151_v6 = vmul.f32 0.70710677, %v13133_v9  ;;  %v3767_v37 = vpop.f32.mrf.mxu0 }
 0x97a   : > { %v5840_v3 = vmul.f32 3.8918573e-05, %v12609_v0  ;;  %v5534_v44 = vadd.f32 %v8652_v61, %v5533_v27  ;;  %vm5535_vm6 = vweird.f32 %v13088_v18  ;;  %v5806_v28 = vmul.f32 %v5805_v29, %v12586_v41 }
 0x97b   : > { %v8220_v4 = vclamps-f32 %v5504_v51, 1.0  ;;  %vm5537_vm7 = vmor %vm5535_vm6, %vm5536_vm5  ;;  %v5542_v30 = vor.u32 1.1754944e-38, %v5541_v45  ;;  %v13156_v15 = vadd.f32 %v3887_v19, %v3847_v54  ;;  %v6120_v16 = vmul.f32 3.8918573e-05, %v12615_v55  ;;  %v14921_v54 = vld [vmem:[#allocation112_spill] sm:$0xff] }
 0x97c   : > { %v5841_v17 = vadd.f32 0.001143296, %v5840_v3  ;;  %v5538_v50 = vsel %vm5537_vm7, %v8652_v61, %v5534_v44  ;;  %vm5540_vm8 = vcmp.eq.f32.partialorder %v5539_v40, 8.507059e+37  ;;  %v5807_v46 = vadd.f32 0.4994258, %v5806_v28 }
 0x97d   : > { %v6623_v48 = vadd.f32 1.0, %v8220_v4  ;;  %v5267_v51 = vmul.f32 %v13148_v43, %v13148_v43  ;;  %v5543_v27 = vsel %vm5540_vm8, %v5542_v30, %v5538_v50  ;;  %v6121_v1 = vadd.f32 0.001143296, %v6120_v16 }
 0x97e   : > { %v5842_v18 = vmul.f32 %v5841_v17, %v12609_v0  ;;  %v5547_v45 = vmul.f32 %v13151_v6, %v13151_v6  ;;  %v5544_v3 = vmul.f32 %v5543_v27, %v12799_v62  ;;  %v5808_v61 = vmul.f32 %v5807_v46, %v12586_v41 }
 0x97f   : > { %v13165_v29 = vmul.f32 %v6623_v48, %v14921_v54  ;;  %v13170_v40 = vmul.f32 0.70710677, %v13156_v15  ;;  %v6122_v44 = vmul.f32 %v6121_v1, %v12615_v55  ;;  %v6160_v19 = vmul.f32 3.8918573e-05, %v12677_v14 }
 0x980   : > { %v5843_v4 = vadd.f32 0.014752088, %v5842_v18  ;;  %v4953_v28 = vmul.f32 %v4952_v39, %v13055_v12  ;;  %v8221_v30 = vclamps-f32 %v5544_v3, 1.0  ;;  %v3768_v17 = vadd.f32 %v3767_v37, %v14896_v13  ;;  %v3808_v37 = vpop.f32.mrf.mxu1 }
 0x981   : > { %14922 = vst [vmem:[#allocation101_spill] sm:$0xff] %v13165_v29  ;;  %7169 = vmatmul.f32.gmra.mxu0 %v13165_v29  ;;  %v13177_v16 = vadd.f32 1.0, %v5808_v61  ;;  %v5230_v62 = vadd.f32 0.00028619796, %v5229_v7  ;;  %v13179_v48 = vmin.f32 %v5267_v51, 16.0  ;;  %v13183_v1 = vmin.f32 %v5547_v45, 16.0 }
 0x982   : > { %v5844_v41 = vmul.f32 %v5843_v4, %v12609_v0  ;;  %v6123_v50 = vadd.f32 0.014752088, %v6122_v44  ;;  %v4598_v46 = vadd.f32 1.1283791, %v13113_v63  ;;  %v6624_v27 = vadd.f32 1.0, %v8221_v30  ;;  %v14924_v30 = vld [vmem:[#allocation109_spill] sm:$0xff] }
 0x983   : > { %8653 = vrcp.f32 %v13177_v16  ;;  %v4638_v39 = vadd.f32 1.1283791, %v4637_v57  ;;  %v5587_v18 = vmul.f32 %v13170_v40, %v13170_v40  ;;  %v6161_v3 = vadd.f32 0.001143296, %v6160_v19 }
 0x984   : > { %v5845_v54 = vadd.f32 0.112945676, %v5844_v41  ;;  %v4954_v7 = vadd.f32 0.05243302, %v4953_v28  ;;  %v13189_v51 = vmul.f32 %v6624_v27, %v12787_v33  ;;  %v13191_v61 = vadd.f32 %v3808_v37, %v3768_v17  ;;  %v6770_v41 = vld [vmem:[#allocation22 + $0x1b8] sm:$0xff] }
 0x985   : > { %v6124_v63 = vmul.f32 %v6123_v50, %v12615_v55  ;;  %v4917_v45 = vmul.f32 %v13124_v21, %v12986_v11  ;;  %v5231_v4 = vmul.f32 %v5230_v62, %v13116_v60  ;;  %v5269_v57 = vmul.f32 2.1237322e-06, %v13179_v48  ;;  %v6913_v21 = vld [vmem:[#allocation22 + $0x630] sm:$0xff]  ;;  %v6738_v62 = vld [vmem:[#allocation22 + $0xb8] sm:$0xff]  ;;  %7350 = vmatpush.msrb.mxu1 %v6770_v41 }
 0x986   : > { %14923 = vst [vmem:[#allocation74_spill] sm:$0xff] %v13189_v51  ;;  %v5846_v44 = vmul.f32 %v5845_v54, %v12609_v0  ;;  %v13201_v19 = vmul.f32 %v12958_v32, %v14924_v30  ;;  %v13205_v33 = vmul.f32 %v13020_v8, %v12961_v2  ;;  %v13208_v28 = vmul.f32 0.5, %v13002_v34  ;;  %7210 = vmatmul.f32.gmra.mxu1 %v13189_v51  ;;  %v6945_v2 = vld [vmem:[#allocation22 + $0x730] sm:$0xff]  ;;  %v6736_v8 = vld [vmem:[#allocation22 + $0xa8] sm:$0xff] }
 0x987   : > { %v5549_v17 = vmul.f32 2.1237322e-06, %v13183_v1  ;;  %v13214_v50 = vmul.f32 %v13107_v36, %v12967_v47  ;;  %v13216_v32 = vmin.f32 %v5587_v18, 16.0  ;;  %7235 = vmatpush.msra.mxu2 %v6913_v21  ;;  %7309 = vmatpush.msrb.mxu0 %v6738_v62  ;;  %v6768_v34 = vld [vmem:[#allocation22 + $0x1a8] sm:$0xff]  ;;  %v6162_v37 = vmul.f32 %v6161_v3, %v12677_v14  ;;  %v6911_v36 = vld [vmem:[#allocation22 + $0x620] sm:$0xff]  ;;  %v6734_v18 = vld [vmem:[#allocation22 + $0x98] sm:$0xff] }
 0x988   : > { %14925 = vst [vmem:[#allocation107_spill] sm:$0xff] %v13205_v33  ;;  %v5847_v27 = vadd.f32 0.4994258, %v5846_v44  ;;  %v13222_v30 = vmul.f32 %v4598_v46, %v12873_v42  ;;  %v4955_v51 = vmul.f32 %v4954_v7, %v13055_v12  ;;  %v13226_v47 = vmul.f32 0.70710677, %v13191_v61  ;;  %7276 = vmatpush.msra.mxu3 %v6945_v2  ;;  %v6766_v42 = vld [vmem:[#allocation22 + $0x198] sm:$0xff]  ;;  %7351 = vmatpush.msrb.mxu1 %v6768_v34 }
 0x989   : > { %14926 = vst [vmem:[#allocation108_spill] sm:$0xff] %v13208_v28  ;;  %v13219_v54 = vpop.eup %8653  ;;  %v6125_v44 = vadd.f32 0.112945676, %v6124_v63  ;;  %v4918_v21 = vadd.f32 1.1283791, %v4917_v45  ;;  %7310 = vmatpush.msrb.mxu0 %v6736_v8  ;;  %7236 = vmatpush.msra.mxu2 %v6911_v36  ;;  %v6943_v46 = vld [vmem:[#allocation22 + $0x720] sm:$0xff]  ;;  %v13232_v7 = vmul.f32 %v4638_v39, %v12903_v24  ;;  %vm5815_vm10 = vweird.f32 %v13177_v16 }
 0x98a   : > { %14927 = vst [vmem:[#allocation110_spill] sm:$0xff] %v13214_v50  ;;  %v5232_v62 = vadd.f32 0.0036580483, %v5231_v4  ;;  %v5811_v3 = vmul.f32 %v13219_v54, %v13177_v16  ;;  %v5848_v29 = vmul.f32 %v5847_v27, %v12609_v0  ;;  %v13235_v41 = vmul.f32 0.5, %v13059_v5  ;;  %7277 = vmatpush.msra.mxu3 %v6943_v46  ;;  %v6732_v63 = vld [vmem:[#allocation22 + $0x88] sm:$0xff]  ;;  %7352 = vmatpush.msrb.mxu1 %v6766_v42 }
 0x98b   : > { %14928 = vst [vmem:[#allocation112_spill] sm:$0xff] %v13226_v47  ;;  %v5270_v2 = vadd.f32 0.00028619796, %v5269_v57  ;;  %v5550_v28 = vadd.f32 0.00028619796, %v5549_v17  ;;  %7311 = vmatpush.msrb.mxu0 %v6734_v18  ;;  %v6764_v0 = vld [vmem:[#allocation22 + $0x188] sm:$0xff]  ;;  %v6126_v27 = vmul.f32 %v6125_v44, %v12615_v55  ;;  %v5867_v5 = vmul.f32 %v13226_v47, %v13226_v47 }
 0x98c   : > { %14929 = vst [vmem:[#allocation109_spill] sm:$0xff] %v13235_v41  ;;  %v5812_v45 = vsub.f32 1.0, %v5811_v3  ;;  %v13237_v4 = vadd.f32 1.0, %v5848_v29  ;;  %v6163_v8 = vadd.f32 0.014752088, %v6162_v37  ;;  %v5821_v39 = vand.u32 2147483648, %v13177_v16  ;;  %7353 = vmatpush.msrb.mxu1 %v6764_v0 }
 0x98d   : > { %v4956_v36 = vadd.f32 0.18741608, %v4955_v51  ;;  %v5589_v24 = vmul.f32 2.1237322e-06, %v13216_v32  ;;  %vm5816_vm9 = vweird.f32 %v13219_v54  ;;  %v5819_v29 = vand.u32 2147483647, %v13177_v16  ;;  %7312 = vmatpush.msrb.mxu0 %v6732_v63 }
 0x98e   : > { %v5813_v57 = vmul.f32 %v13219_v54, %v5812_v45  ;;  %8655 = vrcp.f32 %v13237_v4  ;;  %v5233_v17 = vmul.f32 %v5232_v62, %v13116_v60  ;;  %v5271_v51 = vmul.f32 %v5270_v2, %v13179_v48  ;;  %vm5817_vm11 = vmor %vm5815_vm10, %vm5816_vm9 }
 0x98f   : > { %v5551_v34 = vmul.f32 %v5550_v28, %v13183_v1  ;;  %v6440_v37 = vmul.f32 3.8918573e-05, %v12679_v25  ;;  %v6127_v44 = vadd.f32 0.4994258, %v6126_v27  ;;  %v6164_v3 = vmul.f32 %v6163_v8, %v12677_v14  ;;  %v3849_v8 = vpop.f32.mrf.mxu2 }
 0x990   : > { %v5814_v18 = vadd.f32 %v13219_v54, %v5813_v57  ;;  %v4957_v42 = vmul.f32 %v4956_v36, %v13055_v12  ;;  %v5590_v46 = vadd.f32 0.00028619796, %v5589_v24  ;;  %v13256_v63 = vmin.f32 %v5867_v5, 16.0 }
 0x991   : > { %v5822_v62 = vor.u32 1.1754944e-38, %v5821_v39  ;;  %vm5820_vm12 = vcmp.eq.f32.partialorder %v5819_v29, 8.507059e+37  ;;  %v6128_v2 = vmul.f32 %v6127_v44, %v12615_v55  ;;  %v6165_v45 = vadd.f32 0.112945676, %v6164_v3 }
 0x992   : > { %v5818_v28 = vsel %vm5817_vm11, %v13219_v54, %v5814_v18  ;;  %v5234_v0 = vadd.f32 0.05243302, %v5233_v17  ;;  %v5272_v16 = vadd.f32 0.0036580483, %v5271_v51  ;;  %v5552_v27 = vadd.f32 0.0036580483, %v5551_v34 }
 0x993   : > { %v5823_v57 = vsel %vm5820_vm12, %v5822_v62, %v5818_v28  ;;  %v13265_v24 = vadd.f32 1.0, %v6128_v2  ;;  %v6166_v5 = vmul.f32 %v6165_v45, %v12677_v14  ;;  %v6441_v39 = vadd.f32 0.001143296, %v6440_v37  ;;  %v6909_v62 = vld [vmem:[#allocation22 + $0x610] sm:$0xff]  ;;  %v6730_v28 = vld [vmem:[#allocation22 + $0x78] sm:$0xff] }
 0x994   : > { %v13262_v47 = vpop.eup %8655  ;;  %v5824_v36 = vmul.f32 %v5823_v57, %v12804_v52  ;;  %v13269_v54 = vmul.f32 %v4918_v21, %v12949_v38  ;;  %v13271_v29 = vadd.f32 1.1283791, %v4957_v42  ;;  %v5591_v55 = vmul.f32 %v5590_v46, %v13216_v32  ;;  %v3770_v42 = vpop.f32.mrf.mxu0  ;;  %7237 = vmatpush.msra.mxu2 %v6909_v62  ;;  %7313 = vmatpush.msrb.mxu0 %v6730_v28 }
 0x995   : > { %v5851_v17 = vmul.f32 %v13262_v47, %v13237_v4  ;;  %v5869_v51 = vmul.f32 2.1237322e-06, %v13256_v63  ;;  %v3850_v52 = vadd.f32 %v3849_v8, %v12687_v35  ;;  %8657 = vrcp.f32 %v13265_v24 }
 0x996   : > { %v8228_v34 = vclamps-f32 %v5824_v36, 1.0  ;;  %v5235_v18 = vmul.f32 %v5234_v0, %v13116_v60  ;;  %v5273_v37 = vmul.f32 %v5272_v16, %v13179_v48  ;;  %v5553_v38 = vmul.f32 %v5552_v27, %v13183_v1  ;;  %v3890_v16 = vpop.f32.mrf.mxu3  ;;  %v6762_v27 = vld [vmem:[#allocation22 + $0x178] sm:$0xff] }
 0x997   : > { %v5852_v21 = vsub.f32 1.0, %v5851_v17  ;;  %v5861_v3 = vand.u32 2147483648, %v13237_v4  ;;  %v6167_v46 = vadd.f32 0.4994258, %v6166_v5  ;;  %v6442_v2 = vmul.f32 %v6441_v39, %v12679_v25  ;;  %7354 = vmatpush.msrb.mxu1 %v6762_v27  ;;  %v6941_v39 = vld [vmem:[#allocation22 + $0x710] sm:$0xff] }
 0x998   : > { %v6631_v44 = vadd.f32 1.0, %v8228_v34  ;;  %v5592_v45 = vadd.f32 0.0036580483, %v5591_v55  ;;  %vm5856_vm13 = vweird.f32 %v13262_v47  ;;  %v5859_v0 = vand.u32 2147483647, %v13237_v4  ;;  %v6728_v55 = vld [vmem:[#allocation22 + $0x68] sm:$0xff]  ;;  %7278 = vmatpush.msra.mxu3 %v6941_v39 }
 0x999   : > { %v5853_v57 = vmul.f32 %v13262_v47, %v5852_v21  ;;  %v5870_v8 = vadd.f32 0.00028619796, %v5869_v51  ;;  %v13290_v5 = vadd.f32 %v3890_v16, %v3850_v52  ;;  %v6168_v17 = vmul.f32 %v6167_v46, %v12677_v14  ;;  %v6760_v34 = vld [vmem:[#allocation22 + $0x168] sm:$0xff]  ;;  %7314 = vmatpush.msrb.mxu0 %v6728_v55  ;;  %v6907_v51 = vld [vmem:[#allocation22 + $0x600] sm:$0xff]  ;;  %v6758_v16 = vld [vmem:[#allocation22 + $0x158] sm:$0xff] }
 0x99a   : > { %v13288_v36 = vmul.f32 %v6631_v44, %v12791_v59  ;;  %v5274_v21 = vadd.f32 0.05243302, %v5273_v37  ;;  %vm5855_vm14 = vweird.f32 %v13237_v4  ;;  %v3771_v62 = vadd.f32 %v3770_v42, %v14896_v13  ;;  %7355 = vmatpush.msrb.mxu1 %v6760_v34  ;;  %7238 = vmatpush.msra.mxu2 %v6907_v51  ;;  %v14931_v39 = vld [vmem:[#allocation111_spill] sm:$0xff]  ;;  %v6724_v51 = vld [vmem:[#allocation22 + $0x48] sm:$0xff] }
 0x99b   : > { %v5854_v41 = vadd.f32 %v13262_v47, %v5853_v57  ;;  %v13296_v59 = vpop.eup %8657  ;;  %v5554_v52 = vadd.f32 0.05243302, %v5553_v38  ;;  %vm5857_vm15 = vmor %vm5855_vm14, %vm5856_vm13  ;;  %v5862_v14 = vor.u32 1.1754944e-38, %v5861_v3  ;;  %v13301_v44 = vadd.f32 1.0, %v6168_v17  ;;  %v3811_v3 = vpop.f32.mrf.mxu1  ;;  %7239 = vmatmul.f32.vlgmr.msra.gmra.mxu2 %v13205_v33 }
 0x99c   : > { %14930 = vst [vmem:[#allocation117_spill] sm:$0xff] %v13288_v36  ;;  %7172 = vmatmul.f32.gmra.mxu0 %v13288_v36  ;;  %v6443_v37 = vadd.f32 0.014752088, %v6442_v2  ;;  %v5593_v4 = vmul.f32 %v5592_v45, %v13216_v32  ;;  %vm5860_vm0 = vcmp.eq.f32.partialorder %v5859_v0, 8.507059e+37  ;;  %v6131_v46 = vmul.f32 %v13296_v59, %v13265_v24  ;;  %v6726_v0 = vld [vmem:[#allocation22 + $0x58] sm:$0xff]  ;;  %7356 = vmatpush.msrb.mxu1 %v6758_v16 }
 0x99d   : > { %v5858_v42 = vsel %vm5857_vm15, %v13262_v47, %v5854_v41  ;;  %v5871_v38 = vmul.f32 %v5870_v8, %v13256_v63  ;;  %v13309_v57 = vmul.f32 0.70710677, %v13290_v5  ;;  %8659 = vrcp.f32 %v13301_v44  ;;  %7315 = vmatpush.msrb.mxu0 %v6726_v0 }
 0x99e   : > { %v5863_v28 = vsel %vm5860_vm0, %v5862_v14, %v5858_v42  ;;  %v5236_v2 = vadd.f32 0.18741608, %v5235_v18  ;;  %v13314_v47 = vadd.f32 %v3811_v3, %v3771_v62  ;;  %v6132_v41 = vsub.f32 1.0, %v6131_v46  ;;  %v6939_v62 = vld [vmem:[#allocation22 + $0x700] sm:$0xff]  ;;  %v6756_v14 = vld [vmem:[#allocation22 + $0x148] sm:$0xff] }
 0x99f   : > { %v5864_v45 = vmul.f32 %v5863_v28, %v12817_v56  ;;  %v5275_v27 = vmul.f32 %v5274_v21, %v13179_v48  ;;  %v6141_v8 = vand.u32 2147483648, %v13265_v24  ;;  %v6444_v17 = vmul.f32 %v6443_v37, %v12679_v25  ;;  %7279 = vmatpush.msra.mxu3 %v6939_v62  ;;  %7316 = vmatpush.msrb.mxu0 %v6724_v51 }
 0x9a0   : > { %v6480_v55 = vmul.f32 3.8918573e-05, %v14931_v39  ;;  %v6133_v18 = vmul.f32 %v13296_v59, %v6132_v41  ;;  %vm6136_vm1 = vweird.f32 %v13296_v59  ;;  %v6139_v56 = vand.u32 2147483647, %v13265_v24  ;;  %7357 = vmatpush.msrb.mxu1 %v6756_v14  ;;  %7280 = vmatmul.f32.vlgmr.msra.gmra.mxu3 %v13214_v50  ;;  %v14935_v50 = vld [vmem:[#allocation114_spill] sm:$0xff] }
 0x9a1   : > { %v8229_v34 = vclamps-f32 %v5864_v45, 1.0  ;;  %v5555_v21 = vmul.f32 %v5554_v52, %v13183_v1  ;;  %v5594_v42 = vadd.f32 0.05243302, %v5593_v4  ;;  %v5872_v46 = vadd.f32 0.0036580483, %v5871_v38 }
 0x9a2   : > { %v5907_v28 = vmul.f32 %v13309_v57, %v13309_v57  ;;  %v13327_v3 = vmul.f32 0.70710677, %v13314_v47  ;;  %v6134_v45 = vadd.f32 %v13296_v59, %v6133_v18  ;;  %vm6135_vm2 = vweird.f32 %v13265_v24 }
 0x9a3   : > { %v6632_v37 = vadd.f32 1.0, %v8229_v34  ;;  %v8660_v41 = vpop.eup %8659  ;;  %v13334_v52 = vmul.f32 %v13271_v29, %v13017_v22  ;;  %vm6137_vm3 = vmor %vm6135_vm2, %vm6136_vm1  ;;  %v6142_v4 = vor.u32 1.1754944e-38, %v6141_v8  ;;  %v6445_v38 = vadd.f32 0.112945676, %v6444_v17  ;;  %v14932_v34 = vld [vmem:[#allocation113_spill] sm:$0xff]  ;;  %v14934_v17 = vld [vmem:[#allocation115_spill] sm:$0xff] }
 0x9a4   : > { %v6481_v0 = vadd.f32 0.001143296, %v6480_v55  ;;  %v5237_v16 = vmul.f32 %v5236_v2, %v13116_v60  ;;  %v6138_v24 = vsel %vm6137_vm3, %v13296_v59, %v6134_v45  ;;  %vm6140_vm4 = vcmp.eq.f32.partialorder %v6139_v56, 8.507059e+37 }
 0x9a5   : > { %v13340_v18 = vmul.f32 %v6632_v37, %v14932_v34  ;;  %v5276_v62 = vadd.f32 0.18741608, %v5275_v27  ;;  %v5556_v51 = vadd.f32 0.18741608, %v5555_v21  ;;  %v6143_v14 = vsel %vm6140_vm4, %v6142_v4, %v6138_v24 }
 0x9a6   : > { %v6171_v22 = vmul.f32 %v8660_v41, %v13301_v44  ;;  %v5595_v29 = vmul.f32 %v5594_v42, %v13216_v32  ;;  %v13346_v8 = vmin.f32 %v5907_v28, 16.0  ;;  %v6187_v2 = vmul.f32 %v13327_v3, %v13327_v3 }
 0x9a7   : > { %14933 = vst [vmem:[#allocation111_spill] sm:$0xff] %v13340_v18  ;;  %7213 = vmatmul.f32.gmra.mxu1 %v13340_v18  ;;  %v6144_v55 = vmul.f32 %v6143_v14, %v14934_v17  ;;  %v5873_v37 = vmul.f32 %v5872_v46, %v13256_v63  ;;  %v6446_v27 = vmul.f32 %v6445_v38, %v12679_v25  ;;  %v6179_v45 = vand.u32 2147483647, %v13301_v44 }
 0x9a8   : > { %v6172_v59 = vsub.f32 1.0, %v6171_v22  ;;  %v6482_v56 = vmul.f32 %v6481_v0, %v14931_v39  ;;  %v6181_v42 = vand.u32 2147483648, %v13301_v44  ;;  %v4600_v28 = vmul.f32 3.8918573e-05, %v12911_v23 }
 0x9a9   : > { %v8236_v21 = vclamps-f32 %v6144_v55, 1.0  ;;  %vm6176_vm5 = vweird.f32 %v8660_v41  ;;  %v6447_v34 = vadd.f32 0.4994258, %v6446_v27  ;;  %v5909_v14 = vmul.f32 2.1237322e-06, %v13346_v8 }
 0x9aa   : > { %v6173_v4 = vmul.f32 %v8660_v41, %v6172_v59  ;;  %v6483_v24 = vadd.f32 0.014752088, %v6482_v56  ;;  %v13358_v17 = vmin.f32 %v6187_v2, 16.0  ;;  %v4601_v22 = vadd.f32 0.001143296, %v4600_v28 }
 0x9ab   : > { %v6639_v46 = vadd.f32 1.0, %v8236_v21  ;;  %vm6175_vm6 = vweird.f32 %v13301_v44  ;;  %v6448_v0 = vmul.f32 %v6447_v34, %v12679_v25  ;;  %v6182_v59 = vor.u32 1.1754944e-38, %v6181_v42  ;;  %v3852_v34 = vpop.f32.mrf.mxu2 }
 0x9ac   : > { %v6174_v38 = vadd.f32 %v8660_v41, %v6173_v4  ;;  %v6484_v55 = vmul.f32 %v6483_v24, %v14931_v39  ;;  %vm6177_vm7 = vmor %vm6175_vm6, %vm6176_vm5  ;;  %v4602_v27 = vmul.f32 %v4601_v22, %v12911_v23  ;;  %v4640_v56 = vmul.f32 3.8918573e-05, %v12955_v20 }
 0x9ad   : > { %v13364_v33 = vmul.f32 %v6639_v46, %v14935_v50  ;;  %vm6180_vm8 = vcmp.eq.f32.partialorder %v6179_v45, 8.507059e+37  ;;  %v13368_v21 = vadd.f32 1.0, %v6448_v0  ;;  %v5596_v4 = vadd.f32 0.18741608, %v5595_v29  ;;  %v14937_v46 = vld [vmem:[#allocation69_spill] sm:$0xff] }
 0x9ae   : > { %v6178_v2 = vsel %vm6177_vm7, %v8660_v41, %v6174_v38  ;;  %v6485_v28 = vadd.f32 0.112945676, %v6484_v55  ;;  %v5874_v44 = vadd.f32 0.05243302, %v5873_v37  ;;  %v4603_v24 = vadd.f32 0.014752088, %v4602_v27 }
 0x9af   : > { %14936 = vst [vmem:[#allocation113_spill] sm:$0xff] %v13364_v33  ;;  %7175 = vmatmul.f32.gmra.mxu0 %v13364_v33  ;;  %v6183_v25 = vsel %vm6180_vm8, %v6182_v59, %v6178_v2  ;;  %v5910_v50 = vadd.f32 0.00028619796, %v5909_v14  ;;  %8661 = vrcp.f32 %v13368_v21  ;;  %v4641_v42 = vadd.f32 0.001143296, %v4640_v56  ;;  %v6722_v55 = vld [vmem:[#allocation22 + $0x38] sm:$0xff] }
 0x9b0   : > { %v6184_v18 = vmul.f32 %v6183_v25, %v14937_v46  ;;  %v13374_v22 = vmul.f32 0.5, %v13131_v49  ;;  %v5277_v41 = vmul.f32 %v5276_v62, %v13179_v48  ;;  %v6189_v45 = vmul.f32 2.1237322e-06, %v13358_v17  ;;  %v6754_v59 = vld [vmem:[#allocation22 + $0x138] sm:$0xff]  ;;  %7317 = vmatpush.msrb.mxu0 %v6722_v55  ;;  %v6720_v62 = vld [vmem:[#allocation22 + $0x28] sm:$0xff] }
 0x9b1   : > { %v6486_v29 = vmul.f32 %v6485_v28, %v14931_v39  ;;  %v13380_v37 = vmul.f32 0.5, %v13133_v9  ;;  %v5557_v38 = vmul.f32 %v5556_v51, %v13183_v1  ;;  %v3853_v0 = vadd.f32 %v3852_v34, %v12687_v35  ;;  %v6810_v27 = vld [vmem:[#allocation22 + $0x2f8] sm:$0xff]  ;;  %7358 = vmatpush.msrb.mxu1 %v6754_v59  ;;  %v6752_v25 = vld [vmem:[#allocation22 + $0x128] sm:$0xff] }
 0x9b2   : > { %v8237_v14 = vclamps-f32 %v6184_v18, 1.0  ;;  %v5238_v56 = vadd.f32 1.1283791, %v5237_v16  ;;  %v5597_v49 = vmul.f32 %v5596_v4, %v13216_v32  ;;  %v4604_v28 = vmul.f32 %v4603_v24, %v12911_v23  ;;  %7387 = vmatpush.msrb.mxu2 %v6810_v27  ;;  %v6842_v34 = vld [vmem:[#allocation22 + $0x3f8] sm:$0xff]  ;;  %7318 = vmatpush.msrb.mxu0 %v6720_v62 }
 0x9b3   : > { %v6487_v2 = vadd.f32 0.4994258, %v6486_v29  ;;  %v5875_v9 = vmul.f32 %v5874_v44, %v13256_v63  ;;  %v5911_v51 = vmul.f32 %v5910_v50, %v13346_v8  ;;  %v4642_v46 = vmul.f32 %v4641_v42, %v12955_v20  ;;  %v3893_v29 = vpop.f32.mrf.mxu3  ;;  %7359 = vmatpush.msrb.mxu1 %v6752_v25  ;;  %7428 = vmatpush.msrb.mxu3 %v6842_v34 }
 0x9b4   : > { %v6640_v18 = vadd.f32 1.0, %v8237_v14  ;;  %v5278_v33 = vadd.f32 1.1283791, %v5277_v41  ;;  %v13390_v16 = vmul.f32 0.5, %v13156_v15  ;;  %v6190_v4 = vadd.f32 0.00028619796, %v6189_v45  ;;  %v3773_v41 = vpop.f32.mrf.mxu0 }
 0x9b5   : > { %v6488_v55 = vmul.f32 %v6487_v2, %v14931_v39  ;;  %v13393_v24 = vpop.eup %8661  ;;  %v5558_v44 = vadd.f32 1.1283791, %v5557_v38  ;;  %v13396_v50 = vmul.f32 0.5, %v13191_v61  ;;  %v14938_v14 = vld [vmem:[#allocation116_spill] sm:$0xff]  ;;  %v13401_v42 = vadd.f32 %v3893_v29, %v3853_v0 }
 0x9b6   : > { %v13399_v59 = vmul.f32 %v6640_v18, %v14938_v14  ;;  %v5598_v15 = vadd.f32 1.1283791, %v5597_v49  ;;  %v6451_v45 = vmul.f32 %v13393_v24, %v13368_v21  ;;  %v4605_v27 = vadd.f32 0.112945676, %v4604_v28 }
 0x9b7   : > { %v13405_v39 = vadd.f32 1.0, %v6488_v55  ;;  %v13408_v2 = vmul.f32 %v5238_v56, %v13077_v26  ;;  %v5876_v38 = vadd.f32 0.18741608, %v5875_v9  ;;  %v5912_v61 = vadd.f32 0.0036580483, %v5911_v51 }
 0x9b8   : > { %14939 = vst [vmem:[#allocation115_spill] sm:$0xff] %v13399_v59  ;;  %7216 = vmatmul.f32.gmra.mxu1 %v13399_v59  ;;  %v4643_v62 = vadd.f32 0.014752088, %v4642_v46  ;;  %v13412_v0 = vmul.f32 %v5278_v33, %v13148_v43  ;;  %v6191_v49 = vmul.f32 %v6190_v4, %v13358_v17  ;;  %v6452_v25 = vsub.f32 1.0, %v6451_v45  ;;  %v6718_v46 = vld [vmem:[#allocation22 + $0x18] sm:$0xff]  ;;  %v6808_v4 = vld [vmem:[#allocation22 + $0x2e8] sm:$0xff] }
 0x9b9   : > { %8663 = vrcp.f32 %v13405_v39  ;;  %v13417_v18 = vmul.f32 %v5558_v44, %v13151_v6  ;;  %v13420_v28 = vmul.f32 0.70710677, %v13401_v42  ;;  %v3774_v26 = vadd.f32 %v3773_v41, %v14896_v13  ;;  %v6750_v13 = vld [vmem:[#allocation22 + $0x118] sm:$0xff]  ;;  %v3814_v44 = vpop.f32.mrf.mxu1  ;;  %7319 = vmatpush.msrb.mxu0 %v6718_v46  ;;  %7388 = vmatpush.msrb.mxu2 %v6808_v4 }
 0x9ba   : > { %v6461_v56 = vand.u32 2147483648, %v13368_v21  ;;  %v6453_v9 = vmul.f32 %v13393_v24, %v6452_v25  ;;  %vm6456_vm9 = vweird.f32 %v13393_v24  ;;  %v6459_v43 = vand.u32 2147483647, %v13368_v21  ;;  %7360 = vmatpush.msrb.mxu1 %v6750_v13 }
 0x9bb   : > { %v4606_v33 = vmul.f32 %v4605_v27, %v12911_v23  ;;  %v13429_v51 = vmul.f32 %v5598_v15, %v13170_v40  ;;  %v13432_v6 = vmul.f32 %v5876_v38, %v13256_v63  ;;  %v5913_v34 = vmul.f32 %v5912_v61, %v13346_v8  ;;  %v6716_v40 = vld [vmem:[#allocation22 + $0x8] sm:$0xff] }
 0x9bc   : > { %v4644_v29 = vmul.f32 %v4643_v62, %v12955_v20  ;;  %v6192_v55 = vadd.f32 0.0036580483, %v6191_v49  ;;  %v6454_v14 = vadd.f32 %v13393_v24, %v6453_v9  ;;  %vm6455_vm10 = vweird.f32 %v13368_v21  ;;  %v6748_v15 = vld [vmem:[#allocation22 + $0x108] sm:$0xff]  ;;  %v6806_v21 = vld [vmem:[#allocation22 + $0x2d8] sm:$0xff]  ;;  %7320 = vmatpush.msrb.mxu0 %v6716_v40 }
 0x9bd   : > { %v4607_v41 = vadd.f32 0.4994258, %v4606_v33  ;;  %v6227_v45 = vmul.f32 %v13420_v28, %v13420_v28  ;;  %v13440_v27 = vadd.f32 %v3814_v44, %v3774_v26  ;;  %vm13444_vm11 = vmor %vm6455_vm10, %vm6456_vm9  ;;  %v6462_v61 = vor.u32 1.1754944e-38, %v6461_v56  ;;  %v6840_v62 = vld [vmem:[#allocation22 + $0x3e8] sm:$0xff]  ;;  %7361 = vmatpush.msrb.mxu1 %v6748_v15  ;;  %7389 = vmatpush.msrb.mxu2 %v6806_v21 }
 0x9be   : > { %v4645_v49 = vadd.f32 0.112945676, %v4644_v29  ;;  %v6458_v9 = vsel %vm13444_vm11, %v13393_v24, %v6454_v14  ;;  %vm6460_vm12 = vcmp.eq.f32.partialorder %v6459_v43, 8.507059e+37  ;;  %v4920_v33 = vmul.f32 3.8918573e-05, %v12986_v11  ;;  %7429 = vmatpush.msrb.mxu3 %v6840_v62 }
 0x9bf   : > { %14940 = vst [vmem:[#allocation114_spill] sm:$0xff] %v13440_v27  ;;  %v8664_v25 = vpop.eup %8663  ;;  %v4608_v26 = vmul.f32 %v4607_v41, %v12911_v23  ;;  %v13454_v46 = vmul.f32 0.5, %v13290_v5  ;;  %v5914_v56 = vadd.f32 0.05243302, %v5913_v34  ;;  %v6463_v13 = vsel %vm6460_vm12, %v6462_v61, %v6458_v9  ;;  %v6838_v61 = vld [vmem:[#allocation22 + $0x3d8] sm:$0xff] }
 0x9c0   : > { %v6491_v4 = vmul.f32 %v8664_v25, %v13405_v39  ;;  %v6193_v29 = vmul.f32 %v6192_v55, %v13358_v17  ;;  %v6464_v24 = vmul.f32 %v6463_v13, %v13086_v31  ;;  %v4646_v23 = vmul.f32 %v4645_v49, %v12955_v20  ;;  %7430 = vmatpush.msrb.mxu3 %v6838_v61  ;;  %v14943_v13 = vld [vmem:[#allocation103_spill] sm:$0xff] }
 0x9c1   : > { %v13459_v43 = vadd.f32 1.0, %v4608_v26  ;;  %v13462_v44 = vmin.f32 %v6227_v45, 16.0  ;;  %v13465_v14 = vmul.f32 0.70710677, %v13440_v27  ;;  %v4921_v34 = vadd.f32 0.001143296, %v4920_v33 }
 0x9c2   : > { %v6492_v5 = vsub.f32 1.0, %v6491_v4  ;;  %v8244_v41 = vclamps-f32 %v6464_v24, 1.0  ;;  %v6501_v40 = vand.u32 2147483648, %v13405_v39  ;;  %v4960_v55 = vmul.f32 3.8918573e-05, %v13055_v12 }
 0x9c3   : > { %8665 = vrcp.f32 %v13459_v43  ;;  %vm6496_vm13 = vweird.f32 %v8664_v25  ;;  %v6499_v31 = vand.u32 2147483647, %v13405_v39  ;;  %v4647_v38 = vadd.f32 0.4994258, %v4646_v23 }
 0x9c4   : > { %v6493_v15 = vmul.f32 %v8664_v25, %v6492_v5  ;;  %v5915_v45 = vmul.f32 %v5914_v56, %v13346_v8  ;;  %v6194_v62 = vadd.f32 0.05243302, %v6193_v29  ;;  %v6647_v21 = vadd.f32 1.0, %v8244_v41 }
 0x9c5   : > { %v4922_v49 = vmul.f32 %v4921_v34, %v12986_v11  ;;  %v6229_v9 = vmul.f32 2.1237322e-06, %v13462_v44  ;;  %vm6495_vm14 = vweird.f32 %v13405_v39  ;;  %v4648_v33 = vmul.f32 %v4647_v38, %v12955_v20 }
 0x9c6   : > { %v6494_v26 = vadd.f32 %v8664_v25, %v6493_v15  ;;  %v13477_v4 = vmul.f32 %v6647_v21, %v14943_v13  ;;  %vm6497_vm15 = vmor %vm6495_vm14, %vm6496_vm13  ;;  %v6502_v24 = vor.u32 1.1754944e-38, %v6501_v40  ;;  %v4961_v5 = vadd.f32 0.001143296, %v4960_v55 }
 0x9c7   : > { %v4923_v23 = vadd.f32 0.014752088, %v4922_v49  ;;  %v6507_v56 = vmul.f32 %v13465_v14, %v13465_v14  ;;  %vm6500_vm0 = vcmp.eq.f32.partialorder %v6499_v31, 8.507059e+37  ;;  %v13481_v34 = vadd.f32 1.0, %v4648_v33 }
 0x9c8   : > { %14944 = vst [vmem:[#allocation69_spill] sm:$0xff] %v13477_v4  ;;  %v6498_v29 = vsel %vm6497_vm15, %v8664_v25, %v6494_v26  ;;  %7178 = vmatmul.f32.gmra.mxu0 %v13477_v4  ;;  %v4962_v15 = vmul.f32 %v4961_v5, %v13055_v12  ;;  %v5240_v38 = vmul.f32 3.8918573e-05, %v13116_v60  ;;  %v13488_v40 = vadd.f32 1.1283791, %v13432_v6  ;;  %v14945_v4 = vld [vmem:[#allocation68_spill] sm:$0xff] }
 0x9c9   : > { %v8666_v41 = vpop.eup %8665  ;;  %v6503_v39 = vsel %vm6500_vm0, %v6502_v24, %v6498_v29  ;;  %v4924_v20 = vmul.f32 %v4923_v23, %v12986_v11  ;;  %v5916_v55 = vadd.f32 0.18741608, %v5915_v45  ;;  %v13493_v31 = vmul.f32 %v6194_v62, %v13358_v17 }
 0x9ca   : > { %v6504_v61 = vmul.f32 %v6503_v39, %v13201_v19  ;;  %v4611_v25 = vmul.f32 %v8666_v41, %v13459_v43  ;;  %v6230_v21 = vadd.f32 0.00028619796, %v6229_v9  ;;  %8667 = vrcp.f32 %v13481_v34 }
 0x9cb   : > { %v5280_v49 = vmul.f32 3.8918573e-05, %v13179_v48  ;;  %v4619_v13 = vand.u32 2147483647, %v13459_v43  ;;  %v4925_v24 = vadd.f32 0.112945676, %v4924_v20  ;;  %vm4616_vm1 = vweird.f32 %v8666_v41 }
 0x9cc   : > { %v8245_v26 = vclamps-f32 %v6504_v61, 1.0  ;;  %v4612_v33 = vsub.f32 1.0, %v4611_v25  ;;  %v13498_v6 = vmin.f32 %v6507_v56, 16.0  ;;  %v4621_v45 = vand.u32 2147483648, %v13459_v43 }
 0x9cd   : > { %v4963_v19 = vadd.f32 0.014752088, %v4962_v15  ;;  %v5241_v23 = vadd.f32 0.001143296, %v5240_v38  ;;  %v4926_v62 = vmul.f32 %v4925_v24, %v12986_v11  ;;  %v6231_v9 = vmul.f32 %v6230_v21, %v13462_v44  ;;  %v6804_v38 = vld [vmem:[#allocation22 + $0x2c8] sm:$0xff]  ;;  %v14947_v24 = vld [vmem:[#allocation64_spill] sm:$0xff] }
 0x9ce   : > { %v6648_v5 = vadd.f32 1.0, %v8245_v26  ;;  %v4613_v29 = vmul.f32 %v8666_v41, %v4612_v33  ;;  %v5281_v25 = vadd.f32 0.001143296, %v5280_v49  ;;  %vm4615_vm2 = vweird.f32 %v13459_v43  ;;  %v6836_v26 = vld [vmem:[#allocation22 + $0x3c8] sm:$0xff]  ;;  %7390 = vmatpush.msrb.mxu2 %v6804_v38  ;;  %v6802_v21 = vld [vmem:[#allocation22 + $0x2b8] sm:$0xff] }
 0x9cf   : > { %v4964_v39 = vmul.f32 %v4963_v19, %v13055_v12  ;;  %v5242_v61 = vmul.f32 %v5241_v23, %v13116_v60  ;;  %v4927_v15 = vadd.f32 0.4994258, %v4926_v62  ;;  %vm4617_vm3 = vmor %vm4615_vm2, %vm4616_vm1  ;;  %v4622_v59 = vor.u32 1.1754944e-38, %v4621_v45  ;;  %7431 = vmatpush.msrb.mxu3 %v6836_v26 }
 0x9d0   : > { %v13506_v20 = vmul.f32 %v6648_v5, %v14945_v4  ;;  %v4614_v56 = vadd.f32 %v8666_v41, %v4613_v29  ;;  %v8668_v33 = vpop.eup %8667  ;;  %7321 = vmatmul.f32.vlgmr.msrb.gmra.mxu0 %v14947_v24  ;;  %v5282_v49 = vmul.f32 %v5281_v25, %v13179_v48  ;;  %vm4620_vm4 = vcmp.eq.f32.partialorder %v4619_v13, 8.507059e+37  ;;  %7391 = vmatpush.msrb.mxu2 %v6802_v21  ;;  %v3855_v24 = vpop.f32.mrf.mxu2 }
 0x9d1   : > { %v4965_v19 = vadd.f32 0.112945676, %v4964_v39  ;;  %v5243_v36 = vadd.f32 0.014752088, %v5242_v61  ;;  %v4651_v43 = vmul.f32 %v8668_v33, %v13481_v34  ;;  %v4659_v23 = vand.u32 2147483647, %v13481_v34 }
 0x9d2   : > { %14946 = vst [vmem:[#allocation116_spill] sm:$0xff] %v13506_v20  ;;  %7219 = vmatmul.f32.gmra.mxu1 %v13506_v20  ;;  %v4618_v4 = vsel %vm4617_vm3, %v8666_v41, %v4614_v56  ;;  %v4661_v45 = vand.u32 2147483648, %v13481_v34  ;;  %v4928_v29 = vmul.f32 %v4927_v15, %v12986_v11  ;;  %v5560_v41 = vmul.f32 3.8918573e-05, %v13183_v1 }
 0x9d3   : > { %v4623_v5 = vsel %vm4620_vm4, %v4622_v59, %v4618_v4  ;;  %v4966_v62 = vmul.f32 %v4965_v19, %v13055_v12  ;;  %v4652_v61 = vsub.f32 1.0, %v4651_v43  ;;  %v5244_v25 = vmul.f32 %v5243_v36, %v13116_v60  ;;  %v6834_v59 = vld [vmem:[#allocation22 + $0x3b8] sm:$0xff] }
 0x9d4   : > { %v4624_v39 = vmul.f32 %v4623_v5, %v13222_v30  ;;  %v5917_v13 = vmul.f32 %v5916_v55, %v13346_v8  ;;  %v13521_v56 = vadd.f32 1.0, %v4928_v29  ;;  %v5283_v26 = vadd.f32 0.014752088, %v5282_v49  ;;  %7432 = vmatpush.msrb.mxu3 %v6834_v59  ;;  %v6798_v59 = vld [vmem:[#allocation22 + $0x298] sm:$0xff] }
 0x9d5   : > { %v4967_v38 = vadd.f32 0.4994258, %v4966_v62  ;;  %v4653_v11 = vmul.f32 %v8668_v33, %v4652_v61  ;;  %vm4656_vm5 = vweird.f32 %v8668_v33  ;;  %v5245_v15 = vadd.f32 0.112945676, %v5244_v25  ;;  %v14950_v62 = vld [vmem:[#allocation80_spill] sm:$0xff]  ;;  %v13537_v61 = vpop.f32.mrf.mxu1  ;;  %v14952_v25 = vld [vmem:[#allocation65_spill] sm:$0xff] }
 0x9d6   : > { %v8198_v4 = vclamps-f32 %v4624_v39, 1.0  ;;  %v6232_v21 = vadd.f32 0.0036580483, %v6231_v9  ;;  %v6509_v30 = vmul.f32 2.1237322e-06, %v13498_v6  ;;  %vm4655_vm6 = vweird.f32 %v13481_v34  ;;  %v13535_v39 = vpop.f32.mrf.mxu0 }
 0x9d7   : > { %8669 = vrcp.f32 %v13521_v56  ;;  %v4654_v55 = vadd.f32 %v8668_v33, %v4653_v11  ;;  %v4968_v19 = vmul.f32 %v4967_v38, %v13055_v12  ;;  %v5561_v43 = vadd.f32 0.001143296, %v5560_v41  ;;  %vm13528_vm7 = vmor %vm4655_vm6, %vm4656_vm5  ;;  %v6800_v41 = vld [vmem:[#allocation22 + $0x2a8] sm:$0xff] }
 0x9d8   : > { %v6601_v36 = vadd.f32 1.0, %v8198_v4  ;;  %v3856_v49 = vadd.f32 %v3855_v24, %v12687_v35  ;;  %v4662_v29 = vor.u32 1.1754944e-38, %v4661_v45  ;;  %7324 = vmatmul.f32.gmra.mxu0 %v14950_v62  ;;  %v5246_v9 = vmul.f32 %v5245_v15, %v13116_v60  ;;  %v6832_v38 = vld [vmem:[#allocation22 + $0x3a8] sm:$0xff]  ;;  %7392 = vmatpush.msrb.mxu2 %v6800_v41  ;;  %v3896_v15 = vpop.f32.mrf.mxu3 }
 0x9d9   : > { %v5284_v34 = vmul.f32 %v5283_v26, %v13179_v48  ;;  %v4658_v35 = vsel %vm13528_vm7, %v8668_v33, %v4654_v55  ;;  %vm4660_vm8 = vcmp.eq.f32.partialorder %v4659_v23, 8.507059e+37  ;;  %v13545_v45 = vadd.f32 1.0, %v4968_v19  ;;  %7433 = vmatpush.msrb.mxu3 %v6832_v38 }
 0x9da   : > { %v13540_v12 = vmul.f32 %v6601_v36, %v13032_v53  ;;  %7362 = vmatmul.f32.vlgmr.msrb.gmra.mxu1 %v14952_v25  ;;  %v6510_v24 = vadd.f32 0.00028619796, %v6509_v30  ;;  %v4663_v26 = vsel %vm4660_vm8, %v4662_v29, %v4658_v35  ;;  %v5247_v4 = vadd.f32 0.4994258, %v5246_v9  ;;  %7393 = vmatpush.msrb.mxu2 %v6798_v59  ;;  %v14954_v59 = vld [vmem:[#allocation93_spill] sm:$0xff] }
 0x9db   : > { %v5285_v11 = vadd.f32 0.112945676, %v5284_v34  ;;  %v6233_v53 = vmul.f32 %v6232_v21, %v13462_v44  ;;  %v4664_v36 = vmul.f32 %v4663_v26, %v13232_v7  ;;  %8671 = vrcp.f32 %v13545_v45  ;;  %v6830_v34 = vld [vmem:[#allocation22 + $0x398] sm:$0xff] }
 0x9dc   : > { %14951 = vst [vmem:[#allocation103_spill] sm:$0xff] %v13540_v12  ;;  %7242 = vmatmul.f32.gmra.mxu2 %v13540_v12  ;;  %v5562_v33 = vmul.f32 %v5561_v43, %v13183_v1  ;;  %v13553_v55 = vadd.f32 0.18741608, %v13493_v31  ;;  %v13555_v30 = vadd.f32 %v3896_v15, %v3856_v49  ;;  %v5248_v19 = vmul.f32 %v5247_v4, %v13116_v60  ;;  %v6794_v12 = vld [vmem:[#allocation22 + $0x278] sm:$0xff] }
 0x9dd   : > { %v8670_v23 = vpop.eup %8669  ;;  %v5286_v21 = vmul.f32 %v5285_v11, %v13179_v48  ;;  %v13559_v5 = vadd.f32 1.1283791, %v5917_v13  ;;  %v8199_v29 = vclamps-f32 %v4664_v36, 1.0  ;;  %v4939_v62 = vand.u32 2147483647, %v13521_v56  ;;  %7434 = vmatpush.msrb.mxu3 %v6830_v34  ;;  %v14956_v11 = vld [vmem:[#allocation77_spill] sm:$0xff] }
 0x9de   : > { %14953 = vst [vmem:[#allocation68_spill] sm:$0xff] %v13555_v30  ;;  %v4931_v7 = vmul.f32 %v8670_v23, %v13521_v56  ;;  %v13564_v43 = vmul.f32 %v6510_v24, %v13498_v6  ;;  %v4941_v31 = vand.u32 2147483648, %v13521_v56  ;;  %v13567_v9 = vadd.f32 1.0, %v5248_v19 }
 0x9df   : > { %v5287_v49 = vadd.f32 0.4994258, %v5286_v21  ;;  %v13569_v60 = vadd.f32 0.05243302, %v6233_v53  ;;  %v6602_v25 = vadd.f32 1.0, %v8199_v29  ;;  %vm4935_vm9 = vweird.f32 %v13521_v56  ;;  %v13590_v21 = vpop.f32.mrf.mxu0 }
 0x9e0   : > { %v4932_v35 = vsub.f32 1.0, %v4931_v7  ;;  %v5563_v13 = vadd.f32 0.014752088, %v5562_v33  ;;  %v13572_v41 = vmul.f32 0.70710677, %v13555_v30  ;;  %8673 = vrcp.f32 %v13567_v9  ;;  %7327 = vmatmul.f32.gmra.mxu0 %v14954_v59 }
 0x9e1   : > { %v4979_v38 = vand.u32 2147483647, %v13545_v45  ;;  %v8672_v24 = vpop.eup %8671  ;;  %v13579_v26 = vmul.f32 %v6602_v25, %v13048_v10  ;;  %vm4936_vm10 = vweird.f32 %v8670_v23  ;;  %v5288_v53 = vmul.f32 %v5287_v49, %v13179_v48  ;;  %v13592_v10 = vpop.f32.mrf.mxu1 }
 0x9e2   : > { %v4933_v4 = vmul.f32 %v8670_v23, %v4932_v35  ;;  %7365 = vmatmul.f32.gmra.mxu1 %v14956_v11  ;;  %vm13583_vm11 = vcmp.eq.f32.partialorder %v4939_v62, 8.507059e+37  ;;  %v4942_v36 = vor.u32 1.1754944e-38, %v4941_v31  ;;  %v4971_v33 = vmul.f32 %v8672_v24, %v13545_v45  ;;  %vm4937_vm12 = vmor %vm4935_vm9, %vm4936_vm10 }
 0x9e3   : > { %14955 = vst [vmem:[#allocation64_spill] sm:$0xff] %v13579_v26  ;;  %v4981_v19 = vand.u32 2147483648, %v13545_v45  ;;  %7283 = vmatmul.f32.gmra.mxu3 %v13579_v26  ;;  %v5259_v7 = vand.u32 2147483647, %v13567_v9  ;;  %v13595_v34 = vadd.f32 1.0, %v5288_v53  ;;  %v5564_v48 = vmul.f32 %v5563_v13, %v13183_v1 }
 0x9e4   : > { %v4934_v29 = vadd.f32 %v8670_v23, %v4933_v4  ;;  %v4972_v62 = vsub.f32 1.0, %v4971_v33  ;;  %vm4975_vm13 = vweird.f32 %v13545_v45  ;;  %vm13601_vm14 = vcmp.eq.f32.partialorder %v4979_v38, 8.507059e+37  ;;  %v6828_v45 = vld [vmem:[#allocation22 + $0x388] sm:$0xff] }
 0x9e5   : > { %v5600_v49 = vmul.f32 3.8918573e-05, %v13216_v32  ;;  %vm4976_vm15 = vweird.f32 %v8672_v24  ;;  %v5261_v35 = vand.u32 2147483648, %v13567_v9  ;;  %8675 = vrcp.f32 %v13595_v34  ;;  %7435 = vmatpush.msrb.mxu3 %v6828_v45 }
 0x9e6   : > { %v4938_v25 = vsel %vm4937_vm12, %v8670_v23, %v4934_v29  ;;  %v8674_v59 = vpop.eup %8673  ;;  %v4973_v13 = vmul.f32 %v8672_v24, %v4972_v62  ;;  %v4982_v4 = vor.u32 1.1754944e-38, %v4981_v19  ;;  %v5565_v11 = vadd.f32 0.112945676, %v5564_v48  ;;  %vm13620_vm1 = vmor %vm4975_vm13, %vm4976_vm15  ;;  %v14965_v19 = vld [vmem:[#allocation83_spill] sm:$0xff] }
 0x9e7   : > { %v4943_v56 = vsel %vm13583_vm11, %v4942_v36, %v4938_v25  ;;  %v5251_v53 = vmul.f32 %v8674_v59, %v13567_v9  ;;  %vm13612_vm0 = vcmp.eq.f32.partialorder %v5259_v7, 8.507059e+37  ;;  %v5880_v23 = vmul.f32 3.8918573e-05, %v13256_v63 }
 0x9e8   : > { %v4944_v38 = vmul.f32 %v4943_v56, %v13269_v54  ;;  %v5920_v29 = vmul.f32 3.8918573e-05, %v13346_v8  ;;  %v4974_v26 = vadd.f32 %v8672_v24, %v4973_v13  ;;  %v5299_v36 = vand.u32 2147483647, %v13595_v34  ;;  %7330 = vmatmul.f32.gmra.mxu0 %v14965_v19  ;;  %v14966_v56 = vld [vmem:[#allocation89_spill] sm:$0xff] }
 0x9e9   : > { %v5566_v54 = vmul.f32 %v5565_v11, %v13183_v1  ;;  %v5601_v7 = vadd.f32 0.001143296, %v5600_v49  ;;  %v5252_v62 = vsub.f32 1.0, %v5251_v53  ;;  %vm5255_vm2 = vweird.f32 %v13567_v9  ;;  %v6796_v13 = vld [vmem:[#allocation22 + $0x288] sm:$0xff] }
 0x9ea   : > { %v8206_v48 = vclamps-f32 %v4944_v38, 1.0  ;;  %v5262_v25 = vor.u32 1.1754944e-38, %v5261_v35  ;;  %7368 = vmatmul.f32.gmra.mxu1 %v14966_v56  ;;  %v4978_v20 = vsel %vm13620_vm1, %v8672_v24, %v4974_v26  ;;  %vm5256_vm3 = vweird.f32 %v8674_v59  ;;  %7394 = vmatpush.msrb.mxu2 %v6796_v13 }
 0x9eb   : > { %v5567_v30 = vadd.f32 0.4994258, %v5566_v54  ;;  %v5602_v11 = vmul.f32 %v5601_v7, %v13216_v32  ;;  %v8676_v49 = vpop.eup %8675  ;;  %v4983_v53 = vsel %vm13601_vm14, %v4982_v4, %v4978_v20  ;;  %v5253_v35 = vmul.f32 %v8674_v59, %v5252_v62  ;;  %v13641_v54 = vpop.f32.mrf.mxu0  ;;  %vm5257_vm5 = vmor %vm5255_vm2, %vm5256_vm3 }
 0x9ec   : > { %v6609_v38 = vadd.f32 1.0, %v8206_v48  ;;  %v5881_v19 = vadd.f32 0.001143296, %v5880_v23  ;;  %v4984_v56 = vmul.f32 %v4983_v53, %v13334_v52  ;;  %v5291_v27 = vmul.f32 %v8676_v49, %v13595_v34  ;;  %7395 = vmatpush.msrb.mxu2 %v6794_v12  ;;  %v13643_v7 = vpop.f32.mrf.mxu1 }
 0x9ed   : > { %v5301_v15 = vand.u32 2147483648, %v13595_v34  ;;  %v5568_v24 = vmul.f32 %v5567_v30, %v13183_v1  ;;  %v5254_v31 = vadd.f32 %v8674_v59, %v5253_v35  ;;  %vm5296_vm4 = vweird.f32 %v8676_v49 }
 0x9ee   : > { %v13639_v26 = vmul.f32 %v6609_v38, %v13067_v58  ;;  %v5603_v20 = vadd.f32 0.014752088, %v5602_v11  ;;  %v8207_v4 = vclamps-f32 %v4984_v56, 1.0  ;;  %v5292_v52 = vsub.f32 1.0, %v5291_v27  ;;  %v14967_v27 = vld [vmem:[#allocation79_spill] sm:$0xff]  ;;  %v14969_v38 = vld [vmem:[#allocation108_spill] sm:$0xff] }
 0x9ef   : > { %v13648_v23 = vadd.f32 1.0, %v5568_v24  ;;  %v5882_v1 = vmul.f32 %v5881_v19, %v13256_v63  ;;  %v5258_v58 = vsel %vm5257_vm5, %v8674_v59, %v5254_v31  ;;  %v5921_v30 = vadd.f32 0.001143296, %v5920_v29  ;;  %v14968_v29 = vld [vmem:[#allocation76_spill] sm:$0xff] }
 0x9f0   : > { %7245 = vmatmul.f32.gmra.mxu2 %v13639_v26  ;;  %v5604_v12 = vmul.f32 %v5603_v20, %v13216_v32  ;;  %v6200_v48 = vmul.f32 3.8918573e-05, %v13358_v17  ;;  %v6610_v62 = vadd.f32 1.0, %v8207_v4  ;;  %v5263_v13 = vsel %vm13612_vm0, %v5262_v25, %v5258_v58  ;;  %7333 = vmatmul.f32.gmra.mxu0 %v14967_v27 }
 0x9f1   : > { %v5293_v45 = vmul.f32 %v8676_v49, %v5292_v52  ;;  %8677 = vrcp.f32 %v13648_v23  ;;  %v13659_v9 = vadd.f32 0.0036580483, %v13564_v43  ;;  %v6547_v59 = vmul.f32 %v13572_v41, %v13572_v41  ;;  %v6826_v52 = vld [vmem:[#allocation22 + $0x378] sm:$0xff] }
 0x9f2   : > { %v5264_v11 = vmul.f32 %v5263_v13, %v13408_v2  ;;  %vm5295_vm6 = vweird.f32 %v13595_v34  ;;  %7371 = vmatmul.f32.gmra.mxu1 %v14968_v29  ;;  %v13667_v33 = vmul.f32 %v6610_v62, %v14969_v38  ;;  %v5605_v53 = vadd.f32 0.112945676, %v5604_v12  ;;  %7436 = vmatpush.msrb.mxu3 %v6826_v52  ;;  %v14970_v62 = vld [vmem:[#allocation109_spill] sm:$0xff] }
 0x9f3   : > { %v5294_v25 = vadd.f32 %v8676_v49, %v5293_v45  ;;  %v5883_v35 = vadd.f32 0.014752088, %v5882_v1  ;;  %vm5297_vm7 = vmor %vm5295_vm6, %vm5296_vm4  ;;  %vm5300_vm8 = vcmp.eq.f32.partialorder %v5299_v36, 8.507059e+37  ;;  %v5302_v43 = vor.u32 1.1754944e-38, %v5301_v15  ;;  %v13683_v45 = vpop.f32.mrf.mxu0  ;;  %v6792_v52 = vld [vmem:[#allocation22 + $0x268] sm:$0xff] }
 0x9f4   : > { %v8214_v19 = vclamps-f32 %v5264_v11, 1.0  ;;  %v5922_v56 = vmul.f32 %v5921_v30, %v13346_v8  ;;  %7286 = vmatmul.f32.gmra.mxu3 %v13667_v33  ;;  %v5606_v34 = vmul.f32 %v5605_v53, %v13216_v32  ;;  %v6201_v31 = vadd.f32 0.001143296, %v6200_v48  ;;  %v13685_v48 = vpop.f32.mrf.mxu1  ;;  %v14971_v53 = vld [vmem:[#allocation90_spill] sm:$0xff]  ;;  %7396 = vmatpush.msrb.mxu2 %v6792_v52  ;;  %v14974_v52 = vld [vmem:[#allocation92_spill] sm:$0xff] }
 0x9f5   : > { %v5298_v2 = vsel %vm5297_vm7, %v8676_v49, %v5294_v25  ;;  %v5884_v24 = vmul.f32 %v5883_v35, %v13256_v63  ;;  %v6240_v1 = vmul.f32 3.8918573e-05, %v13462_v44  ;;  %v13677_v36 = vmin.f32 %v6547_v59, 16.0 }
 0x9f6   : > { %v6617_v20 = vadd.f32 1.0, %v8214_v19  ;;  %v5303_v4 = vsel %vm5300_vm8, %v5302_v43, %v5298_v2  ;;  %v5923_v58 = vadd.f32 0.014752088, %v5922_v56  ;;  %v5607_v30 = vadd.f32 0.4994258, %v5606_v34  ;;  %v14972_v19 = vld [vmem:[#allocation88_spill] sm:$0xff] }
 0x9f7   : > { %v13675_v12 = vpop.eup %8677  ;;  %v5304_v15 = vmul.f32 %v5303_v4, %v13412_v0  ;;  %v5885_v49 = vadd.f32 0.112945676, %v5884_v24  ;;  %v5579_v11 = vand.u32 2147483647, %v13648_v23  ;;  %v5581_v0 = vand.u32 2147483648, %v13648_v23  ;;  %v14973_v34 = vld [vmem:[#allocation112_spill] sm:$0xff] }
 0x9f8   : > { %v13681_v13 = vmul.f32 %v6617_v20, %v14970_v62  ;;  %v5571_v27 = vmul.f32 %v13675_v12, %v13648_v23  ;;  %v5924_v59 = vmul.f32 %v5923_v58, %v13346_v8  ;;  %v5608_v38 = vmul.f32 %v5607_v30, %v13216_v32  ;;  %7336 = vmatmul.f32.gmra.mxu0 %v14971_v53  ;;  %v6824_v58 = vld [vmem:[#allocation22 + $0x368] sm:$0xff]  ;;  %v6790_v30 = vld [vmem:[#allocation22 + $0x258] sm:$0xff] }
 0x9f9   : > { %v8215_v29 = vclamps-f32 %v5304_v15, 1.0  ;;  %v5886_v25 = vmul.f32 %v5885_v49, %v13256_v63  ;;  %v6202_v56 = vmul.f32 %v6201_v31, %v13358_v17  ;;  %v6241_v2 = vadd.f32 0.001143296, %v6240_v1  ;;  %7437 = vmatpush.msrb.mxu3 %v6824_v58  ;;  %v6874_v49 = vld [vmem:[#allocation22 + $0x4f8] sm:$0xff]  ;;  %7397 = vmatpush.msrb.mxu2 %v6790_v30  ;;  %v6872_v53 = vld [vmem:[#allocation22 + $0x4e8] sm:$0xff] }
 0x9fa   : > { %7248 = vmatmul.f32.gmra.mxu2 %v13681_v13  ;;  %v5572_v35 = vsub.f32 1.0, %v5571_v27  ;;  %7374 = vmatmul.f32.gmra.mxu1 %v14972_v19  ;;  %v5925_v43 = vadd.f32 0.112945676, %v5924_v59  ;;  %v13700_v24 = vmul.f32 %v13488_v40, %v14973_v34  ;;  %v13702_v4 = vadd.f32 1.0, %v5608_v38  ;;  %v6906_v31 = vld [vmem:[#allocation22 + $0x5f8] sm:$0xff] }
 0x9fb   : > { %v6618_v20 = vadd.f32 1.0, %v8215_v29  ;;  %v5887_v32 = vadd.f32 0.4994258, %v5886_v25  ;;  %vm5576_vm9 = vweird.f32 %v13675_v12  ;;  %v6203_v62 = vadd.f32 0.014752088, %v6202_v56  ;;  %7469 = vmatpush.msra.mxu0 %v6874_v49  ;;  %7510 = vmatpush.msra.mxu1 %v6906_v31 }
 0x9fc   : > { %v5573_v15 = vmul.f32 %v13675_v12, %v5572_v35  ;;  %v5926_v1 = vmul.f32 %v5925_v43, %v13346_v8  ;;  %v6197_v40 = vmul.f32 %v13553_v55, %v13358_v17  ;;  %v6235_v27 = vmul.f32 %v13569_v60, %v13462_v44  ;;  %v6822_v55 = vld [vmem:[#allocation22 + $0x358] sm:$0xff]  ;;  %v6904_v60 = vld [vmem:[#allocation22 + $0x5e8] sm:$0xff] }
 0x9fd   : > { %v13712_v59 = vmul.f32 %v6618_v20, %v13374_v22  ;;  %8679 = vrcp.f32 %v13702_v4  ;;  %v6513_v29 = vmul.f32 %v13659_v9, %v13498_v6  ;;  %vm5575_vm10 = vweird.f32 %v13648_v23  ;;  %7470 = vmatpush.msra.mxu0 %v6872_v53  ;;  %7438 = vmatpush.msrb.mxu3 %v6822_v55  ;;  %v6788_v55 = vld [vmem:[#allocation22 + $0x248] sm:$0xff]  ;;  %v6870_v53 = vld [vmem:[#allocation22 + $0x4d8] sm:$0xff] }
 0x9fe   : > { %v5574_v38 = vadd.f32 %v13675_v12, %v5573_v15  ;;  %v5888_v25 = vmul.f32 %v5887_v32, %v13256_v63  ;;  %v6549_v22 = vmul.f32 2.1237322e-06, %v13677_v36  ;;  %vm5577_vm11 = vmor %vm5575_vm10, %vm5576_vm9  ;;  %v5582_v35 = vor.u32 1.1754944e-38, %v5581_v0  ;;  %7511 = vmatpush.msra.mxu1 %v6904_v60  ;;  %v13743_v15 = vpop.f32.mrf.mxu1  ;;  %7398 = vmatpush.msrb.mxu2 %v6788_v55 }
 0x9ff   : > { %7289 = vmatmul.f32.gmra.mxu3 %v13712_v59  ;;  %v5927_v19 = vadd.f32 0.4994258, %v5926_v1  ;;  %v6204_v9 = vmul.f32 %v6203_v62, %v13358_v17  ;;  %vm5580_vm12 = vcmp.eq.f32.partialorder %v5579_v11, 8.507059e+37  ;;  %v6242_v43 = vmul.f32 %v6241_v2, %v13462_v44  ;;  %v13741_v2 = vpop.f32.mrf.mxu0  ;;  %7471 = vmatpush.msra.mxu0 %v6870_v53 }
 0xa00   : > { %v5578_v23 = vsel %vm5577_vm11, %v13675_v12, %v5574_v38  ;;  %v13726_v63 = vadd.f32 1.0, %v5888_v25  ;;  %v6198_v56 = vadd.f32 1.1283791, %v6197_v40  ;;  %7339 = vmatmul.f32.gmra.mxu0 %v14974_v52  ;;  %v13733_v0 = vmul.f32 %v13559_v5, %v13309_v57  ;;  %v6971_v12 = vld [vmem:[%s14975_s16] sm:$0x3] }
 0xa01   : > { %v5583_v34 = vsel %vm5580_vm12, %v5582_v35, %v5578_v23  ;;  %v5928_v20 = vmul.f32 %v5927_v19, %v13346_v8  ;;  %v6205_v32 = vadd.f32 0.112945676, %v6204_v9  ;;  %v13735_v58 = vadd.f32 0.18741608, %v6235_v27  ;;  %v14976_v8 = vld [vmem:[#allocation85_spill] sm:$0xff]  ;;  %v6902_v19 = vld [vmem:[#allocation22 + $0x5d8] sm:$0xff] }
 0xa02   : > { %v5584_v11 = vmul.f32 %v5583_v34, %v13417_v18  ;;  %8681 = vrcp.f32 %v13726_v63  ;;  %7377 = vmatmul.f32.gmra.mxu1 %v14976_v8  ;;  %v6550_v57 = vadd.f32 0.00028619796, %v6549_v22  ;;  %v6243_v31 = vadd.f32 0.014752088, %v6242_v43  ;;  %v6868_v23 = vld [vmem:[#allocation22 + $0x4c8] sm:$0xff]  ;;  %v6866_v8 = vld [vmem:[#allocation22 + $0x4b8] sm:$0xff] }
 0xa03   : > { %v13747_v30 = vpop.eup %8679  ;;  %v13749_v5 = vadd.f32 1.0, %v5928_v20  ;;  %v6206_v49 = vmul.f32 %v6205_v32, %v13358_v17  ;;  %v13752_v1 = vadd.f32 0.05243302, %v6513_v29  ;;  %v5619_v40 = vand.u32 2147483647, %v13702_v4  ;;  %7512 = vmatpush.msra.mxu1 %v6902_v19  ;;  %v6900_v43 = vld [vmem:[#allocation22 + $0x5c8] sm:$0xff]  ;;  %7472 = vmatpush.msra.mxu0 %v6868_v23 }
 0xa04   : > { %v8222_v62 = vclamps-f32 %v5584_v11, 1.0  ;;  %v5611_v18 = vmul.f32 %v13747_v30, %v13702_v4  ;;  %v13758_v27 = vmul.f32 %v6198_v56, %v13327_v3  ;;  %v5621_v38 = vand.u32 2147483648, %v13702_v4  ;;  %v6820_v3 = vld [vmem:[#allocation22 + $0x348] sm:$0xff]  ;;  %v6786_v11 = vld [vmem:[#allocation22 + $0x238] sm:$0xff] }
 0xa05   : > { %v5899_v25 = vand.u32 2147483647, %v13726_v63  ;;  %8683 = vrcp.f32 %v13749_v5  ;;  %v13763_v60 = vperm.slane %v6971_v12, 0  ;;  %v6207_v35 = vadd.f32 0.4994258, %v6206_v49  ;;  %7439 = vmatpush.msrb.mxu3 %v6820_v3  ;;  %7513 = vmatpush.msra.mxu1 %v6900_v43 }
 0xa06   : > { %v6625_v29 = vadd.f32 1.0, %v8222_v62  ;;  %v5612_v22 = vsub.f32 1.0, %v5611_v18  ;;  %v13766_v9 = vmul.f32 %v6550_v57, %v13677_v36  ;;  %vm5615_vm13 = vweird.f32 %v13702_v4  ;;  %v6898_v57 = vld [vmem:[#allocation22 + $0x5b8] sm:$0xff]  ;;  %7399 = vmatpush.msrb.mxu2 %v6786_v11  ;;  %7473 = vmatpush.msra.mxu0 %v6866_v8  ;;  %v13806_v4 = vpop.f32.mrf.mxu1 }
 0xa07   : > { %v6244_v56 = vmul.f32 %v6243_v31, %v13462_v44  ;;  %v6520_v34 = vmul.f32 3.8918573e-05, %v13498_v6  ;;  %vm5616_vm14 = vweird.f32 %v13747_v30  ;;  %v6208_v12 = vmul.f32 %v6207_v35, %v13358_v17  ;;  %7514 = vmatpush.msra.mxu1 %v6898_v57  ;;  %v14981_v35 = vld [vmem:[#allocation70_spill] sm:$0xff]  ;;  %v13804_v43 = vpop.f32.mrf.mxu0 }
 0xa08   : > { %v13771_v20 = vpop.eup %8681  ;;  %v13774_v32 = vmul.f32 %v6625_v29, %v13380_v37  ;;  %v5613_v52 = vmul.f32 %v13747_v30, %v5612_v22  ;;  %vm13779_vm15 = vcmp.eq.f32.partialorder %v5619_v40, 8.507059e+37  ;;  %v5622_v31 = vor.u32 1.1754944e-38, %v5621_v38  ;;  %vm5617_vm1 = vmor %vm5615_vm13, %vm5616_vm14  ;;  %7342 = vmatmul.f32.gmra.mxu0 %v14981_v35 }
 0xa09   : > { %v5891_v37 = vmul.f32 %v13771_v20, %v13726_v63  ;;  %v6245_v62 = vadd.f32 0.112945676, %v6244_v56  ;;  %vm5895_vm0 = vweird.f32 %v13726_v63  ;;  %v5901_v18 = vand.u32 2147483648, %v13726_v63 }
 0xa0a   : > { %7251 = vmatmul.f32.gmra.mxu2 %v13774_v32  ;;  %v5614_v17 = vadd.f32 %v13747_v30, %v5613_v52  ;;  %v13789_v55 = vadd.f32 1.0, %v6208_v12  ;;  %vm13795_vm2 = vcmp.eq.f32.partialorder %v5899_v25, 8.507059e+37  ;;  %v6521_v22 = vadd.f32 0.001143296, %v6520_v34  ;;  %v14982_v25 = vld [vmem:[#allocation72_spill] sm:$0xff]  ;;  %v6864_v52 = vld [vmem:[#allocation22 + $0x4a8] sm:$0xff] }
 0xa0b   : > { %v8684_v40 = vpop.eup %8683  ;;  %v5892_v38 = vsub.f32 1.0, %v5891_v37  ;;  %v6246_v29 = vmul.f32 %v6245_v62, %v13462_v44  ;;  %v5939_v23 = vand.u32 2147483647, %v13749_v5  ;;  %7380 = vmatmul.f32.gmra.mxu1 %v14982_v25  ;;  %vm5896_vm3 = vweird.f32 %v13771_v20  ;;  %7474 = vmatpush.msra.mxu0 %v6864_v52  ;;  %v6896_v62 = vld [vmem:[#allocation22 + $0x5a8] sm:$0xff] }
 0xa0c   : > { %v5618_v19 = vsel %vm5617_vm1, %v13747_v30, %v5614_v17  ;;  %v5931_v3 = vmul.f32 %v8684_v40, %v13749_v5  ;;  %8685 = vrcp.f32 %v13789_v55  ;;  %v6818_v30 = vld [vmem:[#allocation22 + $0x338] sm:$0xff]  ;;  %v6560_v12 = vmul.f32 3.8918573e-05, %v13677_v36  ;;  %7515 = vmatpush.msra.mxu1 %v6896_v62  ;;  %vm5897_vm5 = vmor %vm5895_vm0, %vm5896_vm3 }
 0xa0d   : > { %v5623_v56 = vsel %vm13779_vm15, %v5622_v31, %v5618_v19  ;;  %v5893_v34 = vmul.f32 %v13771_v20, %v5892_v38  ;;  %v5902_v8 = vor.u32 1.1754944e-38, %v5901_v18  ;;  %v6247_v37 = vadd.f32 0.4994258, %v6246_v29  ;;  %7440 = vmatpush.msrb.mxu3 %v6818_v30  ;;  %v13825_v29 = vpop.f32.mrf.mxu2 }
 0xa0e   : > { %v5624_v11 = vmul.f32 %v5623_v56, %v13429_v51  ;;  %v5932_v57 = vsub.f32 1.0, %v5931_v3  ;;  %vm5935_vm4 = vweird.f32 %v13749_v5  ;;  %v5941_v49 = vand.u32 2147483648, %v13749_v5 }
 0xa0f   : > { %v5894_v17 = vadd.f32 %v13771_v20, %v5893_v34  ;;  %v6522_v31 = vmul.f32 %v6521_v22, %v13498_v6  ;;  %vm5936_vm6 = vweird.f32 %v8684_v40  ;;  %v6248_v18 = vmul.f32 %v6247_v37, %v13462_v44 }
 0xa10   : > { %v8223_v38 = vclamps-f32 %v5624_v11, 1.0  ;;  %v5933_v51 = vmul.f32 %v8684_v40, %v5932_v57  ;;  %vm13828_vm7 = vcmp.eq.f32.partialorder %v5939_v23, 8.507059e+37  ;;  %v6561_v22 = vadd.f32 0.001143296, %v6560_v12  ;;  %vm5937_vm8 = vmor %vm5935_vm4, %vm5936_vm6 }
 0xa11   : > { %v5898_v35 = vsel %vm5897_vm5, %v13771_v20, %v5894_v17  ;;  %v6523_v3 = vadd.f32 0.014752088, %v6522_v31  ;;  %v13836_v30 = vadd.f32 1.0, %v6248_v18  ;;  %v5942_v20 = vor.u32 1.1754944e-38, %v5941_v49  ;;  %v13858_v17 = vpop.f32.mrf.mxu1 }
 0xa12   : > { %v13832_v25 = vpop.eup %8685  ;;  %v6626_v56 = vadd.f32 1.0, %v8223_v38  ;;  %v5903_v63 = vsel %vm13795_vm2, %v5902_v8, %v5898_v35  ;;  %v5934_v34 = vadd.f32 %v8684_v40, %v5933_v51  ;;  %v6221_v53 = vand.u32 2147483648, %v13789_v55  ;;  %v14985_v8 = vld [vmem:[#allocation96_spill] sm:$0xff]  ;;  %v13861_v38 = vpop.f32.mrf.mxu3 }
 0xa13   : > { %v5904_v52 = vmul.f32 %v5903_v63, %v13700_v24  ;;  %v6211_v23 = vmul.f32 %v13832_v25, %v13789_v55  ;;  %v6524_v12 = vmul.f32 %v6523_v3, %v13498_v6  ;;  %8687 = vrcp.f32 %v13836_v30  ;;  %7383 = vmatmul.f32.gmra.mxu1 %v14985_v8 }
 0xa14   : > { %v13845_v11 = vmul.f32 %v6626_v56, %v13390_v16  ;;  %v5938_v57 = vsel %vm5937_vm8, %v8684_v40, %v5934_v34  ;;  %vm6216_vm9 = vweird.f32 %v13832_v25  ;;  %v6552_v62 = vadd.f32 0.0036580483, %v13766_v9  ;;  %v13856_v40 = vpop.f32.mrf.mxu0  ;;  %v6894_v56 = vld [vmem:[#allocation22 + $0x598] sm:$0xff] }
 0xa15   : > { %v8230_v24 = vclamps-f32 %v5904_v52, 1.0  ;;  %v5943_v5 = vsel %vm13828_vm7, %v5942_v20, %v5938_v57  ;;  %v6212_v37 = vsub.f32 1.0, %v6211_v23  ;;  %v6525_v49 = vadd.f32 0.112945676, %v6524_v12  ;;  %v6784_v52 = vld [vmem:[#allocation22 + $0x228] sm:$0xff]  ;;  %7516 = vmatpush.msra.mxu1 %v6894_v56 }
 0xa16   : > { %7292 = vmatmul.f32.gmra.mxu3 %v13845_v11  ;;  %v5944_v16 = vmul.f32 %v5943_v5, %v13733_v0  ;;  %v6562_v31 = vmul.f32 %v6561_v22, %v13677_v36  ;;  %vm6215_vm10 = vweird.f32 %v13789_v55  ;;  %v6219_v9 = vand.u32 2147483647, %v13789_v55  ;;  %v6862_v22 = vld [vmem:[#allocation22 + $0x498] sm:$0xff]  ;;  %v6816_v20 = vld [vmem:[#allocation22 + $0x328] sm:$0xff]  ;;  %7400 = vmatpush.msrb.mxu2 %v6784_v52 }
 0xa17   : > { %v6633_v51 = vadd.f32 1.0, %v8230_v24  ;;  %v6213_v18 = vmul.f32 %v13832_v25, %v6212_v37  ;;  %v6237_v35 = vmul.f32 %v13735_v58, %v13462_v44  ;;  %vm13870_vm11 = vmor %vm6215_vm10, %vm6216_vm9  ;;  %v6526_v3 = vmul.f32 %v6525_v49, %v13498_v6  ;;  %7475 = vmatpush.msra.mxu0 %v6862_v22  ;;  %v6860_v23 = vld [vmem:[#allocation22 + $0x488] sm:$0xff]  ;;  %7441 = vmatpush.msrb.mxu3 %v6816_v20  ;;  %v6858_v5 = vld [vmem:[#allocation22 + $0x478] sm:$0xff] }
 0xa18   : > { %v8231_v0 = vclamps-f32 %v5944_v16, 1.0  ;;  %v6563_v63 = vadd.f32 0.014752088, %v6562_v31  ;;  %v6515_v34 = vmul.f32 %v13752_v1, %v13498_v6  ;;  %v6222_v58 = vor.u32 1.1754944e-38, %v6221_v53  ;;  %v6892_v1 = vld [vmem:[#allocation22 + $0x588] sm:$0xff]  ;;  %v13887_v16 = vpop.f32.mrf.mxu2  ;;  %v6890_v31 = vld [vmem:[#allocation22 + $0x578] sm:$0xff] }
 0xa19   : > { %v13878_v55 = vmul.f32 %v6633_v51, %v13396_v50  ;;  %v6214_v44 = vadd.f32 %v13832_v25, %v6213_v18  ;;  %v13881_v12 = vpop.eup %8687  ;;  %v6995_v57 = vadd.f32 %v13535_v39, %v13763_v60  ;;  %v6527_v24 = vadd.f32 0.4994258, %v6526_v3  ;;  %v6782_v50 = vld [vmem:[#allocation22 + $0x218] sm:$0xff]  ;;  %7476 = vmatpush.msra.mxu0 %v6860_v23  ;;  %7517 = vmatpush.msra.mxu1 %v6892_v1  ;;  %v6856_v20 = vld [vmem:[#allocation22 + $0x468] sm:$0xff] }
 0xa1a   : > { %v6634_v8 = vadd.f32 1.0, %v8231_v0  ;;  %v6564_v37 = vmul.f32 %v6563_v63, %v13677_v36  ;;  %v6553_v53 = vmul.f32 %v6552_v62, %v13677_v36  ;;  %vm6220_vm12 = vcmp.eq.f32.partialorder %v6219_v9, 8.507059e+37  ;;  %7401 = vmatpush.msrb.mxu2 %v6782_v50  ;;  %v6814_v52 = vld [vmem:[#allocation22 + $0x318] sm:$0xff]  ;;  %v6888_v23 = vld [vmem:[#allocation22 + $0x568] sm:$0xff]  ;;  %v13915_v1 = vpop.f32.mrf.mxu3 }
 0xa1b   : > { %7254 = vmatmul.f32.gmra.mxu2 %v13878_v55  ;;  %v6218_v49 = vsel %vm13870_vm11, %v13832_v25, %v6214_v44  ;;  %v6251_v39 = vmul.f32 %v13881_v12, %v13836_v30  ;;  %v6528_v62 = vmul.f32 %v6527_v24, %v13498_v6  ;;  %v6238_v3 = vadd.f32 1.1283791, %v6237_v35  ;;  %7477 = vmatpush.msra.mxu0 %v6858_v5  ;;  %v13913_v24 = vpop.f32.mrf.mxu1 }
 0xa1c   : > { %v13896_v51 = vmul.f32 %v6634_v8, %v13454_v46  ;;  %v6223_v18 = vsel %vm6220_vm12, %v6222_v58, %v6218_v49  ;;  %v6565_v0 = vadd.f32 0.112945676, %v6564_v37  ;;  %v6516_v25 = vadd.f32 0.18741608, %v6515_v34  ;;  %7518 = vmatpush.msra.mxu1 %v6890_v31  ;;  %v13911_v8 = vpop.f32.mrf.mxu0  ;;  %7442 = vmatpush.msrb.mxu3 %v6814_v52  ;;  %v6886_v37 = vld [vmem:[#allocation22 + $0x558] sm:$0xff] }
 0xa1d   : > { %v6224_v22 = vmul.f32 %v6223_v18, %v13758_v27  ;;  %v6252_v19 = vsub.f32 1.0, %v6251_v39  ;;  %v6261_v9 = vand.u32 2147483648, %v13836_v30  ;;  %v13902_v56 = vadd.f32 1.0, %v6528_v62  ;;  %7478 = vmatpush.msra.mxu0 %v6856_v20  ;;  %v6852_v62 = vld [vmem:[#allocation22 + $0x448] sm:$0xff]  ;;  %v6878_v31 = vld [vmem:[#allocation22 + $0x518] sm:$0xff] }
 0xa1e   : > { %7295 = vmatmul.f32.gmra.mxu3 %v13896_v51  ;;  %v6566_v46 = vmul.f32 %v6565_v0, %v13677_v36  ;;  %vm6256_vm13 = vweird.f32 %v13881_v12  ;;  %v6259_v35 = vand.u32 2147483647, %v13836_v30  ;;  %v3953_v27 = vmul.f32 0.5, %v13314_v47  ;;  %7519 = vmatpush.msra.mxu1 %v6888_v23  ;;  %v6848_v23 = vld [vmem:[#allocation22 + $0x428] sm:$0xff] }
 0xa1f   : > { %v8238_v63 = vclamps-f32 %v6224_v22, 1.0  ;;  %v6253_v44 = vmul.f32 %v13881_v12, %v6252_v19  ;;  %v6554_v58 = vadd.f32 0.05243302, %v6553_v53  ;;  %v7036_v34 = vadd.f32 %v13537_v61, %v6995_v57  ;;  %v6780_v61 = vld [vmem:[#allocation22 + $0x208] sm:$0xff]  ;;  %v6854_v57 = vld [vmem:[#allocation22 + $0x458] sm:$0xff] }
 0xa20   : > { %8689 = vrcp.f32 %v13902_v56  ;;  %vm6255_vm14 = vweird.f32 %v13836_v30  ;;  %v6567_v47 = vadd.f32 0.4994258, %v6566_v46  ;;  %v6239_v53 = vmul.f32 %v6238_v3, %v13420_v28  ;;  %7402 = vmatpush.msrb.mxu2 %v6780_v61  ;;  %v6812_v30 = vld [vmem:[#allocation22 + $0x308] sm:$0xff]  ;;  %7479 = vmatpush.msra.mxu0 %v6854_v57  ;;  %v6938_v3 = vld [vmem:[#allocation22 + $0x6f8] sm:$0xff]  ;;  %v13937_v46 = vpop.f32.mrf.mxu2 }
 0xa21   : > { %v6641_v50 = vadd.f32 1.0, %v8238_v63  ;;  %v6254_v5 = vadd.f32 %v13881_v12, %v6253_v44  ;;  %v6517_v49 = vmul.f32 %v6516_v25, %v13498_v6  ;;  %v7077_v39 = vadd.f32 %v13825_v29, %v7036_v34  ;;  %vm13924_vm15 = vmor %vm6255_vm14, %vm6256_vm13  ;;  %v6884_v29 = vld [vmem:[#allocation22 + $0x548] sm:$0xff]  ;;  %7520 = vmatpush.msra.mxu1 %v6886_v37  ;;  %7443 = vmatpush.msrb.mxu3 %v6812_v30  ;;  %v6882_v44 = vld [vmem:[#allocation22 + $0x538] sm:$0xff] }
 0xa22   : > { %v6262_v18 = vor.u32 1.1754944e-38, %v6261_v9  ;;  %vm6260_vm0 = vcmp.eq.f32.partialorder %v6259_v35, 8.507059e+37  ;;  %v6568_v6 = vmul.f32 %v6567_v47, %v13677_v36  ;;  %v6555_v22 = vmul.f32 %v6554_v58, %v13677_v36  ;;  %v6850_v9 = vld [vmem:[#allocation22 + $0x438] sm:$0xff]  ;;  %7480 = vmatpush.msra.mxu0 %v6852_v62  ;;  %7551 = vmatpush.msra.mxu2 %v6938_v3  ;;  %v6936_v30 = vld [vmem:[#allocation22 + $0x6e8] sm:$0xff] }
 0xa23   : > { %v13928_v0 = vmul.f32 %v6641_v50, %v3953_v27  ;;  %v6258_v28 = vsel %vm13924_vm15, %v13881_v12, %v6254_v5  ;;  %v6998_v19 = vadd.f32 %v13590_v21, %v13763_v60  ;;  %7521 = vmatpush.msra.mxu1 %v6884_v29  ;;  %v7118_v27 = vadd.f32 %v13861_v38, %v7077_v39  ;;  %v6880_v50 = vld [vmem:[#allocation22 + $0x528] sm:$0xff]  ;;  %v7199_v47 = vpop.f32.mrf.mxu1  ;;  %v6970_v37 = vld [vmem:[#allocation22 + $0x7f8] sm:$0xff] }
 0xa24   : > { %v6263_v25 = vsel %vm6260_vm0, %v6262_v18, %v6258_v28  ;;  %v13940_v63 = vadd.f32 1.0, %v6568_v6  ;;  %7481 = vmatpush.msra.mxu0 %v6850_v9  ;;  %v6518_v34 = vadd.f32 1.1283791, %v6517_v49  ;;  %v6556_v52 = vadd.f32 0.18741608, %v6555_v22  ;;  %v7158_v5 = vpop.f32.mrf.mxu0  ;;  %v6846_v39 = vld [vmem:[#allocation22 + $0x418] sm:$0xff]  ;;  %7592 = vmatpush.msra.mxu3 %v6970_v37  ;;  %v13953_v28 = vpop.f32.mrf.mxu3 }
 0xa25   : > { %7257 = vmatmul.f32.gmra.mxu2 %v13928_v0  ;;  %v6264_v12 = vmul.f32 %v6263_v25, %v6239_v53  ;;  %v7039_v20 = vadd.f32 %v13592_v10, %v6998_v19  ;;  %7522 = vmatpush.msra.mxu1 %v6882_v44  ;;  %v3954_v61 = vmul.f32 0.5, %v13401_v42  ;;  %v7159_v53 = vadd.f32 %v7158_v5, %v7118_v27  ;;  %v6844_v62 = vld [vmem:[#allocation22 + $0x408] sm:$0xff]  ;;  %v6934_v22 = vld [vmem:[#allocation22 + $0x6d8] sm:$0xff] }
 0xa26   : > { %v13942_v35 = vpop.eup %8689  ;;  %8691 = vrcp.f32 %v13940_v63  ;;  %7482 = vmatpush.msra.mxu0 %v6848_v23  ;;  %v6539_v49 = vand.u32 2147483647, %v13902_v56  ;;  %v6541_v10 = vand.u32 2147483648, %v13902_v56  ;;  %7552 = vmatpush.msra.mxu2 %v6936_v30  ;;  %v6968_v3 = vld [vmem:[#allocation22 + $0x7e8] sm:$0xff]  ;;  %v7001_v25 = vadd.f32 %v13641_v54, %v13763_v60  ;;  %v6930_v37 = vld [vmem:[#allocation22 + $0x6b8] sm:$0xff] }
 0xa27   : > { %v8239_v21 = vclamps-f32 %v6264_v12, 1.0  ;;  %v6531_v58 = vmul.f32 %v13942_v35, %v13902_v56  ;;  %v7080_v18 = vadd.f32 %v13887_v16, %v7039_v20  ;;  %7523 = vmatpush.msra.mxu1 %v6880_v50  ;;  %vm6536_vm1 = vweird.f32 %v13942_v35  ;;  %v6876_v16 = vld [vmem:[#allocation22 + $0x508] sm:$0xff]  ;;  %7593 = vmatpush.msra.mxu3 %v6968_v3  ;;  %v6966_v50 = vld [vmem:[#allocation22 + $0x7d8] sm:$0xff] }
 0xa28   : > { %v13959_v29 = vadd.f32 %v7199_v47, %v7159_v53  ;;  %7483 = vmatpush.msra.mxu0 %v6846_v39  ;;  %vm6535_vm2 = vweird.f32 %v13902_v56  ;;  %v6557_v12 = vmul.f32 %v6556_v52, %v13677_v36  ;;  %v6542_v44 = vor.u32 1.1754944e-38, %v6541_v10  ;;  %v7085_v20 = vpop.f32.mrf.mxu2  ;;  %v14991_v56 = vld [vmem:[#allocation104_spill] sm:$0xff]  ;;  %7553 = vmatpush.msra.mxu2 %v6934_v22  ;;  %v14992_v10 = vld [vmem:[#allocation114_spill] sm:$0xff] }
 0xa29   : > { %v6642_v57 = vadd.f32 1.0, %v8239_v21  ;;  %v6532_v38 = vsub.f32 1.0, %v6531_v58  ;;  %7524 = vmatpush.msra.mxu1 %v6878_v31  ;;  %vm6537_vm3 = vmor %vm6535_vm2, %vm6536_vm1  ;;  %v14990_v21 = vld [vmem:[#allocation84_spill] sm:$0xff]  ;;  %v6519_v54 = vmul.f32 %v6518_v34, %v13465_v14  ;;  %v7121_v58 = vadd.f32 %v13915_v1, %v7080_v18  ;;  %7594 = vmatpush.msra.mxu3 %v6966_v50  ;;  %v6932_v1 = vld [vmem:[#allocation22 + $0x6c8] sm:$0xff] }
 0xa2a   : > { %7484 = vmatpush.msra.mxu0 %v6844_v62  ;;  %vm6540_vm4 = vcmp.eq.f32.partialorder %v6539_v49, 8.507059e+37  ;;  %v6964_v34 = vld [vmem:[#allocation22 + $0x7c8] sm:$0xff]  ;;  %v6579_v39 = vand.u32 2147483647, %v13940_v63  ;;  %7554 = vmatpush.msra.mxu2 %v6932_v1  ;;  %vm6575_vm6 = vweird.f32 %v13940_v63  ;;  %v3961_v30 = vmul.f32 0.5, %v14992_v10 }
 0xa2b   : > { %v13955_v42 = vmul.f32 %v6642_v57, %v3954_v61  ;;  %v6533_v6 = vmul.f32 %v13942_v35, %v6532_v38  ;;  %7525 = vmatpush.msra.mxu1 %v6876_v16  ;;  %7485 = vmatmul.f32.vlgmr.msra.gmra.mxu0 %v14990_v21  ;;  %v7202_v47 = vpop.f32.mrf.mxu1  ;;  %v7042_v61 = vadd.f32 %v13643_v7, %v7001_v25  ;;  %v6581_v38 = vand.u32 2147483648, %v13940_v63  ;;  %v14993_v25 = vld [vmem:[#allocation63_spill] sm:$0xff] }
 0xa2c   : > { %v8692_v19 = vpop.eup %8691  ;;  %7526 = vmatmul.f32.vlgmr.msra.gmra.mxu1 %v14991_v56  ;;  %v7161_v5 = vpop.f32.mrf.mxu0  ;;  %7595 = vmatpush.msra.mxu3 %v6964_v34  ;;  %v7004_v62 = vadd.f32 %v13683_v45, %v13763_v60  ;;  %vm6580_vm8 = vcmp.eq.f32.partialorder %v6579_v39, 8.507059e+37  ;;  %v6962_v21 = vld [vmem:[#allocation22 + $0x7b8] sm:$0xff]  ;;  %v6960_v56 = vld [vmem:[#allocation22 + $0x7a8] sm:$0xff] }
 0xa2d   : > { %7298 = vmatmul.f32.gmra.mxu3 %v13955_v42  ;;  %v6534_v9 = vadd.f32 %v13942_v35, %v6533_v6  ;;  %v6571_v27 = vmul.f32 %v8692_v19, %v13940_v63  ;;  %v7162_v14 = vadd.f32 %v7161_v5, %v7121_v58  ;;  %vm6576_vm5 = vweird.f32 %v8692_v19  ;;  %7555 = vmatpush.msra.mxu2 %v6930_v37  ;;  %v7126_v6 = vpop.f32.mrf.mxu3  ;;  %v14995_v5 = vld [vmem:[#allocation68_spill] sm:$0xff]  ;;  %v14997_v34 = vld [vmem:[#allocation78_spill] sm:$0xff]  ;;  %v14998_v39 = vld [vmem:[#allocation75_spill] sm:$0xff] }
 0xa2e   : > { %v7083_v31 = vadd.f32 %v13937_v46, %v7042_v61  ;;  %vm6577_vm7 = vmor %vm6575_vm6, %vm6576_vm5  ;;  %v6582_v3 = vor.u32 1.1754944e-38, %v6581_v38  ;;  %v7045_v58 = vadd.f32 %v13685_v48, %v7004_v62  ;;  %7596 = vmatpush.msra.mxu3 %v6962_v21  ;;  %v7007_v48 = vadd.f32 %v13741_v2, %v13763_v60  ;;  %v14996_v38 = vld [vmem:[#allocation105_spill] sm:$0xff] }
 0xa2f   : > { %v6538_v23 = vsel %vm6537_vm3, %v13942_v35, %v6534_v9  ;;  %v6572_v52 = vsub.f32 1.0, %v6571_v27  ;;  %v6558_v35 = vadd.f32 1.1283791, %v6557_v12  ;;  %v13979_v49 = vadd.f32 %v7202_v47, %v7162_v14  ;;  %v6924_v2 = vld [vmem:[#allocation22 + $0x688] sm:$0xff] }
 0xa30   : > { %v6543_v36 = vsel %vm6540_vm4, %v6542_v44, %v6538_v23  ;;  %v7124_v9 = vadd.f32 %v13953_v28, %v7083_v31  ;;  %v14994_v44 = vld [vmem:[#allocation95_spill] sm:$0xff]  ;;  %v7088_v23 = vpop.f32.mrf.mxu2  ;;  %7597 = vmatpush.msra.mxu3 %v6960_v56  ;;  %v3962_v47 = vmul.f32 0.5, %v14995_v5  ;;  %v6920_v21 = vld [vmem:[#allocation22 + $0x668] sm:$0xff] }
 0xa31   : > { %v6544_v57 = vmul.f32 %v6543_v36, %v6519_v54  ;;  %v6573_v53 = vmul.f32 %v8692_v19, %v6572_v52  ;;  %v6559_v22 = vmul.f32 %v6558_v35, %v13572_v41  ;;  %v6926_v36 = vld [vmem:[#allocation22 + $0x698] sm:$0xff]  ;;  %v7086_v52 = vadd.f32 %v7085_v20, %v7045_v58  ;;  %v15003_v56 = vld [vmem:[#allocation101_spill] sm:$0xff] }
 0xa32   : > { %v6958_v20 = vld [vmem:[#allocation22 + $0x798] sm:$0xff] }
 0xa33   : > { %v8246_v18 = vclamps-f32 %v6544_v57, 1.0  ;;  %v6574_v7 = vadd.f32 %v8692_v19, %v6573_v53  ;;  %7488 = vmatmul.f32.gmra.mxu0 %v14993_v25  ;;  %v7205_v54 = vpop.f32.mrf.mxu1  ;;  %v7127_v14 = vadd.f32 %v7126_v6, %v7086_v52  ;;  %v7048_v53 = vadd.f32 %v13743_v15, %v7007_v48  ;;  %7598 = vmatpush.msra.mxu3 %v6958_v20  ;;  %v6950_v52 = vld [vmem:[#allocation22 + $0x758] sm:$0xff]  ;;  %v15006_v48 = vld [vmem:[#allocation73_spill] sm:$0xff] }
 0xa34   : > { %7529 = vmatmul.f32.gmra.mxu1 %v14994_v44  ;;  %v7164_v45 = vpop.f32.mrf.mxu0  ;;  %v7010_v6 = vadd.f32 %v13804_v43, %v13763_v60  ;;  %v15002_v44 = vld [vmem:[#allocation82_spill] sm:$0xff] }
 0xa35   : > { %v6649_v16 = vadd.f32 1.0, %v8246_v18  ;;  %v6578_v46 = vsel %vm6577_vm7, %v8692_v19, %v6574_v7  ;;  %v7165_v41 = vadd.f32 %v7164_v45, %v7124_v9  ;;  %v6928_v19 = vld [vmem:[#allocation22 + $0x6a8] sm:$0xff]  ;;  %v7129_v1 = vpop.f32.mrf.mxu3  ;;  %v6922_v7 = vld [vmem:[#allocation22 + $0x678] sm:$0xff]  ;;  %v7089_v10 = vadd.f32 %v7088_v23, %v7048_v53 }
 0xa36   : > { %v6583_v63 = vsel %vm6580_vm8, %v6582_v3, %v6578_v46  ;;  %7556 = vmatpush.msra.mxu2 %v6928_v19  ;;  %v6956_v18 = vld [vmem:[#allocation22 + $0x788] sm:$0xff]  ;;  %v6954_v46 = vld [vmem:[#allocation22 + $0x778] sm:$0xff] }
 0xa37   : > { %v13988_v12 = vmul.f32 %v6649_v16, %v3961_v30  ;;  %v6584_v27 = vmul.f32 %v6583_v63, %v6559_v22  ;;  %v13993_v50 = vadd.f32 %v7205_v54, %v7165_v41  ;;  %7599 = vmatpush.msra.mxu3 %v6956_v18  ;;  %v14999_v16 = vld [vmem:[#allocation106_spill] sm:$0xff]  ;;  %v7130_v15 = vadd.f32 %v7129_v1, %v7089_v10  ;;  %v15001_v22 = vld [vmem:[#allocation97_spill] sm:$0xff]  ;;  %v6918_v54 = vld [vmem:[#allocation22 + $0x658] sm:$0xff] }
 0xa38   : > { %7557 = vmatpush.msra.mxu2 %v6926_v36  ;;  %v7091_v30 = vpop.f32.mrf.mxu2  ;;  %v15000_v3 = vld [vmem:[#allocation102_spill] sm:$0xff]  ;;  %v7051_v63 = vadd.f32 %v13806_v4, %v7010_v6  ;;  %v7013_v41 = vadd.f32 %v13856_v40, %v13763_v60  ;;  %v6914_v40 = vld [vmem:[#allocation22 + $0x638] sm:$0xff]  ;;  %v15007_v53 = vld [vmem:[#allocation117_spill] sm:$0xff] }
 0xa39   : > { %7260 = vmatmul.f32.gmra.mxu2 %v13988_v12  ;;  %v8247_v28 = vclamps-f32 %v6584_v27, 1.0  ;;  %7600 = vmatpush.msra.mxu3 %v6954_v46  ;;  %v6952_v45 = vld [vmem:[#allocation22 + $0x768] sm:$0xff]  ;;  %v6946_v18 = vld [vmem:[#allocation22 + $0x738] sm:$0xff] }
 0xa3a   : > { %7558 = vmatpush.msra.mxu2 %v6924_v2  ;;  %v7092_v58 = vadd.f32 %v7091_v30, %v7051_v63  ;;  %v15004_v36 = vld [vmem:[#allocation74_spill] sm:$0xff]  ;;  %v15010_v6 = vld [vmem:[#allocation99_spill] sm:$0xff] }
 0xa3b   : > { %v6650_v61 = vadd.f32 1.0, %v8247_v28  ;;  %7491 = vmatmul.f32.gmra.mxu0 %v14996_v38  ;;  %v7208_v35 = vpop.f32.mrf.mxu1  ;;  %7601 = vmatpush.msra.mxu3 %v6952_v45  ;;  %v15005_v28 = vld [vmem:[#allocation86_spill] sm:$0xff]  ;;  %v15012_v63 = vld [vmem:[#allocation115_spill] sm:$0xff] }
 0xa3c   : > { %7532 = vmatmul.f32.gmra.mxu1 %v14997_v34  ;;  %v7167_v37 = vpop.f32.mrf.mxu0  ;;  %7559 = vmatpush.msra.mxu2 %v6922_v7  ;;  %v6948_v1 = vld [vmem:[#allocation22 + $0x748] sm:$0xff]  ;;  %v15014_v45 = vld [vmem:[#allocation91_spill] sm:$0xff] }
 0xa3d   : > { %v13998_v57 = vmul.f32 %v6650_v61, %v3962_v47  ;;  %v7168_v31 = vadd.f32 %v7167_v37, %v7127_v14  ;;  %v7132_v43 = vpop.f32.mrf.mxu3  ;;  %v7054_v61 = vadd.f32 %v13858_v17, %v7013_v41  ;;  %7602 = vmatpush.msra.mxu3 %v6950_v52  ;;  %v6916_v14 = vld [vmem:[#allocation22 + $0x648] sm:$0xff] }
 0xa3e   : > { %7560 = vmatpush.msra.mxu2 %v6920_v21  ;;  %v7133_v4 = vadd.f32 %v7132_v43, %v7092_v58  ;;  %v15009_v2 = vld [vmem:[#allocation98_spill] sm:$0xff]  ;;  %v15018_v52 = vld [vmem:[#allocation81_spill] sm:$0xff] }
 0xa3f   : > { %7301 = vmatmul.f32.gmra.mxu3 %v13998_v57  ;;  %v14005_v62 = vadd.f32 %v7208_v35, %v7168_v31  ;;  %v7016_v35 = vadd.f32 %v13911_v8, %v13763_v60  ;;  %v15008_v31 = vld [vmem:[#allocation111_spill] sm:$0xff]  ;;  %v6940_v43 = vld [vmem:[#allocation22 + $0x708] sm:$0xff] }
 0xa40   : > { %7561 = vmatpush.msra.mxu2 %v6918_v54  ;;  %v7094_v19 = vpop.f32.mrf.mxu2  ;;  %7603 = vmatpush.msra.mxu3 %v6948_v1  ;;  %v6910_v60 = vld [vmem:[#allocation22 + $0x618] sm:$0xff] }
 0xa41   : > { %7403 = vmatmul.f32.vlgmr.msrb.gmra.mxu2 %v14998_v39  ;;  %v7095_v34 = vadd.f32 %v7094_v19, %v7054_v61  ;;  %v7057_v30 = vadd.f32 %v13913_v24, %v7016_v35  ;;  %v15013_v24 = vld [vmem:[#allocation100_spill] sm:$0xff]  ;;  %v15022_v35 = vld [vmem:[#allocation87_spill] sm:$0xff] }
 0xa42   : > { %7562 = vmatpush.msra.mxu2 %v6916_v14  ;;  %7604 = vmatpush.msra.mxu3 %v6946_v18  ;;  %v15020_v14 = vld [vmem:[#allocation66_spill] sm:$0xff] }
 0xa43   : > { %7494 = vmatmul.f32.gmra.mxu0 %v14999_v16  ;;  %v7211_v9 = vpop.f32.mrf.mxu1 }
 0xa44   : > { %7535 = vmatmul.f32.gmra.mxu1 %v15000_v3  ;;  %v7170_v25 = vpop.f32.mrf.mxu0  ;;  %7563 = vmatpush.msra.mxu2 %v6914_v40  ;;  %v6944_v3 = vld [vmem:[#allocation22 + $0x728] sm:$0xff] }
 0xa45   : > { %v7171_v27 = vadd.f32 %v7170_v25, %v7130_v15  ;;  %v7135_v37 = vpop.f32.mrf.mxu3  ;;  %v6912_v15 = vld [vmem:[#allocation22 + $0x628] sm:$0xff]  ;;  %7605 = vmatpush.msra.mxu3 %v6944_v3 }
 0xa46   : > { %v7136_v17 = vadd.f32 %v7135_v37, %v7095_v34  ;;  %7564 = vmatpush.msra.mxu2 %v6912_v15  ;;  %v15011_v25 = vld [vmem:[#allocation113_spill] sm:$0xff]  ;;  %v15021_v37 = vld [vmem:[#allocation62_spill] sm:$0xff] }
 0xa47   : > { %7444 = vmatmul.f32.vlgmr.msrb.gmra.mxu3 %v15001_v22  ;;  %v14014_v23 = vadd.f32 %v7211_v9, %v7171_v27  ;;  %v6908_v27 = vld [vmem:[#allocation22 + $0x608] sm:$0xff] }
 0xa48   : > { %v7097_v39 = vpop.f32.mrf.mxu2  ;;  %7565 = vmatpush.msra.mxu2 %v6910_v60 }
 0xa49   : > { %7406 = vmatmul.f32.gmra.mxu2 %v15002_v44  ;;  %v7098_v8 = vadd.f32 %v7097_v39, %v7057_v30  ;;  %v6942_v44 = vld [vmem:[#allocation22 + $0x718] sm:$0xff] }
 0xa4a   : > { %7606 = vmatpush.msra.mxu3 %v6942_v44  ;;  %7566 = vmatpush.msra.mxu2 %v6908_v27 }
 0xa4b   : > { %7497 = vmatmul.f32.gmra.mxu0 %v15003_v56  ;;  %v7214_v47 = vpop.f32.mrf.mxu1 }
 0xa4c   : > { %7538 = vmatmul.f32.gmra.mxu1 %v15004_v36  ;;  %v7173_v5 = vpop.f32.mrf.mxu0  ;;  %7607 = vmatpush.msra.mxu3 %v6940_v43  ;;  %v15016_v36 = vld [vmem:[#allocation116_spill] sm:$0xff] }
 0xa4d   : > { %v7174_v38 = vadd.f32 %v7173_v5, %v7133_v4  ;;  %v7138_v46 = vpop.f32.mrf.mxu3  ;;  %v15015_v4 = vld [vmem:[#allocation69_spill] sm:$0xff] }
 0xa4e   : > { %v7139_v9 = vadd.f32 %v7138_v46, %v7098_v8 }
 0xa4f   : > { %7447 = vmatmul.f32.gmra.mxu3 %v15005_v28  ;;  %v14023_v20 = vadd.f32 %v7214_v47, %v7174_v38  ;;  %v15017_v28 = vld [vmem:[#allocation67_spill] sm:$0xff]  ;;  %v15019_v38 = vld [vmem:[#allocation94_spill] sm:$0xff] }
 0xa50   : > { %v7240_v58 = vpop.f32.mrf.mxu2 }
 0xa51   : > { %7409 = vmatmul.f32.gmra.mxu2 %v15006_v48  ;;  %v7241_v19 = vadd.f32 %v7240_v58, %v13959_v29 }
 0xa53   : > { %7500 = vmatmul.f32.gmra.mxu0 %v15007_v53  ;;  %v7217_v10 = vpop.f32.mrf.mxu1 }
 0xa54   : > { %7541 = vmatmul.f32.gmra.mxu1 %v15008_v31  ;;  %v7176_v7 = vpop.f32.mrf.mxu0  ;;  %v15023_v31 = vld [vmem:[#allocation71_spill] sm:$0xff] }
 0xa55   : > { %v7177_v16 = vadd.f32 %v7176_v7, %v7136_v17  ;;  %v7281_v5 = vpop.f32.mrf.mxu3 }
 0xa56   : > { %v14043_v61 = vadd.f32 %v7281_v5, %v7241_v19 }
 0xa57   : > { %7450 = vmatmul.f32.gmra.mxu3 %v15009_v2  ;;  %v14032_v22 = vadd.f32 %v7217_v10, %v7177_v16  ;;  %v15024_v2 = vld [vmem:[#allocation107_spill] sm:$0xff]  ;;  %v15025_v10 = vld [vmem:[#allocation110_spill] sm:$0xff]  ;;  %v15027_v16 = vld [vmem:[#allocation64_spill] sm:$0xff] }
 0xa59   : > { %7412 = vmatmul.f32.gmra.mxu2 %v15010_v6 }
 0xa5b   : > { %7503 = vmatmul.f32.gmra.mxu0 %v15011_v25  ;;  %v7220_v41 = vpop.f32.mrf.mxu1 }
 0xa5c   : > { %7544 = vmatmul.f32.gmra.mxu1 %v15012_v63  ;;  %v7179_v21 = vpop.f32.mrf.mxu0 }
 0xa5d   : > { %v7180_v54 = vadd.f32 %v7179_v21, %v7139_v9 }
 0xa5f   : > { %7453 = vmatmul.f32.gmra.mxu3 %v15013_v24  ;;  %v7221_v56 = vadd.f32 %v7220_v41, %v7180_v54  ;;  %v7243_v47 = vpop.f32.mrf.mxu2 }
 0xa60   : > { %v7244_v48 = vadd.f32 %v7243_v47, %v13979_v49 }
 0xa61   : > { %7415 = vmatmul.f32.gmra.mxu2 %v15014_v45 }
 0xa63   : > { %7506 = vmatmul.f32.gmra.mxu0 %v15015_v4 }
 0xa64   : > { %7547 = vmatmul.f32.gmra.mxu1 %v15016_v36  ;;  %v7322_v46 = vpop.f32.mrf.mxu0 }
 0xa66   : > { %v7284_v29 = vpop.f32.mrf.mxu3 }
 0xa67   : > { %7456 = vmatmul.f32.gmra.mxu3 %v15017_v28  ;;  %v14048_v1 = vadd.f32 %v7284_v29, %v7244_v48 }
 0xa69   : > { %7418 = vmatmul.f32.gmra.mxu2 %v15018_v52 }
 0xa6c   : > { %v7325_v25 = vpop.f32.mrf.mxu0 }
 0xa6f   : > { %7459 = vmatmul.f32.gmra.mxu3 %v15019_v38  ;;  %v8728_v38 = vld [vmem:[%s14975_s16] sm:$0x3] }
 0xa71   : > { %7421 = vmatmul.f32.gmra.mxu2 %v15020_v14  ;;  %v14113_v14 = vperm.slane %v8728_v38, 1 }
 0xa73   : > { %v7246_v40 = vpop.f32.mrf.mxu2 }
 0xa74   : > { %v7247_v34 = vadd.f32 %v7246_v40, %v13993_v50  ;;  %v15026_v50 = vld [vmem:[#allocation103_spill] sm:$0xff]  ;;  %v7328_v9 = vpop.f32.mrf.mxu0 }
 0xa77   : > { %7462 = vmatmul.f32.gmra.mxu3 %v15021_v37  ;;  %v7287_v53 = vpop.f32.mrf.mxu3 }
 0xa78   : > { %v14053_v17 = vadd.f32 %v7287_v53, %v7247_v34  ;;  %v7323_v34 = vadd.f32 %v7322_v46, %v14113_v14 }
 0xa79   : > { %7424 = vmatmul.f32.gmra.mxu2 %v15022_v35 }
 0xa7d   : > { %v7249_v39 = vpop.f32.mrf.mxu2 }
 0xa7e   : > { %v7250_v49 = vadd.f32 %v7249_v39, %v14005_v62 }
 0xa7f   : > { %7465 = vmatmul.f32.gmra.mxu3 %v15023_v31 }
 0xa81   : > { %7567 = vmatmul.f32.vlgmr.msra.gmra.mxu2 %v15024_v2  ;;  %v7326_v2 = vadd.f32 %v7325_v25, %v14113_v14 }
 0xa82   : > { %v7290_v18 = vpop.f32.mrf.mxu3 }
 0xa83   : > { %v14058_v7 = vadd.f32 %v7290_v18, %v7250_v49 }
 0xa87   : > { %7608 = vmatmul.f32.vlgmr.msra.gmra.mxu3 %v15025_v10 }
 0xa89   : > { %7570 = vmatmul.f32.gmra.mxu2 %v15026_v50 }
 0xa8d   : > { %v7252_v30 = vpop.f32.mrf.mxu2 }
 0xa8e   : > { %v7253_v6 = vadd.f32 %v7252_v30, %v14014_v23 }
 0xa8f   : > { %7611 = vmatmul.f32.gmra.mxu3 %v15027_v16 }
 0xa91   : > { %7573 = vmatmul.f32.gmra.mxu2 %v13639_v26 }
 0xa97   : > { %7614 = vmatmul.f32.gmra.mxu3 %v13667_v33  ;;  %v7363_v33 = vpop.f32.mrf.mxu1 }
 0xa98   : > { %v7364_v53 = vadd.f32 %v7363_v33, %v7323_v34 }
 0xa99   : > { %7576 = vmatmul.f32.gmra.mxu2 %v13681_v13  ;;  %v7293_v62 = vpop.f32.mrf.mxu3 }
 0xa9a   : > { %v14067_v15 = vadd.f32 %v7293_v62, %v7253_v6 }
 0xa9e   : > { %v7255_v3 = vpop.f32.mrf.mxu2 }
 0xa9f   : > { %v7256_v60 = vadd.f32 %v7255_v3, %v14023_v20  ;;  %7617 = vmatmul.f32.gmra.mxu3 %v13712_v59  ;;  %v7329_v3 = vadd.f32 %v7328_v9, %v14113_v14 }
 0xaa1   : > { %7579 = vmatmul.f32.gmra.mxu2 %v13774_v32  ;;  %v7296_v8 = vpop.f32.mrf.mxu3  ;;  %v7366_v32 = vpop.f32.mrf.mxu1 }
 0xaa2   : > { %v14072_v23 = vadd.f32 %v7296_v8, %v7256_v60  ;;  %v7367_v30 = vadd.f32 %v7366_v32, %v7326_v2  ;;  %v15030_v2 = vld [vmem:[#allocation48_spill] sm:$0xff] }
 0xaa7   : > { %7620 = vmatmul.f32.gmra.mxu3 %v13845_v11 }
 0xaa8   : > { %v7258_v26 = vpop.f32.mrf.mxu2 }
 0xaa9   : > { %7582 = vmatmul.f32.gmra.mxu2 %v13878_v55  ;;  %v7259_v13 = vadd.f32 %v7258_v26, %v14032_v22  ;;  %v7369_v63 = vpop.f32.mrf.mxu1  ;;  %v7331_v55 = vpop.f32.mrf.mxu0 }
 0xaaa   : > { %v7332_v9 = vadd.f32 %v7331_v55, %v14113_v14 }
 0xaaf   : > { %7623 = vmatmul.f32.gmra.mxu3 %v13896_v51 }
 0xab0   : > { %v7299_v20 = vpop.f32.mrf.mxu3 }
 0xab1   : > { %7585 = vmatmul.f32.gmra.mxu2 %v13928_v0  ;;  %v14079_v59 = vadd.f32 %v7299_v20, %v7259_v13  ;;  %v7372_v27 = vpop.f32.mrf.mxu1  ;;  %v14086_v45 = vpop.f32.mrf.mxu0  ;;  %v7370_v13 = vadd.f32 %v7369_v63, %v7329_v3 }
 0xab7   : > { %7626 = vmatmul.f32.gmra.mxu3 %v13955_v42 }
 0xab9   : > { %7588 = vmatmul.f32.gmra.mxu2 %v13988_v12  ;;  %v14088_v54 = vpop.f32.mrf.mxu1  ;;  %v14090_v12 = vpop.f32.mrf.mxu0 }
 0xabc   : > { %v7261_v11 = vpop.f32.mrf.mxu2 }
 0xabd   : > { %v7262_v24 = vadd.f32 %v7261_v11, %v7221_v56 }
 0xabf   : > { %7629 = vmatmul.f32.gmra.mxu3 %v13998_v57 }
 0xac1   : > { %v14092_v58 = vpop.f32.mrf.mxu1  ;;  %v14094_v19 = vpop.f32.mrf.mxu0 }
 0xac2   : > { %v7302_v22 = vpop.f32.mrf.mxu3 }
 0xac3   : > { %v14084_v44 = vadd.f32 %v7302_v22, %v7262_v24  ;;  %v15028_v22 = vld [vmem:[#allocation46_spill] sm:$0xff] }
 0xac4   : > { %v7404_v51 = vpop.f32.mrf.mxu2 }
 0xac5   : > { %v7405_v49 = vadd.f32 %v7404_v51, %v7364_v53  ;;  %v14128_v51 = vadd.f32 %v14043_v61, %v15028_v22  ;;  %v7373_v53 = vadd.f32 %v7372_v27, %v7332_v9 }
 0xac9   : > { %v14098_v36 = vpop.f32.mrf.mxu1  ;;  %v14100_v28 = vpop.f32.mrf.mxu0 }
 0xaca   : > { %v7445_v0 = vpop.f32.mrf.mxu3 }
 0xacb   : > { %v7446_v18 = vadd.f32 %v7445_v0, %v7405_v49  ;;  %v15029_v0 = vld [vmem:[#allocation47_spill] sm:$0xff] }
 0xacc   : > { %v7407_v21 = vpop.f32.mrf.mxu2 }
 0xacd   : > { %v7408_v62 = vadd.f32 %v7407_v21, %v7367_v30  ;;  %v15031_v30 = vld [vmem:[#allocation49_spill] sm:$0xff] }
 0xad1   : > { %v14106_v47 = vpop.f32.mrf.mxu1  ;;  %v7486_v40 = vpop.f32.mrf.mxu0 }
 0xad2   : > { %v7448_v42 = vpop.f32.mrf.mxu3  ;;  %v7487_v6 = vadd.f32 %v7486_v40, %v7446_v18 }
 0xad3   : > { %v7449_v60 = vadd.f32 %v7448_v42, %v7408_v62 }
 0xad4   : > { %v7410_v43 = vpop.f32.mrf.mxu2 }
 0xad5   : > { %v7411_v32 = vadd.f32 %v7410_v43, %v7370_v13  ;;  %v14138_v43 = vadd.f32 %v14048_v1, %v15030_v2 }
 0xad9   : > { %v7527_v37 = vpop.f32.mrf.mxu1  ;;  %v7489_v31 = vpop.f32.mrf.mxu0 }
 0xada   : > { %v7451_v41 = vpop.f32.mrf.mxu3  ;;  %v7528_v8 = vadd.f32 %v7527_v37, %v7487_v6  ;;  %v7490_v20 = vadd.f32 %v7489_v31, %v7449_v60 }
 0xadb   : > { %v7452_v21 = vadd.f32 %v7451_v41, %v7411_v32 }
 0xadc   : > { %v7413_v57 = vpop.f32.mrf.mxu2 }
 0xadd   : > { %v7414_v18 = vadd.f32 %v7413_v57, %v7373_v53 }
 0xae1   : > { %v7530_v10 = vpop.f32.mrf.mxu1  ;;  %v7492_v46 = vpop.f32.mrf.mxu0 }
 0xae2   : > { %v7454_v56 = vpop.f32.mrf.mxu3  ;;  %v7531_v42 = vadd.f32 %v7530_v10, %v7490_v20  ;;  %v7493_v49 = vadd.f32 %v7492_v46, %v7452_v21  ;;  %v7335_v10 = vadd.f32 %v14086_v45, %v14113_v14  ;;  %v7338_v20 = vadd.f32 %v14090_v12, %v14113_v14  ;;  %v15034_v21 = vld [vmem:[#allocation52_spill] sm:$0xff] }
 0xae3   : > { %v7455_v6 = vadd.f32 %v7454_v56, %v7414_v18  ;;  %v15033_v56 = vld [vmem:[#allocation51_spill] sm:$0xff] }
 0xae4   : > { %v14096_v4 = vpop.f32.mrf.mxu2  ;;  %v7376_v60 = vadd.f32 %v14088_v54, %v7335_v10 }
 0xae6   : > { %v7417_v45 = vadd.f32 %v14096_v4, %v7376_v60 }
 0xae9   : > { %v7533_v25 = vpop.f32.mrf.mxu1  ;;  %v7495_v34 = vpop.f32.mrf.mxu0 }
 0xaea   : > { %v14102_v52 = vpop.f32.mrf.mxu3  ;;  %v7496_v1 = vadd.f32 %v7495_v34, %v7455_v6  ;;  %v7341_v34 = vadd.f32 %v14094_v19, %v14113_v14  ;;  %v7344_v6 = vadd.f32 %v14100_v28, %v14113_v14  ;;  %v15039_v14 = vld [vmem:[#allocation57_spill] sm:$0xff] }
 0xaec   : > { %v14104_v5 = vpop.f32.mrf.mxu2 }
 0xaf1   : > { %v7536_v41 = vpop.f32.mrf.mxu1  ;;  %v7498_v46 = vpop.f32.mrf.mxu0 }
 0xaf2   : > { %v14108_v48 = vpop.f32.mrf.mxu3 }
 0xaf4   : > { %v14115_v29 = vpop.f32.mrf.mxu2 }
 0xafa   : > { %v14118_v35 = vpop.f32.mrf.mxu3 }
 0xafc   : > { %v14120_v39 = vpop.f32.mrf.mxu2 }
 0xb02   : > { %v14123_v50 = vpop.f32.mrf.mxu3 }
 0xb04   : > { %v7568_v16 = vpop.f32.mrf.mxu2 }
 0xb05   : > { %v7569_v26 = vadd.f32 %v7568_v16, %v7528_v8  ;;  %v7534_v16 = vadd.f32 %v7533_v25, %v7493_v49  ;;  %v7539_v25 = vpop.f32.mrf.mxu1 }
 0xb0a   : > { %v7609_v33 = vpop.f32.mrf.mxu3 }
 0xb0b   : > { %v7610_v11 = vadd.f32 %v7609_v33, %v7569_v26  ;;  %v15032_v26 = vld [vmem:[#allocation50_spill] sm:$0xff] }
 0xb0c   : > { %v7571_v24 = vpop.f32.mrf.mxu2  ;;  %v14150_v33 = vadd.f32 %v14053_v17, %v15032_v26  ;;  %v7379_v17 = vadd.f32 %v14092_v58, %v7338_v20 }
 0xb0d   : > { %v14131_v38 = vadd.f32 %v7610_v11, %v15029_v0  ;;  %v7572_v63 = vadd.f32 %v7571_v24, %v7531_v42  ;;  %v7458_v11 = vadd.f32 %v14102_v52, %v7417_v45  ;;  %v7537_v24 = vadd.f32 %v7536_v41, %v7496_v1  ;;  %v15035_v52 = vld [vmem:[#allocation53_spill] sm:$0xff] }
 0xb0e   : > { %v14164_v42 = vadd.f32 %v14058_v7, %v15034_v21  ;;  %v7420_v12 = vadd.f32 %v14104_v5, %v7379_v17 }
 0xb0f   : > { %v7651_v40 = vadd.f32 %v14131_v38, %v14128_v51  ;;  %v7499_v0 = vadd.f32 %v7498_v46, %v7458_v11  ;;  %v15038_v46 = vld [vmem:[#allocation56_spill] sm:$0xff] }
 0xb10   : > { %v14192_v26 = vadd.f32 %v14072_v23, %v15038_v46 }
 0xb11   : > { %7652 = vadd.xlane.f32.xlu0 %v7651_v40  ;;  %v7540_v53 = vadd.f32 %v7539_v25, %v7499_v0 }
 0xb12   : > { %v7612_v37 = vpop.f32.mrf.mxu3 }
 0xb13   : > { %v7613_v31 = vadd.f32 %v7612_v37, %v7572_v63  ;;  %v7501_v63 = vpop.f32.mrf.mxu0  ;;  %v7461_v37 = vadd.f32 %v14108_v48, %v7420_v12  ;;  %v15037_v48 = vld [vmem:[#allocation55_spill] sm:$0xff] }
 0xb14   : > { %v7574_v61 = vpop.f32.mrf.mxu2 }
 0xb15   : > { %v14141_v55 = vadd.f32 %v7613_v31, %v15031_v30  ;;  %v7575_v62 = vadd.f32 %v7574_v61, %v7534_v16  ;;  %v7542_v31 = vpop.f32.mrf.mxu1  ;;  %v7382_v61 = vadd.f32 %v14098_v36, %v7341_v34  ;;  %v7502_v5 = vadd.f32 %v7501_v63, %v7461_v37  ;;  %v15036_v30 = vld [vmem:[#allocation54_spill] sm:$0xff]  ;;  %v15043_v34 = vld [vmem:[#allocation61_spill] sm:$0xff] }
 0xb16   : > { %v14178_v41 = vadd.f32 %v14067_v15, %v15036_v30  ;;  %v7385_v15 = vadd.f32 %v14106_v47, %v7344_v6 }
 0xb17   : > { %v7654_v27 = vadd.f32 %v14141_v55, %v14138_v43  ;;  %v7423_v19 = vadd.f32 %v14115_v29, %v7382_v61 }
 0xb18   : > { %v7426_v28 = vadd.f32 %v14120_v39, %v7385_v15  ;;  %v15041_v39 = vld [vmem:[#allocation59_spill] sm:$0xff] }
 0xb19   : > { %7655 = vadd.xlane.f32.xlu1 %v7654_v27  ;;  %v7464_v16 = vadd.f32 %v14118_v35, %v7423_v19  ;;  %v7543_v27 = vadd.f32 %v7542_v31, %v7502_v5 }
 0xb1a   : > { %v7615_v3 = vpop.f32.mrf.mxu3  ;;  %v7467_v45 = vadd.f32 %v14123_v50, %v7426_v28 }
 0xb1b   : > { %v7616_v8 = vadd.f32 %v7615_v3, %v7575_v62  ;;  %v7504_v62 = vpop.f32.mrf.mxu0 }
 0xb1c   : > { %v7577_v57 = vpop.f32.mrf.mxu2  ;;  %v7505_v1 = vadd.f32 %v7504_v62, %v7464_v16 }
 0xb1d   : > { %v14154_v13 = vadd.f32 %v7616_v8, %v15033_v56  ;;  %v7578_v22 = vadd.f32 %v7577_v57, %v7537_v24  ;;  %v7545_v8 = vpop.f32.mrf.mxu1 }
 0xb1e   : > { %v7546_v56 = vadd.f32 %v7545_v8, %v7505_v1 }
 0xb1f   : > { %v7657_v54 = vadd.f32 %v14154_v13, %v14150_v33 }
 0xb21   : > { %7658 = vadd.xlane.f32.xlu2 %v7657_v54 }
 0xb22   : > { %v7618_v32 = vpop.f32.mrf.mxu3 }
 0xb23   : > { %v7619_v4 = vadd.f32 %v7618_v32, %v7578_v22  ;;  %v7507_v11 = vpop.f32.mrf.mxu0  ;;  %v15040_v22 = vld [vmem:[#allocation58_spill] sm:$0xff] }
 0xb24   : > { %v7580_v9 = vpop.f32.mrf.mxu2  ;;  %v7508_v54 = vadd.f32 %v7507_v11, %v7467_v45  ;;  %v14203_v23 = vadd.f32 %v14079_v59, %v15040_v22 }
 0xb25   : > { %v14168_v40 = vadd.f32 %v7619_v4, %v15035_v52  ;;  %v7581_v49 = vadd.f32 %v7580_v9, %v7540_v53  ;;  %v7548_v17 = vpop.f32.mrf.mxu1  ;;  %v15042_v52 = vld [vmem:[#allocation60_spill] sm:$0xff] }
 0xb26   : > { %v7549_v50 = vadd.f32 %v7548_v17, %v7508_v54  ;;  %v7647_v63 = vadd.f32 %v14084_v44, %v15042_v52 }
 0xb27   : > { %v7660_v58 = vadd.f32 %v14168_v40, %v14164_v42 }
 0xb29   : > { %7661 = vadd.xlane.f32.xlu0 %v7660_v58  ;;  %v15044_v58 = vld [vmem:[#allocation45_spill] sm:$0xff] }
 0xb2a   : > { %v7621_v7 = vpop.f32.mrf.mxu3 }
 0xb2b   : > { %v7622_v2 = vadd.f32 %v7621_v7, %v7581_v49 }
 0xb2c   : > { %v7583_v18 = vpop.f32.mrf.mxu2 }
 0xb2d   : > { %v14182_v10 = vadd.f32 %v7622_v2, %v15037_v48  ;;  %v7584_v3 = vadd.f32 %v7583_v18, %v7543_v27 }
 0xb2f   : > { %v7663_v36 = vadd.f32 %v14182_v10, %v14178_v41 }
 0xb31   : > { %7664 = vadd.xlane.f32.xlu1 %v7663_v36 }
 0xb32   : > { %v7624_v60 = vpop.f32.mrf.mxu3 }
 0xb33   : > { %v7625_v29 = vadd.f32 %v7624_v60, %v7584_v3 }
 0xb34   : > { %v7586_v57 = vpop.f32.mrf.mxu2 }
 0xb35   : > { %v14196_v35 = vadd.f32 %v7625_v29, %v15039_v14  ;;  %v7587_v47 = vadd.f32 %v7586_v57, %v7546_v56 }
 0xb37   : > { %v7666_v20 = vadd.f32 %v14196_v35, %v14192_v26 }
 0xb39   : > { %7667 = vadd.xlane.f32.xlu2 %v7666_v20 }
 0xb3a   : > { %v7627_v24 = vpop.f32.mrf.mxu3 }
 0xb3b   : > { %v7628_v25 = vadd.f32 %v7627_v24, %v7587_v47 }
 0xb3c   : > { %v7589_v0 = vpop.f32.mrf.mxu2 }
 0xb3d   : > { %v14206_v32 = vadd.f32 %v7628_v25, %v15041_v39  ;;  %v7590_v9 = vadd.f32 %v7589_v0, %v7549_v50 }
 0xb3f   : > { %v7669_v4 = vadd.f32 %v14206_v32, %v14203_v23 }
 0xb41   : > { %7670 = vadd.xlane.f32.xlu0 %v7669_v4 }
 0xb42   : > { %v7630_v21 = vpop.f32.mrf.mxu3 }
 0xb43   : > { %v7631_v12 = vadd.f32 %v7630_v21, %v7590_v9 }
 0xb45   : > { %v7648_v37 = vadd.f32 %v7631_v12, %v15043_v34 }
 0xb47   : > { %v7672_v59 = vadd.f32 %v7648_v37, %v7647_v63 }
 0xb49   : > { %7673 = vadd.xlane.f32.xlu1 %v7672_v59 }
 0xb84   : > { %v7653_v53 = vpop.xlane.xlu0 %7652 }
 0xb85   : > { %v7675_v49 = vmul.f32 %v7653_v53, %v15044_v58 }
 0xb87   : > { %v14215_v31 = vsub.f32 %v14128_v51, %v7675_v49  ;;  %v14218_v7 = vsub.f32 %v14131_v38, %v7675_v49 }
 0xb89   : > { %v7699_v61 = vmul.f32 %v14215_v31, %v14215_v31  ;;  %v7700_v5 = vmul.f32 %v14218_v7, %v14218_v7 }
 0xb8b   : > { %v7715_v44 = vadd.f32 %v7700_v5, %v7699_v61 }
 0xb8c   : > { %v7656_v2 = vpop.xlane.xlu1 %7655 }
 0xb8d   : > { %v7676_v18 = vmul.f32 %v7656_v2, %v15044_v58  ;;  %7716 = vadd.xlane.f32.xlu2 %v7715_v44  ;;  %v7649_v2 = vld [vmem:[#allocation25] sm:$0x3] }
 0xb8f   : > { %v14226_v30 = vsub.f32 %v14138_v43, %v7676_v18  ;;  %v14229_v51 = vsub.f32 %v14141_v55, %v7676_v18 }
 0xb91   : > { %v7701_v38 = vmul.f32 %v14226_v30, %v14226_v30  ;;  %v7702_v19 = vmul.f32 %v14229_v51, %v14229_v51 }
 0xb93   : > { %v7718_v48 = vadd.f32 %v7702_v19, %v7701_v38 }
 0xb94   : > { %v7659_v6 = vpop.xlane.xlu2 %7658 }
 0xb95   : > { %v7677_v16 = vmul.f32 %v7659_v6, %v15044_v58  ;;  %7719 = vadd.xlane.f32.xlu0 %v7718_v48  ;;  %v7650_v48 = vld [vmem:[%s15045_s28] sm:$0x3]  ;;  %s9139_s28 = scalar_lea.hbm %s15048_s7, 512 }
 0xb96   : > { %p9141_p10 = scmp.lt.s32.totalorder %s9139_s28, %s9135_s14 }
 0xb97   : > { %v14237_v27 = vsub.f32 %v14150_v33, %v7677_v16  ;;  %v14240_v43 = vsub.f32 %v14154_v13, %v7677_v16 }
 0xb98   : > { %p9142_p7 = por %p9141_p10, %p9140_p6 }
 0xb99   : > { %v7703_v55 = vmul.f32 %v14237_v27, %v14237_v27  ;;  %v7704_v36 = vmul.f32 %v14240_v43, %v14240_v43 }
 0xb9a   : > { %p9143_p11 = pnand %p9142_p7, %p9138_p0 }
 0xb9b   : > { %v7721_v62 = vadd.f32 %v7704_v36, %v7703_v55  ;;  %v14305_v55 = vperm.slane %v7649_v2, 0  ;;  %v14307_v36 = vperm.slane %v7649_v2, 1 }
 0xb9c   : > { %v7662_v3 = vpop.xlane.xlu0 %7661 }
 0xb9d   : > { %v7678_v60 = vmul.f32 %v7662_v3, %v15044_v58  ;;  %7722 = vadd.xlane.f32.xlu1 %v7721_v62 }
 0xb9f   : > { %v14248_v15 = vsub.f32 %v14164_v42, %v7678_v60  ;;  %v14251_v33 = vsub.f32 %v14168_v40, %v7678_v60  ;;  %v14309_v60 = vperm.slane %v7650_v48, 0 }
 0xba1   : > { %v7705_v13 = vmul.f32 %v14248_v15, %v14248_v15  ;;  %v7706_v1 = vmul.f32 %v14251_v33, %v14251_v33 }
 0xba3   : > { %v7724_v29 = vadd.f32 %v7706_v1, %v7705_v13  ;;  %v14311_v13 = vperm.slane %v7650_v48, 1 }
 0xba4   : > { %v7665_v8 = vpop.xlane.xlu1 %7664 }
 0xba5   : > { %v7679_v57 = vmul.f32 %v7665_v8, %v15044_v58  ;;  %7725 = vadd.xlane.f32.xlu2 %v7724_v29 }
 0xba7   : > { %v14259_v46 = vsub.f32 %v14178_v41, %v7679_v57  ;;  %v14262_v42 = vsub.f32 %v14182_v10, %v7679_v57 }
 0xba9   : > { %v7707_v40 = vmul.f32 %v14259_v46, %v14259_v46  ;;  %v7708_v28 = vmul.f32 %v14262_v42, %v14262_v42 }
 0xbab   : > { %v7727_v14 = vadd.f32 %v7708_v28, %v7707_v40 }
 0xbac   : > { %v7668_v45 = vpop.xlane.xlu2 %7667 }
 0xbad   : > { %v7680_v56 = vmul.f32 %v7668_v45, %v15044_v58  ;;  %7728 = vadd.xlane.f32.xlu0 %v7727_v14 }
 0xbaf   : > { %v14270_v20 = vsub.f32 %v14192_v26, %v7680_v56  ;;  %v14273_v41 = vsub.f32 %v14196_v35, %v7680_v56 }
 0xbb1   : > { %v7709_v10 = vmul.f32 %v14270_v20, %v14270_v20  ;;  %v7710_v47 = vmul.f32 %v14273_v41, %v14273_v41 }
 0xbb3   : > { %v7730_v11 = vadd.f32 %v7710_v47, %v7709_v10 }
 0xbb4   : > { %v7671_v24 = vpop.xlane.xlu0 %7670 }
 0xbb5   : > { %v7681_v54 = vmul.f32 %v7671_v24, %v15044_v58  ;;  %7731 = vadd.xlane.f32.xlu1 %v7730_v11 }
 0xbb7   : > { %v14281_v25 = vsub.f32 %v14203_v23, %v7681_v54  ;;  %v14284_v26 = vsub.f32 %v14206_v32, %v7681_v54 }
 0xbb9   : > { %v7711_v35 = vmul.f32 %v14281_v25, %v14281_v25  ;;  %v7712_v22 = vmul.f32 %v14284_v26, %v14284_v26 }
 0xbbb   : > { %v7733_v39 = vadd.f32 %v7712_v22, %v7711_v35 }
 0xbbc   : > { %v7674_v17 = vpop.xlane.xlu1 %7673 }
 0xbbd   : > { %v7682_v0 = vmul.f32 %v7674_v17, %v15044_v58  ;;  %7734 = vadd.xlane.f32.xlu2 %v7733_v39 }
 0xbbf   : > { %v14291_v50 = vsub.f32 %v7647_v63, %v7682_v0  ;;  %v14293_v4 = vsub.f32 %v7648_v37, %v7682_v0 }
 0xbc1   : > { %v7713_v23 = vmul.f32 %v14291_v50, %v14291_v50  ;;  %v7714_v32 = vmul.f32 %v14293_v4, %v14293_v4 }
 0xbc3   : > { %v7736_v9 = vadd.f32 %v7714_v32, %v7713_v23 }
 0xbc5   : > { %7737 = vadd.xlane.f32.xlu0 %v7736_v9 }
 0xc00   : > { %v7717_v21 = vpop.xlane.xlu2 %7716 }
 0xc01   : > { %v7739_v12 = vmul.f32 %v7717_v21, %v15044_v58 }
 0xc03   : > { %v7747_v52 = vadd.f32 1e-05, %v7739_v12 }
 0xc05   : > { %8693 = vrsqrt.f32 %v7747_v52  ;;  %vm7761_vm10 = vweird.f32 %v7747_v52 }
 0xc08   : > { %v7720_v34 = vpop.xlane.xlu0 %7719 }
 0xc09   : > { %v7740_v59 = vmul.f32 %v7720_v34, %v15044_v58 }
 0xc0b   : > { %v8694_v63 = vpop.eup %8693  ;;  %v7748_v53 = vadd.f32 1e-05, %v7740_v59 }
 0xc0c   : > { %v7756_v37 = vmul.f32 %v8694_v63, %v7747_v52  ;;  %vm7762_vm9 = vweird.f32 %v8694_v63 }
 0xc0d   : > { %8695 = vrsqrt.f32 %v7748_v53  ;;  %vm7763_vm11 = vmor %vm7761_vm10, %vm7762_vm9  ;;  %vm7771_vm13 = vweird.f32 %v7748_v53 }
 0xc0e   : > { %v7757_v49 = vmul.f32 %v8694_v63, %v7756_v37 }
 0xc10   : > { %v7758_v61 = vmul.f32 0.5, %v7757_v49  ;;  %v7723_v5 = vpop.xlane.xlu1 %7722 }
 0xc11   : > { %v7741_v44 = vmul.f32 %v7723_v5, %v15044_v58 }
 0xc12   : > { %v7759_v18 = vsub.f32 1.5, %v7758_v61 }
 0xc13   : > { %v8696_v38 = vpop.eup %8695  ;;  %v7749_v19 = vadd.f32 1e-05, %v7741_v44 }
 0xc14   : > { %v7760_v6 = vmul.f32 %v8694_v63, %v7759_v18  ;;  %v7766_v16 = vmul.f32 %v8696_v38, %v7748_v53  ;;  %vm7772_vm12 = vweird.f32 %v8696_v38 }
 0xc15   : > { %8697 = vrsqrt.f32 %v7749_v19  ;;  %vm7773_vm14 = vmor %vm7771_vm13, %vm7772_vm12  ;;  %vm7781_vm0 = vweird.f32 %v7749_v19 }
 0xc16   : > { %v7764_v62 = vsel %vm7763_vm11, %v8694_v63, %v7760_v6  ;;  %v7767_v3 = vmul.f32 %v8696_v38, %v7766_v16 }
 0xc17   : > { %v7835_v1 = vmul.f32 %v7764_v62, %v14215_v31  ;;  %v7836_v29 = vmul.f32 %v7764_v62, %v14218_v7 }
 0xc18   : > { %v7768_v8 = vmul.f32 0.5, %v7767_v3  ;;  %v7726_v57 = vpop.xlane.xlu2 %7725 }
 0xc19   : > { %v7856_v40 = vmul.f32 %v14305_v55, %v7835_v1  ;;  %v7857_v28 = vmul.f32 %v14307_v36, %v7836_v29  ;;  %v7742_v14 = vmul.f32 %v7726_v57, %v15044_v58 }
 0xc1a   : > { %v7769_v45 = vsub.f32 1.5, %v7768_v8 }
 0xc1b   : > { %v8698_v56 = vpop.eup %8697  ;;  %v7877_v10 = vadd.f32 %v14309_v60, %v7856_v40  ;;  %v7878_v47 = vadd.f32 %v14311_v13, %v7857_v28  ;;  %v7750_v31 = vadd.f32 1e-05, %v7742_v14 }
 0xc1c   : > { %v7770_v11 = vmul.f32 %v8696_v38, %v7769_v45  ;;  %v7776_v7 = vmul.f32 %v8698_v56, %v7749_v19  ;;  %vm7782_vm15 = vweird.f32 %v8698_v56 }
 0xc1d   : > { %7893 = vst [vmem:[%s9656_s27] sm:$0xff] %v7877_v10  ;;  %8699 = vrsqrt.f32 %v7750_v31  ;;  %vm7783_vm1 = vmor %vm7781_vm0, %vm7782_vm15  ;;  %vm7791_vm3 = vweird.f32 %v7750_v31 }
 0xc1e   : > { %7894 = vst [vmem:[%s9656_s27 + $0x8] sm:$0xff] %v7878_v47  ;;  %v7774_v24 = vsel %vm7773_vm14, %v8696_v38, %v7770_v11  ;;  %v7777_v54 = vmul.f32 %v8698_v56, %v7776_v7 }
 0xc1f   : > { %v7837_v35 = vmul.f32 %v7774_v24, %v14226_v30  ;;  %v7838_v22 = vmul.f32 %v7774_v24, %v14229_v51 }
 0xc20   : > { %v7778_v39 = vmul.f32 0.5, %v7777_v54  ;;  %v7729_v17 = vpop.xlane.xlu0 %7728 }
 0xc21   : > { %v7858_v0 = vmul.f32 %v14305_v55, %v7837_v35  ;;  %v7859_v23 = vmul.f32 %v14307_v36, %v7838_v22  ;;  %v7743_v32 = vmul.f32 %v7729_v17, %v15044_v58 }
 0xc22   : > { %v7779_v9 = vsub.f32 1.5, %v7778_v39 }
 0xc23   : > { %v8700_v21 = vpop.eup %8699  ;;  %v7879_v12 = vadd.f32 %v14309_v60, %v7858_v0  ;;  %v7880_v52 = vadd.f32 %v14311_v13, %v7859_v23  ;;  %v7751_v30 = vadd.f32 1e-05, %v7743_v32 }
 0xc24   : > { %v7780_v34 = vmul.f32 %v8698_v56, %v7779_v9  ;;  %v7786_v51 = vmul.f32 %v8700_v21, %v7750_v31  ;;  %vm7792_vm2 = vweird.f32 %v8700_v21 }
 0xc25   : > { %7895 = vst [vmem:[%s9656_s27 + $0x10] sm:$0xff] %v7879_v12  ;;  %8701 = vrsqrt.f32 %v7751_v30  ;;  %vm7793_vm4 = vmor %vm7791_vm3, %vm7792_vm2  ;;  %vm7801_vm6 = vweird.f32 %v7751_v30 }
 0xc26   : > { %7896 = vst [vmem:[%s9656_s27 + $0x18] sm:$0xff] %v7880_v52  ;;  %v7784_v59 = vsel %vm7783_vm1, %v8698_v56, %v7780_v34  ;;  %v7787_v63 = vmul.f32 %v8700_v21, %v7786_v51 }
 0xc27   : > { %v7839_v53 = vmul.f32 %v7784_v59, %v14237_v27  ;;  %v7840_v37 = vmul.f32 %v7784_v59, %v14240_v43 }
 0xc28   : > { %v7788_v49 = vmul.f32 0.5, %v7787_v63  ;;  %v7732_v61 = vpop.xlane.xlu1 %7731 }
 0xc29   : > { %v7860_v5 = vmul.f32 %v14305_v55, %v7839_v53  ;;  %v7861_v44 = vmul.f32 %v14307_v36, %v7840_v37  ;;  %v7744_v2 = vmul.f32 %v7732_v61, %v15044_v58 }
 0xc2a   : > { %v7789_v18 = vsub.f32 1.5, %v7788_v49 }
 0xc2b   : > { %v8702_v38 = vpop.eup %8701  ;;  %v7881_v19 = vadd.f32 %v14309_v60, %v7860_v5  ;;  %v7882_v48 = vadd.f32 %v14311_v13, %v7861_v44  ;;  %v7752_v27 = vadd.f32 1e-05, %v7744_v2 }
 0xc2c   : > { %v7790_v6 = vmul.f32 %v8700_v21, %v7789_v18  ;;  %v7796_v43 = vmul.f32 %v8702_v38, %v7751_v30  ;;  %vm7802_vm5 = vweird.f32 %v8702_v38 }
 0xc2d   : > { %7897 = vst [vmem:[%s9656_s27 + $0x20] sm:$0xff] %v7881_v19  ;;  %8703 = vrsqrt.f32 %v7752_v27  ;;  %vm7803_vm7 = vmor %vm7801_vm6, %vm7802_vm5  ;;  %vm7811_vm9 = vweird.f32 %v7752_v27 }
 0xc2e   : > { %7898 = vst [vmem:[%s9656_s27 + $0x28] sm:$0xff] %v7882_v48  ;;  %v7794_v16 = vsel %vm7793_vm4, %v8700_v21, %v7790_v6  ;;  %v7797_v62 = vmul.f32 %v8702_v38, %v7796_v43 }
 0xc2f   : > { %v7841_v3 = vmul.f32 %v7794_v16, %v14248_v15  ;;  %v7842_v1 = vmul.f32 %v7794_v16, %v14251_v33 }
 0xc30   : > { %v7798_v29 = vmul.f32 0.5, %v7797_v62  ;;  %v7735_v8 = vpop.xlane.xlu2 %7734 }
 0xc31   : > { %v7862_v57 = vmul.f32 %v14305_v55, %v7841_v3  ;;  %v7863_v40 = vmul.f32 %v14307_v36, %v7842_v1  ;;  %v7745_v28 = vmul.f32 %v7735_v8, %v15044_v58 }
 0xc32   : > { %v7799_v14 = vsub.f32 1.5, %v7798_v29 }
 0xc33   : > { %v8704_v45 = vpop.eup %8703  ;;  %v7883_v56 = vadd.f32 %v14309_v60, %v7862_v57  ;;  %v7884_v10 = vadd.f32 %v14311_v13, %v7863_v40  ;;  %v7753_v15 = vadd.f32 1e-05, %v7745_v28 }
 0xc34   : > { %v7800_v47 = vmul.f32 %v8702_v38, %v7799_v14  ;;  %v7806_v33 = vmul.f32 %v8704_v45, %v7752_v27  ;;  %vm7812_vm8 = vweird.f32 %v8704_v45 }
 0xc35   : > { %7899 = vst [vmem:[%s9656_s27 + $0x30] sm:$0xff] %v7883_v56  ;;  %8705 = vrsqrt.f32 %v7753_v15  ;;  %vm7813_vm10 = vmor %vm7811_vm9, %vm7812_vm8  ;;  %vm7821_vm12 = vweird.f32 %v7753_v15 }
 0xc36   : > { %7900 = vst [vmem:[%s9656_s27 + $0x38] sm:$0xff] %v7884_v10  ;;  %v7804_v31 = vsel %vm7803_vm7, %v8702_v38, %v7800_v47  ;;  %v7807_v11 = vmul.f32 %v8704_v45, %v7806_v33 }
 0xc37   : > { %v7843_v7 = vmul.f32 %v7804_v31, %v14259_v46  ;;  %v7844_v24 = vmul.f32 %v7804_v31, %v14262_v42 }
 0xc38   : > { %v7808_v54 = vmul.f32 0.5, %v7807_v11  ;;  %v7738_v35 = vpop.xlane.xlu0 %7737 }
 0xc39   : > { %v7864_v22 = vmul.f32 %v14305_v55, %v7843_v7  ;;  %v7865_v39 = vmul.f32 %v14307_v36, %v7844_v24  ;;  %v7746_v17 = vmul.f32 %v7738_v35, %v15044_v58 }
 0xc3a   : > { %v7809_v0 = vsub.f32 1.5, %v7808_v54 }
 0xc3b   : > { %v8706_v23 = vpop.eup %8705  ;;  %v7885_v32 = vadd.f32 %v14309_v60, %v7864_v22  ;;  %v7886_v9 = vadd.f32 %v14311_v13, %v7865_v39  ;;  %v7754_v46 = vadd.f32 1e-05, %v7746_v17 }
 0xc3c   : > { %v7810_v21 = vmul.f32 %v8704_v45, %v7809_v0  ;;  %v7816_v42 = vmul.f32 %v8706_v23, %v7753_v15  ;;  %vm7822_vm11 = vweird.f32 %v8706_v23 }
 0xc3d   : > { %7901 = vst [vmem:[%s9656_s27 + $0x40] sm:$0xff] %v7885_v32  ;;  %8707 = vrsqrt.f32 %v7754_v46  ;;  %vm7823_vm13 = vmor %vm7821_vm12, %vm7822_vm11  ;;  %vm7831_vm15 = vweird.f32 %v7754_v46 }
 0xc3e   : > { %7902 = vst [vmem:[%s9656_s27 + $0x48] sm:$0xff] %v7886_v9  ;;  %v7814_v12 = vsel %vm7813_vm10, %v8704_v45, %v7810_v21  ;;  %v7817_v52 = vmul.f32 %v8706_v23, %v7816_v42 }
 0xc3f   : > { %v7845_v58 = vmul.f32 %v7814_v12, %v14270_v20  ;;  %v7846_v30 = vmul.f32 %v7814_v12, %v14273_v41 }
 0xc40   : > { %v7818_v34 = vmul.f32 0.5, %v7817_v52 }
 0xc41   : > { %v7866_v51 = vmul.f32 %v14305_v55, %v7845_v58  ;;  %v7867_v59 = vmul.f32 %v14307_v36, %v7846_v30 }
 0xc42   : > { %v7819_v63 = vsub.f32 1.5, %v7818_v34 }
 0xc43   : > { %v8708_v53 = vpop.eup %8707  ;;  %v7887_v37 = vadd.f32 %v14309_v60, %v7866_v51  ;;  %v7888_v49 = vadd.f32 %v14311_v13, %v7867_v59 }
 0xc44   : > { %v7820_v61 = vmul.f32 %v8706_v23, %v7819_v63  ;;  %v7826_v5 = vmul.f32 %v8708_v53, %v7754_v46  ;;  %vm7832_vm14 = vweird.f32 %v8708_v53 }
 0xc45   : > { %7903 = vst [vmem:[%s9656_s27 + $0x50] sm:$0xff] %v7887_v37  ;;  %vm7833_vm0 = vmor %vm7831_vm15, %vm7832_vm14 }
 0xc46   : > { %7904 = vst [vmem:[%s9656_s27 + $0x58] sm:$0xff] %v7888_v49  ;;  %v7824_v20 = vsel %vm7823_vm13, %v8706_v23, %v7820_v61  ;;  %v7827_v41 = vmul.f32 %v8708_v53, %v7826_v5 }
 0xc47   : > { %v7847_v44 = vmul.f32 %v7824_v20, %v14281_v25  ;;  %v7848_v2 = vmul.f32 %v7824_v20, %v14284_v26 }
 0xc48   : > { %v7828_v18 = vmul.f32 0.5, %v7827_v41 }
 0xc49   : > { %v7868_v38 = vmul.f32 %v14305_v55, %v7847_v44  ;;  %v7869_v19 = vmul.f32 %v14307_v36, %v7848_v2 }
 0xc4a   : > { %v7829_v48 = vsub.f32 1.5, %v7828_v18 }
 0xc4b   : > { %v7889_v27 = vadd.f32 %v14309_v60, %v7868_v38  ;;  %v7890_v6 = vadd.f32 %v14311_v13, %v7869_v19 }
 0xc4c   : > { %v7830_v43 = vmul.f32 %v8708_v53, %v7829_v48 }
 0xc4d   : > { %7905 = vst [vmem:[%s9656_s27 + $0x60] sm:$0xff] %v7889_v27 }
 0xc4e   : > { %7906 = vst [vmem:[%s9656_s27 + $0x68] sm:$0xff] %v7890_v6  ;;  %v7834_v25 = vsel %vm7833_vm0, %v8708_v53, %v7830_v43 }
 0xc4f   : > { %v7849_v26 = vmul.f32 %v7834_v25, %v14291_v50  ;;  %v7850_v16 = vmul.f32 %v7834_v25, %v14293_v4 }
 0xc51   : > { %v7870_v62 = vmul.f32 %v14305_v55, %v7849_v26  ;;  %v7871_v3 = vmul.f32 %v14307_v36, %v7850_v16 }
 0xc53   : > { %v7891_v1 = vadd.f32 %v14309_v60, %v7870_v62  ;;  %v7892_v29 = vadd.f32 %v14311_v13, %v7871_v3 }
 0xc55   : > { %7907 = vst [vmem:[%s9656_s27 + $0x70] sm:$0xff] %v7891_v1 }
 0xc56   : > { %7908 = vst [vmem:[%s9656_s27 + $0x78] sm:$0xff] %v7892_v29 }
 0xc57   : > { %9146 = shalt.err (!%p9143_p11)
}
 0xc58   : > { %s9287_s13 = smov 256   ;;  %s9288_s27 = smov 16  }
 0xc59   : > { %8306 = dma.vmem_to_hbm [thread:$0]  (%p9556_p2), %s7926_s6, 2048, %s7928_s10, %s7910_s12, %s9287_s13, %s9287_s13, %s9288_s27  }
 0xc5a PF: > { %p8376_p12 = scmp.ge.s32.totalorder %s9269_s2, 2  ;;  %s7942_s5 = sand.u32 1, %s9241_s30  }
 0xc5b   : > { %s7943_s1 = scalar_lea.sflag [#allocation7], %s7942_s5 }
 0xc5c   : > { %p8350_p13 = pnand %p8376_p12, %p9562_p4 }
 0xc5e   : > { %p8351_p9 = pneg %p8350_p13 }
 0xc60   : > { %9224 = dma.done.wait (%p8351_p9), %s7943_s1, 2048  }
 0xc61   : > { %9226 = vsyncadd (%p8351_p9), %s7943_s1, 4294965248  ;;  %s42_s2 = sadd.s32 1, %s9269_s2   ;;  %s15049_s27 = sld [smem:[#allocation37_spill]] }
 0xc62   : > { %p39_p5 = scmp.ge.s32.totalorder %s42_s2, 6   ;;  %s15050_s28 = sld [smem:[#allocation38_spill]] }
 0xc63   : > { %s15051_s1 = sld [smem:[#allocation41_spill]]  ;;  %s15054_s29 = smov %s9586_s9 }
 0xc64   : > { %s15052_s21 = sld [smem:[#allocation43_spill]]  ;;  %s15055_s30 = smov %s9245_s0 }
 0xc65   : > { %s15053_s25 = sld [smem:[#allocation44_spill]]  ;;  %s15056_s0 = smov %s9249_s19 }
 0xc66   : > { %s15057_s19 = smov %s9570_s15  ;;  %s15058_s20 = smov %s9265_s22 }
 0xc67   :  { %41 = sbr.rel (!%p39_p5) target bundleno = 36 (0x24), region = 198 }
 0xc6b   : > { %s15059_s22 = smov %s15053_s25 }
 0xc6c   :  { %7949 = vsyncpa [#allocation6], 1 }
 0xc6d   :  { %7951 = vsyncpa [#allocation6 + $0x1], 1 }
 0xc6e   :  { %7952 = vsyncpa [#allocation9], 1 }
 0xc6f   :  { %7954 = vsyncpa [#allocation9 + $0x1], 1 }
 0xc70   :  { %7955 = vsyncpa [#allocation12], 1 }
 0xc71   :  { %7956 = vsyncpa [#allocation15], 1 }
 0xc72   :  { %7957 = vsyncpa [#allocation18], 1 }
 0xc73   :  { %7958 = vsyncpa [#allocation21], 1 }
 0xc74   :  { %7959 = vsyncpa [#allocation24], 1 }
 0xc75   :  { %7960 = vsyncpa [#allocation7], 1 }
 0xc76   :  { %7962 = vsyncpa [#allocation7 + $0x1], 1 }

</bundles_post_ra>
